<compile_context>
chip_gen: v7x
topology: tpu7x:2x2x1
jax: 0.10.0
libtpu: 0.0.40
codegen_flags: <defaults>
</compile_context>

<pallas_src>
import jax
import jax.numpy as jnp
from jax.experimental import pallas as pl
from jax.experimental.pallas import tpu as pltpu

# ----------------------------------------------------------------------------- math
_GELU_C = 0.7978845608028654   # sqrt(2/pi)
_GELU_K = 0.044715


def _gelu(x):
    # tanh-approximate GELU; tanh runs on the EUP slot, ~8 VALU ops per element.
    inner = _GELU_C * x * (1.0 + _GELU_K * x * x)
    return 0.5 * x * (1.0 + jnp.tanh(inner))


# --------------------------------------------------------------------------- kernel
def mlp_kernel(x_ref,
               w1, b1,
               w2c, b2c, s2, t2,
               w3c, b3c, s3, t3,
               w4, b4,
               w5, b5,
               w6, b6,
               o_ref):
    """Whole PortPredictor forward for one (TB, input_dim) batch tile -> (1, TB) row."""

    def dot_bf16(h, w_ref):
        # bf16 operands, f32 accumulation on the MXU.
        return jnp.dot(h.astype(jnp.bfloat16), w_ref[...],
                       preferred_element_type=jnp.float32)

    x = x_ref[...]

    # Linear(input_dim,512) + GELU   (BN1 folded into the next weights)
    h = _gelu(dot_bf16(x, w1) + b1[...])                                # (TB, 512)

    # ResidualBlock(512,1024): fused [main | shortcut] matmul
    z = dot_bf16(h, w2c) + b2c[...]                                     # (TB, 2048)
    h = _gelu(z[:, :1024]) * s2[...] + t2[...] + z[:, 1024:]            # (TB, 1024)

    # ResidualBlock(1024,512): fused [main | shortcut] matmul
    z = dot_bf16(h, w3c) + b3c[...]                                     # (TB, 1024)
    h = _gelu(z[:, :512]) * s3[...] + t3[...] + z[:, 512:]              # (TB, 512)

    # Linear(512,256) + GELU   (no fold needed)
    h = _gelu(dot_bf16(h, w4) + b4[...])                                # (TB, 256)
    # Linear(256,128) + GELU   (BN4 folded into w5/b5)
    h = _gelu(dot_bf16(h, w5) + b5[...])                                # (TB, 128)

    # Final Linear(128,1) (BN5 folded into w6/b6), emitted lane-dense as a (1, TB)
    # row: w6 (1,128) @ h.T (128,TB) on the MXU (transposed-RHS dot, f32 accumulate).
    h16 = h.astype(jnp.bfloat16)
    o_ref[...] = jnp.dot(w6[...], h16.T,
                         preferred_element_type=jnp.float32) + b6[...]  # (1, TB)


# --------------------------------------------------------------------------- wrapper
def _tpu_defaults():
    """(tile_b, vmem_limit_bytes) per TPU generation."""
    kind = ""
    try:
        kind = jax.devices()[0].device_kind.lower()
    except Exception:
        pass
    if ("v5" in kind) or ("v6" in kind):
        # 128 MiB VMEM/core: generous scoped limit.
        return 1024, 96 * 1024 * 1024
    # v7x (64 MiB VMEM per TensorCore) or unknown: stay conservative.
    return 1024, 56 * 1024 * 1024


def _round_up(n, m):
    return ((n + m - 1) // m) * m


def port_predictor_forward(x, params, tile_b=None, vmem_limit_bytes=None):
    B, input_dim = x.shape

    d_tile, d_vmem = _tpu_defaults()
    tile_b = tile_b or d_tile
    vmem_limit_bytes = vmem_limit_bytes or d_vmem

    # Tiling: big tiles amortize the ~0.35us/step pipeline overhead; even tile counts
    # keep the two v7x TensorCores balanced; TB is a multiple of 128 whenever the
    # output row is split across tiles (lane-aligned (1, TB) output blocks).
    if B <= tile_b:
        TB = max(8, _round_up(B, 8))
        num_tiles = 1
    else:
        num_tiles = pl.cdiv(B, tile_b)
        if num_tiles % 2:            # even tile count for v7x megacore load balance
            num_tiles += 1
        TB = _round_up(pl.cdiv(B, num_tiles), 128)
    B_pad = TB * num_tiles
    if B_pad != B:
        x = jnp.pad(x, ((0, B_pad - B), (0, 0)))

    def resident(p):
        # Full-array block, constant block index -> fetched once, stays in VMEM for
        # the whole grid; single-buffered (no point double-buffering a constant).
        return pl.BlockSpec(p.shape, lambda i: (0, 0), pipeline_mode=pl.Buffered(1))

    in_specs = ([pl.BlockSpec((TB, input_dim), lambda i: (i, 0))]
                + [resident(p) for p in params])
    # Lane-dense output: one (1, TB) row per grid step into a (1, B_pad) array.
    out_specs = pl.BlockSpec((1, TB), lambda i: (0, i))

    out = pl.pallas_call(
        mlp_kernel,
        out_shape=jax.ShapeDtypeStruct((1, B_pad), jnp.float32),
        grid=(num_tiles,),
        in_specs=in_specs,
        out_specs=out_specs,
        compiler_params=pltpu.CompilerParams(
            dimension_semantics=("parallel",),
            vmem_limit_bytes=vmem_limit_bytes,
        ),
    )(x, *params)
    return out[0, :B]   # matches torch .squeeze(-1)


# ------------------------------------------------------------------------ parameters
def _make_linear(key, din, dout):
    # Deterministic synthetic init (the PyTorch module uses orthogonal init; a scaled
    # normal + constant bias 0.1 preserves the forward-pass structure/semantics).
    w = jax.random.normal(key, (din, dout), dtype=jnp.float32) / jnp.sqrt(float(din))
    b = jnp.full((dout,), 0.1, dtype=jnp.float32)
    return w, b


def _bn_affine(dout, eps=1e-5):
    # Eval-mode BatchNorm1d at PyTorch init: y = y*scale + shift.
    gamma = jnp.ones((dout,), jnp.float32)
    beta = jnp.zeros((dout,), jnp.float32)
    mean = jnp.zeros((dout,), jnp.float32)
    var = jnp.ones((dout,), jnp.float32)
    scale = gamma / jnp.sqrt(var + eps)
    shift = beta - mean * scale
    return scale, shift


def init_params(key, input_dim):
    ks = jax.random.split(key, 8)

    w1, b1 = _make_linear(ks[0], input_dim, 512)
    s1, t1 = _bn_affine(512)

    # ResidualBlock(512, 1024)
    w2, b2 = _make_linear(ks[1], 512, 1024)
    s2, t2 = _bn_affine(1024)
    ws2, bs2 = _make_linear(ks[2], 512, 1024)
    ss2, ts2 = _bn_affine(1024)

    # ResidualBlock(1024, 512)
    w3, b3 = _make_linear(ks[3], 1024, 512)
    s3, t3 = _bn_affine(512)
    ws3, bs3 = _make_linear(ks[4], 1024, 512)
    ss3, ts3 = _bn_affine(512)

    w4, b4 = _make_linear(ks[5], 512, 256)
    s4, t4 = _bn_affine(256)

    w5, b5 = _make_linear(ks[6], 256, 128)
    s5, t5 = _bn_affine(128)

    w6, b6 = _make_linear(ks[7], 128, 1)

    # ---- exact eval-mode folds (module order: Linear -> GELU -> BN -> Dropout) ----
    # shortcut BN -> shortcut Linear (output side)
    ws2 = ws2 * ss2[None, :]
    bs2 = bs2 * ss2 + ts2
    ws3 = ws3 * ss3[None, :]
    bs3 = bs3 * ss3 + ts3
    # BN1 -> both matmuls of ResidualBlock(512, 1024) (input side)
    w2f = s1[:, None] * w2
    b2f = b2 + t1 @ w2
    ws2f = s1[:, None] * ws2
    bs2f = bs2 + t1 @ ws2
    # BN4 -> Linear(256, 128) (input side)
    w5f = s4[:, None] * w5
    b5f = b5 + t4 @ w5
    # BN5 -> Linear(128, 1) (input side)
    w6row = w6[:, 0] * s5                     # (128,)
    b6f = b6[0] + jnp.sum(t5 * w6[:, 0])

    # ---- fuse each residual block's main/shortcut matmuls (shared LHS) ----------
    w2c = jnp.concatenate([w2f, ws2f], axis=1)    # (512, 2048)
    b2c = jnp.concatenate([b2f, bs2f])            # (2048,)
    w3c = jnp.concatenate([w3, ws3], axis=1)      # (1024, 1024)
    b3c = jnp.concatenate([b3, bs3])              # (1024,)

    bf16 = lambda a: a.astype(jnp.bfloat16)                       # weights in HBM as bf16
    row = lambda a: a.reshape(1, -1).astype(jnp.float32)          # biases/affines in f32

    return (bf16(w1), row(b1),
            bf16(w2c), row(b2c), row(s2), row(t2),
            bf16(w3c), row(b3c), row(s3), row(t3),
            bf16(w4), row(b4),
            bf16(w5f), row(b5f),
            bf16(w6row.reshape(1, -1)),                            # (1, 128) bf16
            jnp.reshape(b6f, (1, 1)).astype(jnp.float32))


# ------------------------------------------------------------------------- reference
def reference_forward(x, params):
    """Pure-JAX reference with the same bf16-matmul policy but the exact erf GELU
    (torch nn.GELU() default) — validates the in-kernel tanh-GELU approximation."""
    (w1, b1, w2c, b2c, s2, t2, w3c, b3c, s3, t3,
     w4, b4, w5, b5, w6, b6) = params

    dot = lambda h, w: jnp.dot(h.astype(jnp.bfloat16), w,
                               preferred_element_type=jnp.float32)
    gelu = lambda v: jax.nn.gelu(v, approximate=False)

    h = gelu(dot(x, w1) + b1)
    z = dot(h, w2c) + b2c
    h = gelu(z[:, :1024]) * s2 + t2 + z[:, 1024:]
    z = dot(h, w3c) + b3c
    h = gelu(z[:, :512]) * s3 + t3 + z[:, 512:]
    h = gelu(dot(h, w4) + b4)
    h = gelu(dot(h, w5) + b5)
    return dot(h, w6.T)[:, 0] + b6[0, 0]


# ------------------------------------------------------------------------------ main
if __name__ == "__main__":
    key = jax.random.PRNGKey(0)
    kx, kp = jax.random.split(key)

    B, input_dim = 8, 32
    x = jax.random.normal(kx, (B, input_dim), dtype=jnp.float32)
    params = init_params(kp, input_dim)

    out = port_predictor_forward(x, params)
    out = jax.block_until_ready(out)

    assert out.shape == (B,), out.shape

    ref = reference_forward(x, params)
    # Tolerance covers the tanh-GELU approximation (|err| < 3e-3/activation) on top of
    # the shared bf16 matmul policy.
    if not jnp.allclose(out, ref, atol=3e-2, rtol=3e-2):
        raise AssertionError(f"mismatch: kernel={out}, ref={ref}")

    print("KERNEL_OK")
</pallas_src>

<mosaic_0001>
module attributes {stable_mosaic.version = 11 : i64} {
  func.func @mlp_kernel(%arg0: i32, %arg1: memref<8x32xf32, #tpu.memory_space<vmem>>, %arg2: memref<32x512xbf16, #tpu.memory_space<vmem>>, %arg3: memref<1x512xf32, #tpu.memory_space<vmem>>, %arg4: memref<512x2048xbf16, #tpu.memory_space<vmem>>, %arg5: memref<1x2048xf32, #tpu.memory_space<vmem>>, %arg6: memref<1x1024xf32, #tpu.memory_space<vmem>>, %arg7: memref<1x1024xf32, #tpu.memory_space<vmem>>, %arg8: memref<1024x1024xbf16, #tpu.memory_space<vmem>>, %arg9: memref<1x1024xf32, #tpu.memory_space<vmem>>, %arg10: memref<1x512xf32, #tpu.memory_space<vmem>>, %arg11: memref<1x512xf32, #tpu.memory_space<vmem>>, %arg12: memref<512x256xbf16, #tpu.memory_space<vmem>>, %arg13: memref<1x256xf32, #tpu.memory_space<vmem>>, %arg14: memref<256x128xbf16, #tpu.memory_space<vmem>>, %arg15: memref<1x128xf32, #tpu.memory_space<vmem>>, %arg16: memref<1x128xbf16, #tpu.memory_space<vmem>>, %arg17: memref<1x1xf32, #tpu.memory_space<vmem>>, %arg18: memref<1x8xf32, #tpu.memory_space<vmem>>) attributes {dimension_semantics = [#tpu.dimension_semantics<parallel>], iteration_bounds = array<i64: 1>, scalar_prefetch = 0 : i64, scratch_operands = 0 : i64, tpu.core_type = #tpu.core_type<tc>, window_params = [{transform_indices = @transform_0, window_bounds = array<i64: 8, 32>}, {pipeline_mode = #tpu.pipeline_mode<synchronous>, transform_indices = @transform_1, window_bounds = array<i64: 32, 512>}, {pipeline_mode = #tpu.pipeline_mode<synchronous>, transform_indices = @transform_2, window_bounds = array<i64: 1, 512>}, {pipeline_mode = #tpu.pipeline_mode<synchronous>, transform_indices = @transform_3, window_bounds = array<i64: 512, 2048>}, {pipeline_mode = #tpu.pipeline_mode<synchronous>, transform_indices = @transform_4, window_bounds = array<i64: 1, 2048>}, {pipeline_mode = #tpu.pipeline_mode<synchronous>, transform_indices = @transform_5, window_bounds = array<i64: 1, 1024>}, {pipeline_mode = #tpu.pipeline_mode<synchronous>, transform_indices = @transform_6, window_bounds = array<i64: 1, 1024>}, {pipeline_mode = #tpu.pipeline_mode<synchronous>, transform_indices = @transform_7, window_bounds = array<i64: 1024, 1024>}, {pipeline_mode = #tpu.pipeline_mode<synchronous>, transform_indices = @transform_8, window_bounds = array<i64: 1, 1024>}, {pipeline_mode = #tpu.pipeline_mode<synchronous>, transform_indices = @transform_9, window_bounds = array<i64: 1, 512>}, {pipeline_mode = #tpu.pipeline_mode<synchronous>, transform_indices = @transform_10, window_bounds = array<i64: 1, 512>}, {pipeline_mode = #tpu.pipeline_mode<synchronous>, transform_indices = @transform_11, window_bounds = array<i64: 512, 256>}, {pipeline_mode = #tpu.pipeline_mode<synchronous>, transform_indices = @transform_12, window_bounds = array<i64: 1, 256>}, {pipeline_mode = #tpu.pipeline_mode<synchronous>, transform_indices = @transform_13, window_bounds = array<i64: 256, 128>}, {pipeline_mode = #tpu.pipeline_mode<synchronous>, transform_indices = @transform_14, window_bounds = array<i64: 1, 128>}, {pipeline_mode = #tpu.pipeline_mode<synchronous>, transform_indices = @transform_15, window_bounds = array<i64: 1, 128>}, {pipeline_mode = #tpu.pipeline_mode<synchronous>, transform_indices = @transform_16, window_bounds = array<i64: 1, 1>}, {transform_indices = @transform_17, window_bounds = array<i64: 1, 8>}]} {
    %c0 = arith.constant 0 : index
    %c0_0 = arith.constant 0 : index
    %0 = vector.load %arg1[%c0, %c0_0] : memref<8x32xf32, #tpu.memory_space<vmem>>, vector<8x32xf32>
    %1 = arith.truncf %0 : vector<8x32xf32> to vector<8x32xbf16>
    %c0_1 = arith.constant 0 : index
    %c0_2 = arith.constant 0 : index
    %2 = vector.load %arg2[%c0_1, %c0_2] : memref<32x512xbf16, #tpu.memory_space<vmem>>, vector<32x512xbf16>
    %cst = arith.constant dense<0.000000e+00> : vector<8x512xf32>
    %3 = tpu.matmul %1, %2, %cst {dimension_numbers = #tpu.dot_dimension_numbers<[1], [0], [0], [1], [0, 0, 1, 1], [], []>} : vector<8x32xbf16>, vector<32x512xbf16>, vector<8x512xf32> -> vector<8x512xf32>
    %c0_3 = arith.constant 0 : index
    %c0_4 = arith.constant 0 : index
    %4 = vector.load %arg3[%c0_3, %c0_4] : memref<1x512xf32, #tpu.memory_space<vmem>>, vector<1x512xf32>
    %5 = vector.broadcast %4 : vector<1x512xf32> to vector<8x512xf32>
    %6 = arith.addf %3, %5 : vector<8x512xf32>
    %cst_5 = arith.constant 0.797884583 : f32
    %7 = vector.broadcast %cst_5 : f32 to vector<8x512xf32>
    %8 = arith.mulf %7, %6 : vector<8x512xf32>
    %cst_6 = arith.constant 4.471500e-02 : f32
    %9 = vector.broadcast %cst_6 : f32 to vector<8x512xf32>
    %10 = arith.mulf %9, %6 : vector<8x512xf32>
    %11 = arith.mulf %10, %6 : vector<8x512xf32>
    %cst_7 = arith.constant 1.000000e+00 : f32
    %12 = vector.broadcast %cst_7 : f32 to vector<8x512xf32>
    %13 = arith.addf %12, %11 : vector<8x512xf32>
    %14 = arith.mulf %8, %13 : vector<8x512xf32>
    %cst_8 = arith.constant 5.000000e-01 : f32
    %15 = vector.broadcast %cst_8 : f32 to vector<8x512xf32>
    %16 = arith.mulf %15, %6 : vector<8x512xf32>
    %17 = math.tanh %14 : vector<8x512xf32>
    %cst_9 = arith.constant 1.000000e+00 : f32
    %18 = vector.broadcast %cst_9 : f32 to vector<8x512xf32>
    %19 = arith.addf %18, %17 : vector<8x512xf32>
    %20 = arith.mulf %16, %19 : vector<8x512xf32>
    %21 = arith.truncf %20 : vector<8x512xf32> to vector<8x512xbf16>
    %c0_10 = arith.constant 0 : index
    %c0_11 = arith.constant 0 : index
    %22 = vector.load %arg4[%c0_10, %c0_11] : memref<512x2048xbf16, #tpu.memory_space<vmem>>, vector<512x2048xbf16>
    %cst_12 = arith.constant dense<0.000000e+00> : vector<8x2048xf32>
    %23 = tpu.matmul %21, %22, %cst_12 {dimension_numbers = #tpu.dot_dimension_numbers<[1], [0], [0], [1], [0, 0, 1, 1], [], []>} : vector<8x512xbf16>, vector<512x2048xbf16>, vector<8x2048xf32> -> vector<8x2048xf32>
    %c0_13 = arith.constant 0 : index
    %c0_14 = arith.constant 0 : index
    %24 = vector.load %arg5[%c0_13, %c0_14] : memref<1x2048xf32, #tpu.memory_space<vmem>>, vector<1x2048xf32>
    %25 = vector.broadcast %24 : vector<1x2048xf32> to vector<8x2048xf32>
    %26 = arith.addf %23, %25 : vector<8x2048xf32>
    %27 = vector.extract_strided_slice %26 {offsets = [0, 0], sizes = [8, 1024], strides = [1, 1]} : vector<8x2048xf32> to vector<8x1024xf32>
    %cst_15 = arith.constant 0.797884583 : f32
    %28 = vector.broadcast %cst_15 : f32 to vector<8x1024xf32>
    %29 = arith.mulf %28, %27 : vector<8x1024xf32>
    %cst_16 = arith.constant 4.471500e-02 : f32
    %30 = vector.broadcast %cst_16 : f32 to vector<8x1024xf32>
    %31 = arith.mulf %30, %27 : vector<8x1024xf32>
    %32 = arith.mulf %31, %27 : vector<8x1024xf32>
    %cst_17 = arith.constant 1.000000e+00 : f32
    %33 = vector.broadcast %cst_17 : f32 to vector<8x1024xf32>
    %34 = arith.addf %33, %32 : vector<8x1024xf32>
    %35 = arith.mulf %29, %34 : vector<8x1024xf32>
    %cst_18 = arith.constant 5.000000e-01 : f32
    %36 = vector.broadcast %cst_18 : f32 to vector<8x1024xf32>
    %37 = arith.mulf %36, %27 : vector<8x1024xf32>
    %38 = math.tanh %35 : vector<8x1024xf32>
    %cst_19 = arith.constant 1.000000e+00 : f32
    %39 = vector.broadcast %cst_19 : f32 to vector<8x1024xf32>
    %40 = arith.addf %39, %38 : vector<8x1024xf32>
    %41 = arith.mulf %37, %40 : vector<8x1024xf32>
    %c0_20 = arith.constant 0 : index
    %c0_21 = arith.constant 0 : index
    %42 = vector.load %arg6[%c0_20, %c0_21] : memref<1x1024xf32, #tpu.memory_space<vmem>>, vector<1x1024xf32>
    %43 = vector.broadcast %42 : vector<1x1024xf32> to vector<8x1024xf32>
    %44 = arith.mulf %41, %43 : vector<8x1024xf32>
    %c0_22 = arith.constant 0 : index
    %c0_23 = arith.constant 0 : index
    %45 = vector.load %arg7[%c0_22, %c0_23] : memref<1x1024xf32, #tpu.memory_space<vmem>>, vector<1x1024xf32>
    %46 = vector.broadcast %45 : vector<1x1024xf32> to vector<8x1024xf32>
    %47 = arith.addf %44, %46 : vector<8x1024xf32>
    %48 = vector.extract_strided_slice %26 {offsets = [0, 1024], sizes = [8, 1024], strides = [1, 1]} : vector<8x2048xf32> to vector<8x1024xf32>
    %49 = arith.addf %47, %48 : vector<8x1024xf32>
    %50 = arith.truncf %49 : vector<8x1024xf32> to vector<8x1024xbf16>
    %c0_24 = arith.constant 0 : index
    %c0_25 = arith.constant 0 : index
    %51 = vector.load %arg8[%c0_24, %c0_25] : memref<1024x1024xbf16, #tpu.memory_space<vmem>>, vector<1024x1024xbf16>
    %cst_26 = arith.constant dense<0.000000e+00> : vector<8x1024xf32>
    %52 = tpu.matmul %50, %51, %cst_26 {dimension_numbers = #tpu.dot_dimension_numbers<[1], [0], [0], [1], [0, 0, 1, 1], [], []>} : vector<8x1024xbf16>, vector<1024x1024xbf16>, vector<8x1024xf32> -> vector<8x1024xf32>
    %c0_27 = arith.constant 0 : index
    %c0_28 = arith.constant 0 : index
    %53 = vector.load %arg9[%c0_27, %c0_28] : memref<1x1024xf32, #tpu.memory_space<vmem>>, vector<1x1024xf32>
    %54 = vector.broadcast %53 : vector<1x1024xf32> to vector<8x1024xf32>
    %55 = arith.addf %52, %54 : vector<8x1024xf32>
    %56 = vector.extract_strided_slice %55 {offsets = [0, 0], sizes = [8, 512], strides = [1, 1]} : vector<8x1024xf32> to vector<8x512xf32>
    %cst_29 = arith.constant 0.797884583 : f32
    %57 = vector.broadcast %cst_29 : f32 to vector<8x512xf32>
    %58 = arith.mulf %57, %56 : vector<8x512xf32>
    %cst_30 = arith.constant 4.471500e-02 : f32
    %59 = vector.broadcast %cst_30 : f32 to vector<8x512xf32>
    %60 = arith.mulf %59, %56 : vector<8x512xf32>
    %61 = arith.mulf %60, %56 : vector<8x512xf32>
    %cst_31 = arith.constant 1.000000e+00 : f32
    %62 = vector.broadcast %cst_31 : f32 to vector<8x512xf32>
    %63 = arith.addf %62, %61 : vector<8x512xf32>
    %64 = arith.mulf %58, %63 : vector<8x512xf32>
    %cst_32 = arith.constant 5.000000e-01 : f32
    %65 = vector.broadcast %cst_32 : f32 to vector<8x512xf32>
    %66 = arith.mulf %65, %56 : vector<8x512xf32>
    %67 = math.tanh %64 : vector<8x512xf32>
    %cst_33 = arith.constant 1.000000e+00 : f32
    %68 = vector.broadcast %cst_33 : f32 to vector<8x512xf32>
    %69 = arith.addf %68, %67 : vector<8x512xf32>
    %70 = arith.mulf %66, %69 : vector<8x512xf32>
    %c0_34 = arith.constant 0 : index
    %c0_35 = arith.constant 0 : index
    %71 = vector.load %arg10[%c0_34, %c0_35] : memref<1x512xf32, #tpu.memory_space<vmem>>, vector<1x512xf32>
    %72 = vector.broadcast %71 : vector<1x512xf32> to vector<8x512xf32>
    %73 = arith.mulf %70, %72 : vector<8x512xf32>
    %c0_36 = arith.constant 0 : index
    %c0_37 = arith.constant 0 : index
    %74 = vector.load %arg11[%c0_36, %c0_37] : memref<1x512xf32, #tpu.memory_space<vmem>>, vector<1x512xf32>
    %75 = vector.broadcast %74 : vector<1x512xf32> to vector<8x512xf32>
    %76 = arith.addf %73, %75 : vector<8x512xf32>
    %77 = vector.extract_strided_slice %55 {offsets = [0, 512], sizes = [8, 512], strides = [1, 1]} : vector<8x1024xf32> to vector<8x512xf32>
    %78 = arith.addf %76, %77 : vector<8x512xf32>
    %79 = arith.truncf %78 : vector<8x512xf32> to vector<8x512xbf16>
    %c0_38 = arith.constant 0 : index
    %c0_39 = arith.constant 0 : index
    %80 = vector.load %arg12[%c0_38, %c0_39] : memref<512x256xbf16, #tpu.memory_space<vmem>>, vector<512x256xbf16>
    %cst_40 = arith.constant dense<0.000000e+00> : vector<8x256xf32>
    %81 = tpu.matmul %79, %80, %cst_40 {dimension_numbers = #tpu.dot_dimension_numbers<[1], [0], [0], [1], [0, 0, 1, 1], [], []>} : vector<8x512xbf16>, vector<512x256xbf16>, vector<8x256xf32> -> vector<8x256xf32>
    %c0_41 = arith.constant 0 : index
    %c0_42 = arith.constant 0 : index
    %82 = vector.load %arg13[%c0_41, %c0_42] : memref<1x256xf32, #tpu.memory_space<vmem>>, vector<1x256xf32>
    %83 = vector.broadcast %82 : vector<1x256xf32> to vector<8x256xf32>
    %84 = arith.addf %81, %83 : vector<8x256xf32>
    %cst_43 = arith.constant 0.797884583 : f32
    %85 = vector.broadcast %cst_43 : f32 to vector<8x256xf32>
    %86 = arith.mulf %85, %84 : vector<8x256xf32>
    %cst_44 = arith.constant 4.471500e-02 : f32
    %87 = vector.broadcast %cst_44 : f32 to vector<8x256xf32>
    %88 = arith.mulf %87, %84 : vector<8x256xf32>
    %89 = arith.mulf %88, %84 : vector<8x256xf32>
    %cst_45 = arith.constant 1.000000e+00 : f32
    %90 = vector.broadcast %cst_45 : f32 to vector<8x256xf32>
    %91 = arith.addf %90, %89 : vector<8x256xf32>
    %92 = arith.mulf %86, %91 : vector<8x256xf32>
    %cst_46 = arith.constant 5.000000e-01 : f32
    %93 = vector.broadcast %cst_46 : f32 to vector<8x256xf32>
    %94 = arith.mulf %93, %84 : vector<8x256xf32>
    %95 = math.tanh %92 : vector<8x256xf32>
    %cst_47 = arith.constant 1.000000e+00 : f32
    %96 = vector.broadcast %cst_47 : f32 to vector<8x256xf32>
    %97 = arith.addf %96, %95 : vector<8x256xf32>
    %98 = arith.mulf %94, %97 : vector<8x256xf32>
    %99 = arith.truncf %98 : vector<8x256xf32> to vector<8x256xbf16>
    %c0_48 = arith.constant 0 : index
    %c0_49 = arith.constant 0 : index
    %100 = vector.load %arg14[%c0_48, %c0_49] : memref<256x128xbf16, #tpu.memory_space<vmem>>, vector<256x128xbf16>
    %cst_50 = arith.constant dense<0.000000e+00> : vector<8x128xf32>
    %101 = tpu.matmul %99, %100, %cst_50 {dimension_numbers = #tpu.dot_dimension_numbers<[1], [0], [0], [1], [0, 0, 1, 1], [], []>} : vector<8x256xbf16>, vector<256x128xbf16>, vector<8x128xf32> -> vector<8x128xf32>
    %c0_51 = arith.constant 0 : index
    %c0_52 = arith.constant 0 : index
    %102 = vector.load %arg15[%c0_51, %c0_52] : memref<1x128xf32, #tpu.memory_space<vmem>>, vector<1x128xf32>
    %103 = vector.broadcast %102 : vector<1x128xf32> to vector<8x128xf32>
    %104 = arith.addf %101, %103 : vector<8x128xf32>
    %cst_53 = arith.constant 0.797884583 : f32
    %105 = vector.broadcast %cst_53 : f32 to vector<8x128xf32>
    %106 = arith.mulf %105, %104 : vector<8x128xf32>
    %cst_54 = arith.constant 4.471500e-02 : f32
    %107 = vector.broadcast %cst_54 : f32 to vector<8x128xf32>
    %108 = arith.mulf %107, %104 : vector<8x128xf32>
    %109 = arith.mulf %108, %104 : vector<8x128xf32>
    %cst_55 = arith.constant 1.000000e+00 : f32
    %110 = vector.broadcast %cst_55 : f32 to vector<8x128xf32>
    %111 = arith.addf %110, %109 : vector<8x128xf32>
    %112 = arith.mulf %106, %111 : vector<8x128xf32>
    %cst_56 = arith.constant 5.000000e-01 : f32
    %113 = vector.broadcast %cst_56 : f32 to vector<8x128xf32>
    %114 = arith.mulf %113, %104 : vector<8x128xf32>
    %115 = math.tanh %112 : vector<8x128xf32>
    %cst_57 = arith.constant 1.000000e+00 : f32
    %116 = vector.broadcast %cst_57 : f32 to vector<8x128xf32>
    %117 = arith.addf %116, %115 : vector<8x128xf32>
    %118 = arith.mulf %114, %117 : vector<8x128xf32>
    %119 = arith.truncf %118 : vector<8x128xf32> to vector<8x128xbf16>
    %c0_58 = arith.constant 0 : index
    %c0_59 = arith.constant 0 : index
    %120 = vector.load %arg16[%c0_58, %c0_59] : memref<1x128xbf16, #tpu.memory_space<vmem>>, vector<1x128xbf16>
    %121 = tpu.transpose %119, [1, 0] : vector<8x128xbf16> -> vector<128x8xbf16>
    %cst_60 = arith.constant dense<0.000000e+00> : vector<1x8xf32>
    %122 = tpu.matmul %120, %121, %cst_60 {dimension_numbers = #tpu.dot_dimension_numbers<[1], [0], [0], [1], [0, 0, 1, 1], [], []>} : vector<1x128xbf16>, vector<128x8xbf16>, vector<1x8xf32> -> vector<1x8xf32>
    %c0_61 = arith.constant 0 : index
    %c0_62 = arith.constant 0 : index
    %123 = vector.load %arg17[%c0_61, %c0_62] : memref<1x1xf32, #tpu.memory_space<vmem>>, vector<1x1xf32>
    %124 = vector.broadcast %123 : vector<1x1xf32> to vector<1x8xf32>
    %125 = arith.addf %122, %124 : vector<1x8xf32>
    %c0_63 = arith.constant 0 : index
    %c0_64 = arith.constant 0 : index
    %126 = vector.load %arg18[%c0_63, %c0_64] : memref<1x8xf32, #tpu.memory_space<vmem>>, vector<1x8xf32>
    tpu.vector_store %arg18[%c0_63, %c0_64], %125 {strides = array<i32>} : memref<1x8xf32, #tpu.memory_space<vmem>>, vector<1x8xf32>,
    return
  }
  func.func @transform_0(%arg0: i32) -> (i32, i32) {
    %c0_i32 = arith.constant 0 : i32
    %c0_i32_0 = arith.constant 0 : i32
    return %arg0, %c0_i32 : i32, i32
  }
  func.func @transform_1(%arg0: i32) -> (i32, i32) {
    %c0_i32 = arith.constant 0 : i32
    %c0_i32_0 = arith.constant 0 : i32
    %c0_i32_1 = arith.constant 0 : i32
    return %c0_i32, %c0_i32_0 : i32, i32
  }
  func.func @transform_2(%arg0: i32) -> (i32, i32) {
    %c0_i32 = arith.constant 0 : i32
    %c0_i32_0 = arith.constant 0 : i32
    %c0_i32_1 = arith.constant 0 : i32
    return %c0_i32, %c0_i32_0 : i32, i32
  }
  func.func @transform_3(%arg0: i32) -> (i32, i32) {
    %c0_i32 = arith.constant 0 : i32
    %c0_i32_0 = arith.constant 0 : i32
    %c0_i32_1 = arith.constant 0 : i32
    return %c0_i32, %c0_i32_0 : i32, i32
  }
  func.func @transform_4(%arg0: i32) -> (i32, i32) {
    %c0_i32 = arith.constant 0 : i32
    %c0_i32_0 = arith.constant 0 : i32
    %c0_i32_1 = arith.constant 0 : i32
    return %c0_i32, %c0_i32_0 : i32, i32
  }
  func.func @transform_5(%arg0: i32) -> (i32, i32) {
    %c0_i32 = arith.constant 0 : i32
    %c0_i32_0 = arith.constant 0 : i32
    %c0_i32_1 = arith.constant 0 : i32
    return %c0_i32, %c0_i32_0 : i32, i32
  }
  func.func @transform_6(%arg0: i32) -> (i32, i32) {
    %c0_i32 = arith.constant 0 : i32
    %c0_i32_0 = arith.constant 0 : i32
    %c0_i32_1 = arith.constant 0 : i32
    return %c0_i32, %c0_i32_0 : i32, i32
  }
  func.func @transform_7(%arg0: i32) -> (i32, i32) {
    %c0_i32 = arith.constant 0 : i32
    %c0_i32_0 = arith.constant 0 : i32
    %c0_i32_1 = arith.constant 0 : i32
    return %c0_i32, %c0_i32_0 : i32, i32
  }
  func.func @transform_8(%arg0: i32) -> (i32, i32) {
    %c0_i32 = arith.constant 0 : i32
    %c0_i32_0 = arith.constant 0 : i32
    %c0_i32_1 = arith.constant 0 : i32
    return %c0_i32, %c0_i32_0 : i32, i32
  }
  func.func @transform_9(%arg0: i32) -> (i32, i32) {
    %c0_i32 = arith.constant 0 : i32
    %c0_i32_0 = arith.constant 0 : i32
    %c0_i32_1 = arith.constant 0 : i32
    return %c0_i32, %c0_i32_0 : i32, i32
  }
  func.func @transform_10(%arg0: i32) -> (i32, i32) {
    %c0_i32 = arith.constant 0 : i32
    %c0_i32_0 = arith.constant 0 : i32
    %c0_i32_1 = arith.constant 0 : i32
    return %c0_i32, %c0_i32_0 : i32, i32
  }
  func.func @transform_11(%arg0: i32) -> (i32, i32) {
    %c0_i32 = arith.constant 0 : i32
    %c0_i32_0 = arith.constant 0 : i32
    %c0_i32_1 = arith.constant 0 : i32
    return %c0_i32, %c0_i32_0 : i32, i32
  }
  func.func @transform_12(%arg0: i32) -> (i32, i32) {
    %c0_i32 = arith.constant 0 : i32
    %c0_i32_0 = arith.constant 0 : i32
    %c0_i32_1 = arith.constant 0 : i32
    return %c0_i32, %c0_i32_0 : i32, i32
  }
  func.func @transform_13(%arg0: i32) -> (i32, i32) {
    %c0_i32 = arith.constant 0 : i32
    %c0_i32_0 = arith.constant 0 : i32
    %c0_i32_1 = arith.constant 0 : i32
    return %c0_i32, %c0_i32_0 : i32, i32
  }
  func.func @transform_14(%arg0: i32) -> (i32, i32) {
    %c0_i32 = arith.constant 0 : i32
    %c0_i32_0 = arith.constant 0 : i32
    %c0_i32_1 = arith.constant 0 : i32
    return %c0_i32, %c0_i32_0 : i32, i32
  }
  func.func @transform_15(%arg0: i32) -> (i32, i32) {
    %c0_i32 = arith.constant 0 : i32
    %c0_i32_0 = arith.constant 0 : i32
    %c0_i32_1 = arith.constant 0 : i32
    return %c0_i32, %c0_i32_0 : i32, i32
  }
  func.func @transform_16(%arg0: i32) -> (i32, i32) {
    %c0_i32 = arith.constant 0 : i32
    %c0_i32_0 = arith.constant 0 : i32
    %c0_i32_1 = arith.constant 0 : i32
    return %c0_i32, %c0_i32_0 : i32, i32
  }
  func.func @transform_17(%arg0: i32) -> (i32, i32) {
    %c0_i32 = arith.constant 0 : i32
    %c0_i32_0 = arith.constant 0 : i32
    return %c0_i32, %arg0 : i32, i32
  }
}

</mosaic_0001>

<bundles_post_ra>
// kernel: tpu_custom_call.1
= control target key start
LH: loop header
LB: loop body
LE: loop exit
PB: predicated region body
PF: predicated region fallthrough
CT: control target
= control target key end

     0   :  { %s11587_s0 = inlined_call_operand.hbm [shape: f32[8,32], index: 0, kind: input, shape index: {}]   ;;  %s11588_s1 = inlined_call_operand.hbm [shape: bf16[32,512], index: 1, kind: input, shape index: {}]   ;;  %s11589_s2 = inlined_call_operand.hbm [shape: f32[1,512], index: 2, kind: input, shape index: {}]   ;;  %s11590_s3 = inlined_call_operand.hbm [shape: bf16[512,2048], index: 3, kind: input, shape index: {}]   ;;  %s11591_s4 = inlined_call_operand.hbm [shape: f32[1,2048], index: 4, kind: input, shape index: {}]   ;;  %s11592_s5 = inlined_call_operand.hbm [shape: f32[1,1024], index: 5, kind: input, shape index: {}]   ;;  %s11593_s6 = inlined_call_operand.hbm [shape: f32[1,1024], index: 6, kind: input, shape index: {}]   ;;  %s11594_s7 = inlined_call_operand.hbm [shape: bf16[1024,1024], index: 7, kind: input, shape index: {}]   ;;  %s11595_s8 = inlined_call_operand.hbm [shape: f32[1,1024], index: 8, kind: input, shape index: {}]   ;;  %s11596_s9 = inlined_call_operand.hbm [shape: f32[1,512], index: 9, kind: input, shape index: {}]   ;;  %s11597_s10 = inlined_call_operand.hbm [shape: f32[1,512], index: 10, kind: input, shape index: {}]   ;;  %s11598_s11 = inlined_call_operand.hbm [shape: bf16[512,256], index: 11, kind: input, shape index: {}]   ;;  %s11599_s12 = inlined_call_operand.hbm [shape: f32[1,256], index: 12, kind: input, shape index: {}]   ;;  %s11600_s13 = inlined_call_operand.hbm [shape: bf16[256,128], index: 13, kind: input, shape index: {}]   ;;  %s11601_s14 = inlined_call_operand.hbm [shape: f32[1,128], index: 14, kind: input, shape index: {}]   ;;  %s11602_s15 = inlined_call_operand.hbm [shape: bf16[1,128], index: 15, kind: input, shape index: {}]   ;;  %s11603_s16 = inlined_call_operand.<no memory space> [shape: f32[1,1], index: 16, kind: input, shape index: {}]   ;;  %s11604_s17 = inlined_call_operand.hbm [shape: f32[1,8], index: 17, kind: output, shape index: {}]  }
   0x1   :  { %11607 = sst [smem:[#allocation40_spill]] %s11587_s0  ;;  %v22_v0 = vstv %s11603_s16 }
   0x2   :  { %11608 = sst [smem:[#allocation41_spill]] %s11588_s1  ;;  %23 = vst [vmem:[#allocation2] sm:$0x1] %v22_v0 }
   0x3   :  { %24 = vsyncpa [#allocation4], 0 }
   0x4   :  { %25 = vsyncpa [#allocation7], 0 }
   0x5   :  { %26 = vsyncpa [#allocation10], 0 }
   0x6   :  { %27 = vsyncpa [#allocation13], 0 }
   0x7   :  { %28 = vsyncpa [#allocation16], 0 }
   0x8   :  { %29 = vsyncpa [#allocation19], 0 }
   0x9   :  { %30 = vsyncpa [#allocation22], 0 }
   0xa   :  { %31 = vsyncpa [#allocation25], 0 }
   0xb   :  { %32 = vsyncpa [#allocation28], 0 }
   0xc   :  { %33 = vsyncpa [#allocation5], 0  ;;  %s10869_s26 = smov [#allocation6]   ;;  %s11609_s0 = sld [smem:[#allocation41_spill]] }
   0xd   :  { %s49_s27 = sshll.u32 %s10869_s26, 4  ;;  %s50_s27 = int_to_ptr.vmem [resolvable:$true] %s49_s27 }
  0x12   :  { %s10475_s30 = scalar_lea.hbm %s11609_s0, 1024 }
  0x13   :  { %p10476_p0 = scmp.ne.s32.totalorder %s11609_s0, %s10475_s30  ;;  %p10479_p1 = scmp.lt.u32.totalorder %s10475_s30, %s11609_s0 }
  0x15   :  { %p10481_p2 = pnand %p10479_p1, %p10476_p0 }
  0x17   :  { %10484 = shalt.err (!%p10481_p2)
}
  0x18   :  { %s10485_s20 = scalar_lea.vmem %s50_s27, 1024  ;;  %p10490_p4 = scmp.lt.s32.totalorder %s50_s27, %s50_s27 }
  0x19   :  { %p10486_p3 = scmp.ne.s32.totalorder %s50_s27, %s10485_s20  ;;  %p10491_p5 = scmp.lt.s32.totalorder %s10485_s20, %s10485_s20 }
  0x1b   :  { %p10492_p6 = por %p10491_p5, %p10490_p4 }
  0x1d   :  { %p10493_p7 = pnand %p10492_p6, %p10486_p3 }
  0x1f   :  { %10496 = shalt.err (!%p10493_p7)
}
  0x20   :  { %s10870_s21 = smov 256   ;;  %s10871_s22 = smov 16  }
  0x21   :  { %55 = dma.hbm_to_vmem [thread:$0]  %s11609_s0, 1024, %s50_s27, [#allocation7], %s10870_s21, %s10870_s21, %s10871_s22  }
  0x22   :  { %s10872_s25 = smov [#allocation9]   ;;  %s10497_s30 = scalar_lea.hbm %s11590_s3, 65536 }
  0x23   :  { %s71_s26 = sshll.u32 %s10872_s25, 4  ;;  %p10498_p8 = scmp.ne.s32.totalorder %s11590_s3, %s10497_s30  ;;  %s72_s26 = int_to_ptr.vmem [resolvable:$true] %s71_s26 }
  0x24   :  { %p10501_p9 = scmp.lt.u32.totalorder %s10497_s30, %s11590_s3 }
  0x26   :  { %p10503_p10 = pnand %p10501_p9, %p10498_p8 }
  0x28   :  { %10506 = shalt.err (!%p10503_p10)
}
  0x29   :  { %s10507_s20 = scalar_lea.vmem %s72_s26, 65536  ;;  %p10512_p12 = scmp.lt.s32.totalorder %s72_s26, %s72_s26 }
  0x2a   :  { %p10508_p11 = scmp.ne.s32.totalorder %s72_s26, %s10507_s20  ;;  %p10513_p13 = scmp.lt.s32.totalorder %s10507_s20, %s10507_s20 }
  0x2c   :  { %p10514_p0 = por %p10513_p13, %p10512_p12 }
  0x2e   :  { %p10515_p1 = pnand %p10514_p0, %p10508_p11 }
  0x30   :  { %10518 = shalt.err (!%p10515_p1)
}
  0x31   :  { %s10873_s27 = smov 1024   ;;  %s10874_s0 = smov 64  }
  0x32   :  { %77 = dma.hbm_to_vmem [thread:$0]  %s11590_s3, 65536, %s72_s26, [#allocation10], %s10873_s27, %s10873_s27, %s10874_s0  }
  0x33   :  { %s10875_s23 = smov [#allocation12]   ;;  %s10876_s25 = smov [#allocation15]  }
  0x34   :  { %s94_s24 = sshll.u32 %s10875_s23, 4  ;;  %s113_s28 = sshll.u32 %s10876_s25, 4  ;;  %s95_s24 = int_to_ptr.vmem [resolvable:$true] %s94_s24  ;;  %s11016_s28 = int_to_ptr.vmem [resolvable:$true] %s113_s28 }
  0x35   :  { %s10519_s18 = scalar_lea.hbm %s11592_s5, 128 }
  0x36   :  { %p10520_p2 = scmp.ne.s32.totalorder %s11592_s5, %s10519_s18  ;;  %p10523_p3 = scmp.lt.u32.totalorder %s10519_s18, %s11592_s5 }
  0x38   :  { %p10525_p4 = pnand %p10523_p3, %p10520_p2 }
  0x3a   :  { %10528 = shalt.err (!%p10525_p4)
}
  0x3b   :  { %s10529_s3 = scalar_lea.vmem %s95_s24, 128  ;;  %p10534_p6 = scmp.lt.s32.totalorder %s95_s24, %s95_s24 }
  0x3c   :  { %p10530_p5 = scmp.ne.s32.totalorder %s95_s24, %s10529_s3  ;;  %p10535_p7 = scmp.lt.s32.totalorder %s10529_s3, %s10529_s3 }
  0x3e   :  { %p10536_p8 = por %p10535_p7, %p10534_p6 }
  0x40   :  { %p10537_p9 = pnand %p10536_p8, %p10530_p5 }
  0x42   :  { %10540 = shalt.err (!%p10537_p9)
}
  0x43   :  { %97 = dma.hbm_to_vmem [thread:$0]  %s11592_s5, 128, %s95_s24, [#allocation13]  }
  0x44   :  { %s10541_s23 = scalar_lea.hbm %s11594_s7, 65536 }
  0x45   :  { %p10542_p10 = scmp.ne.s32.totalorder %s11594_s7, %s10541_s23  ;;  %p10545_p11 = scmp.lt.u32.totalorder %s10541_s23, %s11594_s7 }
  0x47   :  { %p10547_p12 = pnand %p10545_p11, %p10542_p10 }
  0x49   :  { %10550 = shalt.err (!%p10547_p12)
}
  0x4a   :  { %s10551_s16 = scalar_lea.vmem %s11016_s28, 65536  ;;  %p10556_p0 = scmp.lt.s32.totalorder %s11016_s28, %s11016_s28 }
  0x4b   :  { %p10552_p13 = scmp.ne.s32.totalorder %s11016_s28, %s10551_s16  ;;  %p10557_p1 = scmp.lt.s32.totalorder %s10551_s16, %s10551_s16 }
  0x4d   :  { %p10558_p2 = por %p10557_p1, %p10556_p0 }
  0x4f   :  { %p10559_p3 = pnand %p10558_p2, %p10552_p13 }
  0x51   :  { %10562 = shalt.err (!%p10559_p3)
}
  0x52   :  { %s10877_s5 = smov 512   ;;  %s10878_s24 = smov 32  }
  0x53   :  { %119 = dma.hbm_to_vmem [thread:$0]  %s11594_s7, 65536, %s11016_s28, [#allocation16], %s10877_s5, %s10877_s5, %s10878_s24  }
  0x54   :  { %s10879_s20 = smov [#allocation18]   ;;  %s10880_s26 = smov [#allocation21]  }
  0x55   :  { %s136_s3 = sshll.u32 %s10879_s20, 4  ;;  %s155_s27 = sshll.u32 %s10880_s26, 4  ;;  %s137_s3 = int_to_ptr.vmem [resolvable:$true] %s136_s3  ;;  %s11047_s27 = int_to_ptr.vmem [resolvable:$true] %s155_s27 }
  0x56   :  { %s10563_s23 = scalar_lea.hbm %s11596_s9, 64 }
  0x57   :  { %p10564_p4 = scmp.ne.s32.totalorder %s11596_s9, %s10563_s23  ;;  %p10567_p5 = scmp.lt.u32.totalorder %s10563_s23, %s11596_s9 }
  0x59   :  { %p10569_p6 = pnand %p10567_p5, %p10564_p4 }
  0x5b   :  { %10572 = shalt.err (!%p10569_p6)
}
  0x5c   :  { %s10573_s7 = scalar_lea.vmem %s137_s3, 64  ;;  %p10578_p8 = scmp.lt.s32.totalorder %s137_s3, %s137_s3 }
  0x5d   :  { %p10574_p7 = scmp.ne.s32.totalorder %s137_s3, %s10573_s7  ;;  %p10579_p9 = scmp.lt.s32.totalorder %s10573_s7, %s10573_s7 }
  0x5f   :  { %p10580_p10 = por %p10579_p9, %p10578_p8 }
  0x61   :  { %p10581_p11 = pnand %p10580_p10, %p10574_p7 }
  0x63   :  { %10584 = shalt.err (!%p10581_p11)
}
  0x64   :  { %139 = dma.hbm_to_vmem [thread:$0]  %s11596_s9, 64, %s137_s3, [#allocation19]  }
  0x65   :  { %s10585_s19 = scalar_lea.hbm %s11598_s11, 8192 }
  0x66   :  { %p10586_p12 = scmp.ne.s32.totalorder %s11598_s11, %s10585_s19  ;;  %p10589_p13 = scmp.lt.u32.totalorder %s10585_s19, %s11598_s11 }
  0x68   :  { %p10591_p0 = pnand %p10589_p13, %p10586_p12 }
  0x6a   :  { %10594 = shalt.err (!%p10591_p0)
}
  0x6b   :  { %s10595_s22 = scalar_lea.vmem %s11047_s27, 8192  ;;  %p10600_p2 = scmp.lt.s32.totalorder %s11047_s27, %s11047_s27 }
  0x6c   :  { %p10596_p1 = scmp.ne.s32.totalorder %s11047_s27, %s10595_s22  ;;  %p10601_p3 = scmp.lt.s32.totalorder %s10595_s22, %s10595_s22 }
  0x6e   :  { %p10602_p4 = por %p10601_p3, %p10600_p2 }
  0x70   :  { %p10603_p5 = pnand %p10602_p4, %p10596_p1 }
  0x72   :  { %10606 = shalt.err (!%p10603_p5)
}
  0x73   :  { %s10881_s9 = smov 128   ;;  %s10882_s3 = smov 8  }
  0x74   :  { %161 = dma.hbm_to_vmem [thread:$0]  %s11598_s11, 8192, %s11047_s27, [#allocation22], %s10881_s9, %s10881_s9, %s10882_s3  }
  0x75   :  { %s10883_s29 = smov [#allocation24]   ;;  %s10884_s18 = smov [#allocation3]  }
  0x76   :  { %s177_s30 = sshll.u32 %s10883_s29, 4  ;;  %s40_s7 = sshll.u32 %s10884_s18, 4  ;;  %s178_s30 = int_to_ptr.vmem [resolvable:$true] %s177_s30  ;;  %s41_s7 = int_to_ptr.vmem [resolvable:$true] %s40_s7 }
  0x77   :  { %s10607_s5 = scalar_lea.hbm %s11600_s13, 2048 }
  0x78   :  { %p10608_p6 = scmp.ne.s32.totalorder %s11600_s13, %s10607_s5  ;;  %p10611_p7 = scmp.lt.u32.totalorder %s10607_s5, %s11600_s13 }
  0x7a   :  { %p10613_p8 = pnand %p10611_p7, %p10608_p6 }
  0x7c   :  { %10616 = shalt.err (!%p10613_p8)
}
  0x7d   :  { %s10617_s11 = scalar_lea.vmem %s178_s30, 2048  ;;  %p10622_p10 = scmp.lt.s32.totalorder %s178_s30, %s178_s30 }
  0x7e   :  { %p10618_p9 = scmp.ne.s32.totalorder %s178_s30, %s10617_s11  ;;  %p10623_p11 = scmp.lt.s32.totalorder %s10617_s11, %s10617_s11 }
  0x80   :  { %p10624_p12 = por %p10623_p11, %p10622_p10 }
  0x82   :  { %p10625_p13 = pnand %p10624_p12, %p10618_p9 }
  0x84   :  { %10628 = shalt.err (!%p10625_p13)
}
  0x85   :  { %s10885_s27 = smov 4   ;;  %s11610_s3 = sld [smem:[#allocation40_spill]] }
  0x86   :  { %183 = dma.hbm_to_vmem [thread:$0]  %s11600_s13, 2048, %s178_s30, [#allocation25], %s10874_s0, %s10874_s0, %s10885_s27  }
  0x8b   :  { %s10629_s23 = scalar_lea.hbm %s11610_s3, 128 }
  0x8c   :  { %p10630_p0 = scmp.ne.s32.totalorder %s11610_s3, %s10629_s23  ;;  %p10633_p1 = scmp.lt.u32.totalorder %s10629_s23, %s11610_s3 }
  0x8e   :  { %p10635_p2 = pnand %p10633_p1, %p10630_p0 }
  0x90   :  { %10638 = shalt.err (!%p10635_p2)
}
  0x91   :  { %s10639_s16 = scalar_lea.vmem %s41_s7, 128  ;;  %p10644_p4 = scmp.lt.s32.totalorder %s41_s7, %s41_s7 }
  0x92   :  { %p10640_p3 = scmp.ne.s32.totalorder %s41_s7, %s10639_s16  ;;  %p10645_p5 = scmp.lt.s32.totalorder %s10639_s16, %s10639_s16 }
  0x94   :  { %p10646_p6 = por %p10645_p5, %p10644_p4 }
  0x96   :  { %p10647_p7 = pnand %p10646_p6, %p10640_p3 }
  0x98   :  { %10650 = shalt.err (!%p10647_p7)
}
  0x99   :  { %43 = dma.hbm_to_vmem [thread:$0]  %s11610_s3, 128, %s41_s7, [#allocation4]  }
  0x9a   :  { %s10886_s30 = smov [#allocation8]   ;;  %s10887_s24 = smov [#allocation11]  }
  0x9b   :  { %s62_s5 = sshll.u32 %s10886_s30, 4  ;;  %s84_s19 = sshll.u32 %s10887_s24, 4  ;;  %s63_s5 = int_to_ptr.vmem [resolvable:$true] %s62_s5  ;;  %s85_s19 = int_to_ptr.vmem [resolvable:$true] %s84_s19 }
  0x9c   :  { %s10651_s11 = scalar_lea.hbm %s11589_s2, 64 }
  0x9d   :  { %p10652_p8 = scmp.ne.s32.totalorder %s11589_s2, %s10651_s11  ;;  %p10655_p9 = scmp.lt.u32.totalorder %s10651_s11, %s11589_s2 }
  0x9f   :  { %p10657_p10 = pnand %p10655_p9, %p10652_p8 }
  0xa1   :  { %10660 = shalt.err (!%p10657_p10)
}
  0xa2   :  { %s10661_s7 = scalar_lea.vmem %s63_s5, 64  ;;  %p10666_p12 = scmp.lt.s32.totalorder %s63_s5, %s63_s5 }
  0xa3   :  { %p10662_p11 = scmp.ne.s32.totalorder %s63_s5, %s10661_s7  ;;  %p10667_p13 = scmp.lt.s32.totalorder %s10661_s7, %s10661_s7 }
  0xa5   :  { %p10668_p0 = por %p10667_p13, %p10666_p12 }
  0xa7   :  { %p10669_p1 = pnand %p10668_p0, %p10662_p11 }
  0xa9   :  { %10672 = shalt.err (!%p10669_p1)
}
  0xaa   :  { %65 = dma.hbm_to_vmem [thread:$0]  %s11589_s2, 64, %s63_s5, [#allocation7]  }
  0xab   :  { %s10673_s29 = scalar_lea.hbm %s11591_s4, 256 }
  0xac   :  { %p10674_p2 = scmp.ne.s32.totalorder %s11591_s4, %s10673_s29  ;;  %p10677_p3 = scmp.lt.u32.totalorder %s10673_s29, %s11591_s4 }
  0xae   :  { %p10679_p4 = pnand %p10677_p3, %p10674_p2 }
  0xb0   :  { %10682 = shalt.err (!%p10679_p4)
}
  0xb1   :  { %s10683_s0 = scalar_lea.vmem %s85_s19, 256  ;;  %p10688_p6 = scmp.lt.s32.totalorder %s85_s19, %s85_s19 }
  0xb2   :  { %p10684_p5 = scmp.ne.s32.totalorder %s85_s19, %s10683_s0  ;;  %p10689_p7 = scmp.lt.s32.totalorder %s10683_s0, %s10683_s0 }
  0xb4   :  { %p10690_p8 = por %p10689_p7, %p10688_p6 }
  0xb6   :  { %p10691_p9 = pnand %p10690_p8, %p10684_p5 }
  0xb8   :  { %10694 = shalt.err (!%p10691_p9)
}
  0xb9   :  { %87 = dma.hbm_to_vmem [thread:$0]  %s11591_s4, 256, %s85_s19, [#allocation10]  }
  0xba   :  { %s10888_s5 = smov [#allocation14]   ;;  %s10889_s1 = smov [#allocation17]  }
  0xbb   :  { %s104_s24 = sshll.u32 %s10888_s5, 4  ;;  %s126_s20 = sshll.u32 %s10889_s1, 4  ;;  %s105_s24 = int_to_ptr.vmem [resolvable:$true] %s104_s24  ;;  %s127_s20 = int_to_ptr.vmem [resolvable:$true] %s126_s20 }
  0xbc   :  { %s10695_s26 = scalar_lea.hbm %s11593_s6, 128 }
  0xbd   :  { %p10696_p10 = scmp.ne.s32.totalorder %s11593_s6, %s10695_s26  ;;  %p10699_p11 = scmp.lt.u32.totalorder %s10695_s26, %s11593_s6 }
  0xbf   :  { %p10701_p12 = pnand %p10699_p11, %p10696_p10 }
  0xc1   :  { %10704 = shalt.err (!%p10701_p12)
}
  0xc2   :  { %s10705_s4 = scalar_lea.vmem %s105_s24, 128  ;;  %p10710_p0 = scmp.lt.s32.totalorder %s105_s24, %s105_s24 }
  0xc3   :  { %p10706_p13 = scmp.ne.s32.totalorder %s105_s24, %s10705_s4  ;;  %p10711_p1 = scmp.lt.s32.totalorder %s10705_s4, %s10705_s4 }
  0xc5   :  { %p10712_p2 = por %p10711_p1, %p10710_p0 }
  0xc7   :  { %p10713_p3 = pnand %p10712_p2, %p10706_p13 }
  0xc9   :  { %10716 = shalt.err (!%p10713_p3)
}
  0xca   :  { %107 = dma.hbm_to_vmem [thread:$0]  %s11593_s6, 128, %s105_s24, [#allocation13]  }
  0xcb   :  { %s10717_s29 = scalar_lea.hbm %s11595_s8, 128 }
  0xcc   :  { %p10718_p4 = scmp.ne.s32.totalorder %s11595_s8, %s10717_s29  ;;  %p10721_p5 = scmp.lt.u32.totalorder %s10717_s29, %s11595_s8 }
  0xce   :  { %p10723_p6 = pnand %p10721_p5, %p10718_p4 }
  0xd0   :  { %10726 = shalt.err (!%p10723_p6)
}
  0xd1   :  { %s10727_s0 = scalar_lea.vmem %s127_s20, 128  ;;  %p10732_p8 = scmp.lt.s32.totalorder %s127_s20, %s127_s20 }
  0xd2   :  { %p10728_p7 = scmp.ne.s32.totalorder %s127_s20, %s10727_s0  ;;  %p10733_p9 = scmp.lt.s32.totalorder %s10727_s0, %s10727_s0 }
  0xd4   :  { %p10734_p10 = por %p10733_p9, %p10732_p8 }
  0xd6   :  { %p10735_p11 = pnand %p10734_p10, %p10728_p7 }
  0xd8   :  { %10738 = shalt.err (!%p10735_p11)
}
  0xd9   :  { %129 = dma.hbm_to_vmem [thread:$0]  %s11595_s8, 128, %s127_s20, [#allocation16]  }
  0xda   :  { %s10890_s30 = smov [#allocation20]   ;;  %s10891_s24 = smov [#allocation23]  }
  0xdb   :  { %s146_s5 = sshll.u32 %s10890_s30, 4  ;;  %s168_s1 = sshll.u32 %s10891_s24, 4  ;;  %s147_s5 = int_to_ptr.vmem [resolvable:$true] %s146_s5  ;;  %s169_s1 = int_to_ptr.vmem [resolvable:$true] %s168_s1 }
  0xdc   :  { %s10739_s26 = scalar_lea.hbm %s11597_s10, 64 }
  0xdd   :  { %p10740_p12 = scmp.ne.s32.totalorder %s11597_s10, %s10739_s26  ;;  %p10743_p13 = scmp.lt.u32.totalorder %s10739_s26, %s11597_s10 }
  0xdf   :  { %p10745_p0 = pnand %p10743_p13, %p10740_p12 }
  0xe1   :  { %10748 = shalt.err (!%p10745_p0)
}
  0xe2   :  { %s10749_s8 = scalar_lea.vmem %s147_s5, 64  ;;  %p10754_p2 = scmp.lt.s32.totalorder %s147_s5, %s147_s5 }
  0xe3   :  { %p10750_p1 = scmp.ne.s32.totalorder %s147_s5, %s10749_s8  ;;  %p10755_p3 = scmp.lt.s32.totalorder %s10749_s8, %s10749_s8 }
  0xe5   :  { %p10756_p4 = por %p10755_p3, %p10754_p2 }
  0xe7   :  { %p10757_p5 = pnand %p10756_p4, %p10750_p1 }
  0xe9   :  { %10760 = shalt.err (!%p10757_p5)
}
  0xea   :  { %149 = dma.hbm_to_vmem [thread:$0]  %s11597_s10, 64, %s147_s5, [#allocation19]  }
  0xeb   :  { %s10761_s23 = scalar_lea.hbm %s11599_s12, 32 }
  0xec   :  { %p10762_p6 = scmp.ne.s32.totalorder %s11599_s12, %s10761_s23  ;;  %p10765_p7 = scmp.lt.u32.totalorder %s10761_s23, %s11599_s12 }
  0xee   :  { %p10767_p8 = pnand %p10765_p7, %p10762_p6 }
  0xf0   :  { %10770 = shalt.err (!%p10767_p8)
}
  0xf1   :  { %s10771_s16 = scalar_lea.vmem %s169_s1, 32  ;;  %p10776_p10 = scmp.lt.s32.totalorder %s169_s1, %s169_s1 }
  0xf2   :  { %p10772_p9 = scmp.ne.s32.totalorder %s169_s1, %s10771_s16  ;;  %p10777_p11 = scmp.lt.s32.totalorder %s10771_s16, %s10771_s16 }
  0xf4   :  { %p10778_p12 = por %p10777_p11, %p10776_p10 }
  0xf6   :  { %p10779_p13 = pnand %p10778_p12, %p10772_p9 }
  0xf8   :  { %10782 = shalt.err (!%p10779_p13)
}
  0xf9   :  { %171 = dma.hbm_to_vmem [thread:$0]  %s11599_s12, 32, %s169_s1, [#allocation22]  }
  0xfa   :  { %s10892_s0 = smov [#allocation26]   ;;  %s10893_s2 = smov [#allocation27]  }
  0xfb   :  { %s190_s6 = sshll.u32 %s10892_s0, 4  ;;  %s200_s30 = sshll.u32 %s10893_s2, 4  ;;  %s191_s6 = int_to_ptr.vmem [resolvable:$true] %s190_s6  ;;  %s201_s30 = int_to_ptr.vmem [resolvable:$true] %s200_s30 }
  0xfc   :  { %s10783_s11 = scalar_lea.hbm %s11601_s14, 16 }
  0xfd   :  { %p10784_p0 = scmp.ne.s32.totalorder %s11601_s14, %s10783_s11  ;;  %p10787_p1 = scmp.lt.u32.totalorder %s10783_s11, %s11601_s14 }
  0xff   :  { %p10789_p2 = pnand %p10787_p1, %p10784_p0 }
 0x101   :  { %10792 = shalt.err (!%p10789_p2)
}
 0x102   :  { %s10793_s12 = scalar_lea.vmem %s191_s6, 16  ;;  %s10797_s1 = scalar_lea.vmem %s191_s6, 32 }
 0x103   :  { %p10794_p3 = scmp.ne.s32.totalorder %s191_s6, %s10793_s12  ;;  %p10798_p4 = scmp.lt.s32.totalorder %s191_s6, %s191_s6 }
 0x104   :  { %p10799_p5 = scmp.lt.s32.totalorder %s10797_s1, %s10793_s12 }
 0x106   :  { %p10800_p6 = por %p10799_p5, %p10798_p4 }
 0x108   :  { %p10801_p7 = pnand %p10800_p6, %p10794_p3 }
 0x10a   :  { %10804 = shalt.err (!%p10801_p7)
}
 0x10b   :  { %193 = dma.hbm_to_vmem [thread:$0]  %s11601_s14, 16, %s191_s6, [#allocation25]  }
 0x10c   :  { %s10805_s4 = scalar_lea.hbm %s11602_s15, 16 }
 0x10d   :  { %p10806_p8 = scmp.ne.s32.totalorder %s11602_s15, %s10805_s4  ;;  %p10809_p9 = scmp.lt.u32.totalorder %s10805_s4, %s11602_s15 }
 0x10f   :  { %p10811_p10 = pnand %p10809_p9, %p10806_p8 }
 0x111   :  { %10814 = shalt.err (!%p10811_p10)
}
 0x112   :  { %s10815_s29 = scalar_lea.vmem %s201_s30, 16  ;;  %s10819_s18 = scalar_lea.vmem %s201_s30, 32 }
 0x113   :  { %p10816_p11 = scmp.ne.s32.totalorder %s201_s30, %s10815_s29  ;;  %p10820_p12 = scmp.lt.s32.totalorder %s201_s30, %s201_s30 }
 0x114   :  { %p10821_p13 = scmp.lt.s32.totalorder %s10819_s18, %s10815_s29 }
 0x116   :  { %p10822_p0 = por %p10821_p13, %p10820_p12 }
 0x118   :  { %p10823_p1 = pnand %p10822_p0, %p10816_p11 }
 0x11a   :  { %10826 = shalt.err (!%p10823_p1)
}
 0x11b   :  { %203 = dma.hbm_to_vmem [thread:$0]  %s11602_s15, 16, %s201_s30, [#allocation28]  }
 0x11c   :  { %10849 = dma.done.wait [#allocation4], 128  }
 0x11d   :  { %10850 = vsyncadd [#allocation4], 4294967168 }
 0x11e   :  { %10851 = dma.done.wait [#allocation7], 1088  }
 0x11f   :  { %10852 = vsyncadd [#allocation7], 4294966208 }
 0x120   :  { %10853 = dma.done.wait [#allocation10], 65792  }
 0x121   :  { %10854 = vsyncadd [#allocation10], 4294901504 }
 0x122   :  { %10855 = dma.done.wait [#allocation13], 256  }
 0x123   :  { %10856 = vsyncadd [#allocation13], 4294967040 }
 0x124   :  { %10857 = dma.done.wait [#allocation16], 65664  }
 0x125   :  { %10858 = vsyncadd [#allocation16], 4294901632 }
 0x126   :  { %10859 = dma.done.wait [#allocation19], 128  }
 0x127   :  { %10860 = vsyncadd [#allocation19], 4294967168 }
 0x128   :  { %10861 = dma.done.wait [#allocation22], 8224  }
 0x129   :  { %10862 = vsyncadd [#allocation22], 4294959072 }
 0x12a   :  { %10863 = dma.done.wait [#allocation25], 2064  }
 0x12b   :  { %10864 = vsyncadd [#allocation25], 4294965232 }
 0x12c   :  { %10865 = dma.done.wait [#allocation28], 16  }
 0x12d   :  { %10866 = vsyncadd [#allocation28], 4294967280  ;;  %v10894_v1 = vmov 0   ;;  %v10309_v2 = vld [vmem:[#allocation6 + $0x4] ss:$16 sps:$4 sm:$0xff]   ;;  %v255_v6 = vld [vmem:[#allocation3] sm:$0xff] }
 0x12e   :  { %363 = vmatprep.mubr.bf16.mxu0 %v10894_v1  ;;  %10308 = vset.pattern.permute.xlu0 %v10894_v1  ;;  %v10311_v3 = vld [vmem:[#allocation6] ss:$16 sps:$4 sm:$0xff]   ;;  %v10312_v4 = vld [vmem:[#allocation6 + $0x24] ss:$16 sps:$4 sm:$0xff]   ;;  %v10317_v7 = vld [vmem:[#allocation6 + $0xc] ss:$16 sps:$4 sm:$0xff]   ;;  %v256_v9 = vpack.c.bf16 %v255_v6, %v255_v6 }
 0x12f   :  { %331 = vmatprep.subr.bf16.mxu0 %v10309_v2  ;;  %v10314_v5 = vld [vmem:[#allocation6 + $0x20] ss:$16 sps:$4 sm:$0xff]   ;;  %v453_v8 = vld [vmem:[#allocation9] sm:$0xff]  ;;  %vm327_vm0 = vcmask 261120   ;;  %v10320_v16 = vld [vmem:[#allocation6 + $0x2c] ss:$16 sps:$4 sm:$0xff]  }
 0x130   :  { %332 = vmatpush1.bf16.msra.mxu0 %v10311_v3  ;;  %v461_v10 = vld [vmem:[#allocation9 + $0x40] sm:$0xff]  ;;  %vm10896_vm1 = vmmov 0   ;;  %s10897_s15 = smov [#allocation29]   ;;  %vm9053_vm2 = vcmask 57344  }
 0x131   :  { %333 = vmatprep.subr.bf16.mxu0 %v10312_v4  ;;  %v469_v11 = vld [vmem:[#allocation9 + $0x80] sm:$0xff]  ;;  %v9089_v14 = vcombine.high %v453_v8, %v461_v10  ;;  %v9088_v15 = vcombine.low %v453_v8, %v461_v10  ;;  %s9061_s16 = sshll.u32 %s10897_s15, 4  ;;  %s9062_s16 = int_to_ptr.vmem [resolvable:$true] %s9061_s16 }
 0x132   :  { %v477_v12 = vld [vmem:[#allocation9 + $0xc0] sm:$0xff]  ;;  %s10827_s10 = scalar_lea.vmem %s9062_s16, 16  ;;  %s10831_s13 = scalar_lea.vmem %s9062_s16, 32 }
 0x133   :  { %v10315_v13 = vld [vmem:[#allocation6 + $0x8] ss:$16 sps:$4 sm:$0xff]   ;;  %v9105_v17 = vcombine.high %v469_v11, %v477_v12  ;;  %3609 = vmatprep.subr.bf16.mxu1 %v9089_v14  ;;  %v9104_v22 = vcombine.low %v469_v11, %v477_v12  ;;  %p10828_p2 = scmp.ne.s32.totalorder %s9062_s16, %s10827_s10  ;;  %p10832_p3 = scmp.lt.s32.totalorder %s9062_s16, %s9062_s16 }
 0x134   :  { %334 = vmatpush1.bf16.msra.mxu0 %v10314_v5  ;;  %v485_v18 = vld [vmem:[#allocation9 + $0x100] sm:$0xff]  ;;  %3610 = vmatpush1.bf16.msra.mxu1 %v9088_v15  ;;  %p10833_p4 = scmp.lt.s32.totalorder %s10831_s13, %s10827_s10 }
 0x135   :  { %372 = vmatprep.subr.bf16.mxu0 %v10317_v7  ;;  %v493_v19 = vld [vmem:[#allocation9 + $0x140] sm:$0xff]  ;;  %3611 = vmatprep.subr.bf16.mxu1 %v9105_v17 }
 0x136   :  { %v709_v20 = vld [vmem:[#allocation9 + $0x800] sm:$0xff]  ;;  %v9121_v24 = vcombine.high %v485_v18, %v493_v19  ;;  %v9120_v30 = vcombine.low %v485_v18, %v493_v19  ;;  %p10834_p5 = por %p10833_p4, %p10832_p3 }
 0x137   :  { %v717_v21 = vld [vmem:[#allocation9 + $0x840] sm:$0xff]  ;;  %9086 = vmatmul.mubr.msk.bf16.vlgmr.msra.gmra.mrb[0].mxu0 %vm327_vm0, %v256_v9 }
 0x138   :  { %373 = vmatpush1.bf16.msra.mxu0 %v10315_v13  ;;  %v10318_v23 = vld [vmem:[#allocation6 + $0x28] ss:$16 sps:$4 sm:$0xff]   ;;  %404 = vmatprep.mubr.bf16.mxu0 %v10894_v1  ;;  %v9345_v25 = vcombine.high %v709_v20, %v717_v21  ;;  %v9344_v31 = vcombine.low %v709_v20, %v717_v21  ;;  %p10835_p6 = pnand %p10834_p5, %p10828_p2 }
 0x139   :  { %374 = vmatprep.subr.bf16.mxu0 %v10320_v16  ;;  %v501_v26 = vld [vmem:[#allocation9 + $0x180] sm:$0xff]  ;;  %3612 = vmatpush1.bf16.msra.mxu1 %v9104_v22 }
 0x13a   :  { %v509_v27 = vld [vmem:[#allocation9 + $0x1c0] sm:$0xff]  ;;  %3613 = vmatprep.subr.bf16.mxu1 %v9121_v24 }
 0x13b   :  { %v725_v28 = vld [vmem:[#allocation9 + $0x880] sm:$0xff]  ;;  %v9137_v32 = vcombine.high %v501_v26, %v509_v27  ;;  %v9136_v38 = vcombine.low %v501_v26, %v509_v27 }
 0x13c   :  { %v733_v29 = vld [vmem:[#allocation9 + $0x8c0] sm:$0xff]  ;;  %375 = vmatpush1.bf16.msra.mxu0 %v10318_v23 }
 0x13d   :  { %v517_v33 = vld [vmem:[#allocation9 + $0x200] sm:$0xff]  ;;  %3650 = vmatprep.subr.bf16.mxu0 %v9345_v25  ;;  %v9361_v35 = vcombine.high %v725_v28, %v733_v29  ;;  %3614 = vmatpush1.bf16.msra.mxu1 %v9120_v30  ;;  %v9360_v41 = vcombine.low %v725_v28, %v733_v29 }
 0x13e   :  { %v525_v34 = vld [vmem:[#allocation9 + $0x240] sm:$0xff]  ;;  %3615 = vmatprep.subr.bf16.mxu1 %v9137_v32 }
 0x13f   :  { %v741_v36 = vld [vmem:[#allocation9 + $0x900] sm:$0xff]  ;;  %9087 = vmatmul.mubr.msk.bf16.vlgmr.msra.gmra.mrb[4].mxu0 %vm327_vm0, %v256_v9  ;;  %v9153_v42 = vcombine.high %v517_v33, %v525_v34  ;;  %v9152_v46 = vcombine.low %v517_v33, %v525_v34 }
 0x140   :  { %v749_v37 = vld [vmem:[#allocation9 + $0x940] sm:$0xff]  ;;  %3651 = vmatpush1.bf16.msra.mxu0 %v9344_v31 }
 0x141   :  { %v533_v39 = vld [vmem:[#allocation9 + $0x280] sm:$0xff]  ;;  %3652 = vmatprep.subr.bf16.mxu0 %v9361_v35  ;;  %v9377_v45 = vcombine.high %v741_v36, %v749_v37  ;;  %3616 = vmatpush1.bf16.msra.mxu1 %v9136_v38  ;;  %v9376_v49 = vcombine.low %v741_v36, %v749_v37 }
 0x142   :  { %v541_v40 = vld [vmem:[#allocation9 + $0x2c0] sm:$0xff]  ;;  %3617 = vmatprep.subr.bf16.mxu1 %v9153_v42 }
 0x143   :  { %v757_v43 = vld [vmem:[#allocation9 + $0x980] sm:$0xff]  ;;  %v9169_v50 = vcombine.high %v533_v39, %v541_v40  ;;  %v9168_v54 = vcombine.low %v533_v39, %v541_v40 }
 0x144   :  { %v765_v44 = vld [vmem:[#allocation9 + $0x9c0] sm:$0xff]  ;;  %3653 = vmatpush1.bf16.msra.mxu0 %v9360_v41 }
 0x145   :  { %v549_v47 = vld [vmem:[#allocation9 + $0x300] sm:$0xff]  ;;  %3654 = vmatprep.subr.bf16.mxu0 %v9377_v45  ;;  %v9393_v53 = vcombine.high %v757_v43, %v765_v44  ;;  %3618 = vmatpush1.bf16.msra.mxu1 %v9152_v46  ;;  %v9392_v57 = vcombine.low %v757_v43, %v765_v44 }
 0x146   :  { %v557_v48 = vld [vmem:[#allocation9 + $0x340] sm:$0xff]  ;;  %3619 = vmatprep.subr.bf16.mxu1 %v9169_v50 }
 0x147   :  { %v773_v51 = vld [vmem:[#allocation9 + $0xa00] sm:$0xff]  ;;  %v9185_v58 = vcombine.high %v549_v47, %v557_v48  ;;  %v9184_v62 = vcombine.low %v549_v47, %v557_v48 }
 0x148   :  { %v781_v52 = vld [vmem:[#allocation9 + $0xa40] sm:$0xff]  ;;  %3655 = vmatpush1.bf16.msra.mxu0 %v9376_v49 }
 0x149   :  { %v565_v55 = vld [vmem:[#allocation9 + $0x380] sm:$0xff]  ;;  %3656 = vmatprep.subr.bf16.mxu0 %v9393_v53  ;;  %v9409_v61 = vcombine.high %v773_v51, %v781_v52  ;;  %3620 = vmatpush1.bf16.msra.mxu1 %v9168_v54  ;;  %v9408_v1 = vcombine.low %v773_v51, %v781_v52 }
 0x14a   :  { %v573_v56 = vld [vmem:[#allocation9 + $0x3c0] sm:$0xff]  ;;  %3621 = vmatprep.subr.bf16.mxu1 %v9185_v58 }
 0x14b   :  { %v789_v59 = vld [vmem:[#allocation9 + $0xa80] sm:$0xff]  ;;  %v9201_v2 = vcombine.high %v565_v55, %v573_v56  ;;  %v9200_v6 = vcombine.low %v565_v55, %v573_v56 }
 0x14c   :  { %v797_v60 = vld [vmem:[#allocation9 + $0xac0] sm:$0xff]  ;;  %3657 = vmatpush1.bf16.msra.mxu0 %v9392_v57 }
 0x14d   :  { %v581_v63 = vld [vmem:[#allocation9 + $0x400] sm:$0xff]  ;;  %3658 = vmatprep.subr.bf16.mxu0 %v9409_v61  ;;  %v9425_v5 = vcombine.high %v789_v59, %v797_v60  ;;  %3622 = vmatpush1.bf16.msra.mxu1 %v9184_v62  ;;  %v9424_v7 = vcombine.low %v789_v59, %v797_v60 }
 0x14e   :  { %v589_v0 = vld [vmem:[#allocation9 + $0x440] sm:$0xff]  ;;  %3623 = vmatprep.subr.bf16.mxu1 %v9201_v2 }
 0x14f   :  { %v805_v3 = vld [vmem:[#allocation9 + $0xb00] sm:$0xff]  ;;  %v9217_v8 = vcombine.high %v581_v63, %v589_v0  ;;  %v9216_v10 = vcombine.low %v581_v63, %v589_v0 }
 0x150   :  { %v813_v4 = vld [vmem:[#allocation9 + $0xb40] sm:$0xff]  ;;  %3659 = vmatpush1.bf16.msra.mxu0 %v9408_v1 }
 0x151   :  { %3660 = vmatprep.subr.bf16.mxu0 %v9425_v5  ;;  %v9441_v9 = vcombine.high %v805_v3, %v813_v4  ;;  %3624 = vmatpush1.bf16.msra.mxu1 %v9200_v6  ;;  %v9440_v11 = vcombine.low %v805_v3, %v813_v4  ;;  %v597_v12 = vld [vmem:[#allocation9 + $0x480] sm:$0xff]  ;;  %v11202_v6 = vld [vmem:[#allocation9 + $0x8] sm:$0xff] }
 0x152   :  { %3625 = vmatprep.subr.bf16.mxu1 %v9217_v8  ;;  %v605_v13 = vld [vmem:[#allocation9 + $0x4c0] sm:$0xff]  ;;  %v11204_v8 = vld [vmem:[#allocation9 + $0x48] sm:$0xff] }
 0x153   :  { %v821_v14 = vld [vmem:[#allocation9 + $0xb80] sm:$0xff]  ;;  %v9233_v15 = vcombine.high %v597_v12, %v605_v13  ;;  %v9232_v19 = vcombine.low %v597_v12, %v605_v13 }
 0x154   :  { %3661 = vmatpush1.bf16.msra.mxu0 %v9424_v7  ;;  %v829_v16 = vld [vmem:[#allocation9 + $0xbc0] sm:$0xff] }
 0x155   :  { %3662 = vmatprep.subr.bf16.mxu0 %v9441_v9  ;;  %3626 = vmatpush1.bf16.msra.mxu1 %v9216_v10  ;;  %v9456_v17 = vcombine.low %v821_v14, %v829_v16  ;;  %v9457_v18 = vcombine.high %v821_v14, %v829_v16  ;;  %v613_v20 = vld [vmem:[#allocation9 + $0x500] sm:$0xff]  ;;  %v9090_v10 = vcombine.low %v11202_v6, %v11204_v8  ;;  %v11210_v16 = vld [vmem:[#allocation9 + $0x10] sm:$0xff] }
 0x156   :  { %3627 = vmatprep.subr.bf16.mxu1 %v9233_v15  ;;  %v621_v21 = vld [vmem:[#allocation9 + $0x540] sm:$0xff] }
 0x157   :  { %v837_v22 = vld [vmem:[#allocation9 + $0xc00] sm:$0xff]  ;;  %v9249_v23 = vcombine.high %v613_v20, %v621_v21  ;;  %v9248_v27 = vcombine.low %v613_v20, %v621_v21  ;;  %v267_v20 = vlaneseq }
 0x158   :  { %3663 = vmatpush1.bf16.msra.mxu0 %v9440_v11  ;;  %v845_v24 = vld [vmem:[#allocation9 + $0xc40] sm:$0xff]  ;;  %v9091_v11 = vcombine.high %v11202_v6, %v11204_v8  ;;  %v518_v8 = vld [vmem:[#allocation9 + $0x208] sm:$0xff] }
 0x159   :  { %3664 = vmatprep.subr.bf16.mxu0 %v9457_v18  ;;  %3628 = vmatpush1.bf16.msra.mxu1 %v9232_v19  ;;  %v9472_v25 = vcombine.low %v837_v22, %v845_v24  ;;  %v9473_v26 = vcombine.high %v837_v22, %v845_v24  ;;  %v629_v28 = vld [vmem:[#allocation9 + $0x580] sm:$0xff]  ;;  %v11218_v21 = vshrl.u32 %v267_v20, 7 }
 0x15a   :  { %3629 = vmatprep.subr.bf16.mxu1 %v9249_v23  ;;  %v637_v29 = vld [vmem:[#allocation9 + $0x5c0] sm:$0xff]  ;;  %v265_v23 = vld [vmem:[#allocation8] sm:$0xf] }
 0x15b   :  { %v853_v30 = vld [vmem:[#allocation9 + $0xc80] sm:$0xff]  ;;  %v9265_v31 = vcombine.high %v629_v28, %v637_v29  ;;  %v9264_v35 = vcombine.low %v629_v28, %v637_v29  ;;  %v11221_v22 = vsub.s32 0, %v11218_v21  ;;  %v11224_v24 = vsub.s32 1, %v11218_v21 }
 0x15c   :  { %3665 = vmatpush1.bf16.msra.mxu0 %v9456_v17  ;;  %v861_v32 = vld [vmem:[#allocation9 + $0xcc0] sm:$0xff]  ;;  %v11212_v17 = vld [vmem:[#allocation9 + $0x50] sm:$0xff] }
 0x15d   :  { %3666 = vmatprep.subr.bf16.mxu0 %v9473_v26  ;;  %3630 = vmatpush1.bf16.msra.mxu1 %v9248_v27  ;;  %v9488_v33 = vcombine.low %v853_v30, %v861_v32  ;;  %v9489_v34 = vcombine.high %v853_v30, %v861_v32  ;;  %v645_v36 = vld [vmem:[#allocation9 + $0x600] sm:$0xff]  ;;  %v9092_v18 = vcombine.low %v11210_v16, %v11212_v17  ;;  %v11229_v30 = vsub.s32 2, %v11218_v21 }
 0x15e   :  { %3631 = vmatprep.subr.bf16.mxu1 %v9265_v31  ;;  %v653_v37 = vld [vmem:[#allocation9 + $0x640] sm:$0xff]  ;;  %v9093_v19 = vcombine.high %v11210_v16, %v11212_v17  ;;  %v274_v26 = vrot.slane %v265_v23, %v11224_v24 }
 0x15f   :  { %v869_v38 = vld [vmem:[#allocation9 + $0xd00] sm:$0xff]  ;;  %v9281_v39 = vcombine.high %v645_v36, %v653_v37  ;;  %v9280_v43 = vcombine.low %v645_v36, %v653_v37 }
 0x160   :  { %3667 = vmatpush1.bf16.msra.mxu0 %v9472_v25  ;;  %v877_v40 = vld [vmem:[#allocation9 + $0xd40] sm:$0xff]  ;;  %v270_v25 = vrot.slane %v265_v23, %v11221_v22 }
 0x161   :  { %3668 = vmatprep.subr.bf16.mxu0 %v9489_v34  ;;  %3632 = vmatpush1.bf16.msra.mxu1 %v9264_v35  ;;  %v9504_v41 = vcombine.low %v869_v38, %v877_v40  ;;  %v9505_v42 = vcombine.high %v869_v38, %v877_v40  ;;  %v661_v44 = vld [vmem:[#allocation9 + $0x680] sm:$0xff]  ;;  %v278_v38 = vrot.slane %v265_v23, %v11229_v30 }
 0x162   :  { %3633 = vmatprep.subr.bf16.mxu1 %v9281_v39  ;;  %v669_v45 = vld [vmem:[#allocation9 + $0x6c0] sm:$0xff] }
 0x163   :  { %v885_v46 = vld [vmem:[#allocation9 + $0xd80] sm:$0xff]  ;;  %v9297_v47 = vcombine.high %v661_v44, %v669_v45  ;;  %v9296_v51 = vcombine.low %v661_v44, %v669_v45 }
 0x164   :  { %3669 = vmatpush1.bf16.msra.mxu0 %v9488_v33  ;;  %v893_v48 = vld [vmem:[#allocation9 + $0xdc0] sm:$0xff]  ;;  %v11232_v33 = vsub.s32 3, %v11218_v21 }
 0x165   :  { %3670 = vmatprep.subr.bf16.mxu0 %v9505_v42  ;;  %3634 = vmatpush1.bf16.msra.mxu1 %v9280_v43  ;;  %v9520_v49 = vcombine.low %v885_v46, %v893_v48  ;;  %v9521_v50 = vcombine.high %v885_v46, %v893_v48  ;;  %v677_v52 = vld [vmem:[#allocation9 + $0x700] sm:$0xff] }
 0x166   :  { %3635 = vmatprep.subr.bf16.mxu1 %v9297_v47  ;;  %v685_v53 = vld [vmem:[#allocation9 + $0x740] sm:$0xff]  ;;  %v282_v40 = vrot.slane %v265_v23, %v11232_v33  ;;  %v486_v23 = vld [vmem:[#allocation9 + $0x108] sm:$0xff] }
 0x167   :  { %v901_v54 = vld [vmem:[#allocation9 + $0xe00] sm:$0xff]  ;;  %v9313_v55 = vcombine.high %v677_v52, %v685_v53  ;;  %v9312_v59 = vcombine.low %v677_v52, %v685_v53 }
 0x168   :  { %3671 = vmatpush1.bf16.msra.mxu0 %v9504_v41  ;;  %v909_v56 = vld [vmem:[#allocation9 + $0xe40] sm:$0xff] }
 0x169   :  { %3672 = vmatprep.subr.bf16.mxu0 %v9521_v50  ;;  %3636 = vmatpush1.bf16.msra.mxu1 %v9296_v51  ;;  %v9536_v57 = vcombine.low %v901_v54, %v909_v56  ;;  %v9537_v58 = vcombine.high %v901_v54, %v909_v56  ;;  %v693_v60 = vld [vmem:[#allocation9 + $0x780] sm:$0xff] }
 0x16a   :  { %3637 = vmatprep.subr.bf16.mxu1 %v9313_v55  ;;  %v701_v61 = vld [vmem:[#allocation9 + $0x7c0] sm:$0xff] }
 0x16b   :  { %v917_v62 = vld [vmem:[#allocation9 + $0xe80] sm:$0xff]  ;;  %v9329_v63 = vcombine.high %v693_v60, %v701_v61  ;;  %v9328_v3 = vcombine.low %v693_v60, %v701_v61 }
 0x16c   :  { %3673 = vmatpush1.bf16.msra.mxu0 %v9520_v49  ;;  %v925_v0 = vld [vmem:[#allocation9 + $0xec0] sm:$0xff] }
 0x16d   :  { %3674 = vmatprep.subr.bf16.mxu0 %v9537_v58  ;;  %3638 = vmatpush1.bf16.msra.mxu1 %v9312_v59  ;;  %v9552_v1 = vcombine.low %v917_v62, %v925_v0  ;;  %v9553_v2 = vcombine.high %v917_v62, %v925_v0  ;;  %v933_v4 = vld [vmem:[#allocation9 + $0xf00] sm:$0xff] }
 0x16e   :  { %3639 = vmatprep.subr.bf16.mxu1 %v9329_v63  ;;  %v941_v5 = vld [vmem:[#allocation9 + $0xf40] sm:$0xff] }
 0x16f   :  { %v9569_v7 = vcombine.high %v933_v4, %v941_v5  ;;  %v9568_v9 = vcombine.low %v933_v4, %v941_v5  ;;  %v949_v12 = vld [vmem:[#allocation9 + $0xf80] sm:$0xff] }
 0x170   :  { %3675 = vmatpush1.bf16.msra.mxu0 %v9536_v57  ;;  %v957_v13 = vld [vmem:[#allocation9 + $0xfc0] sm:$0xff] }
 0x171   :  { %3676 = vmatprep.subr.bf16.mxu0 %v9553_v2  ;;  %3640 = vmatpush1.bf16.msra.mxu1 %v9328_v3  ;;  %v9585_v14 = vcombine.high %v949_v12, %v957_v13  ;;  %v9584_v15 = vcombine.low %v949_v12, %v957_v13 }
 0x172   :  { %3691 = vmatprep.subr.bf16.mxu1 %v9091_v11  ;;  %v478_v11 = vld [vmem:[#allocation9 + $0xc8] sm:$0xff] }
 0x174   :  { %3677 = vmatpush1.bf16.msra.mxu0 %v9552_v1 }
 0x175   :  { %3678 = vmatprep.subr.bf16.mxu0 %v9569_v7 }
 0x178   :  { %3679 = vmatpush1.bf16.msra.mxu0 %v9568_v9  ;;  %v470_v9 = vld [vmem:[#allocation9 + $0x88] sm:$0xff] }
 0x179   :  { %3680 = vmatprep.subr.bf16.mxu0 %v9585_v14 }
 0x17c   :  { %3681 = vmatpush1.bf16.msra.mxu0 %v9584_v15  ;;  %v9107_v15 = vcombine.high %v470_v9, %v478_v11 }
 0x17d   :  { %3773 = vmatprep.subr.bf16.mxu0 %v9093_v19 }
 0x20a   :  { %v365_v27 = vpop.f32.mrb[0].mxu0 }
 0x20b   :  { %v366_v28 = vadd.f32 %v365_v27, %v270_v25  ;;  %v367_v29 = vpop.f32.mrb[1].mxu0  ;;  %v494_v25 = vld [vmem:[#allocation9 + $0x148] sm:$0xff] }
 0x20c   :  { %v368_v31 = vadd.f32 %v367_v29, %v274_v26  ;;  %v369_v32 = vpop.f32.mrb[2].mxu0  ;;  %v9106_v29 = vcombine.low %v470_v9, %v478_v11  ;;  %v590_v9 = vld [vmem:[#allocation9 + $0x448] sm:$0xff]  ;;  %v551_v11 = vld [vmem:[#allocation9 + $0x310] sm:$0xff] }
 0x20d   :  { %v417_v34 = vmul.f32 0.044715, %v366_v28  ;;  %v370_v35 = vpop.f32.mrb[3].mxu0  ;;  %v413_v41 = vmul.f32 0.7978846, %v366_v28  ;;  %v433_v1 = vmul.f32 0.5, %v366_v28  ;;  %v9123_v32 = vcombine.high %v486_v23, %v494_v25 }
 0x20e   :  { %v418_v36 = vmul.f32 0.044715, %v368_v31  ;;  %v414_v43 = vmul.f32 0.7978846, %v368_v31  ;;  %v434_v3 = vmul.f32 0.5, %v368_v31  ;;  %v502_v35 = vld [vmem:[#allocation9 + $0x188] sm:$0xff] }
 0x20f   :  { %v421_v37 = vmul.f32 %v417_v34, %v366_v28 }
 0x210   :  { %v422_v39 = vmul.f32 %v418_v36, %v368_v31  ;;  %v510_v36 = vld [vmem:[#allocation9 + $0x1c8] sm:$0xff] }
 0x211   :  { %v425_v42 = vadd.f32 1.0, %v421_v37  ;;  %v9139_v6 = vcombine.high %v502_v35, %v510_v36 }
 0x212   :  { %v426_v44 = vadd.f32 1.0, %v422_v39  ;;  %v406_v45 = vpop.f32.mrb[4].mxu0  ;;  %v479_v39 = vld [vmem:[#allocation9 + $0xd0] sm:$0xff] }
 0x213   :  { %v429_v46 = vmul.f32 %v425_v42, %v413_v41  ;;  %v407_v47 = vadd.f32 %v406_v45, %v278_v38  ;;  %v408_v48 = vpop.f32.mrb[5].mxu0  ;;  %v471_v38 = vld [vmem:[#allocation9 + $0x90] sm:$0xff]  ;;  %v9122_v41 = vcombine.low %v486_v23, %v494_v25  ;;  %v526_v42 = vld [vmem:[#allocation9 + $0x248] sm:$0xff]  ;;  %v9138_v45 = vcombine.low %v502_v35, %v510_v36 }
 0x214   :  { %v430_v49 = vmul.f32 %v426_v44, %v414_v43  ;;  %v409_v50 = vadd.f32 %v408_v48, %v282_v40  ;;  %v410_v51 = vpop.f32.mrb[6].mxu0  ;;  %v487_v43 = vld [vmem:[#allocation9 + $0x110] sm:$0xff]  ;;  %v598_v25 = vld [vmem:[#allocation9 + $0x488] sm:$0xff] }
 0x215   :  { %10433 = vtanh.f32 %v429_v46  ;;  %v419_v52 = vmul.f32 0.044715, %v407_v47  ;;  %v411_v53 = vpop.f32.mrb[7].mxu0  ;;  %v415_v55 = vmul.f32 0.7978846, %v407_v47  ;;  %v435_v14 = vmul.f32 0.5, %v407_v47 }
 0x216   :  { %10435 = vtanh.f32 %v430_v49  ;;  %v420_v54 = vmul.f32 0.044715, %v409_v50  ;;  %v416_v57 = vmul.f32 0.7978846, %v409_v50  ;;  %v436_v20 = vmul.f32 0.5, %v409_v50  ;;  %v495_v44 = vld [vmem:[#allocation9 + $0x150] sm:$0xff] }
 0x217   :  { %v423_v56 = vmul.f32 %v419_v52, %v407_v47  ;;  %v9108_v46 = vcombine.low %v471_v38, %v479_v39  ;;  %v9155_v47 = vcombine.high %v518_v8, %v526_v42  ;;  %v9125_v48 = vcombine.high %v487_v43, %v495_v44  ;;  %v534_v49 = vld [vmem:[#allocation9 + $0x288] sm:$0xff]  ;;  %v503_v51 = vld [vmem:[#allocation9 + $0x190] sm:$0xff] }
 0x218   :  { %v424_v58 = vmul.f32 %v420_v54, %v409_v50  ;;  %v542_v50 = vld [vmem:[#allocation9 + $0x2c8] sm:$0xff]  ;;  %v511_v52 = vld [vmem:[#allocation9 + $0x1d0] sm:$0xff]  ;;  %v9154_v53 = vcombine.low %v518_v8, %v526_v42  ;;  %v9124_v54 = vcombine.low %v487_v43, %v495_v44 }
 0x219   :  { %v427_v59 = vadd.f32 1.0, %v423_v56  ;;  %v9171_v16 = vcombine.high %v534_v49, %v542_v50  ;;  %v9141_v17 = vcombine.high %v503_v51, %v511_v52  ;;  %v519_v56 = vld [vmem:[#allocation9 + $0x210] sm:$0xff]  ;;  %v614_v35 = vld [vmem:[#allocation9 + $0x508] sm:$0xff] }
 0x21a   :  { %v428_v60 = vadd.f32 1.0, %v424_v58  ;;  %v9170_v58 = vcombine.low %v534_v49, %v542_v50  ;;  %v622_v36 = vld [vmem:[#allocation9 + $0x548] sm:$0xff]  ;;  %v599_v44 = vld [vmem:[#allocation9 + $0x490] sm:$0xff] }
 0x21b   :  { %v431_v61 = vmul.f32 %v427_v59, %v415_v55  ;;  %v558_v55 = vld [vmem:[#allocation9 + $0x348] sm:$0xff]  ;;  %v9140_v59 = vcombine.low %v503_v51, %v511_v52  ;;  %v9251_v8 = vcombine.high %v614_v35, %v622_v36  ;;  %v615_v52 = vld [vmem:[#allocation9 + $0x510] sm:$0xff] }
 0x21c   :  { %v432_v62 = vmul.f32 %v428_v60, %v416_v57  ;;  %v527_v57 = vld [vmem:[#allocation9 + $0x250] sm:$0xff]  ;;  %v630_v42 = vld [vmem:[#allocation9 + $0x588] sm:$0xff] }
 0x21d   :  { %10437 = vtanh.f32 %v431_v61  ;;  %v9157_v61 = vcombine.high %v519_v56, %v527_v57  ;;  %v638_v43 = vld [vmem:[#allocation9 + $0x5c8] sm:$0xff] }
 0x21e   :  { %10439 = vtanh.f32 %v432_v62  ;;  %v566_v62 = vld [vmem:[#allocation9 + $0x388] sm:$0xff] }
 0x21f   :  { %v10434_v63 = vpop.eup %10433  ;;  %v646_v50 = vld [vmem:[#allocation9 + $0x608] sm:$0xff] }
 0x220   :  { %v10436_v0 = vpop.eup %10435  ;;  %v441_v2 = vadd.f32 1.0, %v10434_v63  ;;  %v574_v63 = vld [vmem:[#allocation9 + $0x3c8] sm:$0xff] }
 0x221   :  { %v442_v4 = vadd.f32 1.0, %v10436_v0  ;;  %v535_v0 = vld [vmem:[#allocation9 + $0x290] sm:$0xff]  ;;  %v654_v51 = vld [vmem:[#allocation9 + $0x648] sm:$0xff] }
 0x222   :  { %v445_v5 = vmul.f32 %v441_v2, %v433_v1  ;;  %v543_v1 = vld [vmem:[#allocation9 + $0x2d0] sm:$0xff] }
 0x223   :  { %v446_v7 = vmul.f32 %v442_v4, %v434_v3  ;;  %v9156_v3 = vcombine.low %v519_v56, %v527_v57  ;;  %v9203_v4 = vcombine.high %v566_v62, %v574_v63  ;;  %v670_v56 = vld [vmem:[#allocation9 + $0x6c8] sm:$0xff]  ;;  %v631_v57 = vld [vmem:[#allocation9 + $0x590] sm:$0xff] }
 0x224   :  { %v11238_v13 = vpack.c.bf16 %v445_v5, %v445_v5  ;;  %v9173_v5 = vcombine.high %v535_v0, %v543_v1 }
 0x225   :  { %v11236_v12 = vpack.c.bf16 %v446_v7, %v446_v7  ;;  %v582_v7 = vld [vmem:[#allocation9 + $0x408] sm:$0xff] }
 0x227   :  { %v10438_v19 = vpop.eup %10437  ;;  %3641 = vmatprep.mubr.bf16.mxu1 %v11236_v12 }
 0x228   :  { %v10440_v26 = vpop.eup %10439  ;;  %v443_v27 = vadd.f32 1.0, %v10438_v19  ;;  %3642 = vmatmul.mubr.bf16.vlgmr.msra.gmra.mrb[0].mxu1 %v11238_v13  ;;  %v9172_v19 = vcombine.low %v535_v0, %v543_v1  ;;  %v686_v0 = vld [vmem:[#allocation9 + $0x748] sm:$0xff]  ;;  %v647_v1 = vld [vmem:[#allocation9 + $0x610] sm:$0xff] }
 0x229   :  { %v444_v28 = vadd.f32 1.0, %v10440_v26  ;;  %3692 = vmatpush1.bf16.msra.mxu1 %v9090_v10  ;;  %3723 = vmatprep.mubr.bf16.mxu1 %v11236_v12  ;;  %v9109_v10 = vcombine.high %v471_v38, %v479_v39  ;;  %v606_v26 = vld [vmem:[#allocation9 + $0x4c8] sm:$0xff]  ;;  %v583_v38 = vld [vmem:[#allocation9 + $0x410] sm:$0xff] }
 0x22a   :  { %v447_v31 = vmul.f32 %v443_v27, %v435_v14  ;;  %3693 = vmatprep.subr.bf16.mxu1 %v9107_v15  ;;  %v559_v14 = vld [vmem:[#allocation9 + $0x350] sm:$0xff]  ;;  %v9202_v15 = vcombine.low %v566_v62, %v574_v63  ;;  %v678_v63 = vld [vmem:[#allocation9 + $0x708] sm:$0xff] }
 0x22b   :  { %v448_v34 = vmul.f32 %v444_v28, %v436_v20  ;;  %v9219_v20 = vcombine.high %v582_v7, %v590_v9  ;;  %v9189_v23 = vcombine.high %v551_v11, %v559_v14  ;;  %v567_v27 = vld [vmem:[#allocation9 + $0x390] sm:$0xff] }
 0x22c   :  { %v11246_v37 = vpack.c.bf16 %v447_v31, %v447_v31  ;;  %v575_v28 = vld [vmem:[#allocation9 + $0x3d0] sm:$0xff]  ;;  %v9188_v31 = vcombine.low %v551_v11, %v559_v14  ;;  %v702_v11 = vld [vmem:[#allocation9 + $0x7c8] sm:$0xff] }
 0x22d   :  { %v11248_v40 = vpack.c.bf16 %v448_v34, %v448_v34  ;;  %3694 = vmatpush1.bf16.msra.mxu1 %v9106_v29  ;;  %v9218_v29 = vcombine.low %v582_v7, %v590_v9  ;;  %v9205_v34 = vcombine.high %v567_v27, %v575_v28  ;;  %v591_v39 = vld [vmem:[#allocation9 + $0x450] sm:$0xff]  ;;  %v694_v9 = vld [vmem:[#allocation9 + $0x788] sm:$0xff] }
 0x22e   :  { %3695 = vmatprep.subr.bf16.mxu1 %v9123_v32  ;;  %v9235_v32 = vcombine.high %v598_v25, %v606_v26  ;;  %v663_v14 = vld [vmem:[#allocation9 + $0x690] sm:$0xff] }
 0x22f   :  { %3682 = vmatprep.mubr.bf16.mxu0 %v11248_v40 }
 0x230   :  { %3683 = vmatmul.mubr.bf16.vlgmr.msra.gmra.mrb[8].mxu0 %v11246_v37 }
 0x231   :  { %3696 = vmatpush1.bf16.msra.mxu1 %v9122_v41  ;;  %3774 = vmatpush1.bf16.msra.mxu0 %v9092_v18  ;;  %v550_v18 = vld [vmem:[#allocation9 + $0x308] sm:$0xff]  ;;  %v9234_v41 = vcombine.low %v598_v25, %v606_v26 }
 0x232   :  { %3805 = vmatprep.mubr.bf16.mxu0 %v11236_v12  ;;  %3697 = vmatprep.subr.bf16.mxu1 %v9139_v6  ;;  %v9187_v60 = vcombine.high %v550_v18, %v558_v55  ;;  %v9186_v2 = vcombine.low %v550_v18, %v558_v55  ;;  %v9204_v6 = vcombine.low %v567_v27, %v575_v28  ;;  %v662_v55 = vld [vmem:[#allocation9 + $0x688] sm:$0xff]  ;;  %v679_v28 = vld [vmem:[#allocation9 + $0x710] sm:$0xff] }
 0x233   :  { %3775 = vmatprep.subr.bf16.mxu0 %v9109_v10  ;;  %v9221_v10 = vcombine.high %v583_v38, %v591_v39  ;;  %v710_v26 = vld [vmem:[#allocation9 + $0x808] sm:$0xff] }
 0x234   :  { %v718_v27 = vld [vmem:[#allocation9 + $0x848] sm:$0xff] }
 0x235   :  { %3698 = vmatpush1.bf16.msra.mxu1 %v9138_v45  ;;  %3776 = vmatpush1.bf16.msra.mxu0 %v9108_v46  ;;  %v607_v45 = vld [vmem:[#allocation9 + $0x4d0] sm:$0xff]  ;;  %v9250_v46 = vcombine.low %v614_v35, %v622_v36  ;;  %v726_v36 = vld [vmem:[#allocation9 + $0x888] sm:$0xff] }
 0x236   :  { %3699 = vmatprep.subr.bf16.mxu1 %v9155_v47  ;;  %3777 = vmatprep.subr.bf16.mxu0 %v9125_v48  ;;  %v9220_v47 = vcombine.low %v583_v38, %v591_v39  ;;  %v9267_v48 = vcombine.high %v630_v42, %v638_v43  ;;  %v9237_v49 = vcombine.high %v599_v44, %v607_v45  ;;  %v734_v38 = vld [vmem:[#allocation9 + $0x8c8] sm:$0xff]  ;;  %v695_v39 = vld [vmem:[#allocation9 + $0x790] sm:$0xff] }
 0x239   :  { %3700 = vmatpush1.bf16.msra.mxu1 %v9154_v53  ;;  %3778 = vmatpush1.bf16.msra.mxu0 %v9124_v54  ;;  %v623_v53 = vld [vmem:[#allocation9 + $0x550] sm:$0xff]  ;;  %v9266_v54 = vcombine.low %v630_v42, %v638_v43  ;;  %v742_v43 = vld [vmem:[#allocation9 + $0x908] sm:$0xff] }
 0x23a   :  { %3701 = vmatprep.subr.bf16.mxu1 %v9171_v16  ;;  %3779 = vmatprep.subr.bf16.mxu0 %v9141_v17  ;;  %v9236_v16 = vcombine.low %v599_v44, %v607_v45  ;;  %v9283_v17 = vcombine.high %v646_v50, %v654_v51  ;;  %v9253_v18 = vcombine.high %v615_v52, %v623_v53  ;;  %v750_v44 = vld [vmem:[#allocation9 + $0x948] sm:$0xff]  ;;  %v711_v45 = vld [vmem:[#allocation9 + $0x810] sm:$0xff] }
 0x23d   :  { %3702 = vmatpush1.bf16.msra.mxu1 %v9170_v58  ;;  %3780 = vmatpush1.bf16.msra.mxu0 %v9140_v59  ;;  %v639_v58 = vld [vmem:[#allocation9 + $0x5d0] sm:$0xff]  ;;  %v9282_v59 = vcombine.low %v646_v50, %v654_v51  ;;  %v758_v51 = vld [vmem:[#allocation9 + $0x988] sm:$0xff] }
 0x23e   :  { %3703 = vmatprep.subr.bf16.mxu1 %v9187_v60  ;;  %3781 = vmatprep.subr.bf16.mxu0 %v9157_v61  ;;  %v9252_v60 = vcombine.low %v615_v52, %v623_v53  ;;  %v9299_v61 = vcombine.high %v662_v55, %v670_v56  ;;  %v9269_v62 = vcombine.high %v631_v57, %v639_v58  ;;  %v766_v52 = vld [vmem:[#allocation9 + $0x9c8] sm:$0xff]  ;;  %v727_v53 = vld [vmem:[#allocation9 + $0x890] sm:$0xff] }
 0x241   :  { %3704 = vmatpush1.bf16.msra.mxu1 %v9186_v2  ;;  %3782 = vmatpush1.bf16.msra.mxu0 %v9156_v3  ;;  %v655_v2 = vld [vmem:[#allocation9 + $0x650] sm:$0xff]  ;;  %v9298_v3 = vcombine.low %v662_v55, %v670_v56  ;;  %v774_v56 = vld [vmem:[#allocation9 + $0xa08] sm:$0xff] }
 0x242   :  { %3705 = vmatprep.subr.bf16.mxu1 %v9203_v4  ;;  %3783 = vmatprep.subr.bf16.mxu0 %v9173_v5  ;;  %v9268_v4 = vcombine.low %v631_v57, %v639_v58  ;;  %v9315_v5 = vcombine.high %v678_v63, %v686_v0  ;;  %v9285_v7 = vcombine.high %v647_v1, %v655_v2  ;;  %v782_v57 = vld [vmem:[#allocation9 + $0xa48] sm:$0xff]  ;;  %v743_v58 = vld [vmem:[#allocation9 + $0x910] sm:$0xff] }
 0x245   :  { %3706 = vmatpush1.bf16.msra.mxu1 %v9202_v15  ;;  %3784 = vmatpush1.bf16.msra.mxu0 %v9172_v19  ;;  %v671_v15 = vld [vmem:[#allocation9 + $0x6d0] sm:$0xff]  ;;  %v9314_v19 = vcombine.low %v678_v63, %v686_v0  ;;  %v790_v0 = vld [vmem:[#allocation9 + $0xa88] sm:$0xff] }
 0x246   :  { %3707 = vmatprep.subr.bf16.mxu1 %v9219_v20  ;;  %3785 = vmatprep.subr.bf16.mxu0 %v9189_v23  ;;  %v9284_v20 = vcombine.low %v647_v1, %v655_v2  ;;  %v9331_v23 = vcombine.high %v694_v9, %v702_v11  ;;  %v9301_v25 = vcombine.high %v663_v14, %v671_v15  ;;  %v798_v1 = vld [vmem:[#allocation9 + $0xac8] sm:$0xff]  ;;  %v759_v2 = vld [vmem:[#allocation9 + $0x990] sm:$0xff] }
 0x249   :  { %3708 = vmatpush1.bf16.msra.mxu1 %v9218_v29  ;;  %3786 = vmatpush1.bf16.msra.mxu0 %v9188_v31  ;;  %v687_v29 = vld [vmem:[#allocation9 + $0x750] sm:$0xff]  ;;  %v9330_v31 = vcombine.low %v694_v9, %v702_v11  ;;  %v806_v11 = vld [vmem:[#allocation9 + $0xb08] sm:$0xff] }
 0x24a   :  { %3709 = vmatprep.subr.bf16.mxu1 %v9235_v32  ;;  %3787 = vmatprep.subr.bf16.mxu0 %v9205_v34  ;;  %v9300_v32 = vcombine.low %v663_v14, %v671_v15  ;;  %v9347_v34 = vcombine.high %v710_v26, %v718_v27  ;;  %v9317_v35 = vcombine.high %v679_v28, %v687_v29  ;;  %v814_v14 = vld [vmem:[#allocation9 + $0xb48] sm:$0xff]  ;;  %v775_v15 = vld [vmem:[#allocation9 + $0xa10] sm:$0xff] }
 0x24d   :  { %3710 = vmatpush1.bf16.msra.mxu1 %v9234_v41  ;;  %3788 = vmatpush1.bf16.msra.mxu0 %v9204_v6  ;;  %v703_v41 = vld [vmem:[#allocation9 + $0x7d0] sm:$0xff]  ;;  %v9346_v6 = vcombine.low %v710_v26, %v718_v27  ;;  %v822_v27 = vld [vmem:[#allocation9 + $0xb88] sm:$0xff] }
 0x24e   :  { %3711 = vmatprep.subr.bf16.mxu1 %v9251_v8  ;;  %3789 = vmatprep.subr.bf16.mxu0 %v9221_v10  ;;  %v9316_v8 = vcombine.low %v679_v28, %v687_v29  ;;  %v9363_v10 = vcombine.high %v726_v36, %v734_v38  ;;  %v9333_v42 = vcombine.high %v695_v39, %v703_v41  ;;  %v830_v28 = vld [vmem:[#allocation9 + $0xbc8] sm:$0xff]  ;;  %v791_v29 = vld [vmem:[#allocation9 + $0xa90] sm:$0xff] }
 0x251   :  { %3712 = vmatpush1.bf16.msra.mxu1 %v9250_v46  ;;  %3790 = vmatpush1.bf16.msra.mxu0 %v9220_v47  ;;  %v719_v46 = vld [vmem:[#allocation9 + $0x850] sm:$0xff]  ;;  %v9362_v47 = vcombine.low %v726_v36, %v734_v38  ;;  %v838_v38 = vld [vmem:[#allocation9 + $0xc08] sm:$0xff] }
 0x252   :  { %3713 = vmatprep.subr.bf16.mxu1 %v9267_v48  ;;  %3791 = vmatprep.subr.bf16.mxu0 %v9237_v49  ;;  %v9332_v48 = vcombine.low %v695_v39, %v703_v41  ;;  %v9379_v49 = vcombine.high %v742_v43, %v750_v44  ;;  %v9349_v50 = vcombine.high %v711_v45, %v719_v46  ;;  %v846_v39 = vld [vmem:[#allocation9 + $0xc48] sm:$0xff]  ;;  %v807_v41 = vld [vmem:[#allocation9 + $0xb10] sm:$0xff] }
 0x255   :  { %3714 = vmatpush1.bf16.msra.mxu1 %v9266_v54  ;;  %3792 = vmatpush1.bf16.msra.mxu0 %v9236_v16  ;;  %v735_v54 = vld [vmem:[#allocation9 + $0x8d0] sm:$0xff]  ;;  %v9378_v16 = vcombine.low %v742_v43, %v750_v44  ;;  %v854_v44 = vld [vmem:[#allocation9 + $0xc88] sm:$0xff] }
 0x256   :  { %3715 = vmatprep.subr.bf16.mxu1 %v9283_v17  ;;  %3793 = vmatprep.subr.bf16.mxu0 %v9253_v18  ;;  %v9348_v17 = vcombine.low %v711_v45, %v719_v46  ;;  %v9395_v18 = vcombine.high %v758_v51, %v766_v52  ;;  %v9365_v55 = vcombine.high %v727_v53, %v735_v54  ;;  %v862_v45 = vld [vmem:[#allocation9 + $0xcc8] sm:$0xff]  ;;  %v823_v46 = vld [vmem:[#allocation9 + $0xb90] sm:$0xff] }
 0x259   :  { %3716 = vmatpush1.bf16.msra.mxu1 %v9282_v59  ;;  %3794 = vmatpush1.bf16.msra.mxu0 %v9252_v60  ;;  %v751_v59 = vld [vmem:[#allocation9 + $0x950] sm:$0xff]  ;;  %v9394_v60 = vcombine.low %v758_v51, %v766_v52  ;;  %v870_v52 = vld [vmem:[#allocation9 + $0xd08] sm:$0xff] }
 0x25a   :  { %3717 = vmatprep.subr.bf16.mxu1 %v9299_v61  ;;  %3795 = vmatprep.subr.bf16.mxu0 %v9269_v62  ;;  %v9364_v61 = vcombine.low %v727_v53, %v735_v54  ;;  %v9411_v62 = vcombine.high %v774_v56, %v782_v57  ;;  %v9381_v63 = vcombine.high %v743_v58, %v751_v59  ;;  %v878_v53 = vld [vmem:[#allocation9 + $0xd48] sm:$0xff]  ;;  %v839_v54 = vld [vmem:[#allocation9 + $0xc10] sm:$0xff] }
 0x25d   :  { %3718 = vmatpush1.bf16.msra.mxu1 %v9298_v3  ;;  %3796 = vmatpush1.bf16.msra.mxu0 %v9268_v4  ;;  %v767_v3 = vld [vmem:[#allocation9 + $0x9d0] sm:$0xff]  ;;  %v9410_v4 = vcombine.low %v774_v56, %v782_v57  ;;  %v886_v57 = vld [vmem:[#allocation9 + $0xd88] sm:$0xff] }
 0x25e   :  { %3719 = vmatprep.subr.bf16.mxu1 %v9315_v5  ;;  %3797 = vmatprep.subr.bf16.mxu0 %v9285_v7  ;;  %v9380_v5 = vcombine.low %v743_v58, %v751_v59  ;;  %v9427_v7 = vcombine.high %v790_v0, %v798_v1  ;;  %v9397_v9 = vcombine.high %v759_v2, %v767_v3  ;;  %v894_v58 = vld [vmem:[#allocation9 + $0xdc8] sm:$0xff]  ;;  %v855_v59 = vld [vmem:[#allocation9 + $0xc90] sm:$0xff] }
 0x261   :  { %3720 = vmatpush1.bf16.msra.mxu1 %v9314_v19  ;;  %3798 = vmatpush1.bf16.msra.mxu0 %v9284_v20  ;;  %v783_v19 = vld [vmem:[#allocation9 + $0xa50] sm:$0xff]  ;;  %v9426_v20 = vcombine.low %v790_v0, %v798_v1  ;;  %v902_v1 = vld [vmem:[#allocation9 + $0xe08] sm:$0xff] }
 0x262   :  { %3721 = vmatprep.subr.bf16.mxu1 %v9331_v23  ;;  %3799 = vmatprep.subr.bf16.mxu0 %v9301_v25  ;;  %v9396_v23 = vcombine.low %v759_v2, %v767_v3  ;;  %v9443_v25 = vcombine.high %v806_v11, %v814_v14  ;;  %v9413_v26 = vcombine.high %v775_v15, %v783_v19  ;;  %v910_v2 = vld [vmem:[#allocation9 + $0xe48] sm:$0xff]  ;;  %v871_v3 = vld [vmem:[#allocation9 + $0xd10] sm:$0xff] }
 0x265   :  { %3722 = vmatpush1.bf16.msra.mxu1 %v9330_v31  ;;  %3800 = vmatpush1.bf16.msra.mxu0 %v9300_v32  ;;  %v799_v31 = vld [vmem:[#allocation9 + $0xad0] sm:$0xff]  ;;  %v9442_v32 = vcombine.low %v806_v11, %v814_v14  ;;  %v918_v14 = vld [vmem:[#allocation9 + $0xe88] sm:$0xff] }
 0x266   :  { %3732 = vmatprep.subr.bf16.mxu1 %v9347_v34  ;;  %3801 = vmatprep.subr.bf16.mxu0 %v9317_v35  ;;  %v9412_v34 = vcombine.low %v775_v15, %v783_v19  ;;  %v9459_v35 = vcombine.high %v822_v27, %v830_v28  ;;  %v9429_v36 = vcombine.high %v791_v29, %v799_v31  ;;  %v926_v15 = vld [vmem:[#allocation9 + $0xec8] sm:$0xff]  ;;  %v887_v19 = vld [vmem:[#allocation9 + $0xd90] sm:$0xff] }
 0x268   :  { %3724 = vmatmul.mubr.bf16.vlgmr.msra.gmra.mrb[4].mxu1 %v11238_v13 }
 0x269   :  { %3733 = vmatpush1.bf16.msra.mxu1 %v9346_v6  ;;  %3802 = vmatpush1.bf16.msra.mxu0 %v9316_v8  ;;  %v815_v6 = vld [vmem:[#allocation9 + $0xb50] sm:$0xff]  ;;  %v9458_v8 = vcombine.low %v822_v27, %v830_v28  ;;  %v934_v28 = vld [vmem:[#allocation9 + $0xf08] sm:$0xff] }
 0x26a   :  { %3734 = vmatprep.subr.bf16.mxu1 %v9363_v10  ;;  %3803 = vmatprep.subr.bf16.mxu0 %v9333_v42  ;;  %v9428_v10 = vcombine.low %v791_v29, %v799_v31  ;;  %v9475_v42 = vcombine.high %v838_v38, %v846_v39  ;;  %v9445_v43 = vcombine.high %v807_v41, %v815_v6  ;;  %v942_v29 = vld [vmem:[#allocation9 + $0xf48] sm:$0xff]  ;;  %v903_v31 = vld [vmem:[#allocation9 + $0xe10] sm:$0xff] }
 0x26b   :  { %3764 = vmatprep.mubr.bf16.mxu1 %v11248_v40 }
 0x26d   :  { %3735 = vmatpush1.bf16.msra.mxu1 %v9362_v47  ;;  %3804 = vmatpush1.bf16.msra.mxu0 %v9332_v48  ;;  %v831_v47 = vld [vmem:[#allocation9 + $0xbd0] sm:$0xff]  ;;  %v9474_v48 = vcombine.low %v838_v38, %v846_v39  ;;  %v950_v39 = vld [vmem:[#allocation9 + $0xf88] sm:$0xff] }
 0x26e   :  { %3736 = vmatprep.subr.bf16.mxu1 %v9379_v49  ;;  %3814 = vmatprep.subr.bf16.mxu0 %v9349_v50  ;;  %v9444_v49 = vcombine.low %v807_v41, %v815_v6  ;;  %v9491_v50 = vcombine.high %v854_v44, %v862_v45  ;;  %v9461_v51 = vcombine.high %v823_v46, %v831_v47  ;;  %v958_v41 = vld [vmem:[#allocation9 + $0xfc8] sm:$0xff]  ;;  %v919_v6 = vld [vmem:[#allocation9 + $0xe90] sm:$0xff] }
 0x270   :  { %3806 = vmatmul.mubr.bf16.vlgmr.msra.gmra.mrb[12].mxu0 %v11238_v13 }
 0x271   :  { %3737 = vmatpush1.bf16.msra.mxu1 %v9378_v16  ;;  %3815 = vmatpush1.bf16.msra.mxu0 %v9348_v17  ;;  %v847_v16 = vld [vmem:[#allocation9 + $0xc50] sm:$0xff]  ;;  %v9490_v17 = vcombine.low %v854_v44, %v862_v45 }
 0x272   :  { %3738 = vmatprep.subr.bf16.mxu1 %v9395_v18  ;;  %3816 = vmatprep.subr.bf16.mxu0 %v9365_v55  ;;  %v9460_v18 = vcombine.low %v823_v46, %v831_v47  ;;  %v9507_v55 = vcombine.high %v870_v52, %v878_v53  ;;  %v9477_v56 = vcombine.high %v839_v54, %v847_v16  ;;  %v935_v45 = vld [vmem:[#allocation9 + $0xf10] sm:$0xff]  ;;  %v456_v47 = vld [vmem:[#allocation9 + $0x18] sm:$0xff] }
 0x273   :  { %3846 = vmatprep.mubr.bf16.mxu0 %v11248_v40  ;;  %v943_v46 = vld [vmem:[#allocation9 + $0xf50] sm:$0xff] }
 0x275   :  { %3739 = vmatpush1.bf16.msra.mxu1 %v9394_v60  ;;  %3817 = vmatpush1.bf16.msra.mxu0 %v9364_v61  ;;  %v863_v60 = vld [vmem:[#allocation9 + $0xcd0] sm:$0xff]  ;;  %v9506_v61 = vcombine.low %v870_v52, %v878_v53 }
 0x276   :  { %3740 = vmatprep.subr.bf16.mxu1 %v9411_v62  ;;  %3818 = vmatprep.subr.bf16.mxu0 %v9381_v63  ;;  %v9476_v62 = vcombine.low %v839_v54, %v847_v16  ;;  %v9523_v63 = vcombine.high %v886_v57, %v894_v58  ;;  %v9493_v0 = vcombine.high %v855_v59, %v863_v60  ;;  %v951_v53 = vld [vmem:[#allocation9 + $0xf90] sm:$0xff]  ;;  %v472_v16 = vld [vmem:[#allocation9 + $0x98] sm:$0xff] }
 0x277   :  { %v959_v54 = vld [vmem:[#allocation9 + $0xfd0] sm:$0xff] }
 0x279   :  { %3741 = vmatpush1.bf16.msra.mxu1 %v9410_v4  ;;  %3819 = vmatpush1.bf16.msra.mxu0 %v9380_v5  ;;  %v879_v4 = vld [vmem:[#allocation9 + $0xd50] sm:$0xff]  ;;  %v9522_v5 = vcombine.low %v886_v57, %v894_v58  ;;  %v488_v57 = vld [vmem:[#allocation9 + $0x118] sm:$0xff] }
 0x27a   :  { %3742 = vmatprep.subr.bf16.mxu1 %v9427_v7  ;;  %3820 = vmatprep.subr.bf16.mxu0 %v9397_v9  ;;  %v9492_v7 = vcombine.low %v855_v59, %v863_v60  ;;  %v9539_v9 = vcombine.high %v902_v1, %v910_v2  ;;  %v9509_v11 = vcombine.high %v871_v3, %v879_v4  ;;  %v496_v59 = vld [vmem:[#allocation9 + $0x158] sm:$0xff]  ;;  %v457_v60 = vld [vmem:[#allocation9 + $0x20] sm:$0xff] }
 0x27d   :  { %3743 = vmatpush1.bf16.msra.mxu1 %v9426_v20  ;;  %3821 = vmatpush1.bf16.msra.mxu0 %v9396_v23  ;;  %v895_v20 = vld [vmem:[#allocation9 + $0xdd0] sm:$0xff]  ;;  %v9538_v23 = vcombine.low %v902_v1, %v910_v2  ;;  %v504_v2 = vld [vmem:[#allocation9 + $0x198] sm:$0xff] }
 0x27e   :  { %3744 = vmatprep.subr.bf16.mxu1 %v9443_v25  ;;  %3822 = vmatprep.subr.bf16.mxu0 %v9413_v26  ;;  %v9508_v25 = vcombine.low %v871_v3, %v879_v4  ;;  %v9555_v26 = vcombine.high %v918_v14, %v926_v15  ;;  %v9525_v27 = vcombine.high %v887_v19, %v895_v20  ;;  %v512_v3 = vld [vmem:[#allocation9 + $0x1d8] sm:$0xff]  ;;  %v473_v4 = vld [vmem:[#allocation9 + $0xa0] sm:$0xff] }
 0x281   :  { %3745 = vmatpush1.bf16.msra.mxu1 %v9442_v32  ;;  %3823 = vmatpush1.bf16.msra.mxu0 %v9412_v34  ;;  %v911_v32 = vld [vmem:[#allocation9 + $0xe50] sm:$0xff]  ;;  %v9554_v34 = vcombine.low %v918_v14, %v926_v15  ;;  %v520_v14 = vld [vmem:[#allocation9 + $0x218] sm:$0xff] }
 0x282   :  { %3746 = vmatprep.subr.bf16.mxu1 %v9459_v35  ;;  %3824 = vmatprep.subr.bf16.mxu0 %v9429_v36  ;;  %v9524_v35 = vcombine.low %v887_v19, %v895_v20  ;;  %v9571_v36 = vcombine.high %v934_v28, %v942_v29  ;;  %v9541_v38 = vcombine.high %v903_v31, %v911_v32  ;;  %v528_v19 = vld [vmem:[#allocation9 + $0x258] sm:$0xff]  ;;  %v489_v20 = vld [vmem:[#allocation9 + $0x120] sm:$0xff] }
 0x285   :  { %3747 = vmatpush1.bf16.msra.mxu1 %v9458_v8  ;;  %3825 = vmatpush1.bf16.msra.mxu0 %v9428_v10  ;;  %v927_v8 = vld [vmem:[#allocation9 + $0xed0] sm:$0xff]  ;;  %v9570_v10 = vcombine.low %v934_v28, %v942_v29  ;;  %v536_v29 = vld [vmem:[#allocation9 + $0x298] sm:$0xff] }
 0x286   :  { %3748 = vmatprep.subr.bf16.mxu1 %v9475_v42  ;;  %3826 = vmatprep.subr.bf16.mxu0 %v9445_v43  ;;  %v9540_v42 = vcombine.low %v903_v31, %v911_v32  ;;  %v9587_v43 = vcombine.high %v950_v39, %v958_v41  ;;  %v9557_v44 = vcombine.high %v919_v6, %v927_v8  ;;  %v544_v31 = vld [vmem:[#allocation9 + $0x2d8] sm:$0xff]  ;;  %v505_v32 = vld [vmem:[#allocation9 + $0x1a0] sm:$0xff] }
 0x289   :  { %3749 = vmatpush1.bf16.msra.mxu1 %v9474_v48  ;;  %3827 = vmatpush1.bf16.msra.mxu0 %v9444_v49  ;;  %v464_v48 = vld [vmem:[#allocation9 + $0x58] sm:$0xff]  ;;  %v9586_v49 = vcombine.low %v950_v39, %v958_v41 }
 0x28a   :  { %3750 = vmatprep.subr.bf16.mxu1 %v9491_v50  ;;  %3828 = vmatprep.subr.bf16.mxu0 %v9461_v51  ;;  %v9556_v50 = vcombine.low %v919_v6, %v927_v8  ;;  %v9573_v51 = vcombine.high %v935_v45, %v943_v46  ;;  %v9095_v52 = vcombine.high %v456_v47, %v464_v48  ;;  %v552_v41 = vld [vmem:[#allocation9 + $0x318] sm:$0xff]  ;;  %v521_v8 = vld [vmem:[#allocation9 + $0x220] sm:$0xff] }
 0x28b   :  { %v560_v6 = vld [vmem:[#allocation9 + $0x358] sm:$0xff] }
 0x28d   :  { %3751 = vmatpush1.bf16.msra.mxu1 %v9490_v17  ;;  %3829 = vmatpush1.bf16.msra.mxu0 %v9460_v18  ;;  %v480_v17 = vld [vmem:[#allocation9 + $0xd8] sm:$0xff]  ;;  %v9572_v18 = vcombine.low %v935_v45, %v943_v46 }
 0x28e   :  { %3752 = vmatprep.subr.bf16.mxu1 %v9507_v55  ;;  %3830 = vmatprep.subr.bf16.mxu0 %v9477_v56  ;;  %v9094_v55 = vcombine.low %v456_v47, %v464_v48  ;;  %v9589_v56 = vcombine.high %v951_v53, %v959_v54  ;;  %v9111_v58 = vcombine.high %v472_v16, %v480_v17  ;;  %v568_v46 = vld [vmem:[#allocation9 + $0x398] sm:$0xff]  ;;  %v537_v48 = vld [vmem:[#allocation9 + $0x2a0] sm:$0xff] }
 0x28f   :  { %v576_v47 = vld [vmem:[#allocation9 + $0x3d8] sm:$0xff] }
 0x291   :  { %3753 = vmatpush1.bf16.msra.mxu1 %v9506_v61  ;;  %3831 = vmatpush1.bf16.msra.mxu0 %v9476_v62  ;;  %v465_v61 = vld [vmem:[#allocation9 + $0x60] sm:$0xff]  ;;  %v9588_v62 = vcombine.low %v951_v53, %v959_v54  ;;  %v584_v54 = vld [vmem:[#allocation9 + $0x418] sm:$0xff] }
 0x292   :  { %3754 = vmatprep.subr.bf16.mxu1 %v9523_v63  ;;  %3832 = vmatprep.subr.bf16.mxu0 %v9493_v0  ;;  %v9110_v63 = vcombine.low %v472_v16, %v480_v17  ;;  %v9127_v0 = vcombine.high %v488_v57, %v496_v59  ;;  %v9097_v1 = vcombine.high %v457_v60, %v465_v61  ;;  %v592_v16 = vld [vmem:[#allocation9 + $0x458] sm:$0xff]  ;;  %v553_v17 = vld [vmem:[#allocation9 + $0x320] sm:$0xff] }
 0x295   :  { %3755 = vmatpush1.bf16.msra.mxu1 %v9522_v5  ;;  %3833 = vmatpush1.bf16.msra.mxu0 %v9492_v7  ;;  %v481_v5 = vld [vmem:[#allocation9 + $0xe0] sm:$0xff]  ;;  %v9126_v7 = vcombine.low %v488_v57, %v496_v59  ;;  %v9223_v57 = vcombine.high %v584_v54, %v592_v16  ;;  %v600_v59 = vld [vmem:[#allocation9 + $0x498] sm:$0xff] }
 0x296   :  { %3756 = vmatprep.subr.bf16.mxu1 %v9539_v9  ;;  %3834 = vmatprep.subr.bf16.mxu0 %v9509_v11  ;;  %v9096_v9 = vcombine.low %v457_v60, %v465_v61  ;;  %v9143_v11 = vcombine.high %v504_v2, %v512_v3  ;;  %v9113_v15 = vcombine.high %v473_v4, %v481_v5  ;;  %v608_v60 = vld [vmem:[#allocation9 + $0x4d8] sm:$0xff]  ;;  %v569_v61 = vld [vmem:[#allocation9 + $0x3a0] sm:$0xff] }
 0x299   :  { %3757 = vmatpush1.bf16.msra.mxu1 %v9538_v23  ;;  %3835 = vmatpush1.bf16.msra.mxu0 %v9508_v25  ;;  %v497_v23 = vld [vmem:[#allocation9 + $0x160] sm:$0xff]  ;;  %v9142_v25 = vcombine.low %v504_v2, %v512_v3  ;;  %v616_v3 = vld [vmem:[#allocation9 + $0x518] sm:$0xff] }
 0x29a   :  { %3758 = vmatprep.subr.bf16.mxu1 %v9555_v26  ;;  %3836 = vmatprep.subr.bf16.mxu0 %v9525_v27  ;;  %v9112_v26 = vcombine.low %v473_v4, %v481_v5  ;;  %v9159_v27 = vcombine.high %v520_v14, %v528_v19  ;;  %v9129_v28 = vcombine.high %v489_v20, %v497_v23  ;;  %v624_v4 = vld [vmem:[#allocation9 + $0x558] sm:$0xff]  ;;  %v585_v5 = vld [vmem:[#allocation9 + $0x420] sm:$0xff] }
 0x29d   :  { %3759 = vmatpush1.bf16.msra.mxu1 %v9554_v34  ;;  %3837 = vmatpush1.bf16.msra.mxu0 %v9524_v35  ;;  %v513_v34 = vld [vmem:[#allocation9 + $0x1e0] sm:$0xff]  ;;  %v9158_v35 = vcombine.low %v520_v14, %v528_v19  ;;  %v9255_v14 = vcombine.high %v616_v3, %v624_v4  ;;  %v632_v19 = vld [vmem:[#allocation9 + $0x598] sm:$0xff] }
 0x29e   :  { %3760 = vmatprep.subr.bf16.mxu1 %v9571_v36  ;;  %3838 = vmatprep.subr.bf16.mxu0 %v9541_v38  ;;  %v9128_v36 = vcombine.low %v489_v20, %v497_v23  ;;  %v9175_v38 = vcombine.high %v536_v29, %v544_v31  ;;  %v9145_v39 = vcombine.high %v505_v32, %v513_v34  ;;  %v640_v20 = vld [vmem:[#allocation9 + $0x5d8] sm:$0xff]  ;;  %v601_v23 = vld [vmem:[#allocation9 + $0x4a0] sm:$0xff] }
 0x2a1   :  { %3761 = vmatpush1.bf16.msra.mxu1 %v9570_v10  ;;  %3839 = vmatpush1.bf16.msra.mxu0 %v9540_v42  ;;  %v529_v10 = vld [vmem:[#allocation9 + $0x260] sm:$0xff]  ;;  %v9174_v42 = vcombine.low %v536_v29, %v544_v31  ;;  %v648_v31 = vld [vmem:[#allocation9 + $0x618] sm:$0xff] }
 0x2a2   :  { %3762 = vmatprep.subr.bf16.mxu1 %v9587_v43  ;;  %3840 = vmatprep.subr.bf16.mxu0 %v9557_v44  ;;  %v9144_v43 = vcombine.low %v505_v32, %v513_v34  ;;  %v9191_v44 = vcombine.high %v552_v41, %v560_v6  ;;  %v9161_v45 = vcombine.high %v521_v8, %v529_v10  ;;  %v656_v32 = vld [vmem:[#allocation9 + $0x658] sm:$0xff]  ;;  %v617_v34 = vld [vmem:[#allocation9 + $0x520] sm:$0xff] }
 0x2a5   :  { %3763 = vmatpush1.bf16.msra.mxu1 %v9586_v49  ;;  %3841 = vmatpush1.bf16.msra.mxu0 %v9556_v50  ;;  %v545_v49 = vld [vmem:[#allocation9 + $0x2e0] sm:$0xff]  ;;  %v9190_v50 = vcombine.low %v552_v41, %v560_v6  ;;  %v664_v6 = vld [vmem:[#allocation9 + $0x698] sm:$0xff] }
 0x2a6   :  { %3842 = vmatprep.subr.bf16.mxu0 %v9573_v51  ;;  %3855 = vmatprep.subr.bf16.mxu1 %v9095_v52  ;;  %v9160_v51 = vcombine.low %v521_v8, %v529_v10  ;;  %v9207_v52 = vcombine.high %v568_v46, %v576_v47  ;;  %v9177_v53 = vcombine.high %v537_v48, %v545_v49  ;;  %v672_v8 = vld [vmem:[#allocation9 + $0x6d8] sm:$0xff]  ;;  %v633_v10 = vld [vmem:[#allocation9 + $0x5a0] sm:$0xff] }
 0x2a8   :  { %3765 = vmatmul.mubr.bf16.vlgmr.msra.gmra.mrb[4].mxu1 %v11246_v37 }
 0x2a9   :  { %3843 = vmatpush1.bf16.msra.mxu0 %v9572_v18  ;;  %3856 = vmatpush1.bf16.msra.mxu1 %v9094_v55  ;;  %v561_v18 = vld [vmem:[#allocation9 + $0x360] sm:$0xff]  ;;  %v9206_v55 = vcombine.low %v568_v46, %v576_v47  ;;  %v680_v47 = vld [vmem:[#allocation9 + $0x718] sm:$0xff] }
 0x2aa   :  { %3887 = vmatprep.mubr.bf16.mxu1 %v11236_v12  ;;  %3844 = vmatprep.subr.bf16.mxu0 %v9589_v56  ;;  %v9176_v56 = vcombine.low %v537_v48, %v545_v49  ;;  %v688_v48 = vld [vmem:[#allocation9 + $0x758] sm:$0xff]  ;;  %v649_v49 = vld [vmem:[#allocation9 + $0x620] sm:$0xff] }
 0x2ab   :  { %3857 = vmatprep.subr.bf16.mxu1 %v9111_v58  ;;  %v9193_v58 = vcombine.high %v553_v17, %v561_v18 }
 0x2ad   :  { %3845 = vmatpush1.bf16.msra.mxu0 %v9588_v62  ;;  %3858 = vmatpush1.bf16.msra.mxu1 %v9110_v63  ;;  %v577_v62 = vld [vmem:[#allocation9 + $0x3e0] sm:$0xff]  ;;  %v9222_v63 = vcombine.low %v584_v54, %v592_v16  ;;  %v696_v16 = vld [vmem:[#allocation9 + $0x798] sm:$0xff] }
 0x2ae   :  { %3859 = vmatprep.subr.bf16.mxu1 %v9127_v0  ;;  %3937 = vmatprep.subr.bf16.mxu0 %v9097_v1  ;;  %v9192_v0 = vcombine.low %v553_v17, %v561_v18  ;;  %v9239_v1 = vcombine.high %v600_v59, %v608_v60  ;;  %v9209_v2 = vcombine.high %v569_v61, %v577_v62  ;;  %v704_v17 = vld [vmem:[#allocation9 + $0x7d8] sm:$0xff]  ;;  %v665_v18 = vld [vmem:[#allocation9 + $0x6a0] sm:$0xff] }
 0x2b0   :  { %3847 = vmatmul.mubr.bf16.vlgmr.msra.gmra.mrb[12].mxu0 %v11246_v37 }
 0x2b1   :  { %3860 = vmatpush1.bf16.msra.mxu1 %v9126_v7  ;;  %3938 = vmatpush1.bf16.msra.mxu0 %v9096_v9  ;;  %v593_v7 = vld [vmem:[#allocation9 + $0x460] sm:$0xff]  ;;  %v9238_v9 = vcombine.low %v600_v59, %v608_v60  ;;  %v712_v60 = vld [vmem:[#allocation9 + $0x818] sm:$0xff] }
 0x2b2   :  { %3969 = vmatprep.mubr.bf16.mxu0 %v11236_v12  ;;  %3861 = vmatprep.subr.bf16.mxu1 %v9143_v11  ;;  %v9208_v11 = vcombine.low %v569_v61, %v577_v62  ;;  %v720_v61 = vld [vmem:[#allocation9 + $0x858] sm:$0xff]  ;;  %v681_v62 = vld [vmem:[#allocation9 + $0x720] sm:$0xff] }
 0x2b3   :  { %3939 = vmatprep.subr.bf16.mxu0 %v9113_v15  ;;  %v9225_v15 = vcombine.high %v585_v5, %v593_v7 }
 0x2b5   :  { %3862 = vmatpush1.bf16.msra.mxu1 %v9142_v25  ;;  %3940 = vmatpush1.bf16.msra.mxu0 %v9112_v26  ;;  %v609_v25 = vld [vmem:[#allocation9 + $0x4e0] sm:$0xff]  ;;  %v9254_v26 = vcombine.low %v616_v3, %v624_v4  ;;  %v728_v4 = vld [vmem:[#allocation9 + $0x898] sm:$0xff] }
 0x2b6   :  { %3863 = vmatprep.subr.bf16.mxu1 %v9159_v27  ;;  %3941 = vmatprep.subr.bf16.mxu0 %v9129_v28  ;;  %v9224_v27 = vcombine.low %v585_v5, %v593_v7  ;;  %v9271_v28 = vcombine.high %v632_v19, %v640_v20  ;;  %v9241_v29 = vcombine.high %v601_v23, %v609_v25  ;;  %v736_v5 = vld [vmem:[#allocation9 + $0x8d8] sm:$0xff]  ;;  %v697_v7 = vld [vmem:[#allocation9 + $0x7a0] sm:$0xff] }
 0x2b9   :  { %3864 = vmatpush1.bf16.msra.mxu1 %v9158_v35  ;;  %3942 = vmatpush1.bf16.msra.mxu0 %v9128_v36  ;;  %v625_v35 = vld [vmem:[#allocation9 + $0x560] sm:$0xff]  ;;  %v9270_v36 = vcombine.low %v632_v19, %v640_v20  ;;  %v744_v20 = vld [vmem:[#allocation9 + $0x918] sm:$0xff] }
 0x2ba   :  { %3865 = vmatprep.subr.bf16.mxu1 %v9175_v38  ;;  %3943 = vmatprep.subr.bf16.mxu0 %v9145_v39  ;;  %v9240_v38 = vcombine.low %v601_v23, %v609_v25  ;;  %v9287_v39 = vcombine.high %v648_v31, %v656_v32  ;;  %v9257_v41 = vcombine.high %v617_v34, %v625_v35  ;;  %v752_v23 = vld [vmem:[#allocation9 + $0x958] sm:$0xff]  ;;  %v458_v25 = vld [vmem:[#allocation9 + $0x28] sm:$0xff] }
 0x2bd   :  { %3866 = vmatpush1.bf16.msra.mxu1 %v9174_v42  ;;  %3944 = vmatpush1.bf16.msra.mxu0 %v9144_v43  ;;  %v641_v42 = vld [vmem:[#allocation9 + $0x5e0] sm:$0xff]  ;;  %v9286_v43 = vcombine.low %v648_v31, %v656_v32  ;;  %v760_v32 = vld [vmem:[#allocation9 + $0x998] sm:$0xff] }
 0x2be   :  { %3867 = vmatprep.subr.bf16.mxu1 %v9191_v44  ;;  %3945 = vmatprep.subr.bf16.mxu0 %v9161_v45  ;;  %v9256_v44 = vcombine.low %v617_v34, %v625_v35  ;;  %v9303_v45 = vcombine.high %v664_v6, %v672_v8  ;;  %v9273_v46 = vcombine.high %v633_v10, %v641_v42  ;;  %v768_v34 = vld [vmem:[#allocation9 + $0x9d8] sm:$0xff]  ;;  %v474_v35 = vld [vmem:[#allocation9 + $0xa8] sm:$0xff] }
 0x2c1   :  { %3868 = vmatpush1.bf16.msra.mxu1 %v9190_v50  ;;  %3946 = vmatpush1.bf16.msra.mxu0 %v9160_v51  ;;  %v657_v50 = vld [vmem:[#allocation9 + $0x660] sm:$0xff]  ;;  %v9302_v51 = vcombine.low %v664_v6, %v672_v8  ;;  %v776_v8 = vld [vmem:[#allocation9 + $0xa18] sm:$0xff] }
 0x2c2   :  { %3869 = vmatprep.subr.bf16.mxu1 %v9207_v52  ;;  %3947 = vmatprep.subr.bf16.mxu0 %v9177_v53  ;;  %v9272_v52 = vcombine.low %v633_v10, %v641_v42  ;;  %v9319_v53 = vcombine.high %v680_v47, %v688_v48  ;;  %v9289_v54 = vcombine.high %v649_v49, %v657_v50  ;;  %v784_v10 = vld [vmem:[#allocation9 + $0xa58] sm:$0xff]  ;;  %v490_v42 = vld [vmem:[#allocation9 + $0x128] sm:$0xff] }
 0x2c5   :  { %3870 = vmatpush1.bf16.msra.mxu1 %v9206_v55  ;;  %3948 = vmatpush1.bf16.msra.mxu0 %v9176_v56  ;;  %v673_v55 = vld [vmem:[#allocation9 + $0x6e0] sm:$0xff]  ;;  %v9318_v56 = vcombine.low %v680_v47, %v688_v48  ;;  %v792_v48 = vld [vmem:[#allocation9 + $0xa98] sm:$0xff] }
 0x2c6   :  { %3871 = vmatprep.subr.bf16.mxu1 %v9223_v57  ;;  %3949 = vmatprep.subr.bf16.mxu0 %v9193_v58  ;;  %v9288_v57 = vcombine.low %v649_v49, %v657_v50  ;;  %v9335_v58 = vcombine.high %v696_v16, %v704_v17  ;;  %v9305_v59 = vcombine.high %v665_v18, %v673_v55  ;;  %v800_v49 = vld [vmem:[#allocation9 + $0xad8] sm:$0xff]  ;;  %v506_v50 = vld [vmem:[#allocation9 + $0x1a8] sm:$0xff] }
 0x2c9   :  { %3872 = vmatpush1.bf16.msra.mxu1 %v9222_v63  ;;  %3950 = vmatpush1.bf16.msra.mxu0 %v9192_v0  ;;  %v689_v63 = vld [vmem:[#allocation9 + $0x760] sm:$0xff]  ;;  %v9334_v0 = vcombine.low %v696_v16, %v704_v17  ;;  %v808_v17 = vld [vmem:[#allocation9 + $0xb18] sm:$0xff] }
 0x2ca   :  { %3873 = vmatprep.subr.bf16.mxu1 %v9239_v1  ;;  %3951 = vmatprep.subr.bf16.mxu0 %v9209_v2  ;;  %v9304_v1 = vcombine.low %v665_v18, %v673_v55  ;;  %v9351_v2 = vcombine.high %v712_v60, %v720_v61  ;;  %v9321_v3 = vcombine.high %v681_v62, %v689_v63  ;;  %v816_v18 = vld [vmem:[#allocation9 + $0xb58] sm:$0xff]  ;;  %v522_v55 = vld [vmem:[#allocation9 + $0x228] sm:$0xff] }
 0x2cd   :  { %3874 = vmatpush1.bf16.msra.mxu1 %v9238_v9  ;;  %3952 = vmatpush1.bf16.msra.mxu0 %v9208_v11  ;;  %v705_v9 = vld [vmem:[#allocation9 + $0x7e0] sm:$0xff]  ;;  %v9350_v11 = vcombine.low %v712_v60, %v720_v61 }
 0x2ce   :  { %3875 = vmatprep.subr.bf16.mxu1 %v9255_v14  ;;  %3953 = vmatprep.subr.bf16.mxu0 %v9225_v15  ;;  %v9320_v14 = vcombine.low %v681_v62, %v689_v63  ;;  %v9367_v15 = vcombine.high %v728_v4, %v736_v5  ;;  %v9337_v19 = vcombine.high %v697_v7, %v705_v9  ;;  %v965_v60 = vld [vmem:[#allocation11] sm:$0xff]  ;;  %v824_v63 = vld [vmem:[#allocation9 + $0xb98] sm:$0xff] }
 0x2d1   :  { %3876 = vmatpush1.bf16.msra.mxu1 %v9254_v26  ;;  %3954 = vmatpush1.bf16.msra.mxu0 %v9224_v27  ;;  %v466_v26 = vld [vmem:[#allocation9 + $0x68] sm:$0xff]  ;;  %v9366_v27 = vcombine.low %v728_v4, %v736_v5  ;;  %v9446_v5 = vcombine.low %v808_v17, %v816_v18 }
 0x2d2   :  { %3877 = vmatprep.subr.bf16.mxu1 %v9271_v28  ;;  %3955 = vmatprep.subr.bf16.mxu0 %v9241_v29  ;;  %v9336_v28 = vcombine.low %v697_v7, %v705_v9  ;;  %v9383_v29 = vcombine.high %v744_v20, %v752_v23  ;;  %v9099_v31 = vcombine.high %v458_v25, %v466_v26 }
 0x2d3   :  { %v972_v7 = vrot.slane %v965_v60, %v11221_v22 }
 0x2d5   :  { %3878 = vmatpush1.bf16.msra.mxu1 %v9270_v36  ;;  %3956 = vmatpush1.bf16.msra.mxu0 %v9240_v38  ;;  %v482_v36 = vld [vmem:[#allocation9 + $0xe8] sm:$0xff]  ;;  %v9382_v38 = vcombine.low %v744_v20, %v752_v23  ;;  %v840_v20 = vld [vmem:[#allocation9 + $0xc18] sm:$0xff] }
 0x2d6   :  { %3879 = vmatprep.subr.bf16.mxu1 %v9287_v39  ;;  %3957 = vmatprep.subr.bf16.mxu0 %v9257_v41  ;;  %v9098_v39 = vcombine.low %v458_v25, %v466_v26  ;;  %v9399_v41 = vcombine.high %v760_v32, %v768_v34  ;;  %v9115_v6 = vcombine.high %v474_v35, %v482_v36  ;;  %v848_v23 = vld [vmem:[#allocation9 + $0xc58] sm:$0xff]  ;;  %v554_v25 = vld [vmem:[#allocation9 + $0x328] sm:$0xff] }
 0x2d7   :  { %v562_v26 = vld [vmem:[#allocation9 + $0x368] sm:$0xff] }
 0x2d9   :  { %3880 = vmatpush1.bf16.msra.mxu1 %v9286_v43  ;;  %3958 = vmatpush1.bf16.msra.mxu0 %v9256_v44  ;;  %v498_v43 = vld [vmem:[#allocation9 + $0x168] sm:$0xff]  ;;  %v9398_v44 = vcombine.low %v760_v32, %v768_v34 }
 0x2da   :  { %3881 = vmatprep.subr.bf16.mxu1 %v9303_v45  ;;  %3959 = vmatprep.subr.bf16.mxu0 %v9273_v46  ;;  %v9114_v45 = vcombine.low %v474_v35, %v482_v36  ;;  %v9415_v46 = vcombine.high %v776_v8, %v784_v10  ;;  %v9131_v47 = vcombine.high %v490_v42, %v498_v43  ;;  %v856_v36 = vld [vmem:[#allocation9 + $0xc98] sm:$0xff] }
 0x2db   :  { %v9195_v35 = vcombine.high %v554_v25, %v562_v26 }
 0x2dd   :  { %3882 = vmatpush1.bf16.msra.mxu1 %v9302_v51  ;;  %3960 = vmatpush1.bf16.msra.mxu0 %v9272_v52  ;;  %v514_v51 = vld [vmem:[#allocation9 + $0x1e8] sm:$0xff]  ;;  %v9414_v52 = vcombine.low %v776_v8, %v784_v10 }
 0x2de   :  { %3883 = vmatprep.subr.bf16.mxu1 %v9319_v53  ;;  %3961 = vmatprep.subr.bf16.mxu0 %v9289_v54  ;;  %v9130_v53 = vcombine.low %v490_v42, %v498_v43  ;;  %v9431_v54 = vcombine.high %v792_v48, %v800_v49  ;;  %v9147_v16 = vcombine.high %v506_v50, %v514_v51  ;;  %v578_v8 = vld [vmem:[#allocation9 + $0x3e8] sm:$0xff] }
 0x2df   :  { %v9478_v42 = vcombine.low %v840_v20, %v848_v23 }
 0x2e1   :  { %3884 = vmatpush1.bf16.msra.mxu1 %v9318_v56  ;;  %3962 = vmatpush1.bf16.msra.mxu0 %v9288_v57  ;;  %v530_v56 = vld [vmem:[#allocation9 + $0x268] sm:$0xff]  ;;  %v9430_v57 = vcombine.low %v792_v48, %v800_v49  ;;  %v872_v48 = vld [vmem:[#allocation9 + $0xd18] sm:$0xff] }
 0x2e2   :  { %3885 = vmatprep.subr.bf16.mxu1 %v9335_v58  ;;  %3963 = vmatprep.subr.bf16.mxu0 %v9305_v59  ;;  %v9146_v58 = vcombine.low %v506_v50, %v514_v51  ;;  %v9447_v59 = vcombine.high %v808_v17, %v816_v18  ;;  %v9163_v62 = vcombine.high %v522_v55, %v530_v56  ;;  %v880_v49 = vld [vmem:[#allocation9 + $0xd58] sm:$0xff]  ;;  %v586_v50 = vld [vmem:[#allocation9 + $0x428] sm:$0xff] }
 0x2e3   :  { %v594_v51 = vld [vmem:[#allocation9 + $0x468] sm:$0xff]  ;;  %v888_v17 = vld [vmem:[#allocation9 + $0xd98] sm:$0xff] }
 0x2e4   :  { %v896_v18 = vld [vmem:[#allocation9 + $0xdd8] sm:$0xff] }
 0x2e5   :  { %3886 = vmatpush1.bf16.msra.mxu1 %v9334_v0  ;;  %3964 = vmatpush1.bf16.msra.mxu0 %v9304_v1  ;;  %v832_v0 = vld [vmem:[#allocation9 + $0xbd8] sm:$0xff] }
 0x2e6   :  { %3896 = vmatprep.subr.bf16.mxu1 %v9351_v2  ;;  %3965 = vmatprep.subr.bf16.mxu0 %v9321_v3  ;;  %v538_v2 = vld [vmem:[#allocation9 + $0x2a8] sm:$0xff] }
 0x2e7   :  { %v546_v3 = vld [vmem:[#allocation9 + $0x2e8] sm:$0xff] }
 0x2e8   :  { %3888 = vmatmul.mubr.bf16.vlgmr.msra.gmra.mrb[8].mxu1 %v11238_v13 }
 0x2e9   :  { %3897 = vmatpush1.bf16.msra.mxu1 %v9350_v11  ;;  %3928 = vmatprep.mubr.bf16.mxu1 %v11248_v40  ;;  %v9162_v11 = vcombine.low %v522_v55, %v530_v56  ;;  %v602_v55 = vld [vmem:[#allocation9 + $0x4a8] sm:$0xff] }
 0x2ea   :  { %3966 = vmatpush1.bf16.msra.mxu0 %v9320_v14  ;;  %3898 = vmatprep.subr.bf16.mxu1 %v9367_v15  ;;  %v9463_v14 = vcombine.high %v824_v63, %v832_v0  ;;  %v976_v15 = vrot.slane %v965_v60, %v11224_v24  ;;  %v610_v56 = vld [vmem:[#allocation9 + $0x4e8] sm:$0xff] }
 0x2eb   :  { %3967 = vmatprep.subr.bf16.mxu0 %v9337_v19  ;;  %v9179_v19 = vcombine.high %v538_v2, %v546_v3  ;;  %v9243_v60 = vcombine.high %v602_v55, %v610_v56 }
 0x2ed   :  { %3899 = vmatpush1.bf16.msra.mxu1 %v9366_v27  ;;  %v9462_v27 = vcombine.low %v824_v63, %v832_v0  ;;  %v618_v63 = vld [vmem:[#allocation9 + $0x528] sm:$0xff] }
 0x2ee   :  { %3968 = vmatpush1.bf16.msra.mxu0 %v9336_v28  ;;  %3900 = vmatprep.subr.bf16.mxu1 %v9383_v29  ;;  %v9178_v29 = vcombine.low %v538_v2, %v546_v3  ;;  %v626_v0 = vld [vmem:[#allocation9 + $0x568] sm:$0xff]  ;;  %v9242_v2 = vcombine.low %v602_v55, %v610_v56  ;;  %v745_v56 = vld [vmem:[#allocation9 + $0x920] sm:$0xff] }
 0x2ef   :  { %4019 = vmatprep.subr.bf16.mxu0 %v9099_v31  ;;  %v9479_v31 = vcombine.high %v840_v20, %v848_v23  ;;  %v936_v23 = vld [vmem:[#allocation9 + $0xf18] sm:$0xff] }
 0x2f1   :  { %3970 = vmatmul.mubr.bf16.vlgmr.msra.gmra.mrb[16].mxu0 %v11238_v13  ;;  %3901 = vmatpush1.bf16.msra.mxu1 %v9382_v38  ;;  %v864_v38 = vld [vmem:[#allocation9 + $0xcd8] sm:$0xff] }
 0x2f2   :  { %4020 = vmatpush1.bf16.msra.mxu0 %v9098_v39  ;;  %4051 = vmatprep.mubr.bf16.mxu0 %v11236_v12 }
 0x2f3   :  { %3902 = vmatprep.subr.bf16.mxu1 %v9399_v41  ;;  %4021 = vmatprep.subr.bf16.mxu0 %v9115_v6  ;;  %v570_v6 = vld [vmem:[#allocation9 + $0x3a8] sm:$0xff] }
 0x2f5   :  { %3903 = vmatpush1.bf16.msra.mxu1 %v9398_v44  ;;  %v9194_v44 = vcombine.low %v554_v25, %v562_v26  ;;  %v944_v25 = vld [vmem:[#allocation9 + $0xf58] sm:$0xff]  ;;  %v650_v26 = vld [vmem:[#allocation9 + $0x628] sm:$0xff] }
 0x2f6   :  { %4022 = vmatpush1.bf16.msra.mxu0 %v9114_v45  ;;  %3904 = vmatprep.subr.bf16.mxu1 %v9415_v46  ;;  %v9495_v45 = vcombine.high %v856_v36, %v864_v38 }
 0x2f7   :  { %4023 = vmatprep.subr.bf16.mxu0 %v9131_v47  ;;  %v9211_v47 = vcombine.high %v570_v6, %v578_v8 }
 0x2f9   :  { %3905 = vmatpush1.bf16.msra.mxu1 %v9414_v52  ;;  %v9494_v52 = vcombine.low %v856_v36, %v864_v38  ;;  %v666_v36 = vld [vmem:[#allocation9 + $0x6a8] sm:$0xff] }
 0x2fa   :  { %4024 = vmatpush1.bf16.msra.mxu0 %v9130_v53  ;;  %3906 = vmatprep.subr.bf16.mxu1 %v9431_v54  ;;  %v9210_v53 = vcombine.low %v570_v6, %v578_v8  ;;  %v9511_v54 = vcombine.high %v872_v48, %v880_v49  ;;  %v674_v38 = vld [vmem:[#allocation9 + $0x6e8] sm:$0xff] }
 0x2fb   :  { %v3643_v61 = vpop.f32.mrb[0].mxu1  ;;  %4025 = vmatprep.subr.bf16.mxu0 %v9147_v16  ;;  %v9227_v16 = vcombine.high %v586_v50, %v594_v51 }
 0x2fc   :  { %v3645_v1 = vpop.f32.mrb[1].mxu1  ;;  %v3644_v28 = vadd.f32 %v3643_v61, %v972_v7  ;;  %v904_v61 = vld [vmem:[#allocation9 + $0xe18] sm:$0xff] }
 0x2fd   :  { %3907 = vmatpush1.bf16.msra.mxu1 %v9430_v57  ;;  %v3647_v4 = vpop.f32.mrb[2].mxu1  ;;  %v3646_v32 = vadd.f32 %v3645_v1, %v976_v15  ;;  %v9510_v57 = vcombine.low %v872_v48, %v880_v49  ;;  %v9526_v1 = vcombine.low %v888_v17, %v896_v18  ;;  %v928_v7 = vld [vmem:[#allocation9 + $0xed8] sm:$0xff]  ;;  %v9258_v15 = vcombine.low %v618_v63, %v626_v0 }
 0x2fe   :  { %4026 = vmatpush1.bf16.msra.mxu0 %v9146_v58  ;;  %v3648_v9 = vpop.f32.mrb[3].mxu1  ;;  %3908 = vmatprep.subr.bf16.mxu1 %v9447_v59  ;;  %v9226_v58 = vcombine.low %v586_v50, %v594_v51  ;;  %v9527_v59 = vcombine.high %v888_v17, %v896_v18  ;;  %v9259_v4 = vcombine.high %v618_v63, %v626_v0  ;;  %v729_v51 = vld [vmem:[#allocation9 + $0x8a0] sm:$0xff] }
 0x2ff   :  { %4027 = vmatprep.subr.bf16.mxu0 %v9163_v62  ;;  %v912_v62 = vld [vmem:[#allocation9 + $0xe58] sm:$0xff]  ;;  %v634_v9 = vld [vmem:[#allocation9 + $0x5a8] sm:$0xff]  ;;  %v9306_v48 = vcombine.low %v666_v36, %v674_v38  ;;  %v761_v0 = vld [vmem:[#allocation9 + $0x9a0] sm:$0xff] }
 0x300   :  { %v9543_v3 = vcombine.high %v904_v61, %v912_v62 }
 0x301   :  { %3909 = vmatpush1.bf16.msra.mxu1 %v9446_v5  ;;  %v920_v5 = vld [vmem:[#allocation9 + $0xe98] sm:$0xff] }
 0x302   :  { %4028 = vmatpush1.bf16.msra.mxu0 %v9162_v11  ;;  %3910 = vmatprep.subr.bf16.mxu1 %v9463_v14  ;;  %v642_v11 = vld [vmem:[#allocation9 + $0x5e8] sm:$0xff]  ;;  %v9542_v14 = vcombine.low %v904_v61, %v912_v62 }
 0x303   :  { %v3684_v34 = vpop.f32.mrb[8].mxu0  ;;  %4029 = vmatprep.subr.bf16.mxu0 %v9179_v19  ;;  %v9559_v19 = vcombine.high %v920_v5, %v928_v7  ;;  %v9275_v20 = vcombine.high %v634_v9, %v642_v11 }
 0x304   :  { %v11270_v39 = vadd.f32 %v3684_v34, %v3644_v28  ;;  %v3686_v41 = vpop.f32.mrb[9].mxu0  ;;  %v9558_v28 = vcombine.low %v920_v5, %v928_v7  ;;  %v952_v34 = vld [vmem:[#allocation9 + $0xf98] sm:$0xff] }
 0x305   :  { %v11272_v10 = vadd.f32 %v3686_v41, %v3646_v32  ;;  %3911 = vmatpush1.bf16.msra.mxu1 %v9462_v27  ;;  %v3688_v43 = vpop.f32.mrb[10].mxu0  ;;  %v658_v27 = vld [vmem:[#allocation9 + $0x668] sm:$0xff]  ;;  %v9574_v41 = vcombine.low %v936_v23, %v944_v25 }
 0x306   :  { %4030 = vmatpush1.bf16.msra.mxu0 %v9178_v29  ;;  %3912 = vmatprep.subr.bf16.mxu1 %v9479_v31  ;;  %v3689_v46 = vpop.f32.mrb[11].mxu0  ;;  %v9274_v29 = vcombine.low %v634_v9, %v642_v11  ;;  %v9575_v31 = vcombine.high %v936_v23, %v944_v25  ;;  %v9291_v32 = vcombine.high %v650_v26, %v658_v27  ;;  %v713_v43 = vld [vmem:[#allocation9 + $0x820] sm:$0xff] }
 0x307   :  { %4031 = vmatprep.subr.bf16.mxu0 %v9195_v35  ;;  %v960_v35 = vld [vmem:[#allocation9 + $0xfd8] sm:$0xff]  ;;  %v9290_v6 = vcombine.low %v650_v26, %v658_v27  ;;  %v690_v46 = vld [vmem:[#allocation9 + $0x768] sm:$0xff]  ;;  %v777_v11 = vld [vmem:[#allocation9 + $0xa20] sm:$0xff] }
 0x308   :  { %v9591_v8 = vcombine.high %v952_v34, %v960_v35  ;;  %v793_v27 = vld [vmem:[#allocation9 + $0xaa0] sm:$0xff] }
 0x309   :  { %3913 = vmatpush1.bf16.msra.mxu1 %v9478_v42  ;;  %v9307_v42 = vcombine.high %v666_v36, %v674_v38  ;;  %v809_v38 = vld [vmem:[#allocation9 + $0xb20] sm:$0xff] }
 0x30a   :  { %4032 = vmatpush1.bf16.msra.mxu0 %v9194_v44  ;;  %3914 = vmatprep.subr.bf16.mxu1 %v9495_v45  ;;  %v721_v44 = vld [vmem:[#allocation9 + $0x860] sm:$0xff]  ;;  %v682_v45 = vld [vmem:[#allocation9 + $0x728] sm:$0xff] }
 0x30b   :  { %4033 = vmatprep.subr.bf16.mxu0 %v9211_v47  ;;  %v9590_v47 = vcombine.low %v952_v34, %v960_v35  ;;  %v9353_v49 = vcombine.high %v713_v43, %v721_v44  ;;  %v9323_v50 = vcombine.high %v682_v45, %v690_v46  ;;  %v9322_v17 = vcombine.low %v682_v45, %v690_v46  ;;  %v825_v46 = vld [vmem:[#allocation9 + $0xba0] sm:$0xff] }
 0x30d   :  { %3915 = vmatpush1.bf16.msra.mxu1 %v9494_v52  ;;  %v737_v52 = vld [vmem:[#allocation9 + $0x8e0] sm:$0xff] }
 0x30e   :  { %4034 = vmatpush1.bf16.msra.mxu0 %v9210_v53  ;;  %3916 = vmatprep.subr.bf16.mxu1 %v9511_v54  ;;  %v698_v53 = vld [vmem:[#allocation9 + $0x7a8] sm:$0xff]  ;;  %v9369_v18 = vcombine.high %v729_v51, %v737_v52 }
 0x30f   :  { %4035 = vmatprep.subr.bf16.mxu0 %v9227_v16  ;;  %v706_v54 = vld [vmem:[#allocation9 + $0x7e8] sm:$0xff]  ;;  %v9352_v16 = vcombine.low %v713_v43, %v721_v44 }
 0x310   :  { %v9339_v55 = vcombine.high %v698_v53, %v706_v54  ;;  %v9338_v61 = vcombine.low %v698_v53, %v706_v54  ;;  %v841_v54 = vld [vmem:[#allocation9 + $0xc20] sm:$0xff] }
 0x311   :  { %3917 = vmatpush1.bf16.msra.mxu1 %v9510_v57  ;;  %v753_v57 = vld [vmem:[#allocation9 + $0x960] sm:$0xff] }
 0x312   :  { %4036 = vmatpush1.bf16.msra.mxu0 %v9226_v58  ;;  %3918 = vmatprep.subr.bf16.mxu1 %v9527_v59  ;;  %v459_v58 = vld [vmem:[#allocation9 + $0x30] sm:$0xff]  ;;  %v9385_v62 = vcombine.high %v745_v56, %v753_v57 }
 0x313   :  { %4037 = vmatprep.subr.bf16.mxu0 %v9243_v60  ;;  %v467_v59 = vld [vmem:[#allocation9 + $0x70] sm:$0xff]  ;;  %v9368_v60 = vcombine.low %v729_v51, %v737_v52 }
 0x314   :  { %v9101_v63 = vcombine.high %v459_v58, %v467_v59  ;;  %v9100_v5 = vcombine.low %v459_v58, %v467_v59  ;;  %v857_v59 = vld [vmem:[#allocation9 + $0xca0] sm:$0xff] }
 0x315   :  { %3919 = vmatpush1.bf16.msra.mxu1 %v9526_v1  ;;  %v769_v1 = vld [vmem:[#allocation9 + $0x9e0] sm:$0xff] }
 0x316   :  { %4038 = vmatpush1.bf16.msra.mxu0 %v9242_v2  ;;  %3920 = vmatprep.subr.bf16.mxu1 %v9543_v3  ;;  %v475_v2 = vld [vmem:[#allocation9 + $0xb0] sm:$0xff]  ;;  %v9401_v7 = vcombine.high %v761_v0, %v769_v1 }
 0x317   :  { %4039 = vmatprep.subr.bf16.mxu0 %v9259_v4  ;;  %v483_v3 = vld [vmem:[#allocation9 + $0xf0] sm:$0xff]  ;;  %v9384_v4 = vcombine.low %v745_v56, %v753_v57 }
 0x318   :  { %v9117_v9 = vcombine.high %v475_v2, %v483_v3  ;;  %v9116_v23 = vcombine.low %v475_v2, %v483_v3  ;;  %v873_v3 = vld [vmem:[#allocation9 + $0xd20] sm:$0xff] }
 0x319   :  { %3921 = vmatpush1.bf16.msra.mxu1 %v9542_v14  ;;  %v785_v14 = vld [vmem:[#allocation9 + $0xa60] sm:$0xff] }
 0x31a   :  { %4040 = vmatpush1.bf16.msra.mxu0 %v9258_v15  ;;  %3922 = vmatprep.subr.bf16.mxu1 %v9559_v19  ;;  %v491_v15 = vld [vmem:[#allocation9 + $0x130] sm:$0xff]  ;;  %v9417_v25 = vcombine.high %v777_v11, %v785_v14 }
 0x31b   :  { %4041 = vmatprep.subr.bf16.mxu0 %v9275_v20  ;;  %v499_v19 = vld [vmem:[#allocation9 + $0x170] sm:$0xff]  ;;  %v9400_v20 = vcombine.low %v761_v0, %v769_v1 }
 0x31c   :  { %v9133_v26 = vcombine.high %v491_v15, %v499_v19  ;;  %v9132_v34 = vcombine.low %v491_v15, %v499_v19  ;;  %v889_v19 = vld [vmem:[#allocation9 + $0xda0] sm:$0xff] }
 0x31d   :  { %3923 = vmatpush1.bf16.msra.mxu1 %v9558_v28  ;;  %v801_v28 = vld [vmem:[#allocation9 + $0xae0] sm:$0xff] }
 0x31e   :  { %4042 = vmatpush1.bf16.msra.mxu0 %v9274_v29  ;;  %3924 = vmatprep.subr.bf16.mxu1 %v9575_v31  ;;  %v507_v29 = vld [vmem:[#allocation9 + $0x1b0] sm:$0xff]  ;;  %v9433_v35 = vcombine.high %v793_v27, %v801_v28 }
 0x31f   :  { %4043 = vmatprep.subr.bf16.mxu0 %v9291_v32  ;;  %v515_v31 = vld [vmem:[#allocation9 + $0x1f0] sm:$0xff]  ;;  %v9416_v32 = vcombine.low %v777_v11, %v785_v14 }
 0x320   :  { %v9149_v36 = vcombine.high %v507_v29, %v515_v31  ;;  %v9148_v43 = vcombine.low %v507_v29, %v515_v31  ;;  %v905_v31 = vld [vmem:[#allocation9 + $0xe20] sm:$0xff] }
 0x321   :  { %3925 = vmatpush1.bf16.msra.mxu1 %v9574_v41  ;;  %v817_v41 = vld [vmem:[#allocation9 + $0xb60] sm:$0xff] }
 0x322   :  { %4044 = vmatpush1.bf16.msra.mxu0 %v9290_v6  ;;  %3926 = vmatprep.subr.bf16.mxu1 %v9591_v8  ;;  %v523_v6 = vld [vmem:[#allocation9 + $0x230] sm:$0xff]  ;;  %v9449_v44 = vcombine.high %v809_v38, %v817_v41 }
 0x323   :  { %4045 = vmatprep.subr.bf16.mxu0 %v9307_v42  ;;  %v531_v8 = vld [vmem:[#allocation9 + $0x270] sm:$0xff]  ;;  %v9432_v42 = vcombine.low %v793_v27, %v801_v28 }
 0x324   :  { %v9165_v45 = vcombine.high %v523_v6, %v531_v8  ;;  %v9164_v51 = vcombine.low %v523_v6, %v531_v8  ;;  %v921_v8 = vld [vmem:[#allocation9 + $0xea0] sm:$0xff] }
 0x325   :  { %3927 = vmatpush1.bf16.msra.mxu1 %v9590_v47  ;;  %v833_v47 = vld [vmem:[#allocation9 + $0xbe0] sm:$0xff] }
 0x326   :  { %4046 = vmatpush1.bf16.msra.mxu0 %v9306_v48  ;;  %3978 = vmatprep.subr.bf16.mxu1 %v9353_v49  ;;  %v539_v48 = vld [vmem:[#allocation9 + $0x2b0] sm:$0xff]  ;;  %v9465_v52 = vcombine.high %v825_v46, %v833_v47 }
 0x327   :  { %4047 = vmatprep.subr.bf16.mxu0 %v9323_v50  ;;  %v547_v49 = vld [vmem:[#allocation9 + $0x2f0] sm:$0xff]  ;;  %v9448_v50 = vcombine.low %v809_v38, %v817_v41 }
 0x328   :  { %3929 = vmatmul.mubr.bf16.vlgmr.msra.gmra.mrb[8].mxu1 %v11246_v37  ;;  %v9181_v53 = vcombine.high %v539_v48, %v547_v49  ;;  %v9180_v56 = vcombine.low %v539_v48, %v547_v49  ;;  %v937_v49 = vld [vmem:[#allocation9 + $0xf20] sm:$0xff] }
 0x329   :  { %3979 = vmatpush1.bf16.msra.mxu1 %v9352_v16  ;;  %4010 = vmatprep.mubr.bf16.mxu1 %v11248_v40  ;;  %v849_v16 = vld [vmem:[#allocation9 + $0xc60] sm:$0xff] }
 0x32a   :  { %4048 = vmatpush1.bf16.msra.mxu0 %v9322_v17  ;;  %3980 = vmatprep.subr.bf16.mxu1 %v9369_v18  ;;  %v555_v17 = vld [vmem:[#allocation9 + $0x330] sm:$0xff]  ;;  %v9481_v57 = vcombine.high %v841_v54, %v849_v16 }
 0x32b   :  { %4049 = vmatprep.subr.bf16.mxu0 %v9339_v55  ;;  %v563_v18 = vld [vmem:[#allocation9 + $0x370] sm:$0xff]  ;;  %v9464_v55 = vcombine.low %v825_v46, %v833_v47 }
 0x32c   :  { %v9197_v58 = vcombine.high %v555_v17, %v563_v18  ;;  %v9196_v0 = vcombine.low %v555_v17, %v563_v18  ;;  %v953_v18 = vld [vmem:[#allocation9 + $0xfa0] sm:$0xff] }
 0x32d   :  { %3981 = vmatpush1.bf16.msra.mxu1 %v9368_v60  ;;  %v865_v60 = vld [vmem:[#allocation9 + $0xce0] sm:$0xff] }
 0x32e   :  { %4050 = vmatpush1.bf16.msra.mxu0 %v9338_v61  ;;  %3982 = vmatprep.subr.bf16.mxu1 %v9385_v62  ;;  %v571_v61 = vld [vmem:[#allocation9 + $0x3b0] sm:$0xff]  ;;  %v9497_v1 = vcombine.high %v857_v59, %v865_v60 }
 0x32f   :  { %4101 = vmatprep.subr.bf16.mxu0 %v9101_v63  ;;  %v579_v62 = vld [vmem:[#allocation9 + $0x3f0] sm:$0xff]  ;;  %v9480_v63 = vcombine.low %v841_v54, %v849_v16 }
 0x330   :  { %v9213_v2 = vcombine.high %v571_v61, %v579_v62  ;;  %v9212_v11 = vcombine.low %v571_v61, %v579_v62  ;;  %v714_v62 = vld [vmem:[#allocation9 + $0x828] sm:$0xff] }
 0x331   :  { %4052 = vmatmul.mubr.bf16.vlgmr.msra.gmra.mrb[20].mxu0 %v11238_v13  ;;  %3983 = vmatpush1.bf16.msra.mxu1 %v9384_v4  ;;  %v881_v4 = vld [vmem:[#allocation9 + $0xd60] sm:$0xff] }
 0x332   :  { %4102 = vmatpush1.bf16.msra.mxu0 %v9100_v5  ;;  %4133 = vmatprep.mubr.bf16.mxu0 %v11236_v12  ;;  %v587_v5 = vld [vmem:[#allocation9 + $0x430] sm:$0xff]  ;;  %v9513_v14 = vcombine.high %v873_v3, %v881_v4 }
 0x333   :  { %3984 = vmatprep.subr.bf16.mxu1 %v9401_v7  ;;  %4103 = vmatprep.subr.bf16.mxu0 %v9117_v9  ;;  %v595_v7 = vld [vmem:[#allocation9 + $0x470] sm:$0xff]  ;;  %v9496_v9 = vcombine.low %v857_v59, %v865_v60 }
 0x334   :  { %v9229_v15 = vcombine.high %v587_v5, %v595_v7  ;;  %v9228_v27 = vcombine.low %v587_v5, %v595_v7  ;;  %v730_v7 = vld [vmem:[#allocation9 + $0x8a8] sm:$0xff] }
 0x335   :  { %3985 = vmatpush1.bf16.msra.mxu1 %v9400_v20  ;;  %v897_v20 = vld [vmem:[#allocation9 + $0xde0] sm:$0xff] }
 0x336   :  { %4104 = vmatpush1.bf16.msra.mxu0 %v9116_v23  ;;  %3986 = vmatprep.subr.bf16.mxu1 %v9417_v25  ;;  %v603_v23 = vld [vmem:[#allocation9 + $0x4b0] sm:$0xff]  ;;  %v9529_v28 = vcombine.high %v889_v19, %v897_v20 }
 0x337   :  { %4105 = vmatprep.subr.bf16.mxu0 %v9133_v26  ;;  %v611_v25 = vld [vmem:[#allocation9 + $0x4f0] sm:$0xff]  ;;  %v9512_v26 = vcombine.low %v873_v3, %v881_v4 }
 0x338   :  { %v9245_v29 = vcombine.high %v603_v23, %v611_v25  ;;  %v9244_v38 = vcombine.low %v603_v23, %v611_v25  ;;  %v746_v25 = vld [vmem:[#allocation9 + $0x928] sm:$0xff] }
 0x339   :  { %3987 = vmatpush1.bf16.msra.mxu1 %v9416_v32  ;;  %v913_v32 = vld [vmem:[#allocation9 + $0xe60] sm:$0xff] }
 0x33a   :  { %4106 = vmatpush1.bf16.msra.mxu0 %v9132_v34  ;;  %3988 = vmatprep.subr.bf16.mxu1 %v9433_v35  ;;  %v619_v34 = vld [vmem:[#allocation9 + $0x530] sm:$0xff]  ;;  %v9545_v41 = vcombine.high %v905_v31, %v913_v32 }
 0x33b   :  { %4107 = vmatprep.subr.bf16.mxu0 %v9149_v36  ;;  %v627_v35 = vld [vmem:[#allocation9 + $0x570] sm:$0xff]  ;;  %v9528_v36 = vcombine.low %v889_v19, %v897_v20 }
 0x33c   :  { %v9261_v6 = vcombine.high %v619_v34, %v627_v35  ;;  %v9260_v46 = vcombine.low %v619_v34, %v627_v35  ;;  %v762_v35 = vld [vmem:[#allocation9 + $0x9a8] sm:$0xff] }
 0x33d   :  { %3989 = vmatpush1.bf16.msra.mxu1 %v9432_v42  ;;  %v929_v42 = vld [vmem:[#allocation9 + $0xee0] sm:$0xff] }
 0x33e   :  { %4108 = vmatpush1.bf16.msra.mxu0 %v9148_v43  ;;  %3990 = vmatprep.subr.bf16.mxu1 %v9449_v44  ;;  %v635_v43 = vld [vmem:[#allocation9 + $0x5b0] sm:$0xff]  ;;  %v9561_v47 = vcombine.high %v921_v8, %v929_v42 }
 0x33f   :  { %4109 = vmatprep.subr.bf16.mxu0 %v9165_v45  ;;  %v643_v44 = vld [vmem:[#allocation9 + $0x5f0] sm:$0xff]  ;;  %v9544_v45 = vcombine.low %v905_v31, %v913_v32 }
 0x340   :  { %v9277_v48 = vcombine.high %v635_v43, %v643_v44  ;;  %v9276_v54 = vcombine.low %v635_v43, %v643_v44  ;;  %v778_v44 = vld [vmem:[#allocation9 + $0xa28] sm:$0xff] }
 0x341   :  { %3991 = vmatpush1.bf16.msra.mxu1 %v9448_v50  ;;  %v945_v50 = vld [vmem:[#allocation9 + $0xf60] sm:$0xff] }
 0x342   :  { %4110 = vmatpush1.bf16.msra.mxu0 %v9164_v51  ;;  %3992 = vmatprep.subr.bf16.mxu1 %v9465_v52  ;;  %v651_v51 = vld [vmem:[#allocation9 + $0x630] sm:$0xff]  ;;  %v9577_v16 = vcombine.high %v937_v49, %v945_v50 }
 0x343   :  { %4111 = vmatprep.subr.bf16.mxu0 %v9181_v53  ;;  %v659_v52 = vld [vmem:[#allocation9 + $0x670] sm:$0xff]  ;;  %v9560_v53 = vcombine.low %v921_v8, %v929_v42 }
 0x344   :  { %v9293_v17 = vcombine.high %v651_v51, %v659_v52  ;;  %v9292_v59 = vcombine.low %v651_v51, %v659_v52  ;;  %v794_v52 = vld [vmem:[#allocation9 + $0xaa8] sm:$0xff] }
 0x345   :  { %3993 = vmatpush1.bf16.msra.mxu1 %v9464_v55  ;;  %v961_v55 = vld [vmem:[#allocation9 + $0xfe0] sm:$0xff] }
 0x346   :  { %4112 = vmatpush1.bf16.msra.mxu0 %v9180_v56  ;;  %3994 = vmatprep.subr.bf16.mxu1 %v9481_v57  ;;  %v667_v56 = vld [vmem:[#allocation9 + $0x6b0] sm:$0xff]  ;;  %v9593_v60 = vcombine.high %v953_v18, %v961_v55 }
 0x347   :  { %4113 = vmatprep.subr.bf16.mxu0 %v9197_v58  ;;  %v675_v57 = vld [vmem:[#allocation9 + $0x6f0] sm:$0xff]  ;;  %v9576_v58 = vcombine.low %v937_v49, %v945_v50 }
 0x348   :  { %v9309_v61 = vcombine.high %v667_v56, %v675_v57  ;;  %v9308_v3 = vcombine.low %v667_v56, %v675_v57  ;;  %v810_v57 = vld [vmem:[#allocation9 + $0xb28] sm:$0xff] }
 0x349   :  { %3995 = vmatpush1.bf16.msra.mxu1 %v9480_v63  ;;  %v722_v63 = vld [vmem:[#allocation9 + $0x868] sm:$0xff] }
 0x34a   :  { %4114 = vmatpush1.bf16.msra.mxu0 %v9196_v0  ;;  %3996 = vmatprep.subr.bf16.mxu1 %v9497_v1  ;;  %v683_v0 = vld [vmem:[#allocation9 + $0x730] sm:$0xff]  ;;  %v9355_v4 = vcombine.high %v714_v62, %v722_v63 }
 0x34b   :  { %4115 = vmatprep.subr.bf16.mxu0 %v9213_v2  ;;  %v691_v1 = vld [vmem:[#allocation9 + $0x770] sm:$0xff]  ;;  %v9592_v2 = vcombine.low %v953_v18, %v961_v55 }
 0x34c   :  { %v9325_v5 = vcombine.high %v683_v0, %v691_v1  ;;  %v9324_v19 = vcombine.low %v683_v0, %v691_v1  ;;  %v826_v1 = vld [vmem:[#allocation9 + $0xba8] sm:$0xff] }
 0x34d   :  { %3997 = vmatpush1.bf16.msra.mxu1 %v9496_v9  ;;  %v738_v9 = vld [vmem:[#allocation9 + $0x8e8] sm:$0xff] }
 0x34e   :  { %4116 = vmatpush1.bf16.msra.mxu0 %v9212_v11  ;;  %3998 = vmatprep.subr.bf16.mxu1 %v9513_v14  ;;  %v699_v11 = vld [vmem:[#allocation9 + $0x7b0] sm:$0xff]  ;;  %v9371_v20 = vcombine.high %v730_v7, %v738_v9 }
 0x34f   :  { %4117 = vmatprep.subr.bf16.mxu0 %v9229_v15  ;;  %v707_v14 = vld [vmem:[#allocation9 + $0x7f0] sm:$0xff]  ;;  %v9354_v15 = vcombine.low %v714_v62, %v722_v63 }
 0x350   :  { %v9341_v23 = vcombine.high %v699_v11, %v707_v14  ;;  %v9340_v31 = vcombine.low %v699_v11, %v707_v14 }
 0x351   :  { %3999 = vmatpush1.bf16.msra.mxu1 %v9512_v26  ;;  %v754_v26 = vld [vmem:[#allocation9 + $0x968] sm:$0xff] }
 0x352   :  { %4118 = vmatpush1.bf16.msra.mxu0 %v9228_v27  ;;  %4000 = vmatprep.subr.bf16.mxu1 %v9529_v28  ;;  %v460_v27 = vld [vmem:[#allocation9 + $0x38] sm:$0xff]  ;;  %v9387_v32 = vcombine.high %v746_v25, %v754_v26 }
 0x353   :  { %4119 = vmatprep.subr.bf16.mxu0 %v9245_v29  ;;  %v468_v28 = vld [vmem:[#allocation9 + $0x78] sm:$0xff]  ;;  %v9370_v29 = vcombine.low %v730_v7, %v738_v9 }
 0x354   :  { %v9103_v34 = vcombine.high %v460_v27, %v468_v28  ;;  %v9102_v8 = vcombine.low %v460_v27, %v468_v28 }
 0x355   :  { %4001 = vmatpush1.bf16.msra.mxu1 %v9528_v36  ;;  %v770_v36 = vld [vmem:[#allocation9 + $0x9e8] sm:$0xff] }
 0x356   :  { %4120 = vmatpush1.bf16.msra.mxu0 %v9244_v38  ;;  %4002 = vmatprep.subr.bf16.mxu1 %v9545_v41  ;;  %v476_v38 = vld [vmem:[#allocation9 + $0xb8] sm:$0xff]  ;;  %v9403_v42 = vcombine.high %v762_v35, %v770_v36 }
 0x357   :  { %4121 = vmatprep.subr.bf16.mxu0 %v9261_v6  ;;  %v484_v41 = vld [vmem:[#allocation9 + $0xf8] sm:$0xff]  ;;  %v9386_v6 = vcombine.low %v746_v25, %v754_v26 }
 0x358   :  { %v9119_v43 = vcombine.high %v476_v38, %v484_v41  ;;  %v9118_v49 = vcombine.low %v476_v38, %v484_v41  ;;  %v556_v25 = vld [vmem:[#allocation9 + $0x338] sm:$0xff] }
 0x359   :  { %4003 = vmatpush1.bf16.msra.mxu1 %v9544_v45  ;;  %v786_v45 = vld [vmem:[#allocation9 + $0xa68] sm:$0xff]  ;;  %v564_v26 = vld [vmem:[#allocation9 + $0x378] sm:$0xff] }
 0x35a   :  { %4122 = vmatpush1.bf16.msra.mxu0 %v9260_v46  ;;  %4004 = vmatprep.subr.bf16.mxu1 %v9561_v47  ;;  %v492_v46 = vld [vmem:[#allocation9 + $0x138] sm:$0xff]  ;;  %v9419_v50 = vcombine.high %v778_v44, %v786_v45 }
 0x35b   :  { %4123 = vmatprep.subr.bf16.mxu0 %v9277_v48  ;;  %v500_v47 = vld [vmem:[#allocation9 + $0x178] sm:$0xff]  ;;  %v9402_v48 = vcombine.low %v762_v35, %v770_v36  ;;  %v866_v35 = vld [vmem:[#allocation9 + $0xce8] sm:$0xff] }
 0x35c   :  { %v9135_v51 = vcombine.high %v492_v46, %v500_v47  ;;  %v9134_v18 = vcombine.low %v492_v46, %v500_v47  ;;  %v572_v38 = vld [vmem:[#allocation9 + $0x3b8] sm:$0xff]  ;;  %v874_v46 = vld [vmem:[#allocation9 + $0xd28] sm:$0xff] }
 0x35d   :  { %4005 = vmatpush1.bf16.msra.mxu1 %v9560_v53  ;;  %v802_v53 = vld [vmem:[#allocation9 + $0xae8] sm:$0xff]  ;;  %v580_v41 = vld [vmem:[#allocation9 + $0x3f8] sm:$0xff] }
 0x35e   :  { %4124 = vmatpush1.bf16.msra.mxu0 %v9276_v54  ;;  %4006 = vmatprep.subr.bf16.mxu1 %v9577_v16  ;;  %v508_v54 = vld [vmem:[#allocation9 + $0x1b8] sm:$0xff]  ;;  %v9435_v55 = vcombine.high %v794_v52, %v802_v53  ;;  %v882_v47 = vld [vmem:[#allocation9 + $0xd68] sm:$0xff] }
 0x35f   :  { %4125 = vmatprep.subr.bf16.mxu0 %v9293_v17  ;;  %v516_v16 = vld [vmem:[#allocation9 + $0x1f8] sm:$0xff]  ;;  %v9418_v17 = vcombine.low %v778_v44, %v786_v45  ;;  %v9215_v45 = vcombine.high %v572_v38, %v580_v41 }
 0x360   :  { %v9151_v56 = vcombine.high %v508_v54, %v516_v16 }
 0x361   :  { %4007 = vmatpush1.bf16.msra.mxu1 %v9576_v58  ;;  %v818_v58 = vld [vmem:[#allocation9 + $0xb68] sm:$0xff] }
 0x362   :  { %4126 = vmatpush1.bf16.msra.mxu0 %v9292_v59  ;;  %4008 = vmatprep.subr.bf16.mxu1 %v9593_v60  ;;  %v532_v59 = vld [vmem:[#allocation9 + $0x278] sm:$0xff]  ;;  %v9434_v60 = vcombine.low %v794_v52, %v802_v53  ;;  %v9451_v62 = vcombine.high %v810_v57, %v818_v58  ;;  %v9450_v9 = vcombine.low %v810_v57, %v818_v58 }
 0x363   :  { %4127 = vmatprep.subr.bf16.mxu0 %v9309_v61  ;;  %v9150_v61 = vcombine.low %v508_v54, %v516_v16  ;;  %v9515_v52 = vcombine.high %v874_v46, %v882_v47  ;;  %v890_v54 = vld [vmem:[#allocation9 + $0xda8] sm:$0xff] }
 0x364   :  { %v898_v16 = vld [vmem:[#allocation9 + $0xde8] sm:$0xff] }
 0x365   :  { %4009 = vmatpush1.bf16.msra.mxu1 %v9592_v2  ;;  %v834_v2 = vld [vmem:[#allocation9 + $0xbe8] sm:$0xff]  ;;  %v9531_v57 = vcombine.high %v890_v54, %v898_v16 }
 0x366   :  { %4128 = vmatpush1.bf16.msra.mxu0 %v9308_v3  ;;  %4060 = vmatprep.subr.bf16.mxu1 %v9355_v4  ;;  %v540_v4 = vld [vmem:[#allocation9 + $0x2b8] sm:$0xff]  ;;  %v9466_v27 = vcombine.low %v826_v1, %v834_v2 }
 0x367   :  { %4129 = vmatprep.subr.bf16.mxu0 %v9325_v5  ;;  %v548_v5 = vld [vmem:[#allocation9 + $0x2f8] sm:$0xff] }
 0x368   :  { %4011 = vmatmul.mubr.bf16.vlgmr.msra.gmra.mrb[12].mxu1 %v11246_v37  ;;  %v9182_v28 = vcombine.low %v540_v4, %v548_v5 }
 0x369   :  { %4061 = vmatpush1.bf16.msra.mxu1 %v9354_v15  ;;  %4092 = vmatprep.mubr.bf16.mxu1 %v11248_v40  ;;  %v9467_v15 = vcombine.high %v826_v1, %v834_v2 }
 0x36a   :  { %4130 = vmatpush1.bf16.msra.mxu0 %v9324_v19  ;;  %4062 = vmatprep.subr.bf16.mxu1 %v9371_v20  ;;  %v9183_v19 = vcombine.high %v540_v4, %v548_v5  ;;  %v842_v20 = vld [vmem:[#allocation9 + $0xc28] sm:$0xff] }
 0x36b   :  { %4131 = vmatprep.subr.bf16.mxu0 %v9341_v23  ;;  %v850_v23 = vld [vmem:[#allocation9 + $0xc68] sm:$0xff] }
 0x36c   :  { %v922_v4 = vld [vmem:[#allocation9 + $0xea8] sm:$0xff] }
 0x36d   :  { %4063 = vmatpush1.bf16.msra.mxu1 %v9370_v29  ;;  %v9483_v29 = vcombine.high %v842_v20, %v850_v23  ;;  %v930_v5 = vld [vmem:[#allocation9 + $0xee8] sm:$0xff] }
 0x36e   :  { %4132 = vmatpush1.bf16.msra.mxu0 %v9340_v31  ;;  %4064 = vmatprep.subr.bf16.mxu1 %v9387_v32  ;;  %v9199_v32 = vcombine.high %v556_v25, %v564_v26 }
 0x36f   :  { %4183 = vmatprep.subr.bf16.mxu0 %v9103_v34  ;;  %v858_v34 = vld [vmem:[#allocation9 + $0xca8] sm:$0xff] }
 0x370   :  { %v9499_v44 = vcombine.high %v858_v34, %v866_v35 }
 0x371   :  { %4134 = vmatmul.mubr.bf16.vlgmr.msra.gmra.mrb[24].mxu0 %v11238_v13  ;;  %4065 = vmatpush1.bf16.msra.mxu1 %v9386_v6 }
 0x372   :  { %4184 = vmatpush1.bf16.msra.mxu0 %v9102_v8  ;;  %4215 = vmatprep.mubr.bf16.mxu0 %v11236_v12  ;;  %v524_v12 = vld [vmem:[#allocation9 + $0x238] sm:$0xff]  ;;  %v9482_v8 = vcombine.low %v842_v20, %v850_v23  ;;  %v938_v20 = vld [vmem:[#allocation9 + $0xf28] sm:$0xff] }
 0x373   :  { %4066 = vmatprep.subr.bf16.mxu1 %v9403_v42  ;;  %4185 = vmatprep.subr.bf16.mxu0 %v9119_v43  ;;  %v9167_v0 = vcombine.high %v524_v12, %v532_v59  ;;  %v9166_v14 = vcombine.low %v524_v12, %v532_v59  ;;  %v9198_v43 = vcombine.low %v556_v25, %v564_v26  ;;  %v906_v12 = vld [vmem:[#allocation9 + $0xe28] sm:$0xff]  ;;  %v652_v25 = vld [vmem:[#allocation9 + $0x638] sm:$0xff] }
 0x374   :  { %v914_v59 = vld [vmem:[#allocation9 + $0xe68] sm:$0xff]  ;;  %v660_v26 = vld [vmem:[#allocation9 + $0x678] sm:$0xff] }
 0x375   :  { %4067 = vmatpush1.bf16.msra.mxu1 %v9402_v48  ;;  %v588_v48 = vld [vmem:[#allocation9 + $0x438] sm:$0xff]  ;;  %v9547_v1 = vcombine.high %v906_v12, %v914_v59  ;;  %v946_v23 = vld [vmem:[#allocation9 + $0xf68] sm:$0xff] }
 0x376   :  { %4186 = vmatpush1.bf16.msra.mxu0 %v9118_v49  ;;  %4068 = vmatprep.subr.bf16.mxu1 %v9419_v50  ;;  %v596_v49 = vld [vmem:[#allocation9 + $0x478] sm:$0xff]  ;;  %v9498_v50 = vcombine.low %v858_v34, %v866_v35  ;;  %v954_v34 = vld [vmem:[#allocation9 + $0xfa8] sm:$0xff] }
 0x377   :  { %4187 = vmatprep.subr.bf16.mxu0 %v9135_v51  ;;  %v9214_v51 = vcombine.low %v572_v38, %v580_v41  ;;  %v9231_v53 = vcombine.high %v588_v48, %v596_v49  ;;  %v962_v35 = vld [vmem:[#allocation9 + $0xfe8] sm:$0xff]  ;;  %v668_v38 = vld [vmem:[#allocation9 + $0x6b8] sm:$0xff] }
 0x378   :  { %v676_v41 = vld [vmem:[#allocation9 + $0x6f8] sm:$0xff] }
 0x379   :  { %4069 = vmatpush1.bf16.msra.mxu1 %v9418_v17  ;;  %v604_v17 = vld [vmem:[#allocation9 + $0x4b8] sm:$0xff] }
 0x37a   :  { %4188 = vmatpush1.bf16.msra.mxu0 %v9134_v18  ;;  %4070 = vmatprep.subr.bf16.mxu1 %v9435_v55  ;;  %v612_v18 = vld [vmem:[#allocation9 + $0x4f8] sm:$0xff]  ;;  %v9514_v55 = vcombine.low %v874_v46, %v882_v47 }
 0x37b   :  { %v11282_v63 = vpop.f32.mrb[4].mxu1  ;;  %4189 = vmatprep.subr.bf16.mxu0 %v9151_v56  ;;  %v9230_v56 = vcombine.low %v588_v48, %v596_v49  ;;  %v9247_v58 = vcombine.high %v604_v17, %v612_v18  ;;  %v684_v46 = vld [vmem:[#allocation9 + $0x738] sm:$0xff]  ;;  %v9594_v48 = vcombine.low %v954_v34, %v962_v35  ;;  %v9310_v49 = vcombine.low %v668_v38, %v676_v41 }
 0x37c   :  { %v11284_v3 = vpop.f32.mrb[5].mxu1  ;;  %v692_v47 = vld [vmem:[#allocation9 + $0x778] sm:$0xff] }
 0x37d   :  { %v3770_v7 = vpop.f32.mrb[6].mxu1  ;;  %4071 = vmatpush1.bf16.msra.mxu1 %v9434_v60  ;;  %v620_v60 = vld [vmem:[#allocation9 + $0x538] sm:$0xff] }
 0x37e   :  { %4190 = vmatpush1.bf16.msra.mxu0 %v9150_v61  ;;  %v3771_v11 = vpop.f32.mrb[7].mxu1  ;;  %4072 = vmatprep.subr.bf16.mxu1 %v9451_v62  ;;  %v628_v61 = vld [vmem:[#allocation9 + $0x578] sm:$0xff]  ;;  %v9530_v62 = vcombine.low %v890_v54, %v898_v16 }
 0x37f   :  { %4191 = vmatprep.subr.bf16.mxu0 %v9167_v0  ;;  %v9246_v0 = vcombine.low %v604_v17, %v612_v18  ;;  %v9263_v2 = vcombine.high %v620_v60, %v628_v61  ;;  %v636_v7 = vld [vmem:[#allocation9 + $0x5b8] sm:$0xff]  ;;  %v9546_v11 = vcombine.low %v906_v12, %v914_v59  ;;  %v9326_v18 = vcombine.low %v684_v46, %v692_v47  ;;  %v4453_v12 = vld [vmem:[#allocation15] sm:$0xff] }
 0x380   :  { %v700_v54 = vld [vmem:[#allocation9 + $0x7b8] sm:$0xff]  ;;  %v4457_v59 = vld [vmem:[#allocation15 + $0x20] sm:$0xff] }
 0x381   :  { %4073 = vmatpush1.bf16.msra.mxu1 %v9450_v9  ;;  %v644_v9 = vld [vmem:[#allocation9 + $0x5f8] sm:$0xff] }
 0x382   :  { %4192 = vmatpush1.bf16.msra.mxu0 %v9166_v14  ;;  %4074 = vmatprep.subr.bf16.mxu1 %v9467_v15  ;;  %v9262_v14 = vcombine.low %v620_v60, %v628_v61  ;;  %v9563_v15 = vcombine.high %v922_v4, %v930_v5  ;;  %v708_v16 = vld [vmem:[#allocation9 + $0x7f8] sm:$0xff] }
 0x383   :  { %v11286_v31 = vpop.f32.mrb[12].mxu0  ;;  %4193 = vmatprep.subr.bf16.mxu0 %v9183_v19  ;;  %v9279_v19 = vcombine.high %v636_v7, %v644_v9  ;;  %v9342_v61 = vcombine.low %v700_v54, %v708_v16 }
 0x384   :  { %v11288_v36 = vpop.f32.mrb[13].mxu0 }
 0x385   :  { %v3852_v6 = vpop.f32.mrb[14].mxu0  ;;  %4075 = vmatpush1.bf16.msra.mxu1 %v9466_v27  ;;  %v9562_v27 = vcombine.low %v922_v4, %v930_v5  ;;  %v4461_v4 = vld [vmem:[#allocation15 + $0x40] sm:$0xff] }
 0x386   :  { %4194 = vmatpush1.bf16.msra.mxu0 %v9182_v28  ;;  %v3853_v42 = vpop.f32.mrb[15].mxu0  ;;  %4076 = vmatprep.subr.bf16.mxu1 %v9483_v29  ;;  %v9278_v28 = vcombine.low %v636_v7, %v644_v9  ;;  %v9579_v29 = vcombine.high %v938_v20, %v946_v23  ;;  %v9578_v6 = vcombine.low %v938_v20, %v946_v23  ;;  %v4465_v5 = vld [vmem:[#allocation15 + $0x60] sm:$0xff] }
 0x387   :  { %4195 = vmatprep.subr.bf16.mxu0 %v9199_v32  ;;  %v9295_v32 = vcombine.high %v652_v25, %v660_v26  ;;  %v9595_v42 = vcombine.high %v954_v34, %v962_v35  ;;  %v4469_v20 = vld [vmem:[#allocation15 + $0x80] sm:$0xff] }
 0x388   :  { %v4473_v23 = vld [vmem:[#allocation15 + $0xa0] sm:$0xff] }
 0x389   :  { %4077 = vmatpush1.bf16.msra.mxu1 %v9482_v8  ;;  %v9294_v8 = vcombine.low %v652_v25, %v660_v26  ;;  %v4477_v34 = vld [vmem:[#allocation15 + $0xc0] sm:$0xff] }
 0x38a   :  { %4196 = vmatpush1.bf16.msra.mxu0 %v9198_v43  ;;  %4078 = vmatprep.subr.bf16.mxu1 %v9499_v44  ;;  %v9311_v43 = vcombine.high %v668_v38, %v676_v41  ;;  %v715_v44 = vld [vmem:[#allocation9 + $0x830] sm:$0xff]  ;;  %v4481_v35 = vld [vmem:[#allocation15 + $0xe0] sm:$0xff] }
 0x38b   :  { %4197 = vmatprep.subr.bf16.mxu0 %v9215_v45  ;;  %v723_v45 = vld [vmem:[#allocation9 + $0x870] sm:$0xff] }
 0x38c   :  { %v9356_v17 = vcombine.low %v715_v44, %v723_v45 }
 0x38d   :  { %4079 = vmatpush1.bf16.msra.mxu1 %v9498_v50  ;;  %v9357_v50 = vcombine.high %v715_v44, %v723_v45  ;;  %v4489_v44 = vld [vmem:[#allocation15 + $0x120] sm:$0xff] }
 0x38e   :  { %4198 = vmatpush1.bf16.msra.mxu0 %v9214_v51  ;;  %4080 = vmatprep.subr.bf16.mxu1 %v9515_v52  ;;  %v9327_v51 = vcombine.high %v684_v46, %v692_v47  ;;  %v731_v52 = vld [vmem:[#allocation9 + $0x8b0] sm:$0xff]  ;;  %v9624_v47 = vcombine.low %v4477_v34, %v4481_v35 }
 0x38f   :  { %4199 = vmatprep.subr.bf16.mxu0 %v9231_v53  ;;  %v739_v53 = vld [vmem:[#allocation9 + $0x8f0] sm:$0xff] }
 0x390   :  { %v9372_v60 = vcombine.low %v731_v52, %v739_v53 }
 0x391   :  { %4081 = vmatpush1.bf16.msra.mxu1 %v9514_v55  ;;  %v9373_v55 = vcombine.high %v731_v52, %v739_v53  ;;  %v4497_v52 = vld [vmem:[#allocation15 + $0x160] sm:$0xff] }
 0x392   :  { %4200 = vmatpush1.bf16.msra.mxu0 %v9230_v56  ;;  %4082 = vmatprep.subr.bf16.mxu1 %v9531_v57  ;;  %v9343_v56 = vcombine.high %v700_v54, %v708_v16  ;;  %v747_v57 = vld [vmem:[#allocation9 + $0x930] sm:$0xff] }
 0x393   :  { %4201 = vmatprep.subr.bf16.mxu0 %v9247_v58  ;;  %v755_v58 = vld [vmem:[#allocation9 + $0x970] sm:$0xff] }
 0x394   :  { %v9388_v7 = vcombine.low %v747_v57, %v755_v58 }
 0x395   :  { %4083 = vmatpush1.bf16.msra.mxu1 %v9530_v62  ;;  %v9389_v62 = vcombine.high %v747_v57, %v755_v58  ;;  %v4505_v57 = vld [vmem:[#allocation15 + $0x1a0] sm:$0xff] }
 0x396   :  { %4202 = vmatpush1.bf16.msra.mxu0 %v9246_v0  ;;  %4084 = vmatprep.subr.bf16.mxu1 %v9547_v1  ;;  %v763_v0 = vld [vmem:[#allocation9 + $0x9b0] sm:$0xff] }
 0x397   :  { %4203 = vmatprep.subr.bf16.mxu0 %v9263_v2  ;;  %v771_v1 = vld [vmem:[#allocation9 + $0x9f0] sm:$0xff]  ;;  %v9601_v2 = vcombine.high %v4453_v12, %v4457_v59 }
 0x398   :  { %v9405_v9 = vcombine.high %v763_v0, %v771_v1  ;;  %v9404_v25 = vcombine.low %v763_v0, %v771_v1  ;;  %v867_v0 = vld [vmem:[#allocation9 + $0xcf0] sm:$0xff] }
 0x399   :  { %4085 = vmatpush1.bf16.msra.mxu1 %v9546_v11  ;;  %v9600_v11 = vcombine.low %v4453_v12, %v4457_v59  ;;  %v11293_v12 = vld [vmem:[#allocation15 + $0x400] sm:$0xff] }
 0x39a   :  { %4204 = vmatpush1.bf16.msra.mxu0 %v9262_v14  ;;  %4086 = vmatprep.subr.bf16.mxu1 %v9563_v15  ;;  %v779_v14 = vld [vmem:[#allocation9 + $0xa30] sm:$0xff]  ;;  %v11295_v59 = vld [vmem:[#allocation15 + $0x420] sm:$0xff] }
 0x39b   :  { %4205 = vmatprep.subr.bf16.mxu0 %v9279_v19  ;;  %v787_v15 = vld [vmem:[#allocation9 + $0xa70] sm:$0xff]  ;;  %v9609_v19 = vcombine.high %v4461_v4, %v4465_v5 }
 0x39c   :  { %v9421_v26 = vcombine.high %v779_v14, %v787_v15  ;;  %v9420_v38 = vcombine.low %v779_v14, %v787_v15 }
 0x39d   :  { %4087 = vmatpush1.bf16.msra.mxu1 %v9562_v27  ;;  %v9608_v27 = vcombine.low %v4461_v4, %v4465_v5  ;;  %v4509_v5 = vld [vmem:[#allocation15 + $0x1c0] sm:$0xff] }
 0x39e   :  { %4206 = vmatpush1.bf16.msra.mxu0 %v9278_v28  ;;  %4088 = vmatprep.subr.bf16.mxu1 %v9579_v29  ;;  %v795_v28 = vld [vmem:[#allocation9 + $0xab0] sm:$0xff] }
 0x39f   :  { %4207 = vmatprep.subr.bf16.mxu0 %v9295_v32  ;;  %v803_v29 = vld [vmem:[#allocation9 + $0xaf0] sm:$0xff]  ;;  %v9617_v32 = vcombine.high %v4469_v20, %v4473_v23 }
 0x3a0   :  { %v9437_v41 = vcombine.high %v795_v28, %v803_v29  ;;  %v9436_v45 = vcombine.low %v795_v28, %v803_v29  ;;  %v4521_v28 = vld [vmem:[#allocation15 + $0x220] sm:$0xff] }
 0x3a1   :  { %4089 = vmatpush1.bf16.msra.mxu1 %v9578_v6  ;;  %v9616_v6 = vcombine.low %v4469_v20, %v4473_v23  ;;  %v875_v23 = vld [vmem:[#allocation9 + $0xd30] sm:$0xff] }
 0x3a2   :  { %4208 = vmatpush1.bf16.msra.mxu0 %v9294_v8  ;;  %4090 = vmatprep.subr.bf16.mxu1 %v9595_v42  ;;  %v811_v8 = vld [vmem:[#allocation9 + $0xb30] sm:$0xff]  ;;  %v9625_v42 = vcombine.high %v4477_v34, %v4481_v35 }
 0x3a3   :  { %4209 = vmatprep.subr.bf16.mxu0 %v9311_v43  ;;  %v4485_v43 = vld [vmem:[#allocation15 + $0x100] sm:$0xff]  ;;  %v891_v35 = vld [vmem:[#allocation9 + $0xdb0] sm:$0xff] }
 0x3a4   :  { %v9632_v16 = vcombine.low %v4485_v43, %v4489_v44 }
 0x3a5   :  { %4091 = vmatpush1.bf16.msra.mxu1 %v9594_v48  ;;  %v827_v48 = vld [vmem:[#allocation9 + $0xbb0] sm:$0xff] }
 0x3a6   :  { %4210 = vmatpush1.bf16.msra.mxu0 %v9310_v49  ;;  %4142 = vmatprep.subr.bf16.mxu1 %v9357_v50  ;;  %v835_v49 = vld [vmem:[#allocation9 + $0xbf0] sm:$0xff]  ;;  %v9633_v50 = vcombine.high %v4485_v43, %v4489_v44 }
 0x3a7   :  { %4211 = vmatprep.subr.bf16.mxu0 %v9327_v51  ;;  %v4493_v51 = vld [vmem:[#allocation15 + $0x140] sm:$0xff]  ;;  %v9469_v54 = vcombine.high %v827_v48, %v835_v49  ;;  %v9468_v58 = vcombine.low %v827_v48, %v835_v49  ;;  %v907_v44 = vld [vmem:[#allocation9 + $0xe30] sm:$0xff] }
 0x3a8   :  { %4093 = vmatmul.mubr.bf16.vlgmr.msra.gmra.mrb[16].mxu1 %v11246_v37  ;;  %v4537_v48 = vld [vmem:[#allocation15 + $0x2a0] sm:$0xff] }
 0x3a9   :  { %4143 = vmatpush1.bf16.msra.mxu1 %v9356_v17  ;;  %4174 = vmatprep.mubr.bf16.mxu1 %v11248_v40  ;;  %v843_v17 = vld [vmem:[#allocation9 + $0xc30] sm:$0xff] }
 0x3aa   :  { %4212 = vmatpush1.bf16.msra.mxu0 %v9326_v18  ;;  %4144 = vmatprep.subr.bf16.mxu1 %v9373_v55  ;;  %v851_v18 = vld [vmem:[#allocation9 + $0xc70] sm:$0xff]  ;;  %v9641_v55 = vcombine.high %v4493_v51, %v4497_v52 }
 0x3ab   :  { %4213 = vmatprep.subr.bf16.mxu0 %v9343_v56  ;;  %v4501_v56 = vld [vmem:[#allocation15 + $0x180] sm:$0xff] }
 0x3ac   :  { %v9649_v1 = vcombine.high %v4501_v56, %v4505_v57 }
 0x3ad   :  { %4145 = vmatpush1.bf16.msra.mxu1 %v9372_v60  ;;  %v9485_v60 = vcombine.high %v843_v17, %v851_v18 }
 0x3ae   :  { %4214 = vmatpush1.bf16.msra.mxu0 %v9342_v61  ;;  %4146 = vmatprep.subr.bf16.mxu1 %v9389_v62  ;;  %v9640_v61 = vcombine.low %v4493_v51, %v4497_v52  ;;  %v859_v62 = vld [vmem:[#allocation9 + $0xcb0] sm:$0xff] }
 0x3af   :  { %7567 = vmatprep.subr.bf16.mxu0 %v9601_v2  ;;  %v9728_v2 = vcombine.low %v11293_v12, %v11295_v59  ;;  %v9501_v15 = vcombine.high %v859_v62, %v867_v0  ;;  %v9500_v29 = vcombine.low %v859_v62, %v867_v0  ;;  %v923_v52 = vld [vmem:[#allocation9 + $0xeb0] sm:$0xff]  ;;  %v4553_v62 = vld [vmem:[#allocation15 + $0x320] sm:$0xff] }
 0x3b1   :  { %4216 = vmatmul.mubr.bf16.vlgmr.msra.gmra.mrb[28].mxu0 %v11238_v13  ;;  %4147 = vmatpush1.bf16.msra.mxu1 %v9388_v7  ;;  %v819_v13 = vld [vmem:[#allocation9 + $0xb70] sm:$0xff]  ;;  %v4513_v7 = vld [vmem:[#allocation15 + $0x1e0] sm:$0xff] }
 0x3b2   :  { %4148 = vmatprep.subr.bf16.mxu1 %v9405_v9  ;;  %7568 = vmatpush1.bf16.msra.mxu0 %v9600_v11  ;;  %v9453_v46 = vcombine.high %v811_v8, %v819_v13  ;;  %v9452_v53 = vcombine.low %v811_v8, %v819_v13  ;;  %v9484_v11 = vcombine.low %v843_v17, %v851_v18  ;;  %v4529_v8 = vld [vmem:[#allocation15 + $0x260] sm:$0xff] }
 0x3b3   :  { %7569 = vmatprep.subr.bf16.mxu0 %v9609_v19  ;;  %v9648_v19 = vcombine.low %v4501_v56, %v4505_v57  ;;  %v9656_v34 = vcombine.low %v4509_v5, %v4513_v7  ;;  %v4545_v17 = vld [vmem:[#allocation15 + $0x2e0] sm:$0xff]  ;;  %v939_v57 = vld [vmem:[#allocation9 + $0xf30] sm:$0xff] }
 0x3b5   :  { %4149 = vmatpush1.bf16.msra.mxu1 %v9404_v25  ;;  %v883_v25 = vld [vmem:[#allocation9 + $0xd70] sm:$0xff] }
 0x3b6   :  { %4150 = vmatprep.subr.bf16.mxu1 %v9421_v26  ;;  %7570 = vmatpush1.bf16.msra.mxu0 %v9608_v27  ;;  %v9657_v26 = vcombine.high %v4509_v5, %v4513_v7  ;;  %v4517_v27 = vld [vmem:[#allocation15 + $0x200] sm:$0xff]  ;;  %v9516_v13 = vcombine.low %v875_v23, %v883_v25  ;;  %v955_v7 = vld [vmem:[#allocation9 + $0xfb0] sm:$0xff] }
 0x3b7   :  { %7571 = vmatprep.subr.bf16.mxu0 %v9617_v32  ;;  %v9517_v32 = vcombine.high %v875_v23, %v883_v25  ;;  %v9664_v43 = vcombine.low %v4517_v27, %v4521_v28 }
 0x3b9   :  { %4151 = vmatpush1.bf16.msra.mxu1 %v9420_v38  ;;  %v899_v38 = vld [vmem:[#allocation9 + $0xdf0] sm:$0xff] }
 0x3ba   :  { %4152 = vmatprep.subr.bf16.mxu1 %v9437_v41  ;;  %7572 = vmatpush1.bf16.msra.mxu0 %v9616_v6  ;;  %v9665_v41 = vcombine.high %v4517_v27, %v4521_v28  ;;  %v4525_v6 = vld [vmem:[#allocation15 + $0x240] sm:$0xff]  ;;  %v9532_v49 = vcombine.low %v891_v35, %v899_v38  ;;  %v724_v27 = vld [vmem:[#allocation9 + $0x878] sm:$0xff] }
 0x3bb   :  { %7573 = vmatprep.subr.bf16.mxu0 %v9625_v42  ;;  %v9533_v42 = vcombine.high %v891_v35, %v899_v38  ;;  %v9672_v51 = vcombine.low %v4525_v6, %v4529_v8 }
 0x3bd   :  { %4153 = vmatpush1.bf16.msra.mxu1 %v9436_v45  ;;  %v915_v45 = vld [vmem:[#allocation9 + $0xe70] sm:$0xff] }
 0x3be   :  { %4154 = vmatprep.subr.bf16.mxu1 %v9453_v46  ;;  %7574 = vmatpush1.bf16.msra.mxu0 %v9624_v47  ;;  %v9673_v46 = vcombine.high %v4525_v6, %v4529_v8  ;;  %v4533_v47 = vld [vmem:[#allocation15 + $0x280] sm:$0xff]  ;;  %v9548_v18 = vcombine.low %v907_v44, %v915_v45  ;;  %v740_v6 = vld [vmem:[#allocation9 + $0x8f8] sm:$0xff] }
 0x3bf   :  { %7575 = vmatprep.subr.bf16.mxu0 %v9633_v50  ;;  %v9549_v50 = vcombine.high %v907_v44, %v915_v45  ;;  %v9680_v56 = vcombine.low %v4533_v47, %v4537_v48 }
 0x3c1   :  { %4155 = vmatpush1.bf16.msra.mxu1 %v9452_v53  ;;  %v931_v53 = vld [vmem:[#allocation9 + $0xef0] sm:$0xff] }
 0x3c2   :  { %4156 = vmatprep.subr.bf16.mxu1 %v9469_v54  ;;  %7576 = vmatpush1.bf16.msra.mxu0 %v9632_v16  ;;  %v9681_v54 = vcombine.high %v4533_v47, %v4537_v48  ;;  %v4541_v16 = vld [vmem:[#allocation15 + $0x2c0] sm:$0xff]  ;;  %v9564_v0 = vcombine.low %v923_v52, %v931_v53  ;;  %v756_v47 = vld [vmem:[#allocation9 + $0x978] sm:$0xff] }
 0x3c3   :  { %7577 = vmatprep.subr.bf16.mxu0 %v9641_v55  ;;  %v9565_v55 = vcombine.high %v923_v52, %v931_v53  ;;  %v9688_v5 = vcombine.low %v4541_v16, %v4545_v17  ;;  %v764_v52 = vld [vmem:[#allocation9 + $0x9b8] sm:$0xff] }
 0x3c4   :  { %v11299_v4 = vpop.f32.mrb[16].mxu0  ;;  %v772_v53 = vld [vmem:[#allocation9 + $0x9f8] sm:$0xff] }
 0x3c5   :  { %v11301_v9 = vpop.f32.mrb[17].mxu0  ;;  %4157 = vmatpush1.bf16.msra.mxu1 %v9468_v58  ;;  %v947_v58 = vld [vmem:[#allocation9 + $0xf70] sm:$0xff] }
 0x3c6   :  { %v3975_v14 = vpop.f32.mrb[18].mxu0  ;;  %4158 = vmatprep.subr.bf16.mxu1 %v9485_v60  ;;  %7578 = vmatpush1.bf16.msra.mxu0 %v9640_v61  ;;  %v9689_v60 = vcombine.high %v4541_v16, %v4545_v17  ;;  %v4549_v61 = vld [vmem:[#allocation15 + $0x300] sm:$0xff]  ;;  %v9407_v17 = vcombine.high %v764_v52, %v772_v53 }
 0x3c7   :  { %v3976_v20 = vpop.f32.mrb[19].mxu0  ;;  %7579 = vmatprep.subr.bf16.mxu0 %v9649_v1  ;;  %v9581_v1 = vcombine.high %v939_v57, %v947_v58  ;;  %v9697_v14 = vcombine.high %v4549_v61, %v4553_v62  ;;  %v9696_v25 = vcombine.low %v4549_v61, %v4553_v62  ;;  %v812_v62 = vld [vmem:[#allocation9 + $0xb38] sm:$0xff] }
 0x3c8   :  { %v9580_v20 = vcombine.low %v939_v57, %v947_v58  ;;  %v796_v57 = vld [vmem:[#allocation9 + $0xab8] sm:$0xff] }
 0x3c9   :  { %4159 = vmatpush1.bf16.msra.mxu1 %v9484_v11  ;;  %v963_v11 = vld [vmem:[#allocation9 + $0xff0] sm:$0xff]  ;;  %v804_v58 = vld [vmem:[#allocation9 + $0xaf8] sm:$0xff] }
 0x3ca   :  { %4160 = vmatprep.subr.bf16.mxu1 %v9501_v15  ;;  %7580 = vmatpush1.bf16.msra.mxu0 %v9648_v19  ;;  %v4557_v15 = vld [vmem:[#allocation15 + $0x340] sm:$0xff]  ;;  %v9597_v23 = vcombine.high %v955_v7, %v963_v11  ;;  %v9439_v61 = vcombine.high %v796_v57, %v804_v58 }
 0x3cb   :  { %7581 = vmatprep.subr.bf16.mxu0 %v9657_v26  ;;  %v4561_v19 = vld [vmem:[#allocation15 + $0x360] sm:$0xff]  ;;  %v716_v26 = vld [vmem:[#allocation9 + $0x838] sm:$0xff] }
 0x3cc   :  { %v9705_v28 = vcombine.high %v4557_v15, %v4561_v19  ;;  %v9359_v35 = vcombine.high %v716_v26, %v724_v27  ;;  %v9704_v38 = vcombine.low %v4557_v15, %v4561_v19 }
 0x3cd   :  { %4161 = vmatpush1.bf16.msra.mxu1 %v9500_v29  ;;  %v4565_v29 = vld [vmem:[#allocation15 + $0x380] sm:$0xff] }
 0x3ce   :  { %4162 = vmatprep.subr.bf16.mxu1 %v9517_v32  ;;  %7582 = vmatpush1.bf16.msra.mxu0 %v9656_v34  ;;  %v4569_v32 = vld [vmem:[#allocation15 + $0x3a0] sm:$0xff]  ;;  %v9596_v34 = vcombine.low %v955_v7, %v963_v11  ;;  %v828_v11 = vld [vmem:[#allocation9 + $0xbb8] sm:$0xff] }
 0x3cf   :  { %7583 = vmatprep.subr.bf16.mxu0 %v9665_v41  ;;  %v732_v41 = vld [vmem:[#allocation9 + $0x8b8] sm:$0xff]  ;;  %v9713_v8 = vcombine.high %v4565_v29, %v4569_v32  ;;  %v9712_v45 = vcombine.low %v4565_v29, %v4569_v32 }
 0x3d0   :  { %v9375_v44 = vcombine.high %v732_v41, %v740_v6  ;;  %v860_v32 = vld [vmem:[#allocation9 + $0xcb8] sm:$0xff] }
 0x3d1   :  { %4163 = vmatpush1.bf16.msra.mxu1 %v9516_v13  ;;  %v4573_v13 = vld [vmem:[#allocation15 + $0x3c0] sm:$0xff] }
 0x3d2   :  { %4164 = vmatprep.subr.bf16.mxu1 %v9533_v42  ;;  %7584 = vmatpush1.bf16.msra.mxu0 %v9664_v43  ;;  %v4577_v42 = vld [vmem:[#allocation15 + $0x3e0] sm:$0xff]  ;;  %v9358_v43 = vcombine.low %v716_v26, %v724_v27  ;;  %v844_v26 = vld [vmem:[#allocation9 + $0xc38] sm:$0xff] }
 0x3d3   :  { %7585 = vmatprep.subr.bf16.mxu0 %v9673_v46  ;;  %v748_v46 = vld [vmem:[#allocation9 + $0x938] sm:$0xff]  ;;  %v9721_v48 = vcombine.high %v4573_v13, %v4577_v42 }
 0x3d4   :  { %v9390_v16 = vcombine.low %v748_v46, %v756_v47  ;;  %v852_v27 = vld [vmem:[#allocation9 + $0xc78] sm:$0xff] }
 0x3d5   :  { %4165 = vmatpush1.bf16.msra.mxu1 %v9532_v49  ;;  %v9374_v49 = vcombine.low %v732_v41, %v740_v6  ;;  %v9487_v29 = vcombine.high %v844_v26, %v852_v27  ;;  %v9486_v41 = vcombine.low %v844_v26, %v852_v27  ;;  %v4454_v26 = vld [vmem:[#allocation15 + $0x8] sm:$0xff] }
 0x3d6   :  { %4166 = vmatprep.subr.bf16.mxu1 %v9549_v50  ;;  %7586 = vmatpush1.bf16.msra.mxu0 %v9672_v51  ;;  %v9391_v50 = vcombine.high %v748_v46, %v756_v47  ;;  %v9720_v51 = vcombine.low %v4573_v13, %v4577_v42  ;;  %v876_v42 = vld [vmem:[#allocation9 + $0xd38] sm:$0xff]  ;;  %v4458_v27 = vld [vmem:[#allocation15 + $0x28] sm:$0xff] }
 0x3d7   :  { %7587 = vmatprep.subr.bf16.mxu0 %v9681_v54  ;;  %v9729_v54 = vcombine.high %v11293_v12, %v11295_v59  ;;  %v892_v46 = vld [vmem:[#allocation9 + $0xdb8] sm:$0xff] }
 0x3d8   :  { %v900_v47 = vld [vmem:[#allocation9 + $0xdf8] sm:$0xff] }
 0x3d9   :  { %4167 = vmatpush1.bf16.msra.mxu1 %v9548_v18  ;;  %v780_v18 = vld [vmem:[#allocation9 + $0xa38] sm:$0xff] }
 0x3da   :  { %4168 = vmatprep.subr.bf16.mxu1 %v9565_v55  ;;  %7588 = vmatpush1.bf16.msra.mxu0 %v9680_v56  ;;  %v788_v55 = vld [vmem:[#allocation9 + $0xa78] sm:$0xff] }
 0x3db   :  { %7589 = vmatprep.subr.bf16.mxu0 %v9689_v60  ;;  %v9423_v56 = vcombine.high %v780_v18, %v788_v55  ;;  %v9422_v60 = vcombine.low %v780_v18, %v788_v55  ;;  %v4274_v18 = vmul.f32 0.044715, %v11272_v10 }
 0x3dd   :  { %4169 = vmatpush1.bf16.msra.mxu1 %v9564_v0  ;;  %v820_v0 = vld [vmem:[#allocation9 + $0xb78] sm:$0xff] }
 0x3de   :  { %4170 = vmatprep.subr.bf16.mxu1 %v9581_v1  ;;  %7590 = vmatpush1.bf16.msra.mxu0 %v9688_v5  ;;  %v9438_v1 = vcombine.low %v796_v57, %v804_v58  ;;  %v9455_v5 = vcombine.high %v812_v62, %v820_v0  ;;  %v940_v57 = vld [vmem:[#allocation9 + $0xf38] sm:$0xff] }
 0x3df   :  { %7591 = vmatprep.subr.bf16.mxu0 %v9697_v14  ;;  %v836_v14 = vld [vmem:[#allocation9 + $0xbf8] sm:$0xff] }
 0x3e0   :  { %v948_v58 = vld [vmem:[#allocation9 + $0xf78] sm:$0xff] }
 0x3e1   :  { %4171 = vmatpush1.bf16.msra.mxu1 %v9580_v20  ;;  %v9454_v20 = vcombine.low %v812_v62, %v820_v0  ;;  %v9583_v62 = vcombine.high %v940_v57, %v948_v58 }
 0x3e2   :  { %4172 = vmatprep.subr.bf16.mxu1 %v9597_v23  ;;  %7592 = vmatpush1.bf16.msra.mxu0 %v9696_v25  ;;  %v9471_v25 = vcombine.high %v828_v11, %v836_v14 }
 0x3e3   :  { %7593 = vmatprep.subr.bf16.mxu0 %v9705_v28  ;;  %v9470_v28 = vcombine.low %v828_v11, %v836_v14  ;;  %v4265_v14 = vmul.f32 0.7978846, %v11270_v39 }
 0x3e5   :  { %4173 = vmatpush1.bf16.msra.mxu1 %v9596_v34  ;;  %v868_v34 = vld [vmem:[#allocation9 + $0xcf8] sm:$0xff] }
 0x3e6   :  { %4224 = vmatprep.subr.bf16.mxu1 %v9359_v35  ;;  %7594 = vmatpush1.bf16.msra.mxu0 %v9704_v38 }
 0x3e7   :  { %7595 = vmatprep.subr.bf16.mxu0 %v9713_v8  ;;  %v9503_v8 = vcombine.high %v860_v32, %v868_v34 }
 0x3e8   :  { %4175 = vmatmul.mubr.bf16.vlgmr.msra.gmra.mrb[20].mxu1 %v11246_v37 }
 0x3e9   :  { %4225 = vmatpush1.bf16.msra.mxu1 %v9358_v43  ;;  %4256 = vmatprep.mubr.bf16.mxu1 %v11248_v40  ;;  %v9406_v40 = vcombine.low %v764_v52, %v772_v53  ;;  %v884_v43 = vld [vmem:[#allocation9 + $0xd78] sm:$0xff]  ;;  %v9534_v52 = vcombine.low %v892_v46, %v900_v47 }
 0x3ea   :  { %4226 = vmatprep.subr.bf16.mxu1 %v9375_v44  ;;  %7596 = vmatpush1.bf16.msra.mxu0 %v9712_v45  ;;  %v9502_v44 = vcombine.low %v860_v32, %v868_v34  ;;  %v9519_v45 = vcombine.high %v876_v42, %v884_v43  ;;  %v9603_v32 = vcombine.high %v4454_v26, %v4458_v27  ;;  %v4462_v34 = vld [vmem:[#allocation15 + $0x48] sm:$0xff] }
 0x3eb   :  { %7597 = vmatprep.subr.bf16.mxu0 %v9721_v48  ;;  %v9518_v48 = vcombine.low %v876_v42, %v884_v43  ;;  %v4474_v42 = vld [vmem:[#allocation15 + $0xa8] sm:$0xff] }
 0x3ed   :  { %4227 = vmatpush1.bf16.msra.mxu1 %v9374_v49  ;;  %v9535_v49 = vcombine.high %v892_v46, %v900_v47  ;;  %v4482_v46 = vld [vmem:[#allocation15 + $0xe8] sm:$0xff] }
 0x3ee   :  { %4228 = vmatprep.subr.bf16.mxu1 %v9391_v50  ;;  %7598 = vmatpush1.bf16.msra.mxu0 %v9720_v51  ;;  %v908_v50 = vld [vmem:[#allocation9 + $0xe38] sm:$0xff] }
 0x3ef   :  { %7608 = vmatprep.subr.bf16.mxu0 %v9729_v54  ;;  %v916_v51 = vld [vmem:[#allocation9 + $0xe78] sm:$0xff]  ;;  %v4273_v54 = vmul.f32 0.044715, %v11270_v39 }
 0x3f0   :  { %v9551_v53 = vcombine.high %v908_v50, %v916_v51  ;;  %v9550_v55 = vcombine.low %v908_v50, %v916_v51  ;;  %v4486_v51 = vld [vmem:[#allocation15 + $0x108] sm:$0xff] }
 0x3f1   :  { %4229 = vmatpush1.bf16.msra.mxu1 %v9390_v16  ;;  %v924_v16 = vld [vmem:[#allocation9 + $0xeb8] sm:$0xff] }
 0x3f2   :  { %4230 = vmatprep.subr.bf16.mxu1 %v9407_v17  ;;  %v932_v17 = vld [vmem:[#allocation9 + $0xef8] sm:$0xff] }
 0x3f5   :  { %4231 = vmatpush1.bf16.msra.mxu1 %v9406_v40  ;;  %v9567_v40 = vcombine.high %v924_v16, %v932_v17 }
 0x3f6   :  { %4232 = vmatprep.subr.bf16.mxu1 %v9423_v56  ;;  %v4281_v56 = vmul.f32 %v4273_v54, %v11270_v39 }
 0x3f8   :  { %v4289_v0 = vadd.f32 1.0, %v4281_v56  ;;  %v4494_v56 = vld [vmem:[#allocation15 + $0x148] sm:$0xff] }
 0x3f9   :  { %4233 = vmatpush1.bf16.msra.mxu1 %v9422_v60  ;;  %v4282_v60 = vmul.f32 %v4274_v18, %v11272_v10 }
 0x3fa   :  { %4234 = vmatprep.subr.bf16.mxu1 %v9439_v61  ;;  %v9566_v61 = vcombine.low %v924_v16, %v932_v17  ;;  %v11322_v16 = vld [vmem:[#allocation12] sm:$0xff]  ;;  %v4305_v17 = vmul.f32 0.5, %v11270_v39 }
 0x3fb   :  { %v11307_v7 = vpop.f32.mrb[8].mxu1  ;;  %v4290_v11 = vadd.f32 1.0, %v4282_v60  ;;  %v4342_v60 = vrot.slane %v11322_v16, %v11221_v22  ;;  %v4346_v39 = vrot.slane %v11322_v16, %v11224_v24 }
 0x3fc   :  { %v11309_v15 = vpop.f32.mrb[9].mxu1 }
 0x3fd   :  { %v3934_v19 = vpop.f32.mrb[10].mxu1  ;;  %4235 = vmatpush1.bf16.msra.mxu1 %v9438_v1  ;;  %v956_v1 = vld [vmem:[#allocation9 + $0xfb8] sm:$0xff] }
 0x3fe   :  { %v3935_v23 = vpop.f32.mrb[11].mxu1  ;;  %4236 = vmatprep.subr.bf16.mxu1 %v9455_v5  ;;  %v964_v5 = vld [vmem:[#allocation9 + $0xff8] sm:$0xff]  ;;  %v9582_v19 = vcombine.low %v940_v57, %v948_v58  ;;  %v4498_v57 = vld [vmem:[#allocation15 + $0x168] sm:$0xff] }
 0x3ff   :  { %v9599_v23 = vcombine.high %v956_v1, %v964_v5 }
 0x401   :  { %4237 = vmatpush1.bf16.msra.mxu1 %v9454_v20  ;;  %v4266_v20 = vmul.f32 0.7978846, %v11272_v10 }
 0x402   :  { %4238 = vmatprep.subr.bf16.mxu1 %v9471_v25  ;;  %v4297_v25 = vmul.f32 %v4289_v0, %v4265_v14  ;;  %v4506_v14 = vld [vmem:[#allocation15 + $0x1a8] sm:$0xff] }
 0x404   :  { %v11311_v35 = vpop.f32.mrb[20].mxu0  ;;  %10441 = vtanh.f32 %v4297_v25 }
 0x405   :  { %v11313_v38 = vpop.f32.mrb[21].mxu0  ;;  %4239 = vmatpush1.bf16.msra.mxu1 %v9470_v28  ;;  %v4298_v28 = vmul.f32 %v4290_v11, %v4266_v20  ;;  %v4502_v11 = vld [vmem:[#allocation15 + $0x188] sm:$0xff] }
 0x406   :  { %v4057_v6 = vpop.f32.mrb[22].mxu0  ;;  %4240 = vmatprep.subr.bf16.mxu1 %v9487_v29  ;;  %v9598_v29 = vcombine.low %v956_v1, %v964_v5 }
 0x407   :  { %v4058_v13 = vpop.f32.mrb[23].mxu0  ;;  %10443 = vtanh.f32 %v4298_v28  ;;  %v9602_v6 = vcombine.low %v4454_v26, %v4458_v27  ;;  %v9642_v26 = vcombine.low %v4494_v56, %v4498_v57  ;;  %v9651_v28 = vcombine.high %v4502_v11, %v4506_v14 }
 0x408   :  { %v4470_v13 = vld [vmem:[#allocation15 + $0x88] sm:$0xff] }
 0x409   :  { %4241 = vmatpush1.bf16.msra.mxu1 %v9486_v41  ;;  %v4466_v41 = vld [vmem:[#allocation15 + $0x68] sm:$0xff] }
 0x40a   :  { %4242 = vmatprep.subr.bf16.mxu1 %v9503_v8  ;;  %v9611_v8 = vcombine.high %v4462_v34, %v4466_v41  ;;  %v9610_v43 = vcombine.low %v4462_v34, %v4466_v41  ;;  %v4510_v34 = vld [vmem:[#allocation15 + $0x1c8] sm:$0xff] }
 0x40b   :  { %v4514_v41 = vld [vmem:[#allocation15 + $0x1e8] sm:$0xff] }
 0x40d   :  { %4243 = vmatpush1.bf16.msra.mxu1 %v9502_v44  ;;  %v9619_v44 = vcombine.high %v4470_v13, %v4474_v42 }
 0x40e   :  { %4244 = vmatprep.subr.bf16.mxu1 %v9519_v45  ;;  %v4478_v45 = vld [vmem:[#allocation15 + $0xc8] sm:$0xff]  ;;  %v10442_v47 = vpop.eup %10441 }
 0x40f   :  { %v9627_v50 = vcombine.high %v4478_v45, %v4482_v46  ;;  %v9626_v54 = vcombine.low %v4478_v45, %v4482_v46  ;;  %v9650_v45 = vcombine.low %v4502_v11, %v4506_v14  ;;  %v4609_v14 = vld [vmem:[#allocation15 + $0x4e0] sm:$0xff] }
 0x411   :  { %4245 = vmatpush1.bf16.msra.mxu1 %v9518_v48  ;;  %v9618_v48 = vcombine.low %v4470_v13, %v4474_v42 }
 0x412   :  { %4246 = vmatprep.subr.bf16.mxu1 %v9535_v49  ;;  %v10444_v49 = vpop.eup %10443 }
 0x415   :  { %4247 = vmatpush1.bf16.msra.mxu1 %v9534_v52  ;;  %v4490_v52 = vld [vmem:[#allocation15 + $0x128] sm:$0xff] }
 0x416   :  { %4248 = vmatprep.subr.bf16.mxu1 %v9551_v53  ;;  %v4321_v53 = vadd.f32 1.0, %v10442_v47  ;;  %v9635_v18 = vcombine.high %v4486_v51, %v4490_v52 }
 0x418   :  { %v4329_v58 = vmul.f32 %v4321_v53, %v4305_v17  ;;  %v9658_v53 = vcombine.low %v4510_v34, %v4514_v41 }
 0x419   :  { %4249 = vmatpush1.bf16.msra.mxu1 %v9550_v55  ;;  %v4306_v55 = vmul.f32 0.5, %v11272_v10  ;;  %v9643_v10 = vcombine.high %v4494_v56, %v4498_v57  ;;  %v4526_v56 = vld [vmem:[#allocation15 + $0x248] sm:$0xff] }
 0x41a   :  { %4250 = vmatprep.subr.bf16.mxu1 %v9567_v40  ;;  %v11326_v40 = vld [vmem:[#allocation11 + $0x8] sm:$0xff] }
 0x41b   :  { %v1004_v1 = vrot.slane %v11326_v40, %v11221_v22  ;;  %v1008_v5 = vrot.slane %v11326_v40, %v11224_v24  ;;  %v4530_v57 = vld [vmem:[#allocation15 + $0x268] sm:$0xff] }
 0x41d   :  { %4251 = vmatpush1.bf16.msra.mxu1 %v9566_v61  ;;  %v9634_v61 = vcombine.low %v4486_v51, %v4490_v52  ;;  %v3972_v27 = vadd.f32 %v11299_v4, %v1004_v1  ;;  %v4589_v4 = vld [vmem:[#allocation15 + $0x440] sm:$0xff]  ;;  %v4518_v51 = vld [vmem:[#allocation15 + $0x208] sm:$0xff] }
 0x41e   :  { %4252 = vmatprep.subr.bf16.mxu1 %v9583_v62  ;;  %v11330_v62 = vld [vmem:[#allocation14] sm:$0xff] }
 0x41f   :  { %v4392_v20 = vrot.slane %v11330_v62, %v11221_v22  ;;  %v4396_v25 = vrot.slane %v11330_v62, %v11224_v24 }
 0x421   :  { %4253 = vmatpush1.bf16.msra.mxu1 %v9582_v19  ;;  %v4379_v19 = vmul.f32 %v4342_v60, %v4329_v58 }
 0x422   :  { %4254 = vmatprep.subr.bf16.mxu1 %v9599_v23 }
 0x425   :  { %4255 = vmatpush1.bf16.msra.mxu1 %v9598_v29  ;;  %v3974_v29 = vadd.f32 %v11301_v9, %v1008_v5  ;;  %v4522_v9 = vld [vmem:[#allocation15 + $0x228] sm:$0xff]  ;;  %v4605_v5 = vld [vmem:[#allocation15 + $0x4c0] sm:$0xff] }
 0x426   :  { %7731 = vmatprep.subr.bf16.mxu1 %v9603_v32  ;;  %v9667_v17 = vcombine.high %v4518_v51, %v4522_v9  ;;  %v9753_v59 = vcombine.high %v4605_v5, %v4609_v14 }
 0x428   :  { %4257 = vmatmul.mubr.bf16.vlgmr.msra.gmra.mrb[24].mxu1 %v11246_v37  ;;  %v4322_v37 = vadd.f32 1.0, %v10444_v49 }
 0x429   :  { %7732 = vmatpush1.bf16.msra.mxu1 %v9602_v6 }
 0x42a   :  { %7733 = vmatprep.subr.bf16.mxu1 %v9611_v8  ;;  %v4330_v0 = vmul.f32 %v4322_v37, %v4306_v55  ;;  %v4429_v8 = vadd.f32 %v4392_v20, %v4379_v19  ;;  %v4601_v55 = vld [vmem:[#allocation15 + $0x4a0] sm:$0xff]  ;;  %v4534_v19 = vld [vmem:[#allocation15 + $0x288] sm:$0xff] }
 0x42b   :  { %v4538_v20 = vld [vmem:[#allocation15 + $0x2a8] sm:$0xff] }
 0x42c   :  { %v4380_v23 = vmul.f32 %v4346_v39, %v4330_v0  ;;  %v9666_v0 = vcombine.low %v4518_v51, %v4522_v9  ;;  %v4629_v51 = vld [vmem:[#allocation15 + $0x580] sm:$0xff] }
 0x42d   :  { %7734 = vmatpush1.bf16.msra.mxu1 %v9610_v43 }
 0x42e   :  { %7735 = vmatprep.subr.bf16.mxu1 %v9619_v44  ;;  %v4430_v43 = vadd.f32 %v4396_v25, %v4380_v23  ;;  %v9674_v25 = vcombine.low %v4526_v56, %v4530_v57 }
 0x431   :  { %7736 = vmatpush1.bf16.msra.mxu1 %v9618_v48  ;;  %v9659_v48 = vcombine.high %v4510_v34, %v4514_v41  ;;  %v4546_v34 = vld [vmem:[#allocation15 + $0x2e8] sm:$0xff]  ;;  %v9752_v41 = vcombine.low %v4605_v5, %v4609_v14 }
 0x432   :  { %7737 = vmatprep.subr.bf16.mxu1 %v9627_v50  ;;  %v4593_v50 = vld [vmem:[#allocation15 + $0x460] sm:$0xff] }
 0x433   :  { %v9737_v37 = vcombine.high %v4589_v4, %v4593_v50 }
 0x435   :  { %7738 = vmatpush1.bf16.msra.mxu1 %v9626_v54 }
 0x436   :  { %7739 = vmatprep.subr.bf16.mxu1 %v9635_v18  ;;  %v4597_v18 = vld [vmem:[#allocation15 + $0x480] sm:$0xff] }
 0x437   :  { %v9745_v1 = vcombine.high %v4597_v18, %v4601_v55  ;;  %v9744_v23 = vcombine.low %v4597_v18, %v4601_v55 }
 0x439   :  { %7740 = vmatpush1.bf16.msra.mxu1 %v9634_v61  ;;  %v9736_v61 = vcombine.low %v4589_v4, %v4593_v50 }
 0x43a   :  { %7741 = vmatprep.subr.bf16.mxu1 %v9643_v10  ;;  %v9675_v10 = vcombine.high %v4526_v56, %v4530_v57 }
 0x43b   :  { %v4012_v32 = vpop.f32.mrb[12].mxu1 }
 0x43c   :  { %v4013_v6 = vadd.f32 %v4012_v32, %v3972_v27  ;;  %v4014_v13 = vpop.f32.mrb[13].mxu1  ;;  %v4613_v27 = vld [vmem:[#allocation15 + $0x500] sm:$0xff]  ;;  %v4542_v32 = vld [vmem:[#allocation15 + $0x2c8] sm:$0xff] }
 0x43d   :  { %v4015_v42 = vadd.f32 %v4014_v13, %v3974_v29  ;;  %v4016_v44 = vpop.f32.mrb[14].mxu1  ;;  %7742 = vmatpush1.bf16.msra.mxu1 %v9642_v26  ;;  %v11358_v26 = vld [vmem:[#allocation11] sm:$0xff]  ;;  %v9690_v4 = vcombine.low %v4542_v32, %v4546_v34 }
 0x43e   :  { %v4437_v46 = vadd.f32 %v4429_v8, %v4013_v6  ;;  %v4017_v47 = vpop.f32.mrb[15].mxu1  ;;  %7743 = vmatprep.subr.bf16.mxu1 %v9651_v28  ;;  %v980_v12 = vrot.slane %v11358_v26, %v11229_v30  ;;  %v984_v28 = vrot.slane %v11358_v26, %v11232_v33  ;;  %v4617_v29 = vld [vmem:[#allocation15 + $0x520] sm:$0xff]  ;;  %v9682_v6 = vcombine.low %v4534_v19, %v4538_v20 }
 0x43f   :  { %v4438_v49 = vadd.f32 %v4430_v43, %v4015_v42  ;;  %v9761_v13 = vcombine.high %v4613_v27, %v4617_v29  ;;  %v9691_v42 = vcombine.high %v4542_v32, %v4546_v34  ;;  %v4621_v43 = vld [vmem:[#allocation15 + $0x540] sm:$0xff]  ;;  %v4554_v47 = vld [vmem:[#allocation15 + $0x328] sm:$0xff] }
 0x440   :  { %v11346_v54 = vpack.c.bf16 %v4437_v46, %v4437_v46  ;;  %v11365_v8 = vadd.f32 %v11282_v63, %v980_v12  ;;  %v11368_v44 = vadd.f32 %v11284_v3, %v984_v28  ;;  %v4550_v46 = vld [vmem:[#allocation15 + $0x308] sm:$0xff]  ;;  %v4649_v12 = vld [vmem:[#allocation15 + $0x620] sm:$0xff] }
 0x441   :  { %v11344_v52 = vpack.c.bf16 %v4438_v49, %v4438_v49  ;;  %7744 = vmatpush1.bf16.msra.mxu1 %v9650_v45  ;;  %v4625_v45 = vld [vmem:[#allocation15 + $0x560] sm:$0xff]  ;;  %v9699_v50 = vcombine.high %v4550_v46, %v4554_v47  ;;  %v4562_v3 = vld [vmem:[#allocation15 + $0x368] sm:$0xff]  ;;  %v9698_v18 = vcombine.low %v4550_v46, %v4554_v47 }
 0x442   :  { %7745 = vmatprep.subr.bf16.mxu1 %v9659_v48  ;;  %v9760_v48 = vcombine.low %v4613_v27, %v4617_v29  ;;  %v4275_v49 = vmul.f32 0.044715, %v11365_v8  ;;  %v9769_v63 = vcombine.high %v4621_v43, %v4625_v45  ;;  %v4276_v9 = vmul.f32 0.044715, %v11368_v44  ;;  %v4586_v46 = vld [vmem:[#allocation15 + $0x428] sm:$0xff] }
 0x443   :  { %7599 = vmatprep.mubr.bf16.mxu0 %v11344_v52  ;;  %7763 = vmatprep.mubr.bf16.mxu1 %v11344_v52  ;;  %v4267_v27 = vmul.f32 0.7978846, %v11365_v8  ;;  %v4268_v28 = vmul.f32 0.7978846, %v11368_v44 }
 0x444   :  { %v11350_v58 = vpop.f32.mrb[24].mxu0  ;;  %7600 = vmatmul.mubr.bf16.vlgmr.msra.gmra.mrb[32].mxu0 %v11346_v54  ;;  %v4283_v55 = vmul.f32 %v11365_v8, %v4275_v49 }
 0x445   :  { %v11353_v60 = vpop.f32.mrb[25].mxu0  ;;  %7609 = vmatpush1.bf16.msra.mxu0 %v9728_v2  ;;  %7746 = vmatpush1.bf16.msra.mxu1 %v9658_v53  ;;  %v9683_v2 = vcombine.high %v4534_v19, %v4538_v20  ;;  %v4633_v53 = vld [vmem:[#allocation15 + $0x5a0] sm:$0xff] }
 0x446   :  { %v4139_v39 = vpop.f32.mrb[26].mxu0  ;;  %7610 = vmatprep.subr.bf16.mxu0 %v9737_v37  ;;  %7747 = vmatprep.subr.bf16.mxu1 %v9667_v17  ;;  %v4558_v37 = vld [vmem:[#allocation15 + $0x348] sm:$0xff]  ;;  %v9768_v17 = vcombine.low %v4621_v43, %v4625_v45  ;;  %v9777_v56 = vcombine.high %v4629_v51, %v4633_v53  ;;  %v9776_v5 = vcombine.low %v4629_v51, %v4633_v53  ;;  %v4291_v14 = vadd.f32 1.0, %v4283_v55  ;;  %v4657_v43 = vld [vmem:[#allocation15 + $0x660] sm:$0xff] }
 0x447   :  { %v4140_v11 = vpop.f32.mrb[27].mxu0  ;;  %v9707_v57 = vcombine.high %v4558_v37, %v4562_v3  ;;  %v4641_v39 = vld [vmem:[#allocation15 + $0x5e0] sm:$0xff]  ;;  %v4582_v45 = vld [vmem:[#allocation15 + $0x408] sm:$0xff] }
 0x448   :  { %v9706_v11 = vcombine.low %v4558_v37, %v4562_v3  ;;  %v4299_v34 = vmul.f32 %v4291_v14, %v4267_v27  ;;  %v9731_v49 = vcombine.high %v4582_v45, %v4586_v46  ;;  %v4590_v51 = vld [vmem:[#allocation15 + $0x448] sm:$0xff]  ;;  %v9730_v37 = vcombine.low %v4582_v45, %v4586_v46  ;;  %v4673_v55 = vld [vmem:[#allocation15 + $0x6e0] sm:$0xff] }
 0x449   :  { %7611 = vmatpush1.bf16.msra.mxu0 %v9736_v61  ;;  %7748 = vmatpush1.bf16.msra.mxu1 %v9666_v0  ;;  %v4637_v61 = vld [vmem:[#allocation15 + $0x5c0] sm:$0xff]  ;;  %v4284_v0 = vmul.f32 %v11368_v44, %v4276_v9  ;;  %v4594_v9 = vld [vmem:[#allocation15 + $0x468] sm:$0xff] }
 0x44a   :  { %7612 = vmatprep.subr.bf16.mxu0 %v9745_v1  ;;  %7749 = vmatprep.subr.bf16.mxu1 %v9675_v10  ;;  %v4566_v1 = vld [vmem:[#allocation15 + $0x388] sm:$0xff]  ;;  %v9785_v19 = vcombine.high %v4637_v61, %v4641_v39  ;;  %v9784_v29 = vcombine.low %v4637_v61, %v4641_v39  ;;  %10445 = vtanh.f32 %v4299_v34  ;;  %v4689_v27 = vld [vmem:[#allocation15 + $0x760] sm:$0xff] }
 0x44b   :  { %v4570_v10 = vld [vmem:[#allocation15 + $0x3a8] sm:$0xff]  ;;  %v4693_v46 = vld [vmem:[#allocation15 + $0x780] sm:$0xff] }
 0x44c   :  { %v9715_v20 = vcombine.high %v4566_v1, %v4570_v10  ;;  %v9714_v32 = vcombine.low %v4566_v1, %v4570_v10  ;;  %v4677_v10 = vld [vmem:[#allocation15 + $0x700] sm:$0xff]  ;;  %v4610_v14 = vld [vmem:[#allocation15 + $0x4e8] sm:$0xff] }
 0x44d   :  { %7613 = vmatpush1.bf16.msra.mxu0 %v9744_v23  ;;  %7750 = vmatpush1.bf16.msra.mxu1 %v9674_v25  ;;  %v4645_v23 = vld [vmem:[#allocation15 + $0x600] sm:$0xff]  ;;  %v4292_v25 = vadd.f32 1.0, %v4284_v0  ;;  %v9738_v0 = vcombine.low %v4590_v51, %v4594_v9 }
 0x44e   :  { %7614 = vmatprep.subr.bf16.mxu0 %v9753_v59  ;;  %7751 = vmatprep.subr.bf16.mxu1 %v9683_v2  ;;  %v4574_v59 = vld [vmem:[#allocation15 + $0x3c8] sm:$0xff]  ;;  %v9792_v47 = vcombine.low %v4645_v23, %v4649_v12 }
 0x44f   :  { %v4578_v2 = vld [vmem:[#allocation15 + $0x3e8] sm:$0xff] }
 0x451   :  { %7615 = vmatpush1.bf16.msra.mxu0 %v9752_v41  ;;  %7752 = vmatpush1.bf16.msra.mxu1 %v9682_v6  ;;  %v9793_v41 = vcombine.high %v4645_v23, %v4649_v12  ;;  %v9723_v6 = vcombine.high %v4574_v59, %v4578_v2 }
 0x452   :  { %7616 = vmatprep.subr.bf16.mxu0 %v9761_v13  ;;  %7753 = vmatprep.subr.bf16.mxu1 %v9691_v42  ;;  %v4653_v13 = vld [vmem:[#allocation15 + $0x640] sm:$0xff]  ;;  %v4300_v42 = vmul.f32 %v4292_v25, %v4268_v28  ;;  %v4614_v28 = vld [vmem:[#allocation15 + $0x508] sm:$0xff] }
 0x453   :  { %v9800_v53 = vcombine.low %v4653_v13, %v4657_v43 }
 0x454   :  { %10447 = vtanh.f32 %v4300_v42  ;;  %v4308_v42 = vmul.f32 0.5, %v11368_v44 }
 0x455   :  { %7617 = vmatpush1.bf16.msra.mxu0 %v9760_v48  ;;  %7754 = vmatpush1.bf16.msra.mxu1 %v9690_v4  ;;  %v9722_v48 = vcombine.low %v4574_v59, %v4578_v2  ;;  %v9801_v4 = vcombine.high %v4653_v13, %v4657_v43  ;;  %v4685_v2 = vld [vmem:[#allocation15 + $0x740] sm:$0xff]  ;;  %v4307_v13 = vmul.f32 0.5, %v11365_v8 }
 0x456   :  { %7618 = vmatprep.subr.bf16.mxu0 %v9769_v63  ;;  %7755 = vmatprep.subr.bf16.mxu1 %v9699_v50  ;;  %v4661_v63 = vld [vmem:[#allocation15 + $0x680] sm:$0xff]  ;;  %v9833_v43 = vcombine.high %v4685_v2, %v4689_v27  ;;  %v9832_v8 = vcombine.low %v4685_v2, %v4689_v27 }
 0x457   :  { %v4665_v50 = vld [vmem:[#allocation15 + $0x6a0] sm:$0xff] }
 0x458   :  { %v9809_v3 = vcombine.high %v4661_v63, %v4665_v50  ;;  %v9808_v61 = vcombine.low %v4661_v63, %v4665_v50  ;;  %v4350_v63 = vrot.slane %v11322_v16, %v11229_v30 }
 0x459   :  { %7619 = vmatpush1.bf16.msra.mxu0 %v9768_v17  ;;  %7756 = vmatpush1.bf16.msra.mxu1 %v9698_v18  ;;  %v9739_v17 = vcombine.high %v4590_v51, %v4594_v9  ;;  %v4669_v18 = vld [vmem:[#allocation15 + $0x6c0] sm:$0xff]  ;;  %v4354_v51 = vrot.slane %v11322_v16, %v11232_v33  ;;  %v1012_v9 = vrot.slane %v11326_v40, %v11229_v30 }
 0x45a   :  { %7620 = vmatprep.subr.bf16.mxu0 %v9777_v56  ;;  %7757 = vmatprep.subr.bf16.mxu1 %v9707_v57  ;;  %v4598_v56 = vld [vmem:[#allocation15 + $0x488] sm:$0xff]  ;;  %v9817_v39 = vcombine.high %v4669_v18, %v4673_v55  ;;  %v9816_v23 = vcombine.low %v4669_v18, %v4673_v55  ;;  %v4705_v18 = vld [vmem:[#allocation15 + $0x7e0] sm:$0xff] }
 0x45b   :  { %v4602_v57 = vld [vmem:[#allocation15 + $0x4a8] sm:$0xff] }
 0x45c   :  { %v9747_v1 = vcombine.high %v4598_v56, %v4602_v57  ;;  %v9746_v25 = vcombine.low %v4598_v56, %v4602_v57  ;;  %v4630_v55 = vld [vmem:[#allocation15 + $0x588] sm:$0xff] }
 0x45d   :  { %7621 = vmatpush1.bf16.msra.mxu0 %v9776_v5  ;;  %7758 = vmatpush1.bf16.msra.mxu1 %v9706_v11  ;;  %v4681_v5 = vld [vmem:[#allocation15 + $0x720] sm:$0xff]  ;;  %v4606_v11 = vld [vmem:[#allocation15 + $0x4c8] sm:$0xff] }
 0x45e   :  { %7622 = vmatprep.subr.bf16.mxu0 %v9785_v19  ;;  %7759 = vmatprep.subr.bf16.mxu1 %v9715_v20  ;;  %v10446_v19 = vpop.eup %10445  ;;  %v9825_v12 = vcombine.high %v4677_v10, %v4681_v5  ;;  %v9755_v59 = vcombine.high %v4606_v11, %v4610_v14  ;;  %v4634_v56 = vld [vmem:[#allocation15 + $0x5a8] sm:$0xff] }
 0x45f   :  { %v10448_v20 = vpop.eup %10447 }
 0x460   :  { %v4324_v34 = vadd.f32 1.0, %v10448_v20 }
 0x461   :  { %7623 = vmatpush1.bf16.msra.mxu0 %v9784_v29  ;;  %7760 = vmatpush1.bf16.msra.mxu1 %v9714_v32  ;;  %v4618_v29 = vld [vmem:[#allocation15 + $0x528] sm:$0xff]  ;;  %v4323_v32 = vadd.f32 1.0, %v10446_v19  ;;  %v4709_v19 = vld [vmem:[#allocation15 + $0x800] sm:$0xff] }
 0x462   :  { %7624 = vmatprep.subr.bf16.mxu0 %v9793_v41  ;;  %7761 = vmatprep.subr.bf16.mxu1 %v9723_v6  ;;  %v9824_v41 = vcombine.low %v4677_v10, %v4681_v5  ;;  %v9754_v6 = vcombine.low %v4606_v11, %v4610_v14  ;;  %v9763_v45 = vcombine.high %v4614_v28, %v4618_v29 }
 0x463   :  { %v4332_v50 = vmul.f32 %v4324_v34, %v4308_v42  ;;  %v9762_v44 = vcombine.low %v4614_v28, %v4618_v29  ;;  %v4054_v5 = vadd.f32 %v11311_v35, %v1012_v9  ;;  %v9779_v14 = vcombine.high %v4630_v55, %v4634_v56  ;;  %v4729_v9 = vld [vmem:[#allocation15 + $0x8a0] sm:$0xff] }
 0x465   :  { %7625 = vmatpush1.bf16.msra.mxu0 %v9792_v47  ;;  %7762 = vmatpush1.bf16.msra.mxu1 %v9722_v48  ;;  %v4697_v47 = vld [vmem:[#allocation15 + $0x7a0] sm:$0xff]  ;;  %v4622_v48 = vld [vmem:[#allocation15 + $0x548] sm:$0xff] }
 0x466   :  { %7626 = vmatprep.subr.bf16.mxu0 %v9801_v4  ;;  %7772 = vmatprep.subr.bf16.mxu1 %v9731_v49  ;;  %v4626_v4 = vld [vmem:[#allocation15 + $0x568] sm:$0xff]  ;;  %v4331_v49 = vmul.f32 %v4323_v32, %v4307_v13 }
 0x467   :  { %v9770_v10 = vcombine.low %v4622_v48, %v4626_v4 }
 0x468   :  { %7764 = vmatmul.mubr.bf16.vlgmr.msra.gmra.mrb[28].mxu1 %v11346_v54  ;;  %v4381_v57 = vmul.f32 %v4350_v63, %v4331_v49 }
 0x469   :  { %7627 = vmatpush1.bf16.msra.mxu0 %v9800_v53  ;;  %7773 = vmatpush1.bf16.msra.mxu1 %v9730_v37  ;;  %v9841_v53 = vcombine.high %v4693_v46, %v4697_v47  ;;  %v9771_v37 = vcombine.high %v4622_v48, %v4626_v4  ;;  %v4650_v48 = vld [vmem:[#allocation15 + $0x628] sm:$0xff] }
 0x46a   :  { %7628 = vmatprep.subr.bf16.mxu0 %v9809_v3  ;;  %7774 = vmatprep.subr.bf16.mxu1 %v9739_v17  ;;  %v4701_v3 = vld [vmem:[#allocation15 + $0x7c0] sm:$0xff]  ;;  %v1016_v17 = vrot.slane %v11326_v40, %v11232_v33 }
 0x46b   :  { %v9849_v11 = vcombine.high %v4701_v3, %v4705_v18  ;;  %v9848_v35 = vcombine.low %v4701_v3, %v4705_v18 }
 0x46c   :  { %v4056_v20 = vadd.f32 %v11313_v38, %v1016_v17 }
 0x46d   :  { %7629 = vmatpush1.bf16.msra.mxu0 %v9808_v61  ;;  %7775 = vmatpush1.bf16.msra.mxu1 %v9738_v0  ;;  %v4400_v61 = vrot.slane %v11330_v62, %v11229_v30  ;;  %v4382_v0 = vmul.f32 %v4354_v51, %v4332_v50 }
 0x46e   :  { %7630 = vmatprep.subr.bf16.mxu0 %v9817_v39  ;;  %7776 = vmatprep.subr.bf16.mxu1 %v9747_v1  ;;  %v4404_v39 = vrot.slane %v11330_v62, %v11232_v33  ;;  %v9840_v1 = vcombine.low %v4693_v46, %v4697_v47  ;;  %v4721_v46 = vld [vmem:[#allocation15 + $0x860] sm:$0xff]  ;;  %v4646_v47 = vld [vmem:[#allocation15 + $0x608] sm:$0xff] }
 0x46f   :  { %v4431_v27 = vadd.f32 %v4400_v61, %v4381_v57 }
 0x470   :  { %v4432_v29 = vadd.f32 %v4404_v39, %v4382_v0  ;;  %v4733_v39 = vld [vmem:[#allocation15 + $0x8c0] sm:$0xff] }
 0x471   :  { %7631 = vmatpush1.bf16.msra.mxu0 %v9816_v23  ;;  %7777 = vmatpush1.bf16.msra.mxu1 %v9746_v25  ;;  %v4713_v25 = vld [vmem:[#allocation15 + $0x820] sm:$0xff] }
 0x472   :  { %7632 = vmatprep.subr.bf16.mxu0 %v9825_v12  ;;  %7778 = vmatprep.subr.bf16.mxu1 %v9755_v59  ;;  %v4638_v12 = vld [vmem:[#allocation15 + $0x5c8] sm:$0xff]  ;;  %v9857_v42 = vcombine.high %v4709_v19, %v4713_v25  ;;  %v9856_v49 = vcombine.low %v4709_v19, %v4713_v25 }
 0x473   :  { %v4642_v59 = vld [vmem:[#allocation15 + $0x5e8] sm:$0xff] }
 0x474   :  { %v9787_v38 = vcombine.high %v4638_v12, %v4642_v59  ;;  %v9786_v63 = vcombine.low %v4638_v12, %v4642_v59  ;;  %v4741_v59 = vld [vmem:[#allocation15 + $0x900] sm:$0xff] }
 0x475   :  { %7633 = vmatpush1.bf16.msra.mxu0 %v9824_v41  ;;  %7779 = vmatpush1.bf16.msra.mxu1 %v9754_v6  ;;  %v9778_v41 = vcombine.low %v4630_v55, %v4634_v56  ;;  %v9794_v55 = vcombine.low %v4646_v47, %v4650_v48  ;;  %v11405_v56 = vsub.s32 4, %v11218_v21 }
 0x476   :  { %7634 = vmatprep.subr.bf16.mxu0 %v9833_v43  ;;  %7780 = vmatprep.subr.bf16.mxu1 %v9763_v45  ;;  %v4717_v43 = vld [vmem:[#allocation15 + $0x840] sm:$0xff] }
 0x477   :  { %v9865_v51 = vcombine.high %v4717_v43, %v4721_v46  ;;  %v9864_v18 = vcombine.low %v4717_v43, %v4721_v46  ;;  %v4678_v43 = vld [vmem:[#allocation15 + $0x708] sm:$0xff] }
 0x479   :  { %7635 = vmatpush1.bf16.msra.mxu0 %v9832_v8  ;;  %7781 = vmatpush1.bf16.msra.mxu1 %v9762_v44  ;;  %v9795_v8 = vcombine.high %v4646_v47, %v4650_v48  ;;  %v4725_v44 = vld [vmem:[#allocation15 + $0x880] sm:$0xff] }
 0x47a   :  { %7636 = vmatprep.subr.bf16.mxu0 %v9841_v53  ;;  %7782 = vmatprep.subr.bf16.mxu1 %v9771_v37  ;;  %v4654_v53 = vld [vmem:[#allocation15 + $0x648] sm:$0xff]  ;;  %v9873_v61 = vcombine.high %v4725_v44, %v4729_v9  ;;  %v9872_v19 = vcombine.low %v4725_v44, %v4729_v9 }
 0x47b   :  { %v4094_v23 = vpop.f32.mrb[16].mxu1  ;;  %v4658_v37 = vld [vmem:[#allocation15 + $0x668] sm:$0xff] }
 0x47c   :  { %v4095_v2 = vadd.f32 %v4094_v23, %v4054_v5  ;;  %v4096_v28 = vpop.f32.mrb[17].mxu1  ;;  %v9803_v0 = vcombine.high %v4654_v53, %v4658_v37  ;;  %v4737_v5 = vld [vmem:[#allocation15 + $0x8e0] sm:$0xff]  ;;  %v988_v23 = vrot.slane %v11358_v26, %v11405_v56  ;;  %v4686_v44 = vld [vmem:[#allocation15 + $0x748] sm:$0xff] }
 0x47d   :  { %v4097_v32 = vadd.f32 %v4096_v28, %v4056_v20  ;;  %7637 = vmatpush1.bf16.msra.mxu0 %v9840_v1  ;;  %v4098_v34 = vpop.f32.mrb[18].mxu1  ;;  %7783 = vmatpush1.bf16.msra.mxu1 %v9770_v10  ;;  %v11408_v1 = vsub.s32 5, %v11218_v21  ;;  %v9802_v20 = vcombine.low %v4654_v53, %v4658_v37  ;;  %v9881_v25 = vcombine.high %v4733_v39, %v4737_v5  ;;  %v4670_v28 = vld [vmem:[#allocation15 + $0x6c8] sm:$0xff] }
 0x47e   :  { %v4439_v6 = vadd.f32 %v4431_v27, %v4095_v2  ;;  %v4099_v13 = vpop.f32.mrb[19].mxu1  ;;  %7638 = vmatprep.subr.bf16.mxu0 %v9849_v11  ;;  %7784 = vmatprep.subr.bf16.mxu1 %v9779_v14  ;;  %v4662_v11 = vld [vmem:[#allocation15 + $0x688] sm:$0xff]  ;;  %v4745_v27 = vld [vmem:[#allocation15 + $0x920] sm:$0xff] }
 0x47f   :  { %v4440_v45 = vadd.f32 %v4432_v29, %v4097_v32  ;;  %v4666_v14 = vld [vmem:[#allocation15 + $0x6a8] sm:$0xff]  ;;  %v992_v2 = vrot.slane %v11358_v26, %v11408_v1  ;;  %v9880_v32 = vcombine.low %v4733_v39, %v4737_v5  ;;  %v4749_v13 = vld [vmem:[#allocation15 + $0x940] sm:$0xff]  ;;  %v9888_v46 = vcombine.low %v4741_v59, %v4745_v27 }
 0x480   :  { %v11395_v50 = vpack.c.bf16 %v4439_v6, %v4439_v6  ;;  %v9811_v12 = vcombine.high %v4662_v11, %v4666_v14  ;;  %v4674_v29 = vld [vmem:[#allocation15 + $0x6e8] sm:$0xff]  ;;  %v9810_v34 = vcombine.low %v4662_v11, %v4666_v14 }
 0x481   :  { %v11393_v4 = vpack.c.bf16 %v4440_v45, %v4440_v45  ;;  %7639 = vmatpush1.bf16.msra.mxu0 %v9848_v35  ;;  %7785 = vmatpush1.bf16.msra.mxu1 %v9778_v41  ;;  %v11415_v35 = vadd.f32 %v11286_v31, %v988_v23  ;;  %v9889_v41 = vcombine.high %v4741_v59, %v4745_v27  ;;  %v4682_v45 = vld [vmem:[#allocation15 + $0x728] sm:$0xff]  ;;  %v4773_v23 = vld [vmem:[#allocation15 + $0xa00] sm:$0xff] }
 0x482   :  { %7649 = vmatprep.subr.bf16.mxu0 %v9857_v42  ;;  %7786 = vmatprep.subr.bf16.mxu1 %v9787_v38  ;;  %v9819_v6 = vcombine.high %v4670_v28, %v4674_v29  ;;  %v11418_v42 = vadd.f32 %v11288_v36, %v992_v2  ;;  %v4753_v38 = vld [vmem:[#allocation15 + $0x960] sm:$0xff]  ;;  %v9818_v47 = vcombine.low %v4670_v28, %v4674_v29  ;;  %v4690_v36 = vld [vmem:[#allocation15 + $0x768] sm:$0xff] }
 0x483   :  { %7640 = vmatprep.mubr.bf16.mxu0 %v11393_v4  ;;  %7804 = vmatprep.mubr.bf16.mxu1 %v11393_v4  ;;  %v4277_v48 = vmul.f32 0.044715, %v11415_v35  ;;  %v9897_v31 = vcombine.high %v4749_v13, %v4753_v38  ;;  %v9896_v9 = vcombine.low %v4749_v13, %v4753_v38  ;;  %v9826_v53 = vcombine.low %v4678_v43, %v4682_v45  ;;  %v4694_v39 = vld [vmem:[#allocation15 + $0x788] sm:$0xff]  ;;  %v4781_v13 = vld [vmem:[#allocation15 + $0xa40] sm:$0xff] }
 0x484   :  { %v11399_v3 = vpop.f32.mrb[28].mxu0  ;;  %7641 = vmatmul.mubr.bf16.vlgmr.msra.gmra.mrb[32].mxu0 %v11395_v50  ;;  %v9834_v11 = vcombine.low %v4686_v44, %v4690_v36  ;;  %v4702_v59 = vld [vmem:[#allocation15 + $0x7c8] sm:$0xff]  ;;  %v4269_v27 = vmul.f32 0.7978846, %v11415_v35  ;;  %v4270_v28 = vmul.f32 0.7978846, %v11418_v42 }
 0x485   :  { %v11402_v17 = vpop.f32.mrb[29].mxu0  ;;  %7650 = vmatpush1.bf16.msra.mxu0 %v9856_v49  ;;  %7787 = vmatpush1.bf16.msra.mxu1 %v9786_v63  ;;  %v9827_v49 = vcombine.high %v4678_v43, %v4682_v45  ;;  %v4757_v63 = vld [vmem:[#allocation15 + $0x980] sm:$0xff]  ;;  %v4285_v37 = vmul.f32 %v11415_v35, %v4277_v48  ;;  %v4706_v2 = vld [vmem:[#allocation15 + $0x7e8] sm:$0xff] }
 0x486   :  { %v4221_v57 = vpop.f32.mrb[30].mxu0  ;;  %7651 = vmatprep.subr.bf16.mxu0 %v9865_v51  ;;  %7788 = vmatprep.subr.bf16.mxu1 %v9795_v8  ;;  %v4278_v51 = vmul.f32 0.044715, %v11418_v42  ;;  %v4761_v8 = vld [vmem:[#allocation15 + $0x9a0] sm:$0xff]  ;;  %v4710_v45 = vld [vmem:[#allocation15 + $0x808] sm:$0xff]  ;;  %v9850_v48 = vcombine.low %v4702_v59, %v4706_v2 }
 0x487   :  { %v4222_v10 = vpop.f32.mrb[31].mxu0  ;;  %v4765_v57 = vld [vmem:[#allocation15 + $0x9c0] sm:$0xff]  ;;  %v9904_v5 = vcombine.low %v4757_v63, %v4761_v8  ;;  %v4293_v14 = vadd.f32 1.0, %v4285_v37 }
 0x488   :  { %v4698_v10 = vld [vmem:[#allocation15 + $0x7a8] sm:$0xff]  ;;  %v4785_v43 = vld [vmem:[#allocation15 + $0xa60] sm:$0xff] }
 0x489   :  { %7652 = vmatpush1.bf16.msra.mxu0 %v9864_v18  ;;  %7789 = vmatpush1.bf16.msra.mxu1 %v9794_v55  ;;  %v9905_v18 = vcombine.high %v4757_v63, %v4761_v8  ;;  %v9835_v55 = vcombine.high %v4686_v44, %v4690_v36  ;;  %v4789_v63 = vld [vmem:[#allocation15 + $0xa80] sm:$0xff]  ;;  %v4718_v8 = vld [vmem:[#allocation15 + $0x848] sm:$0xff]  ;;  %v9928_v36 = vcombine.low %v4781_v13, %v4785_v43 }
 0x48a   :  { %7653 = vmatprep.subr.bf16.mxu0 %v9873_v61  ;;  %7790 = vmatprep.subr.bf16.mxu1 %v9803_v0  ;;  %v4286_v61 = vmul.f32 %v11418_v42, %v4278_v51  ;;  %v4769_v0 = vld [vmem:[#allocation15 + $0x9e0] sm:$0xff]  ;;  %v4722_v44 = vld [vmem:[#allocation15 + $0x868] sm:$0xff] }
 0x48b   :  { %v9912_v29 = vcombine.low %v4765_v57, %v4769_v0  ;;  %v4793_v51 = vld [vmem:[#allocation15 + $0xaa0] sm:$0xff]  ;;  %v9867_v37 = vcombine.high %v4718_v8, %v4722_v44 }
 0x48d   :  { %7654 = vmatpush1.bf16.msra.mxu0 %v9872_v19  ;;  %7791 = vmatpush1.bf16.msra.mxu1 %v9802_v20  ;;  %v9913_v19 = vcombine.high %v4765_v57, %v4769_v0  ;;  %v9843_v20 = vcombine.high %v4694_v39, %v4698_v10  ;;  %v4726_v57 = vld [vmem:[#allocation15 + $0x888] sm:$0xff]  ;;  %v9936_v0 = vcombine.low %v4789_v63, %v4793_v51 }
 0x48e   :  { %7655 = vmatprep.subr.bf16.mxu0 %v9881_v25  ;;  %7792 = vmatprep.subr.bf16.mxu1 %v9811_v12  ;;  %v4294_v25 = vadd.f32 1.0, %v4286_v61  ;;  %v4777_v12 = vld [vmem:[#allocation15 + $0xa20] sm:$0xff]  ;;  %v4730_v61 = vld [vmem:[#allocation15 + $0x8a8] sm:$0xff] }
 0x490   :  { %v4302_v38 = vmul.f32 %v4294_v25, %v4270_v28  ;;  %v4813_v28 = vld [vmem:[#allocation15 + $0xb40] sm:$0xff] }
 0x491   :  { %7656 = vmatpush1.bf16.msra.mxu0 %v9880_v32  ;;  %7793 = vmatpush1.bf16.msra.mxu1 %v9810_v34  ;;  %v9842_v32 = vcombine.low %v4694_v39, %v4698_v10  ;;  %v4301_v34 = vmul.f32 %v4293_v14, %v4269_v27  ;;  %v9866_v39 = vcombine.low %v4718_v8, %v4722_v44  ;;  %v4809_v14 = vld [vmem:[#allocation15 + $0xb20] sm:$0xff] }
 0x492   :  { %7657 = vmatprep.subr.bf16.mxu0 %v9889_v41  ;;  %7794 = vmatprep.subr.bf16.mxu1 %v9819_v6  ;;  %v9921_v41 = vcombine.high %v4773_v23, %v4777_v12  ;;  %v9851_v6 = vcombine.high %v4702_v59, %v4706_v2  ;;  %v9874_v59 = vcombine.low %v4726_v57, %v4730_v61 }
 0x493   :  { %10449 = vtanh.f32 %v4301_v34  ;;  %v4746_v34 = vld [vmem:[#allocation15 + $0x928] sm:$0xff]  ;;  %v4358_v8 = vrot.slane %v11322_v16, %v11405_v56 }
 0x494   :  { %10451 = vtanh.f32 %v4302_v38 }
 0x495   :  { %7658 = vmatpush1.bf16.msra.mxu0 %v9888_v46  ;;  %7795 = vmatpush1.bf16.msra.mxu1 %v9818_v47  ;;  %v4714_v46 = vld [vmem:[#allocation15 + $0x828] sm:$0xff]  ;;  %v9920_v47 = vcombine.low %v4773_v23, %v4777_v12 }
 0x496   :  { %7659 = vmatprep.subr.bf16.mxu0 %v9897_v31  ;;  %7796 = vmatprep.subr.bf16.mxu1 %v9827_v49  ;;  %v9929_v31 = vcombine.high %v4781_v13, %v4785_v43  ;;  %v9859_v49 = vcombine.high %v4710_v45, %v4714_v46  ;;  %v4309_v43 = vmul.f32 0.5, %v11415_v35 }
 0x499   :  { %7660 = vmatpush1.bf16.msra.mxu0 %v9896_v9  ;;  %7797 = vmatpush1.bf16.msra.mxu1 %v9826_v53  ;;  %v9858_v9 = vcombine.low %v4710_v45, %v4714_v46  ;;  %v9937_v53 = vcombine.high %v4789_v63, %v4793_v51  ;;  %v4310_v45 = vmul.f32 0.5, %v11418_v42  ;;  %v4754_v63 = vld [vmem:[#allocation15 + $0x968] sm:$0xff] }
 0x49a   :  { %7661 = vmatprep.subr.bf16.mxu0 %v9905_v18  ;;  %7798 = vmatprep.subr.bf16.mxu1 %v9835_v55  ;;  %v4797_v18 = vld [vmem:[#allocation15 + $0xac0] sm:$0xff] }
 0x49b   :  { %v4801_v55 = vld [vmem:[#allocation15 + $0xae0] sm:$0xff] }
 0x49c   :  { %v9945_v10 = vcombine.high %v4797_v18, %v4801_v55  ;;  %v9944_v12 = vcombine.low %v4797_v18, %v4801_v55  ;;  %v4829_v18 = vld [vmem:[#allocation15 + $0xbc0] sm:$0xff]  ;;  %v1024_v55 = vrot.slane %v11326_v40, %v11408_v1 }
 0x49d   :  { %7662 = vmatpush1.bf16.msra.mxu0 %v9904_v5  ;;  %7799 = vmatpush1.bf16.msra.mxu1 %v9834_v11  ;;  %v9875_v5 = vcombine.high %v4726_v57, %v4730_v61  ;;  %v4805_v11 = vld [vmem:[#allocation15 + $0xb00] sm:$0xff]  ;;  %v10450_v23 = vpop.eup %10449  ;;  %v4758_v61 = vld [vmem:[#allocation15 + $0x988] sm:$0xff] }
 0x49e   :  { %7663 = vmatprep.subr.bf16.mxu0 %v9913_v19  ;;  %7800 = vmatprep.subr.bf16.mxu1 %v9843_v20  ;;  %v4734_v19 = vld [vmem:[#allocation15 + $0x8c8] sm:$0xff]  ;;  %v10452_v25 = vpop.eup %10451  ;;  %v9953_v2 = vcombine.high %v4805_v11, %v4809_v14  ;;  %v9952_v13 = vcombine.low %v4805_v11, %v4809_v14  ;;  %v4833_v57 = vld [vmem:[#allocation15 + $0xbe0] sm:$0xff] }
 0x49f   :  { %v4738_v20 = vld [vmem:[#allocation15 + $0x8e8] sm:$0xff] }
 0x4a0   :  { %v9883_v27 = vcombine.high %v4734_v19, %v4738_v20  ;;  %v9882_v38 = vcombine.low %v4734_v19, %v4738_v20 }
 0x4a1   :  { %7664 = vmatpush1.bf16.msra.mxu0 %v9912_v29  ;;  %7801 = vmatpush1.bf16.msra.mxu1 %v9842_v32  ;;  %v4817_v29 = vld [vmem:[#allocation15 + $0xb60] sm:$0xff]  ;;  %v4742_v32 = vld [vmem:[#allocation15 + $0x908] sm:$0xff] }
 0x4a2   :  { %7665 = vmatprep.subr.bf16.mxu0 %v9921_v41  ;;  %7802 = vmatprep.subr.bf16.mxu1 %v9851_v6  ;;  %v4325_v41 = vadd.f32 1.0, %v10450_v23  ;;  %v4326_v6 = vadd.f32 1.0, %v10452_v25  ;;  %v9961_v46 = vcombine.high %v4813_v28, %v4817_v29  ;;  %v9960_v35 = vcombine.low %v4813_v28, %v4817_v29  ;;  %v4837_v23 = vld [vmem:[#allocation15 + $0xc00] sm:$0xff] }
 0x4a3   :  { %v9890_v42 = vcombine.low %v4742_v32, %v4746_v34  ;;  %v4138_v25 = vadd.f32 %v11353_v60, %v1024_v55  ;;  %v11451_v55 = vsub.s32 6, %v11218_v21 }
 0x4a4   :  { %v4333_v51 = vmul.f32 %v4325_v41, %v4309_v43  ;;  %v4334_v44 = vmul.f32 %v4326_v6, %v4310_v45  ;;  %v4845_v45 = vld [vmem:[#allocation15 + $0xc40] sm:$0xff] }
 0x4a5   :  { %7666 = vmatpush1.bf16.msra.mxu0 %v9920_v47  ;;  %7803 = vmatpush1.bf16.msra.mxu1 %v9850_v48  ;;  %v9891_v47 = vcombine.high %v4742_v32, %v4746_v34  ;;  %v4821_v48 = vld [vmem:[#allocation15 + $0xb80] sm:$0xff] }
 0x4a6   :  { %7667 = vmatprep.subr.bf16.mxu0 %v9929_v31  ;;  %7813 = vmatprep.subr.bf16.mxu1 %v9859_v49  ;;  %v4825_v31 = vld [vmem:[#allocation15 + $0xba0] sm:$0xff]  ;;  %v4750_v49 = vld [vmem:[#allocation15 + $0x948] sm:$0xff] }
 0x4a7   :  { %v9968_v11 = vcombine.low %v4821_v48, %v4825_v31  ;;  %v9898_v14 = vcombine.low %v4750_v49, %v4754_v63 }
 0x4a8   :  { %7805 = vmatmul.mubr.bf16.vlgmr.msra.gmra.mrb[28].mxu1 %v11395_v50 }
 0x4a9   :  { %7668 = vmatpush1.bf16.msra.mxu0 %v9928_v36  ;;  %7814 = vmatpush1.bf16.msra.mxu1 %v9858_v9  ;;  %v4362_v36 = vrot.slane %v11322_v16, %v11408_v1  ;;  %v1020_v9 = vrot.slane %v11326_v40, %v11405_v56  ;;  %v4408_v16 = vrot.slane %v11330_v62, %v11405_v56 }
 0x4aa   :  { %7669 = vmatprep.subr.bf16.mxu0 %v9937_v53  ;;  %7815 = vmatprep.subr.bf16.mxu1 %v9867_v37  ;;  %v9969_v53 = vcombine.high %v4821_v48, %v4825_v31  ;;  %v9899_v37 = vcombine.high %v4750_v49, %v4754_v63  ;;  %v9977_v40 = vcombine.high %v4829_v18, %v4833_v57  ;;  %v4774_v48 = vld [vmem:[#allocation15 + $0xa08] sm:$0xff] }
 0x4ab   :  { %v4136_v19 = vadd.f32 %v11350_v58, %v1020_v9  ;;  %v9976_v58 = vcombine.low %v4829_v18, %v4833_v57  ;;  %v4778_v31 = vld [vmem:[#allocation15 + $0xa28] sm:$0xff] }
 0x4ac   :  { %v4782_v9 = vld [vmem:[#allocation15 + $0xa48] sm:$0xff]  ;;  %v9922_v18 = vcombine.low %v4774_v48, %v4778_v31 }
 0x4ad   :  { %7670 = vmatpush1.bf16.msra.mxu0 %v9936_v0  ;;  %7816 = vmatpush1.bf16.msra.mxu1 %v9866_v39  ;;  %v4762_v0 = vld [vmem:[#allocation15 + $0x9a8] sm:$0xff]  ;;  %v4383_v39 = vmul.f32 %v4358_v8, %v4333_v51 }
 0x4ae   :  { %7671 = vmatprep.subr.bf16.mxu0 %v9945_v10  ;;  %7817 = vmatprep.subr.bf16.mxu1 %v9875_v5  ;;  %v4384_v10 = vmul.f32 %v4362_v36, %v4334_v44  ;;  %v4412_v5 = vrot.slane %v11330_v62, %v11408_v1  ;;  %v9907_v20 = vcombine.high %v4758_v61, %v4762_v0 }
 0x4af   :  { %v4433_v29 = vadd.f32 %v4408_v16, %v4383_v39  ;;  %v9906_v6 = vcombine.low %v4758_v61, %v4762_v0  ;;  %v9923_v36 = vcombine.high %v4774_v48, %v4778_v31  ;;  %v4861_v0 = vld [vmem:[#allocation15 + $0xcc0] sm:$0xff]  ;;  %v11454_v39 = vsub.s32 7, %v11218_v21 }
 0x4b0   :  { %v4434_v32 = vadd.f32 %v4412_v5, %v4384_v10  ;;  %v4865_v16 = vld [vmem:[#allocation15 + $0xce0] sm:$0xff]  ;;  %v4790_v10 = vld [vmem:[#allocation15 + $0xa88] sm:$0xff] }
 0x4b1   :  { %7672 = vmatpush1.bf16.msra.mxu0 %v9944_v12  ;;  %7818 = vmatpush1.bf16.msra.mxu1 %v9874_v59  ;;  %v4841_v59 = vld [vmem:[#allocation15 + $0xc20] sm:$0xff]  ;;  %v4794_v5 = vld [vmem:[#allocation15 + $0xaa8] sm:$0xff] }
 0x4b2   :  { %7673 = vmatprep.subr.bf16.mxu0 %v9953_v2  ;;  %7819 = vmatprep.subr.bf16.mxu1 %v9883_v27  ;;  %v4766_v2 = vld [vmem:[#allocation15 + $0x9c8] sm:$0xff]  ;;  %v9985_v43 = vcombine.high %v4837_v23, %v4841_v59  ;;  %v9984_v63 = vcombine.low %v4837_v23, %v4841_v59  ;;  %v4869_v23 = vld [vmem:[#allocation15 + $0xd00] sm:$0xff] }
 0x4b3   :  { %v4770_v27 = vld [vmem:[#allocation15 + $0x9e8] sm:$0xff]  ;;  %v4873_v21 = vld [vmem:[#allocation15 + $0xd20] sm:$0xff] }
 0x4b4   :  { %v9915_v60 = vcombine.high %v4766_v2, %v4770_v27  ;;  %v9914_v51 = vcombine.low %v4766_v2, %v4770_v27  ;;  %v4802_v59 = vld [vmem:[#allocation15 + $0xae8] sm:$0xff]  ;;  %v10008_v2 = vcombine.low %v4861_v0, %v4865_v16  ;;  %v9938_v27 = vcombine.low %v4790_v10, %v4794_v5 }
 0x4b5   :  { %7674 = vmatpush1.bf16.msra.mxu0 %v9952_v13  ;;  %7820 = vmatpush1.bf16.msra.mxu1 %v9882_v38 }
 0x4b6   :  { %7675 = vmatprep.subr.bf16.mxu0 %v9961_v46  ;;  %7821 = vmatprep.subr.bf16.mxu1 %v9891_v47  ;;  %v4849_v47 = vld [vmem:[#allocation15 + $0xc60] sm:$0xff] }
 0x4b7   :  { %v9993_v44 = vcombine.high %v4845_v45, %v4849_v47 }
 0x4b9   :  { %7676 = vmatpush1.bf16.msra.mxu0 %v9960_v35  ;;  %7822 = vmatpush1.bf16.msra.mxu1 %v9890_v42  ;;  %v4853_v35 = vld [vmem:[#allocation15 + $0xc80] sm:$0xff] }
 0x4ba   :  { %7677 = vmatprep.subr.bf16.mxu0 %v9969_v53  ;;  %7823 = vmatprep.subr.bf16.mxu1 %v9899_v37  ;;  %v4857_v42 = vld [vmem:[#allocation15 + $0xca0] sm:$0xff]  ;;  %v4786_v53 = vld [vmem:[#allocation15 + $0xa68] sm:$0xff]  ;;  %v9992_v37 = vcombine.low %v4845_v45, %v4849_v47 }
 0x4bb   :  { %v4176_v12 = vpop.f32.mrb[20].mxu1  ;;  %v10001_v57 = vcombine.high %v4853_v35, %v4857_v42  ;;  %v9931_v61 = vcombine.high %v4782_v9, %v4786_v53  ;;  %v4814_v47 = vld [vmem:[#allocation15 + $0xb48] sm:$0xff] }
 0x4bc   :  { %v4177_v28 = vadd.f32 %v4176_v12, %v4136_v19  ;;  %v4178_v62 = vpop.f32.mrb[21].mxu1  ;;  %v996_v19 = vrot.slane %v11358_v26, %v11451_v55  ;;  %v4798_v12 = vld [vmem:[#allocation15 + $0xac8] sm:$0xff] }
 0x4bd   :  { %v4179_v34 = vadd.f32 %v4178_v62, %v4138_v25  ;;  %7678 = vmatpush1.bf16.msra.mxu0 %v9968_v11  ;;  %v4180_v41 = vpop.f32.mrb[22].mxu1  ;;  %7824 = vmatpush1.bf16.msra.mxu1 %v9898_v14  ;;  %v10000_v11 = vcombine.low %v4853_v35, %v4857_v42  ;;  %v9930_v14 = vcombine.low %v4782_v9, %v4786_v53  ;;  %v4897_v42 = vld [vmem:[#allocation15 + $0xde0] sm:$0xff]  ;;  %v4822_v9 = vld [vmem:[#allocation15 + $0xb88] sm:$0xff] }
 0x4be   :  { %v4441_v13 = vadd.f32 %v4433_v29, %v4177_v28  ;;  %v4181_v38 = vpop.f32.mrb[23].mxu1  ;;  %7679 = vmatprep.subr.bf16.mxu0 %v9977_v40  ;;  %7825 = vmatprep.subr.bf16.mxu1 %v9907_v20  ;;  %v10009_v40 = vcombine.high %v4861_v0, %v4865_v16  ;;  %v9939_v20 = vcombine.high %v4790_v10, %v4794_v5  ;;  %v4881_v41 = vld [vmem:[#allocation15 + $0xd60] sm:$0xff]  ;;  %v4826_v53 = vld [vmem:[#allocation15 + $0xba8] sm:$0xff] }
 0x4bf   :  { %v4442_v46 = vadd.f32 %v4434_v32, %v4179_v34  ;;  %v1000_v25 = vrot.slane %v11358_v26, %v11454_v39  ;;  %v11461_v28 = vadd.f32 %v11307_v7, %v996_v19  ;;  %v10017_v29 = vcombine.high %v4869_v23, %v4873_v21  ;;  %v4877_v32 = vld [vmem:[#allocation15 + $0xd40] sm:$0xff]  ;;  %v4806_v26 = vld [vmem:[#allocation15 + $0xb08] sm:$0xff] }
 0x4c0   :  { %v11445_v8 = vpack.c.bf16 %v4441_v13, %v4441_v13  ;;  %v9947_v62 = vcombine.high %v4798_v12, %v4802_v59  ;;  %v9946_v13 = vcombine.low %v4798_v12, %v4802_v59  ;;  %v10025_v7 = vcombine.high %v4877_v32, %v4881_v41  ;;  %v4901_v16 = vld [vmem:[#allocation15 + $0xe00] sm:$0xff] }
 0x4c1   :  { %v11443_v49 = vpack.c.bf16 %v4442_v46, %v4442_v46  ;;  %7680 = vmatpush1.bf16.msra.mxu0 %v9976_v58  ;;  %7826 = vmatpush1.bf16.msra.mxu1 %v9906_v6  ;;  %v11464_v34 = vadd.f32 %v11309_v15, %v1000_v25  ;;  %v4810_v58 = vld [vmem:[#allocation15 + $0xb28] sm:$0xff]  ;;  %v10016_v6 = vcombine.low %v4869_v23, %v4873_v21  ;;  %v4279_v38 = vmul.f32 0.044715, %v11461_v28  ;;  %v4889_v46 = vld [vmem:[#allocation15 + $0xda0] sm:$0xff] }
 0x4c2   :  { %7690 = vmatprep.subr.bf16.mxu0 %v9985_v43  ;;  %7827 = vmatprep.subr.bf16.mxu1 %v9915_v60  ;;  %v9955_v43 = vcombine.high %v4806_v26, %v4810_v58  ;;  %v4885_v60 = vld [vmem:[#allocation15 + $0xd80] sm:$0xff]  ;;  %v4818_v15 = vld [vmem:[#allocation15 + $0xb68] sm:$0xff]  ;;  %v10024_v48 = vcombine.low %v4877_v32, %v4881_v41  ;;  %v9954_v31 = vcombine.low %v4806_v26, %v4810_v58  ;;  %v4271_v19 = vmul.f32 0.7978846, %v11461_v28 }
 0x4c3   :  { %7681 = vmatprep.mubr.bf16.mxu0 %v11443_v49  ;;  %7845 = vmatprep.mubr.bf16.mxu1 %v11443_v49  ;;  %v4280_v45 = vmul.f32 0.044715, %v11464_v34  ;;  %v9971_v0 = vcombine.high %v4822_v9, %v4826_v53  ;;  %v4905_v5 = vld [vmem:[#allocation15 + $0xe20] sm:$0xff]  ;;  %v9970_v23 = vcombine.low %v4822_v9, %v4826_v53  ;;  %v4862_v9 = vld [vmem:[#allocation15 + $0xcc8] sm:$0xff] }
 0x4c4   :  { %7682 = vmatmul.mubr.bf16.vlgmr.msra.gmra.mrb[32].mxu0 %v11445_v8  ;;  %v10049_v21 = vcombine.high %v4901_v16, %v4905_v5  ;;  %v4909_v59 = vld [vmem:[#allocation15 + $0xe40] sm:$0xff]  ;;  %v10048_v32 = vcombine.low %v4901_v16, %v4905_v5  ;;  %v4866_v53 = vld [vmem:[#allocation15 + $0xce8] sm:$0xff] }
 0x4c5   :  { %7691 = vmatpush1.bf16.msra.mxu0 %v9984_v63  ;;  %7828 = vmatpush1.bf16.msra.mxu1 %v9914_v51  ;;  %v4287_v63 = vmul.f32 %v11461_v28, %v4279_v38  ;;  %v10033_v51 = vcombine.high %v4885_v60, %v4889_v46  ;;  %v4288_v35 = vmul.f32 %v11464_v34, %v4280_v45  ;;  %v4846_v38 = vld [vmem:[#allocation15 + $0xc48] sm:$0xff]  ;;  %v4945_v5 = vld [vmem:[#allocation15 + $0xf60] sm:$0xff] }
 0x4c6   :  { %7692 = vmatprep.subr.bf16.mxu0 %v9993_v44  ;;  %7829 = vmatprep.subr.bf16.mxu1 %v9923_v36  ;;  %v9963_v44 = vcombine.high %v4814_v47, %v4818_v15  ;;  %v4893_v36 = vld [vmem:[#allocation15 + $0xdc0] sm:$0xff]  ;;  %v10011_v16 = vcombine.high %v4862_v9, %v4866_v53 }
 0x4c7   :  { %v4296_v10 = vadd.f32 1.0, %v4288_v35  ;;  %v4933_v35 = vld [vmem:[#allocation15 + $0xf00] sm:$0xff] }
 0x4c9   :  { %7693 = vmatpush1.bf16.msra.mxu0 %v9992_v37  ;;  %7830 = vmatpush1.bf16.msra.mxu1 %v9922_v18  ;;  %v10032_v37 = vcombine.low %v4885_v60, %v4889_v46  ;;  %v9962_v18 = vcombine.low %v4814_v47, %v4818_v15  ;;  %v4925_v47 = vld [vmem:[#allocation15 + $0xec0] sm:$0xff] }
 0x4ca   :  { %7694 = vmatprep.subr.bf16.mxu0 %v10001_v57  ;;  %7831 = vmatprep.subr.bf16.mxu1 %v9931_v61  ;;  %v4295_v57 = vadd.f32 1.0, %v4287_v63  ;;  %v10041_v61 = vcombine.high %v4893_v36, %v4897_v42  ;;  %v4929_v15 = vld [vmem:[#allocation15 + $0xee0] sm:$0xff] }
 0x4cc   :  { %v4303_v25 = vmul.f32 %v4295_v57, %v4271_v19  ;;  %v10072_v57 = vcombine.low %v4925_v47, %v4929_v15 }
 0x4cd   :  { %7695 = vmatpush1.bf16.msra.mxu0 %v10000_v11  ;;  %7832 = vmatpush1.bf16.msra.mxu1 %v9930_v14  ;;  %v4830_v11 = vld [vmem:[#allocation15 + $0xbc8] sm:$0xff] }
 0x4ce   :  { %7696 = vmatprep.subr.bf16.mxu0 %v10009_v40  ;;  %7833 = vmatprep.subr.bf16.mxu1 %v9939_v20  ;;  %v4834_v14 = vld [vmem:[#allocation15 + $0xbe8] sm:$0xff]  ;;  %v4272_v40 = vmul.f32 0.7978846, %v11464_v34  ;;  %v10040_v20 = vcombine.low %v4893_v36, %v4897_v42  ;;  %10453 = vtanh.f32 %v4303_v25  ;;  %v4937_v42 = vld [vmem:[#allocation15 + $0xf20] sm:$0xff]  ;;  %v4311_v25 = vmul.f32 0.5, %v11461_v28 }
 0x4cf   :  { %v9979_v12 = vcombine.high %v4830_v11, %v4834_v14  ;;  %v9978_v41 = vcombine.low %v4830_v11, %v4834_v14  ;;  %v4870_v11 = vld [vmem:[#allocation15 + $0xd08] sm:$0xff] }
 0x4d0   :  { %v4874_v14 = vld [vmem:[#allocation15 + $0xd28] sm:$0xff] }
 0x4d1   :  { %7697 = vmatpush1.bf16.msra.mxu0 %v10008_v2  ;;  %7834 = vmatpush1.bf16.msra.mxu1 %v9938_v27  ;;  %v4304_v2 = vmul.f32 %v4296_v10, %v4272_v40  ;;  %v4913_v27 = vld [vmem:[#allocation15 + $0xe60] sm:$0xff] }
 0x4d2   :  { %7698 = vmatprep.subr.bf16.mxu0 %v10017_v29  ;;  %7835 = vmatprep.subr.bf16.mxu1 %v9947_v62  ;;  %v4838_v29 = vld [vmem:[#allocation15 + $0xc08] sm:$0xff]  ;;  %v10057_v26 = vcombine.high %v4909_v59, %v4913_v27  ;;  %v4941_v10 = vld [vmem:[#allocation15 + $0xf40] sm:$0xff] }
 0x4d3   :  { %v4842_v62 = vld [vmem:[#allocation15 + $0xc28] sm:$0xff]  ;;  %10455 = vtanh.f32 %v4304_v2  ;;  %v4949_v2 = vld [vmem:[#allocation15 + $0xf80] sm:$0xff]  ;;  %v10088_v28 = vcombine.low %v4941_v10, %v4945_v5 }
 0x4d4   :  { %v9987_v58 = vcombine.high %v4838_v29, %v4842_v62  ;;  %v9986_v60 = vcombine.low %v4838_v29, %v4842_v62  ;;  %v4878_v29 = vld [vmem:[#allocation15 + $0xd48] sm:$0xff] }
 0x4d5   :  { %7699 = vmatpush1.bf16.msra.mxu0 %v10016_v6  ;;  %7836 = vmatpush1.bf16.msra.mxu1 %v9946_v13  ;;  %v4917_v6 = vld [vmem:[#allocation15 + $0xe80] sm:$0xff]  ;;  %v4882_v62 = vld [vmem:[#allocation15 + $0xd68] sm:$0xff] }
 0x4d6   :  { %7700 = vmatprep.subr.bf16.mxu0 %v10025_v7  ;;  %7837 = vmatprep.subr.bf16.mxu1 %v9955_v43  ;;  %v4921_v13 = vld [vmem:[#allocation15 + $0xea0] sm:$0xff]  ;;  %v4850_v7 = vld [vmem:[#allocation15 + $0xc68] sm:$0xff]  ;;  %v10056_v43 = vcombine.low %v4909_v59, %v4913_v27  ;;  %v10019_v59 = vcombine.high %v4870_v11, %v4874_v14 }
 0x4d7   :  { %v10065_v45 = vcombine.high %v4917_v6, %v4921_v13  ;;  %v9995_v46 = vcombine.high %v4846_v38, %v4850_v7  ;;  %v10064_v63 = vcombine.low %v4917_v6, %v4921_v13  ;;  %v4953_v27 = vld [vmem:[#allocation15 + $0xfa0] sm:$0xff]  ;;  %v10018_v13 = vcombine.low %v4870_v11, %v4874_v14 }
 0x4d9   :  { %7701 = vmatpush1.bf16.msra.mxu0 %v10024_v48  ;;  %7838 = vmatpush1.bf16.msra.mxu1 %v9954_v31  ;;  %v4854_v48 = vld [vmem:[#allocation15 + $0xc88] sm:$0xff] }
 0x4da   :  { %7702 = vmatprep.subr.bf16.mxu0 %v10033_v51  ;;  %7839 = vmatprep.subr.bf16.mxu1 %v9963_v44  ;;  %v4858_v31 = vld [vmem:[#allocation15 + $0xca8] sm:$0xff]  ;;  %v9994_v51 = vcombine.low %v4846_v38, %v4850_v7  ;;  %v10073_v44 = vcombine.high %v4925_v47, %v4929_v15  ;;  %v10097_v7 = vcombine.high %v4949_v2, %v4953_v27 }
 0x4db   :  { %v10003_v36 = vcombine.high %v4854_v48, %v4858_v31  ;;  %v4886_v47 = vld [vmem:[#allocation15 + $0xd88] sm:$0xff] }
 0x4dc   :  { %v4890_v15 = vld [vmem:[#allocation15 + $0xda8] sm:$0xff] }
 0x4dd   :  { %7703 = vmatpush1.bf16.msra.mxu0 %v10032_v37  ;;  %7840 = vmatpush1.bf16.msra.mxu1 %v9962_v18  ;;  %v10454_v37 = vpop.eup %10453 }
 0x4de   :  { %7704 = vmatprep.subr.bf16.mxu0 %v10041_v61  ;;  %7841 = vmatprep.subr.bf16.mxu1 %v9971_v0  ;;  %v10456_v18 = vpop.eup %10455  ;;  %v10002_v61 = vcombine.low %v4854_v48, %v4858_v31  ;;  %v10081_v0 = vcombine.high %v4933_v35, %v4937_v42  ;;  %v4327_v19 = vadd.f32 1.0, %v10454_v37  ;;  %v10474_v31 = vld [vmem:[#allocation14] sm:$0xff]  ;;  %v4455_v37 = vld [vmem:[#allocation15 + $0x10] sm:$0xff] }
 0x4df   :  { %v4328_v40 = vadd.f32 1.0, %v10456_v18 }
 0x4e1   :  { %7705 = vmatpush1.bf16.msra.mxu0 %v10040_v20  ;;  %7842 = vmatpush1.bf16.msra.mxu1 %v9970_v23  ;;  %v10080_v20 = vcombine.low %v4933_v35, %v4937_v42  ;;  %v10010_v23 = vcombine.low %v4862_v9, %v4866_v53  ;;  %v10026_v35 = vcombine.low %v4878_v29, %v4882_v62 }
 0x4e2   :  { %7706 = vmatprep.subr.bf16.mxu0 %v10049_v21  ;;  %7843 = vmatprep.subr.bf16.mxu1 %v9979_v12  ;;  %v4312_v21 = vmul.f32 0.5, %v11464_v34  ;;  %v10089_v12 = vcombine.high %v4941_v10, %v4945_v5  ;;  %v10473_v34 = vld [vmem:[#allocation11 + $0x8] sm:$0xff]  ;;  %v10035_v53 = vcombine.high %v4886_v47, %v4890_v15 }
 0x4e3   :  { %v1028_v38 = vrot.slane %v10473_v34, %v11451_v55 }
 0x4e5   :  { %7707 = vmatpush1.bf16.msra.mxu0 %v10048_v32  ;;  %7844 = vmatpush1.bf16.msra.mxu1 %v9978_v41  ;;  %v4335_v32 = vmul.f32 %v4327_v19, %v4311_v25  ;;  %v10472_v41 = vld [vmem:[#allocation12] sm:$0xff]  ;;  %v4218_v42 = vadd.f32 %v11399_v3, %v1028_v38  ;;  %v4914_v38 = vld [vmem:[#allocation15 + $0xe68] sm:$0xff] }
 0x4e6   :  { %7708 = vmatprep.subr.bf16.mxu0 %v10057_v26  ;;  %7854 = vmatprep.subr.bf16.mxu1 %v9987_v58  ;;  %v4366_v26 = vrot.slane %v10472_v41, %v11451_v55  ;;  %v4336_v58 = vmul.f32 %v4328_v40, %v4312_v21  ;;  %v4370_v6 = vrot.slane %v10472_v41, %v11454_v39 }
 0x4e8   :  { %7846 = vmatmul.mubr.bf16.vlgmr.msra.gmra.mrb[28].mxu1 %v11445_v8  ;;  %v4385_v48 = vmul.f32 %v4366_v26, %v4335_v32 }
 0x4e9   :  { %7709 = vmatpush1.bf16.msra.mxu0 %v10056_v43  ;;  %7855 = vmatpush1.bf16.msra.mxu1 %v9986_v60  ;;  %v10027_v43 = vcombine.high %v4878_v29, %v4882_v62  ;;  %v4957_v60 = vld [vmem:[#allocation15 + $0xfc0] sm:$0xff]  ;;  %v4906_v29 = vld [vmem:[#allocation15 + $0xe28] sm:$0xff] }
 0x4ea   :  { %7710 = vmatprep.subr.bf16.mxu0 %v10065_v45  ;;  %7856 = vmatprep.subr.bf16.mxu1 %v9995_v46  ;;  %v1032_v45 = vrot.slane %v10473_v34, %v11454_v39  ;;  %v4961_v46 = vld [vmem:[#allocation15 + $0xfe0] sm:$0xff]  ;;  %v4910_v34 = vld [vmem:[#allocation15 + $0xe48] sm:$0xff] }
 0x4eb   :  { %v10105_v9 = vcombine.high %v4957_v60, %v4961_v46  ;;  %v10104_v3 = vcombine.low %v4957_v60, %v4961_v46  ;;  %v4479_v46 = vld [vmem:[#allocation15 + $0xd0] sm:$0xff] }
 0x4ec   :  { %v4220_v18 = vadd.f32 %v11402_v17, %v1032_v45  ;;  %v10059_v45 = vcombine.high %v4910_v34, %v4914_v38 }
 0x4ed   :  { %7711 = vmatpush1.bf16.msra.mxu0 %v10064_v63  ;;  %7857 = vmatpush1.bf16.msra.mxu1 %v9994_v51  ;;  %v4416_v63 = vrot.slane %v10474_v31, %v11451_v55  ;;  %v4386_v51 = vmul.f32 %v4370_v6, %v4336_v58  ;;  %v4471_v6 = vld [vmem:[#allocation15 + $0x90] sm:$0xff] }
 0x4ee   :  { %7712 = vmatprep.subr.bf16.mxu0 %v10073_v44  ;;  %7858 = vmatprep.subr.bf16.mxu1 %v10003_v36  ;;  %v4420_v44 = vrot.slane %v10474_v31, %v11454_v39  ;;  %v10096_v36 = vcombine.low %v4949_v2, %v4953_v27  ;;  %v4467_v2 = vld [vmem:[#allocation15 + $0x70] sm:$0xff]  ;;  %v4902_v27 = vld [vmem:[#allocation15 + $0xe08] sm:$0xff] }
 0x4ef   :  { %v4435_v5 = vadd.f32 %v4416_v63, %v4385_v48  ;;  %v4922_v48 = vld [vmem:[#allocation15 + $0xea8] sm:$0xff]  ;;  %v10058_v63 = vcombine.low %v4910_v34, %v4914_v38 }
 0x4f0   :  { %v4436_v14 = vadd.f32 %v4420_v44, %v4386_v51  ;;  %v4958_v34 = vld [vmem:[#allocation15 + $0xfc8] sm:$0xff] }
 0x4f1   :  { %7713 = vmatpush1.bf16.msra.mxu0 %v10072_v57  ;;  %7859 = vmatpush1.bf16.msra.mxu1 %v10002_v61  ;;  %v4459_v61 = vld [vmem:[#allocation15 + $0x30] sm:$0xff]  ;;  %v4962_v38 = vld [vmem:[#allocation15 + $0xfe8] sm:$0xff] }
 0x4f2   :  { %7714 = vmatprep.subr.bf16.mxu0 %v10081_v0  ;;  %7860 = vmatprep.subr.bf16.mxu1 %v10011_v16  ;;  %v4894_v0 = vld [vmem:[#allocation15 + $0xdc8] sm:$0xff]  ;;  %v9605_v21 = vcombine.high %v4455_v37, %v4459_v61  ;;  %v9604_v32 = vcombine.low %v4455_v37, %v4459_v61  ;;  %v4495_v61 = vld [vmem:[#allocation15 + $0x150] sm:$0xff] }
 0x4f3   :  { %v4898_v16 = vld [vmem:[#allocation15 + $0xde8] sm:$0xff] }
 0x4f4   :  { %v10043_v17 = vcombine.high %v4894_v0, %v4898_v16  ;;  %v10042_v41 = vcombine.low %v4894_v0, %v4898_v16  ;;  %v4499_v0 = vld [vmem:[#allocation15 + $0x170] sm:$0xff]  ;;  %v4934_v16 = vld [vmem:[#allocation15 + $0xf08] sm:$0xff] }
 0x4f5   :  { %7715 = vmatpush1.bf16.msra.mxu0 %v10080_v20  ;;  %7861 = vmatpush1.bf16.msra.mxu1 %v10010_v23  ;;  %v10034_v20 = vcombine.low %v4886_v47, %v4890_v15  ;;  %v4483_v47 = vld [vmem:[#allocation15 + $0xf0] sm:$0xff]  ;;  %v4918_v15 = vld [vmem:[#allocation15 + $0xe88] sm:$0xff] }
 0x4f6   :  { %7716 = vmatprep.subr.bf16.mxu0 %v10089_v12  ;;  %7862 = vmatprep.subr.bf16.mxu1 %v10019_v59  ;;  %v4463_v59 = vld [vmem:[#allocation15 + $0x50] sm:$0xff]  ;;  %v9629_v51 = vcombine.high %v4479_v46, %v4483_v47  ;;  %v10067_v44 = vcombine.high %v4918_v15, %v4922_v48  ;;  %v10066_v37 = vcombine.low %v4918_v15, %v4922_v48 }
 0x4f7   :  { %v9613_v58 = vcombine.high %v4463_v59, %v4467_v2  ;;  %v4583_v15 = vld [vmem:[#allocation15 + $0x410] sm:$0xff] }
 0x4f8   :  { %v4587_v48 = vld [vmem:[#allocation15 + $0x430] sm:$0xff] }
 0x4f9   :  { %7717 = vmatpush1.bf16.msra.mxu0 %v10088_v28  ;;  %7863 = vmatpush1.bf16.msra.mxu1 %v10018_v13  ;;  %v10051_v28 = vcombine.high %v4902_v27, %v4906_v29  ;;  %v4475_v13 = vld [vmem:[#allocation15 + $0xb0] sm:$0xff] }
 0x4fa   :  { %7718 = vmatprep.subr.bf16.mxu0 %v10097_v7  ;;  %7864 = vmatprep.subr.bf16.mxu1 %v10027_v43  ;;  %v9612_v7 = vcombine.low %v4463_v59, %v4467_v2  ;;  %v10050_v43 = vcombine.low %v4902_v27, %v4906_v29  ;;  %v9621_v60 = vcombine.high %v4471_v6, %v4475_v13  ;;  %v4511_v59 = vld [vmem:[#allocation15 + $0x1d0] sm:$0xff]  ;;  %v4950_v27 = vld [vmem:[#allocation15 + $0xf88] sm:$0xff] }
 0x4fb   :  { %v4258_v57 = vpop.f32.mrb[24].mxu1  ;;  %v9620_v31 = vcombine.low %v4471_v6, %v4475_v13  ;;  %v4515_v2 = vld [vmem:[#allocation15 + $0x1f0] sm:$0xff]  ;;  %v4954_v29 = vld [vmem:[#allocation15 + $0xfa8] sm:$0xff] }
 0x4fc   :  { %v4259_v10 = vadd.f32 %v4258_v57, %v4218_v42  ;;  %v4260_v11 = vpop.f32.mrb[25].mxu1  ;;  %v4926_v42 = vld [vmem:[#allocation15 + $0xec8] sm:$0xff]  ;;  %v10099_v6 = vcombine.high %v4950_v27, %v4954_v29  ;;  %v4523_v13 = vld [vmem:[#allocation15 + $0x230] sm:$0xff] }
 0x4fd   :  { %v4261_v19 = vadd.f32 %v4260_v11, %v4220_v18  ;;  %7719 = vmatpush1.bf16.msra.mxu0 %v10096_v36  ;;  %v4262_v40 = vpop.f32.mrb[26].mxu1  ;;  %7865 = vmatpush1.bf16.msra.mxu1 %v10026_v35  ;;  %v4487_v36 = vld [vmem:[#allocation15 + $0x110] sm:$0xff] }
 0x4fe   :  { %v4443_v23 = vadd.f32 %v4435_v5, %v4259_v10  ;;  %v4263_v25 = vpop.f32.mrb[27].mxu1  ;;  %7720 = vmatprep.subr.bf16.mxu0 %v10105_v9  ;;  %7866 = vmatprep.subr.bf16.mxu1 %v10035_v53  ;;  %v4491_v35 = vld [vmem:[#allocation15 + $0x130] sm:$0xff]  ;;  %v4930_v9 = vld [vmem:[#allocation15 + $0xee8] sm:$0xff]  ;;  %v9628_v53 = vcombine.low %v4479_v46, %v4483_v47 }
 0x4ff   :  { %v4444_v12 = vadd.f32 %v4436_v14, %v4261_v19  ;;  %v9637_v18 = vcombine.high %v4487_v36, %v4491_v35  ;;  %v10075_v57 = vcombine.high %v4926_v42, %v4930_v9  ;;  %v4938_v10 = vld [vmem:[#allocation15 + $0xf28] sm:$0xff]  ;;  %v9636_v5 = vcombine.low %v4487_v36, %v4491_v35  ;;  %v4503_v40 = vld [vmem:[#allocation15 + $0x190] sm:$0xff] }
 0x500   :  { %v11485_v26 = vpack.c.bf16 %v4443_v23, %v4443_v23  ;;  %v10074_v11 = vcombine.low %v4926_v42, %v4930_v9  ;;  %v9645_v14 = vcombine.high %v4495_v61, %v4499_v0  ;;  %v10083_v19 = vcombine.high %v4934_v16, %v4938_v10  ;;  %v4946_v23 = vld [vmem:[#allocation15 + $0xf68] sm:$0xff]  ;;  %v4527_v46 = vld [vmem:[#allocation15 + $0x250] sm:$0xff] }
 0x501   :  { %v11483_v62 = vpack.c.bf16 %v4444_v12, %v4444_v12  ;;  %7721 = vmatpush1.bf16.msra.mxu0 %v10104_v3  ;;  %7867 = vmatpush1.bf16.msra.mxu1 %v10034_v20  ;;  %v4507_v3 = vld [vmem:[#allocation15 + $0x1b0] sm:$0xff]  ;;  %v4942_v20 = vld [vmem:[#allocation15 + $0xf48] sm:$0xff]  ;;  %v9644_v25 = vcombine.low %v4495_v61, %v4499_v0 }
 0x502   :  { %7895 = vmatprep.subr.bf16.mxu0 %v9605_v21  ;;  %7868 = vmatprep.subr.bf16.mxu1 %v10043_v17  ;;  %v10082_v21 = vcombine.low %v4934_v16, %v4938_v10  ;;  %v9653_v17 = vcombine.high %v4503_v40, %v4507_v3  ;;  %v10091_v12 = vcombine.high %v4942_v20, %v4946_v23  ;;  %v4531_v47 = vld [vmem:[#allocation15 + $0x270] sm:$0xff] }
 0x503   :  { %7722 = vmatprep.mubr.bf16.mxu0 %v11483_v62  ;;  %7886 = vmatprep.mubr.bf16.mxu1 %v11483_v62  ;;  %v4535_v36 = vld [vmem:[#allocation15 + $0x290] sm:$0xff] }
 0x504   :  { %7723 = vmatmul.mubr.bf16.vlgmr.msra.gmra.mrb[32].mxu0 %v11485_v26  ;;  %v4539_v35 = vld [vmem:[#allocation15 + $0x2b0] sm:$0xff] }
 0x505   :  { %7896 = vmatpush1.bf16.msra.mxu0 %v9604_v32  ;;  %7869 = vmatpush1.bf16.msra.mxu1 %v10042_v41  ;;  %v9652_v32 = vcombine.low %v4503_v40, %v4507_v3  ;;  %v10090_v41 = vcombine.low %v4942_v20, %v4946_v23  ;;  %v4591_v42 = vld [vmem:[#allocation15 + $0x450] sm:$0xff] }
 0x506   :  { %7927 = vmatprep.mubr.bf16.mxu0 %v11344_v52  ;;  %7897 = vmatprep.subr.bf16.mxu0 %v9613_v58  ;;  %v9661_v58 = vcombine.high %v4511_v59, %v4515_v2  ;;  %v4595_v9 = vld [vmem:[#allocation15 + $0x470] sm:$0xff] }
 0x507   :  { %7870 = vmatprep.subr.bf16.mxu1 %v10051_v28  ;;  %v4519_v28 = vld [vmem:[#allocation15 + $0x210] sm:$0xff]  ;;  %v9741_v61 = vcombine.high %v4591_v42, %v4595_v9 }
 0x508   :  { %v4547_v0 = vld [vmem:[#allocation15 + $0x2f0] sm:$0xff] }
 0x509   :  { %7898 = vmatpush1.bf16.msra.mxu0 %v9612_v7  ;;  %7871 = vmatpush1.bf16.msra.mxu1 %v10050_v43  ;;  %v9660_v7 = vcombine.low %v4511_v59, %v4515_v2  ;;  %v10098_v43 = vcombine.low %v4950_v27, %v4954_v29  ;;  %v4599_v16 = vld [vmem:[#allocation15 + $0x490] sm:$0xff] }
 0x50a   :  { %7899 = vmatprep.subr.bf16.mxu0 %v9621_v60  ;;  %7872 = vmatprep.subr.bf16.mxu1 %v10059_v45  ;;  %v9669_v60 = vcombine.high %v4519_v28, %v4523_v13  ;;  %v10107_v45 = vcombine.high %v4958_v34, %v4962_v38  ;;  %v4603_v10 = vld [vmem:[#allocation15 + $0x4b0] sm:$0xff] }
 0x50b   :  { %v4551_v40 = vld [vmem:[#allocation15 + $0x310] sm:$0xff] }
 0x50c   :  { %v4555_v3 = vld [vmem:[#allocation15 + $0x330] sm:$0xff] }
 0x50d   :  { %7900 = vmatpush1.bf16.msra.mxu0 %v9620_v31  ;;  %7873 = vmatpush1.bf16.msra.mxu1 %v10058_v63  ;;  %v9668_v31 = vcombine.low %v4519_v28, %v4523_v13  ;;  %v10106_v63 = vcombine.low %v4958_v34, %v4962_v38  ;;  %v4607_v20 = vld [vmem:[#allocation15 + $0x4d0] sm:$0xff] }
 0x50e   :  { %7901 = vmatprep.subr.bf16.mxu0 %v9629_v51  ;;  %7874 = vmatprep.subr.bf16.mxu1 %v10067_v44  ;;  %v9677_v51 = vcombine.high %v4527_v46, %v4531_v47  ;;  %v9733_v44 = vcombine.high %v4583_v15, %v4587_v48  ;;  %v4611_v23 = vld [vmem:[#allocation15 + $0x4f0] sm:$0xff] }
 0x50f   :  { %v4559_v59 = vld [vmem:[#allocation15 + $0x350] sm:$0xff] }
 0x510   :  { %v4563_v2 = vld [vmem:[#allocation15 + $0x370] sm:$0xff] }
 0x511   :  { %7902 = vmatpush1.bf16.msra.mxu0 %v9628_v53  ;;  %7875 = vmatpush1.bf16.msra.mxu1 %v10066_v37  ;;  %v9676_v53 = vcombine.low %v4527_v46, %v4531_v47  ;;  %v9732_v37 = vcombine.low %v4583_v15, %v4587_v48  ;;  %v4615_v27 = vld [vmem:[#allocation15 + $0x510] sm:$0xff] }
 0x512   :  { %7903 = vmatprep.subr.bf16.mxu0 %v9637_v18  ;;  %7876 = vmatprep.subr.bf16.mxu1 %v10075_v57  ;;  %v9685_v18 = vcombine.high %v4535_v36, %v4539_v35  ;;  %v4543_v57 = vld [vmem:[#allocation15 + $0x2d0] sm:$0xff] }
 0x513   :  { %v4619_v29 = vld [vmem:[#allocation15 + $0x530] sm:$0xff] }
 0x514   :  { %v4567_v28 = vld [vmem:[#allocation15 + $0x390] sm:$0xff] }
 0x515   :  { %7904 = vmatpush1.bf16.msra.mxu0 %v9636_v5  ;;  %7877 = vmatpush1.bf16.msra.mxu1 %v10074_v11  ;;  %v9684_v5 = vcombine.low %v4535_v36, %v4539_v35  ;;  %v9740_v11 = vcombine.low %v4591_v42, %v4595_v9  ;;  %v4571_v13 = vld [vmem:[#allocation15 + $0x3b0] sm:$0xff] }
 0x516   :  { %7905 = vmatprep.subr.bf16.mxu0 %v9645_v14  ;;  %7878 = vmatprep.subr.bf16.mxu1 %v10083_v19  ;;  %v9693_v14 = vcombine.high %v4543_v57, %v4547_v0  ;;  %v9749_v19 = vcombine.high %v4599_v16, %v4603_v10  ;;  %v4623_v34 = vld [vmem:[#allocation15 + $0x550] sm:$0xff] }
 0x517   :  { %v4627_v38 = vld [vmem:[#allocation15 + $0x570] sm:$0xff] }
 0x518   :  { %v4575_v46 = vld [vmem:[#allocation15 + $0x3d0] sm:$0xff] }
 0x519   :  { %7906 = vmatpush1.bf16.msra.mxu0 %v9644_v25  ;;  %7879 = vmatpush1.bf16.msra.mxu1 %v10082_v21  ;;  %v9692_v25 = vcombine.low %v4543_v57, %v4547_v0  ;;  %v9748_v21 = vcombine.low %v4599_v16, %v4603_v10  ;;  %v4579_v47 = vld [vmem:[#allocation15 + $0x3f0] sm:$0xff] }
 0x51a   :  { %7907 = vmatprep.subr.bf16.mxu0 %v9653_v17  ;;  %7880 = vmatprep.subr.bf16.mxu1 %v10091_v12  ;;  %v9701_v17 = vcombine.high %v4551_v40, %v4555_v3  ;;  %v9757_v12 = vcombine.high %v4607_v20, %v4611_v23  ;;  %v4631_v15 = vld [vmem:[#allocation15 + $0x590] sm:$0xff] }
 0x51b   :  { %v4635_v48 = vld [vmem:[#allocation15 + $0x5b0] sm:$0xff] }
 0x51c   :  { %v4711_v36 = vld [vmem:[#allocation15 + $0x810] sm:$0xff] }
 0x51d   :  { %7908 = vmatpush1.bf16.msra.mxu0 %v9652_v32  ;;  %7881 = vmatpush1.bf16.msra.mxu1 %v10090_v41  ;;  %v9700_v32 = vcombine.low %v4551_v40, %v4555_v3  ;;  %v9756_v41 = vcombine.low %v4607_v20, %v4611_v23  ;;  %v4715_v35 = vld [vmem:[#allocation15 + $0x830] sm:$0xff] }
 0x51e   :  { %7909 = vmatprep.subr.bf16.mxu0 %v9661_v58  ;;  %7882 = vmatprep.subr.bf16.mxu1 %v10099_v6  ;;  %v9709_v58 = vcombine.high %v4559_v59, %v4563_v2  ;;  %v9765_v6 = vcombine.high %v4615_v27, %v4619_v29  ;;  %v4639_v42 = vld [vmem:[#allocation15 + $0x5d0] sm:$0xff] }
 0x51f   :  { %v4643_v9 = vld [vmem:[#allocation15 + $0x5f0] sm:$0xff] }
 0x520   :  { %v9789_v57 = vcombine.high %v4639_v42, %v4643_v9  ;;  %v4723_v0 = vld [vmem:[#allocation15 + $0x870] sm:$0xff] }
 0x521   :  { %7910 = vmatpush1.bf16.msra.mxu0 %v9660_v7  ;;  %7883 = vmatpush1.bf16.msra.mxu1 %v10098_v43  ;;  %v9708_v7 = vcombine.low %v4559_v59, %v4563_v2  ;;  %v9764_v43 = vcombine.low %v4615_v27, %v4619_v29  ;;  %v4647_v16 = vld [vmem:[#allocation15 + $0x610] sm:$0xff] }
 0x522   :  { %7911 = vmatprep.subr.bf16.mxu0 %v9669_v60  ;;  %7884 = vmatprep.subr.bf16.mxu1 %v10107_v45  ;;  %v9717_v60 = vcombine.high %v4567_v28, %v4571_v13  ;;  %v9773_v45 = vcombine.high %v4623_v34, %v4627_v38  ;;  %v4651_v10 = vld [vmem:[#allocation15 + $0x630] sm:$0xff] }
 0x523   :  { %v4727_v40 = vld [vmem:[#allocation15 + $0x890] sm:$0xff] }
 0x524   :  { %v4731_v3 = vld [vmem:[#allocation15 + $0x8b0] sm:$0xff] }
 0x525   :  { %7912 = vmatpush1.bf16.msra.mxu0 %v9668_v31  ;;  %7885 = vmatpush1.bf16.msra.mxu1 %v10106_v63  ;;  %v9716_v31 = vcombine.low %v4567_v28, %v4571_v13  ;;  %v9772_v63 = vcombine.low %v4623_v34, %v4627_v38  ;;  %v4655_v20 = vld [vmem:[#allocation15 + $0x650] sm:$0xff] }
 0x526   :  { %7913 = vmatprep.subr.bf16.mxu0 %v9677_v51  ;;  %7936 = vmatprep.subr.bf16.mxu1 %v9733_v44  ;;  %v9725_v51 = vcombine.high %v4575_v46, %v4579_v47  ;;  %v9781_v44 = vcombine.high %v4631_v15, %v4635_v48  ;;  %v4659_v23 = vld [vmem:[#allocation15 + $0x670] sm:$0xff] }
 0x527   :  { %v4735_v59 = vld [vmem:[#allocation15 + $0x8d0] sm:$0xff] }
 0x528   :  { %7887 = vmatmul.mubr.bf16.vlgmr.msra.gmra.mrb[28].mxu1 %v11485_v26  ;;  %v4739_v2 = vld [vmem:[#allocation15 + $0x8f0] sm:$0xff] }
 0x529   :  { %7914 = vmatpush1.bf16.msra.mxu0 %v9676_v53  ;;  %7937 = vmatpush1.bf16.msra.mxu1 %v9732_v37  ;;  %v9724_v53 = vcombine.low %v4575_v46, %v4579_v47  ;;  %v9780_v37 = vcombine.low %v4631_v15, %v4635_v48  ;;  %v4663_v27 = vld [vmem:[#allocation15 + $0x690] sm:$0xff] }
 0x52a   :  { %7968 = vmatprep.mubr.bf16.mxu1 %v11393_v4  ;;  %7915 = vmatprep.subr.bf16.mxu0 %v9685_v18  ;;  %v9861_v18 = vcombine.high %v4711_v36, %v4715_v35  ;;  %v4667_v29 = vld [vmem:[#allocation15 + $0x6b0] sm:$0xff] }
 0x52b   :  { %7938 = vmatprep.subr.bf16.mxu1 %v9741_v61  ;;  %v4719_v61 = vld [vmem:[#allocation15 + $0x850] sm:$0xff] }
 0x52c   :  { %v4743_v28 = vld [vmem:[#allocation15 + $0x910] sm:$0xff] }
 0x52d   :  { %7916 = vmatpush1.bf16.msra.mxu0 %v9684_v5  ;;  %7939 = vmatpush1.bf16.msra.mxu1 %v9740_v11  ;;  %v9860_v5 = vcombine.low %v4711_v36, %v4715_v35  ;;  %v9788_v11 = vcombine.low %v4639_v42, %v4643_v9  ;;  %v4747_v13 = vld [vmem:[#allocation15 + $0x930] sm:$0xff] }
 0x52e   :  { %7917 = vmatprep.subr.bf16.mxu0 %v9693_v14  ;;  %7940 = vmatprep.subr.bf16.mxu1 %v9749_v19  ;;  %v9869_v14 = vcombine.high %v4719_v61, %v4723_v0  ;;  %v9797_v19 = vcombine.high %v4647_v16, %v4651_v10  ;;  %v4671_v34 = vld [vmem:[#allocation15 + $0x6d0] sm:$0xff] }
 0x52f   :  { %v4675_v38 = vld [vmem:[#allocation15 + $0x6f0] sm:$0xff] }
 0x530   :  { %v4751_v46 = vld [vmem:[#allocation15 + $0x950] sm:$0xff] }
 0x531   :  { %7918 = vmatpush1.bf16.msra.mxu0 %v9692_v25  ;;  %7941 = vmatpush1.bf16.msra.mxu1 %v9748_v21  ;;  %v9868_v25 = vcombine.low %v4719_v61, %v4723_v0  ;;  %v9796_v21 = vcombine.low %v4647_v16, %v4651_v10  ;;  %v4755_v47 = vld [vmem:[#allocation15 + $0x970] sm:$0xff] }
 0x532   :  { %7919 = vmatprep.subr.bf16.mxu0 %v9701_v17  ;;  %7942 = vmatprep.subr.bf16.mxu1 %v9757_v12  ;;  %v9877_v17 = vcombine.high %v4727_v40, %v4731_v3  ;;  %v9805_v12 = vcombine.high %v4655_v20, %v4659_v23  ;;  %v4679_v15 = vld [vmem:[#allocation15 + $0x710] sm:$0xff] }
 0x533   :  { %v4683_v48 = vld [vmem:[#allocation15 + $0x730] sm:$0xff] }
 0x534   :  { %v4759_v36 = vld [vmem:[#allocation15 + $0x990] sm:$0xff] }
 0x535   :  { %7920 = vmatpush1.bf16.msra.mxu0 %v9700_v32  ;;  %7943 = vmatpush1.bf16.msra.mxu1 %v9756_v41  ;;  %v9876_v32 = vcombine.low %v4727_v40, %v4731_v3  ;;  %v9804_v41 = vcombine.low %v4655_v20, %v4659_v23  ;;  %v4763_v35 = vld [vmem:[#allocation15 + $0x9b0] sm:$0xff] }
 0x536   :  { %7921 = vmatprep.subr.bf16.mxu0 %v9709_v58  ;;  %7944 = vmatprep.subr.bf16.mxu1 %v9765_v6  ;;  %v9885_v58 = vcombine.high %v4735_v59, %v4739_v2  ;;  %v9813_v6 = vcombine.high %v4663_v27, %v4667_v29  ;;  %v4687_v42 = vld [vmem:[#allocation15 + $0x750] sm:$0xff] }
 0x537   :  { %v4691_v9 = vld [vmem:[#allocation15 + $0x770] sm:$0xff] }
 0x538   :  { %v4767_v61 = vld [vmem:[#allocation15 + $0x9d0] sm:$0xff] }
 0x539   :  { %7922 = vmatpush1.bf16.msra.mxu0 %v9708_v7  ;;  %7945 = vmatpush1.bf16.msra.mxu1 %v9764_v43  ;;  %v9884_v7 = vcombine.low %v4735_v59, %v4739_v2  ;;  %v9812_v43 = vcombine.low %v4663_v27, %v4667_v29  ;;  %v4771_v0 = vld [vmem:[#allocation15 + $0x9f0] sm:$0xff] }
 0x53a   :  { %7923 = vmatprep.subr.bf16.mxu0 %v9717_v60  ;;  %7946 = vmatprep.subr.bf16.mxu1 %v9773_v45  ;;  %v9893_v60 = vcombine.high %v4743_v28, %v4747_v13  ;;  %v9821_v45 = vcombine.high %v4671_v34, %v4675_v38  ;;  %v4695_v16 = vld [vmem:[#allocation15 + $0x790] sm:$0xff] }
 0x53b   :  { %v4699_v10 = vld [vmem:[#allocation15 + $0x7b0] sm:$0xff] }
 0x53c   :  { %v4775_v40 = vld [vmem:[#allocation15 + $0xa10] sm:$0xff] }
 0x53d   :  { %7924 = vmatpush1.bf16.msra.mxu0 %v9716_v31  ;;  %7947 = vmatpush1.bf16.msra.mxu1 %v9772_v63  ;;  %v9892_v31 = vcombine.low %v4743_v28, %v4747_v13  ;;  %v9820_v63 = vcombine.low %v4671_v34, %v4675_v38  ;;  %v4779_v3 = vld [vmem:[#allocation15 + $0xa30] sm:$0xff] }
 0x53e   :  { %7925 = vmatprep.subr.bf16.mxu0 %v9725_v51  ;;  %7948 = vmatprep.subr.bf16.mxu1 %v9781_v44  ;;  %v9901_v51 = vcombine.high %v4751_v46, %v4755_v47  ;;  %v9829_v44 = vcombine.high %v4679_v15, %v4683_v48  ;;  %v4703_v20 = vld [vmem:[#allocation15 + $0x7d0] sm:$0xff] }
 0x53f   :  { %v4707_v23 = vld [vmem:[#allocation15 + $0x7f0] sm:$0xff] }
 0x540   :  { %v4783_v59 = vld [vmem:[#allocation15 + $0xa50] sm:$0xff] }
 0x541   :  { %7926 = vmatpush1.bf16.msra.mxu0 %v9724_v53  ;;  %7949 = vmatpush1.bf16.msra.mxu1 %v9780_v37  ;;  %v9900_v53 = vcombine.low %v4751_v46, %v4755_v47  ;;  %v9828_v37 = vcombine.low %v4679_v15, %v4683_v48  ;;  %v4787_v2 = vld [vmem:[#allocation15 + $0xa70] sm:$0xff] }
 0x542   :  { %7977 = vmatprep.subr.bf16.mxu0 %v9861_v18  ;;  %7950 = vmatprep.subr.bf16.mxu1 %v9789_v57  ;;  %v9909_v18 = vcombine.high %v4759_v36, %v4763_v35  ;;  %v9837_v57 = vcombine.high %v4687_v42, %v4691_v9  ;;  %v4839_v27 = vld [vmem:[#allocation15 + $0xc10] sm:$0xff] }
 0x543   :  { %v4843_v29 = vld [vmem:[#allocation15 + $0xc30] sm:$0xff] }
 0x544   :  { %7928 = vmatmul.mubr.bf16.vlgmr.msra.gmra.mrb[36].mxu0 %v11346_v54  ;;  %v4791_v28 = vld [vmem:[#allocation15 + $0xa90] sm:$0xff] }
 0x545   :  { %7978 = vmatpush1.bf16.msra.mxu0 %v9860_v5  ;;  %8009 = vmatprep.mubr.bf16.mxu0 %v11443_v49  ;;  %v9908_v5 = vcombine.low %v4759_v36, %v4763_v35  ;;  %v4795_v13 = vld [vmem:[#allocation15 + $0xab0] sm:$0xff] }
 0x546   :  { %7951 = vmatpush1.bf16.msra.mxu1 %v9788_v11  ;;  %7979 = vmatprep.subr.bf16.mxu0 %v9869_v14  ;;  %v9836_v11 = vcombine.low %v4687_v42, %v4691_v9  ;;  %v9917_v14 = vcombine.high %v4767_v61, %v4771_v0  ;;  %v4847_v34 = vld [vmem:[#allocation15 + $0xc50] sm:$0xff] }
 0x547   :  { %7952 = vmatprep.subr.bf16.mxu1 %v9797_v19  ;;  %v9845_v19 = vcombine.high %v4695_v16, %v4699_v10  ;;  %v4851_v38 = vld [vmem:[#allocation15 + $0xc70] sm:$0xff] }
 0x548   :  { %v4799_v46 = vld [vmem:[#allocation15 + $0xad0] sm:$0xff] }
 0x549   :  { %7980 = vmatpush1.bf16.msra.mxu0 %v9868_v25  ;;  %v9916_v25 = vcombine.low %v4767_v61, %v4771_v0  ;;  %v4803_v47 = vld [vmem:[#allocation15 + $0xaf0] sm:$0xff] }
 0x54a   :  { %7953 = vmatpush1.bf16.msra.mxu1 %v9796_v21  ;;  %7981 = vmatprep.subr.bf16.mxu0 %v9877_v17  ;;  %v9844_v21 = vcombine.low %v4695_v16, %v4699_v10  ;;  %v9925_v17 = vcombine.high %v4775_v40, %v4779_v3  ;;  %v4855_v15 = vld [vmem:[#allocation15 + $0xc90] sm:$0xff] }
 0x54b   :  { %7954 = vmatprep.subr.bf16.mxu1 %v9805_v12  ;;  %v9853_v12 = vcombine.high %v4703_v20, %v4707_v23  ;;  %v4859_v48 = vld [vmem:[#allocation15 + $0xcb0] sm:$0xff] }
 0x54c   :  { %v4807_v36 = vld [vmem:[#allocation15 + $0xb10] sm:$0xff] }
 0x54d   :  { %7982 = vmatpush1.bf16.msra.mxu0 %v9876_v32  ;;  %v9924_v32 = vcombine.low %v4775_v40, %v4779_v3  ;;  %v4811_v35 = vld [vmem:[#allocation15 + $0xb30] sm:$0xff] }
 0x54e   :  { %7955 = vmatpush1.bf16.msra.mxu1 %v9804_v41  ;;  %7983 = vmatprep.subr.bf16.mxu0 %v9885_v58  ;;  %v9852_v41 = vcombine.low %v4703_v20, %v4707_v23  ;;  %v9933_v58 = vcombine.high %v4783_v59, %v4787_v2  ;;  %v4863_v42 = vld [vmem:[#allocation15 + $0xcd0] sm:$0xff] }
 0x54f   :  { %7956 = vmatprep.subr.bf16.mxu1 %v9813_v6  ;;  %v9989_v6 = vcombine.high %v4839_v27, %v4843_v29  ;;  %v4867_v9 = vld [vmem:[#allocation15 + $0xcf0] sm:$0xff] }
 0x550   :  { %v4815_v61 = vld [vmem:[#allocation15 + $0xb50] sm:$0xff] }
 0x551   :  { %7984 = vmatpush1.bf16.msra.mxu0 %v9884_v7  ;;  %v9932_v7 = vcombine.low %v4783_v59, %v4787_v2  ;;  %v4819_v0 = vld [vmem:[#allocation15 + $0xb70] sm:$0xff] }
 0x552   :  { %7957 = vmatpush1.bf16.msra.mxu1 %v9812_v43  ;;  %7985 = vmatprep.subr.bf16.mxu0 %v9893_v60  ;;  %v9988_v43 = vcombine.low %v4839_v27, %v4843_v29  ;;  %v9941_v60 = vcombine.high %v4791_v28, %v4795_v13  ;;  %v4871_v16 = vld [vmem:[#allocation15 + $0xd10] sm:$0xff] }
 0x553   :  { %7958 = vmatprep.subr.bf16.mxu1 %v9821_v45  ;;  %v9997_v45 = vcombine.high %v4847_v34, %v4851_v38  ;;  %v4875_v10 = vld [vmem:[#allocation15 + $0xd30] sm:$0xff] }
 0x554   :  { %v4823_v40 = vld [vmem:[#allocation15 + $0xb90] sm:$0xff] }
 0x555   :  { %7986 = vmatpush1.bf16.msra.mxu0 %v9892_v31  ;;  %v9940_v31 = vcombine.low %v4791_v28, %v4795_v13  ;;  %v4827_v3 = vld [vmem:[#allocation15 + $0xbb0] sm:$0xff]  ;;  %v4456_v28 = vld [vmem:[#allocation15 + $0x18] sm:$0xff] }
 0x556   :  { %7959 = vmatpush1.bf16.msra.mxu1 %v9820_v63  ;;  %7987 = vmatprep.subr.bf16.mxu0 %v9901_v51  ;;  %v9996_v63 = vcombine.low %v4847_v34, %v4851_v38  ;;  %v9949_v51 = vcombine.high %v4799_v46, %v4803_v47  ;;  %v4879_v20 = vld [vmem:[#allocation15 + $0xd50] sm:$0xff]  ;;  %v4460_v13 = vld [vmem:[#allocation15 + $0x38] sm:$0xff] }
 0x557   :  { %7960 = vmatprep.subr.bf16.mxu1 %v9829_v44  ;;  %v10005_v44 = vcombine.high %v4855_v15, %v4859_v48  ;;  %v4883_v23 = vld [vmem:[#allocation15 + $0xd70] sm:$0xff] }
 0x558   :  { %v4831_v59 = vld [vmem:[#allocation15 + $0xbd0] sm:$0xff] }
 0x559   :  { %7988 = vmatpush1.bf16.msra.mxu0 %v9900_v53  ;;  %v9948_v53 = vcombine.low %v4799_v46, %v4803_v47  ;;  %v4835_v2 = vld [vmem:[#allocation15 + $0xbf0] sm:$0xff]  ;;  %v4464_v46 = vld [vmem:[#allocation15 + $0x58] sm:$0xff] }
 0x55a   :  { %7961 = vmatpush1.bf16.msra.mxu1 %v9828_v37  ;;  %7989 = vmatprep.subr.bf16.mxu0 %v9909_v18  ;;  %v10004_v37 = vcombine.low %v4855_v15, %v4859_v48  ;;  %v9957_v18 = vcombine.high %v4807_v36, %v4811_v35  ;;  %v4887_v27 = vld [vmem:[#allocation15 + $0xd90] sm:$0xff]  ;;  %v4468_v47 = vld [vmem:[#allocation15 + $0x78] sm:$0xff] }
 0x55b   :  { %7962 = vmatprep.subr.bf16.mxu1 %v9837_v57  ;;  %v10013_v57 = vcombine.high %v4863_v42, %v4867_v9  ;;  %v4891_v29 = vld [vmem:[#allocation15 + $0xdb0] sm:$0xff] }
 0x55c   :  { %v4895_v34 = vld [vmem:[#allocation15 + $0xdd0] sm:$0xff] }
 0x55d   :  { %7990 = vmatpush1.bf16.msra.mxu0 %v9908_v5  ;;  %v9956_v5 = vcombine.low %v4807_v36, %v4811_v35  ;;  %v4899_v38 = vld [vmem:[#allocation15 + $0xdf0] sm:$0xff]  ;;  %v4472_v36 = vld [vmem:[#allocation15 + $0x98] sm:$0xff] }
 0x55e   :  { %7963 = vmatpush1.bf16.msra.mxu1 %v9836_v11  ;;  %7991 = vmatprep.subr.bf16.mxu0 %v9917_v14  ;;  %v10012_v11 = vcombine.low %v4863_v42, %v4867_v9  ;;  %v9965_v14 = vcombine.high %v4815_v61, %v4819_v0  ;;  %v4903_v15 = vld [vmem:[#allocation15 + $0xe10] sm:$0xff]  ;;  %v4476_v35 = vld [vmem:[#allocation15 + $0xb8] sm:$0xff] }
 0x55f   :  { %7964 = vmatprep.subr.bf16.mxu1 %v9845_v19  ;;  %v10021_v19 = vcombine.high %v4871_v16, %v4875_v10  ;;  %v4907_v48 = vld [vmem:[#allocation15 + $0xe30] sm:$0xff] }
 0x560   :  { %v4911_v42 = vld [vmem:[#allocation15 + $0xe50] sm:$0xff] }
 0x561   :  { %7992 = vmatpush1.bf16.msra.mxu0 %v9916_v25  ;;  %v9964_v25 = vcombine.low %v4815_v61, %v4819_v0  ;;  %v4915_v9 = vld [vmem:[#allocation15 + $0xe70] sm:$0xff]  ;;  %v4480_v61 = vld [vmem:[#allocation15 + $0xd8] sm:$0xff] }
 0x562   :  { %7965 = vmatpush1.bf16.msra.mxu1 %v9844_v21  ;;  %7993 = vmatprep.subr.bf16.mxu0 %v9925_v17  ;;  %v10020_v21 = vcombine.low %v4871_v16, %v4875_v10  ;;  %v9973_v17 = vcombine.high %v4823_v40, %v4827_v3  ;;  %v4484_v0 = vld [vmem:[#allocation15 + $0xf8] sm:$0xff]  ;;  %v4919_v16 = vld [vmem:[#allocation15 + $0xe90] sm:$0xff] }
 0x563   :  { %7966 = vmatprep.subr.bf16.mxu1 %v9853_v12  ;;  %v10029_v12 = vcombine.high %v4879_v20, %v4883_v23  ;;  %v4923_v10 = vld [vmem:[#allocation15 + $0xeb0] sm:$0xff] }
 0x565   :  { %7994 = vmatpush1.bf16.msra.mxu0 %v9924_v32  ;;  %v9972_v32 = vcombine.low %v4823_v40, %v4827_v3  ;;  %v4492_v40 = vld [vmem:[#allocation15 + $0x138] sm:$0xff]  ;;  %v4927_v3 = vld [vmem:[#allocation15 + $0xed0] sm:$0xff] }
 0x566   :  { %7967 = vmatpush1.bf16.msra.mxu1 %v9852_v41  ;;  %7995 = vmatprep.subr.bf16.mxu0 %v9933_v58  ;;  %v10028_v41 = vcombine.low %v4879_v20, %v4883_v23  ;;  %v9981_v58 = vcombine.high %v4831_v59, %v4835_v2  ;;  %v4931_v20 = vld [vmem:[#allocation15 + $0xef0] sm:$0xff]  ;;  %v9630_v23 = vcombine.low %v4480_v61, %v4484_v0 }
 0x567   :  { %8018 = vmatprep.subr.bf16.mxu1 %v9989_v6  ;;  %v10037_v6 = vcombine.high %v4887_v27, %v4891_v29 }
 0x569   :  { %7969 = vmatmul.mubr.bf16.vlgmr.msra.gmra.mrb[32].mxu1 %v11395_v50  ;;  %7996 = vmatpush1.bf16.msra.mxu0 %v9932_v7  ;;  %v9980_v7 = vcombine.low %v4831_v59, %v4835_v2  ;;  %v4500_v59 = vld [vmem:[#allocation15 + $0x178] sm:$0xff]  ;;  %v4935_v2 = vld [vmem:[#allocation15 + $0xf10] sm:$0xff] }
 0x56a   :  { %8019 = vmatpush1.bf16.msra.mxu1 %v9988_v43  ;;  %8050 = vmatprep.mubr.bf16.mxu1 %v11483_v62  ;;  %v10036_v43 = vcombine.low %v4887_v27, %v4891_v29  ;;  %v4939_v27 = vld [vmem:[#allocation15 + $0xf30] sm:$0xff] }
 0x56b   :  { %7997 = vmatprep.subr.bf16.mxu0 %v9941_v60  ;;  %8020 = vmatprep.subr.bf16.mxu1 %v9997_v45  ;;  %v9607_v60 = vcombine.high %v4456_v28, %v4460_v13  ;;  %v10045_v45 = vcombine.high %v4895_v34, %v4899_v38 }
 0x56d   :  { %7998 = vmatpush1.bf16.msra.mxu0 %v9940_v31  ;;  %v9606_v31 = vcombine.low %v4456_v28, %v4460_v13  ;;  %v4508_v28 = vld [vmem:[#allocation15 + $0x1b8] sm:$0xff]  ;;  %v4943_v13 = vld [vmem:[#allocation15 + $0xf50] sm:$0xff] }
 0x56e   :  { %8021 = vmatpush1.bf16.msra.mxu1 %v9996_v63  ;;  %7999 = vmatprep.subr.bf16.mxu0 %v9949_v51  ;;  %v10044_v63 = vcombine.low %v4895_v34, %v4899_v38  ;;  %v9615_v51 = vcombine.high %v4464_v46, %v4468_v47  ;;  %v4947_v34 = vld [vmem:[#allocation15 + $0xf70] sm:$0xff] }
 0x56f   :  { %8022 = vmatprep.subr.bf16.mxu1 %v10005_v44  ;;  %v10053_v44 = vcombine.high %v4903_v15, %v4907_v48 }
 0x571   :  { %8000 = vmatpush1.bf16.msra.mxu0 %v9948_v53  ;;  %v9614_v53 = vcombine.low %v4464_v46, %v4468_v47  ;;  %v4516_v46 = vld [vmem:[#allocation15 + $0x1f8] sm:$0xff]  ;;  %v4951_v47 = vld [vmem:[#allocation15 + $0xf90] sm:$0xff] }
 0x572   :  { %8023 = vmatpush1.bf16.msra.mxu1 %v10004_v37  ;;  %8001 = vmatprep.subr.bf16.mxu0 %v9957_v18  ;;  %v10052_v37 = vcombine.low %v4903_v15, %v4907_v48  ;;  %v9623_v18 = vcombine.high %v4472_v36, %v4476_v35  ;;  %v4955_v15 = vld [vmem:[#allocation15 + $0xfb0] sm:$0xff] }
 0x573   :  { %8024 = vmatprep.subr.bf16.mxu1 %v10013_v57  ;;  %v10061_v57 = vcombine.high %v4911_v42, %v4915_v9 }
 0x575   :  { %8002 = vmatpush1.bf16.msra.mxu0 %v9956_v5  ;;  %v9622_v5 = vcombine.low %v4472_v36, %v4476_v35  ;;  %v4524_v36 = vld [vmem:[#allocation15 + $0x238] sm:$0xff]  ;;  %v4959_v35 = vld [vmem:[#allocation15 + $0xfd0] sm:$0xff] }
 0x576   :  { %8025 = vmatpush1.bf16.msra.mxu1 %v10012_v11  ;;  %8003 = vmatprep.subr.bf16.mxu0 %v9965_v14  ;;  %v10060_v11 = vcombine.low %v4911_v42, %v4915_v9  ;;  %v9631_v14 = vcombine.high %v4480_v61, %v4484_v0  ;;  %v4963_v42 = vld [vmem:[#allocation15 + $0xff0] sm:$0xff]  ;;  %v4532_v61 = vld [vmem:[#allocation15 + $0x278] sm:$0xff] }
 0x577   :  { %8026 = vmatprep.subr.bf16.mxu1 %v10021_v19  ;;  %v10069_v19 = vcombine.high %v4919_v16, %v4923_v10  ;;  %v4584_v0 = vld [vmem:[#allocation15 + $0x418] sm:$0xff] }
 0x579   :  { %8004 = vmatpush1.bf16.msra.mxu0 %v9964_v25  ;;  %v10068_v25 = vcombine.low %v4919_v16, %v4923_v10  ;;  %v4588_v16 = vld [vmem:[#allocation15 + $0x438] sm:$0xff] }
 0x57a   :  { %8027 = vmatpush1.bf16.msra.mxu1 %v10020_v21  ;;  %8005 = vmatprep.subr.bf16.mxu0 %v9973_v17  ;;  %v10077_v17 = vcombine.high %v4927_v3, %v4931_v20 }
 0x57b   :  { %8028 = vmatprep.subr.bf16.mxu1 %v10029_v12  ;;  %v4496_v12 = vld [vmem:[#allocation15 + $0x158] sm:$0xff] }
 0x57c   :  { %v9646_v38 = vcombine.low %v4496_v12, %v4500_v59 }
 0x57d   :  { %8006 = vmatpush1.bf16.msra.mxu0 %v9972_v32  ;;  %v10076_v32 = vcombine.low %v4927_v3, %v4931_v20  ;;  %v4596_v3 = vld [vmem:[#allocation15 + $0x478] sm:$0xff] }
 0x57e   :  { %8029 = vmatpush1.bf16.msra.mxu1 %v10028_v41  ;;  %8007 = vmatprep.subr.bf16.mxu0 %v9981_v58  ;;  %v9647_v41 = vcombine.high %v4496_v12, %v4500_v59  ;;  %v10085_v58 = vcombine.high %v4935_v2, %v4939_v27  ;;  %v4548_v12 = vld [vmem:[#allocation15 + $0x2f8] sm:$0xff] }
 0x57f   :  { %8030 = vmatprep.subr.bf16.mxu1 %v10037_v6  ;;  %v4504_v6 = vld [vmem:[#allocation15 + $0x198] sm:$0xff] }
 0x580   :  { %v9654_v48 = vcombine.low %v4504_v6, %v4508_v28  ;;  %v4600_v59 = vld [vmem:[#allocation15 + $0x498] sm:$0xff] }
 0x581   :  { %8008 = vmatpush1.bf16.msra.mxu0 %v9980_v7  ;;  %v10084_v7 = vcombine.low %v4935_v2, %v4939_v27  ;;  %v4604_v2 = vld [vmem:[#allocation15 + $0x4b8] sm:$0xff] }
 0x582   :  { %8031 = vmatpush1.bf16.msra.mxu1 %v10036_v43  ;;  %8059 = vmatprep.subr.bf16.mxu0 %v9607_v60  ;;  %v9655_v43 = vcombine.high %v4504_v6, %v4508_v28  ;;  %v10093_v60 = vcombine.high %v4943_v13, %v4947_v34  ;;  %v4556_v6 = vld [vmem:[#allocation15 + $0x338] sm:$0xff] }
 0x583   :  { %8032 = vmatprep.subr.bf16.mxu1 %v10045_v45  ;;  %v4512_v45 = vld [vmem:[#allocation15 + $0x1d8] sm:$0xff] }
 0x584   :  { %8010 = vmatmul.mubr.bf16.vlgmr.msra.gmra.mrb[40].mxu0 %v11445_v8  ;;  %v9662_v9 = vcombine.low %v4512_v45, %v4516_v46  ;;  %v4608_v28 = vld [vmem:[#allocation15 + $0x4d8] sm:$0xff] }
 0x585   :  { %8060 = vmatpush1.bf16.msra.mxu0 %v9606_v31  ;;  %8091 = vmatprep.mubr.bf16.mxu0 %v11344_v52  ;;  %v4488_v52 = vld [vmem:[#allocation15 + $0x118] sm:$0xff]  ;;  %v10092_v31 = vcombine.low %v4943_v13, %v4947_v34 }
 0x586   :  { %8033 = vmatpush1.bf16.msra.mxu1 %v10044_v63  ;;  %8061 = vmatprep.subr.bf16.mxu0 %v9615_v51  ;;  %v9639_v21 = vcombine.high %v4488_v52, %v4492_v40  ;;  %v9638_v29 = vcombine.low %v4488_v52, %v4492_v40  ;;  %v9663_v63 = vcombine.high %v4512_v45, %v4516_v46  ;;  %v4540_v52 = vld [vmem:[#allocation15 + $0x2b8] sm:$0xff] }
 0x587   :  { %8034 = vmatprep.subr.bf16.mxu1 %v10053_v44  ;;  %v10101_v51 = vcombine.high %v4951_v47, %v4955_v15  ;;  %v4520_v44 = vld [vmem:[#allocation15 + $0x218] sm:$0xff] }
 0x588   :  { %v9670_v10 = vcombine.low %v4520_v44, %v4524_v36  ;;  %v4592_v40 = vld [vmem:[#allocation15 + $0x458] sm:$0xff] }
 0x589   :  { %8062 = vmatpush1.bf16.msra.mxu0 %v9614_v53  ;;  %v10100_v53 = vcombine.low %v4951_v47, %v4955_v15  ;;  %v4612_v13 = vld [vmem:[#allocation15 + $0x4f8] sm:$0xff] }
 0x58a   :  { %8035 = vmatpush1.bf16.msra.mxu1 %v10052_v37  ;;  %8063 = vmatprep.subr.bf16.mxu0 %v9623_v18  ;;  %v9671_v37 = vcombine.high %v4520_v44, %v4524_v36  ;;  %v10109_v18 = vcombine.high %v4959_v35, %v4963_v42  ;;  %v4564_v45 = vld [vmem:[#allocation15 + $0x378] sm:$0xff]  ;;  %v9758_v15 = vcombine.low %v4608_v28, %v4612_v13 }
 0x58b   :  { %8036 = vmatprep.subr.bf16.mxu1 %v10061_v57  ;;  %v4528_v57 = vld [vmem:[#allocation15 + $0x258] sm:$0xff] }
 0x58c   :  { %v9678_v20 = vcombine.low %v4528_v57, %v4532_v61  ;;  %v4620_v46 = vld [vmem:[#allocation15 + $0x538] sm:$0xff] }
 0x58d   :  { %8064 = vmatpush1.bf16.msra.mxu0 %v9622_v5  ;;  %v10108_v5 = vcombine.low %v4959_v35, %v4963_v42  ;;  %v4624_v44 = vld [vmem:[#allocation15 + $0x558] sm:$0xff] }
 0x58e   :  { %8037 = vmatpush1.bf16.msra.mxu1 %v10060_v11  ;;  %8065 = vmatprep.subr.bf16.mxu0 %v9631_v14  ;;  %v9679_v11 = vcombine.high %v4528_v57, %v4532_v61  ;;  %v9735_v14 = vcombine.high %v4584_v0, %v4588_v16  ;;  %v4628_v36 = vld [vmem:[#allocation15 + $0x578] sm:$0xff] }
 0x58f   :  { %8038 = vmatprep.subr.bf16.mxu1 %v10069_v19  ;;  %v4536_v19 = vld [vmem:[#allocation15 + $0x298] sm:$0xff] }
 0x590   :  { %v9686_v27 = vcombine.low %v4536_v19, %v4540_v52  ;;  %v4632_v57 = vld [vmem:[#allocation15 + $0x598] sm:$0xff] }
 0x591   :  { %8066 = vmatpush1.bf16.msra.mxu0 %v9630_v23  ;;  %v9734_v23 = vcombine.low %v4584_v0, %v4588_v16  ;;  %v4636_v61 = vld [vmem:[#allocation15 + $0x5b8] sm:$0xff]  ;;  %v9774_v16 = vcombine.low %v4624_v44, %v4628_v36 }
 0x592   :  { %8039 = vmatpush1.bf16.msra.mxu1 %v10068_v25  ;;  %8067 = vmatprep.subr.bf16.mxu0 %v9639_v21  ;;  %v9687_v25 = vcombine.high %v4536_v19, %v4540_v52  ;;  %v9743_v21 = vcombine.high %v4592_v40, %v4596_v3  ;;  %v4640_v19 = vld [vmem:[#allocation15 + $0x5d8] sm:$0xff] }
 0x593   :  { %8040 = vmatprep.subr.bf16.mxu1 %v10077_v17  ;;  %v4544_v17 = vld [vmem:[#allocation15 + $0x2d8] sm:$0xff] }
 0x594   :  { %v9694_v34 = vcombine.low %v4544_v17, %v4548_v12  ;;  %v4644_v52 = vld [vmem:[#allocation15 + $0x5f8] sm:$0xff] }
 0x595   :  { %8068 = vmatpush1.bf16.msra.mxu0 %v9638_v29  ;;  %v9742_v29 = vcombine.low %v4592_v40, %v4596_v3  ;;  %v9782_v3 = vcombine.low %v4632_v57, %v4636_v61 }
 0x596   :  { %8041 = vmatpush1.bf16.msra.mxu1 %v10076_v32  ;;  %8069 = vmatprep.subr.bf16.mxu0 %v9647_v41  ;;  %v9695_v32 = vcombine.high %v4544_v17, %v4548_v12  ;;  %v9751_v41 = vcombine.high %v4600_v59, %v4604_v2  ;;  %v4648_v17 = vld [vmem:[#allocation15 + $0x618] sm:$0xff] }
 0x597   :  { %8042 = vmatprep.subr.bf16.mxu1 %v10085_v58  ;;  %v4552_v58 = vld [vmem:[#allocation15 + $0x318] sm:$0xff] }
 0x598   :  { %v9702_v47 = vcombine.low %v4552_v58, %v4556_v6  ;;  %v4652_v12 = vld [vmem:[#allocation15 + $0x638] sm:$0xff] }
 0x599   :  { %8070 = vmatpush1.bf16.msra.mxu0 %v9646_v38  ;;  %v9750_v38 = vcombine.low %v4600_v59, %v4604_v2  ;;  %v9790_v2 = vcombine.low %v4640_v19, %v4644_v52 }
 0x59a   :  { %8043 = vmatpush1.bf16.msra.mxu1 %v10084_v7  ;;  %8071 = vmatprep.subr.bf16.mxu0 %v9655_v43  ;;  %v9703_v7 = vcombine.high %v4552_v58, %v4556_v6  ;;  %v9759_v43 = vcombine.high %v4608_v28, %v4612_v13  ;;  %v4656_v58 = vld [vmem:[#allocation15 + $0x658] sm:$0xff]  ;;  %v9798_v13 = vcombine.low %v4648_v17, %v4652_v12 }
 0x59b   :  { %8044 = vmatprep.subr.bf16.mxu1 %v10093_v60  ;;  %v4560_v60 = vld [vmem:[#allocation15 + $0x358] sm:$0xff] }
 0x59c   :  { %v9710_v35 = vcombine.low %v4560_v60, %v4564_v45  ;;  %v4660_v6 = vld [vmem:[#allocation15 + $0x678] sm:$0xff] }
 0x59d   :  { %8072 = vmatpush1.bf16.msra.mxu0 %v9654_v48  ;;  %v9711_v48 = vcombine.high %v4560_v60, %v4564_v45  ;;  %v4664_v60 = vld [vmem:[#allocation15 + $0x698] sm:$0xff] }
 0x59e   :  { %8045 = vmatpush1.bf16.msra.mxu1 %v10092_v31  ;;  %8073 = vmatprep.subr.bf16.mxu0 %v9663_v63  ;;  %v4568_v63 = vld [vmem:[#allocation15 + $0x398] sm:$0xff] }
 0x59f   :  { %8046 = vmatprep.subr.bf16.mxu1 %v10101_v51  ;;  %v4572_v51 = vld [vmem:[#allocation15 + $0x3b8] sm:$0xff] }
 0x5a0   :  { %v9718_v0 = vcombine.low %v4568_v63, %v4572_v51  ;;  %v4668_v45 = vld [vmem:[#allocation15 + $0x6b8] sm:$0xff] }
 0x5a1   :  { %8074 = vmatpush1.bf16.msra.mxu0 %v9662_v9  ;;  %v9719_v9 = vcombine.high %v4568_v63, %v4572_v51  ;;  %v9814_v51 = vcombine.low %v4664_v60, %v4668_v45 }
 0x5a2   :  { %8047 = vmatpush1.bf16.msra.mxu1 %v10100_v53  ;;  %8075 = vmatprep.subr.bf16.mxu0 %v9671_v37  ;;  %v9775_v53 = vcombine.high %v4624_v44, %v4628_v36  ;;  %v4576_v37 = vld [vmem:[#allocation15 + $0x3d8] sm:$0xff] }
 0x5a3   :  { %8048 = vmatprep.subr.bf16.mxu1 %v10109_v18  ;;  %v4580_v18 = vld [vmem:[#allocation15 + $0x3f8] sm:$0xff] }
 0x5a4   :  { %v9726_v40 = vcombine.low %v4576_v37, %v4580_v18 }
 0x5a5   :  { %8076 = vmatpush1.bf16.msra.mxu0 %v9670_v10  ;;  %v9727_v10 = vcombine.high %v4576_v37, %v4580_v18 }
 0x5a6   :  { %8049 = vmatpush1.bf16.msra.mxu1 %v10108_v5  ;;  %8077 = vmatprep.subr.bf16.mxu0 %v9679_v11  ;;  %v9783_v5 = vcombine.high %v4632_v57, %v4636_v61  ;;  %v4712_v11 = vld [vmem:[#allocation15 + $0x818] sm:$0xff] }
 0x5a7   :  { %8100 = vmatprep.subr.bf16.mxu1 %v9735_v14  ;;  %v4716_v14 = vld [vmem:[#allocation15 + $0x838] sm:$0xff] }
 0x5a8   :  { %v9862_v59 = vcombine.low %v4712_v11, %v4716_v14 }
 0x5a9   :  { %8051 = vmatmul.mubr.bf16.vlgmr.msra.gmra.mrb[36].mxu1 %v11485_v26  ;;  %8078 = vmatpush1.bf16.msra.mxu0 %v9678_v20  ;;  %v9863_v20 = vcombine.high %v4712_v11, %v4716_v14 }
 0x5aa   :  { %8101 = vmatpush1.bf16.msra.mxu1 %v9734_v23  ;;  %8132 = vmatprep.mubr.bf16.mxu1 %v11393_v4  ;;  %v4616_v4 = vld [vmem:[#allocation15 + $0x518] sm:$0xff]  ;;  %v9791_v23 = vcombine.high %v4640_v19, %v4644_v52 }
 0x5ab   :  { %8079 = vmatprep.subr.bf16.mxu0 %v9687_v25  ;;  %8102 = vmatprep.subr.bf16.mxu1 %v9743_v21  ;;  %v9767_v31 = vcombine.high %v4616_v4, %v4620_v46  ;;  %v9766_v42 = vcombine.low %v4616_v4, %v4620_v46  ;;  %v4720_v25 = vld [vmem:[#allocation15 + $0x858] sm:$0xff] }
 0x5ac   :  { %v4724_v21 = vld [vmem:[#allocation15 + $0x878] sm:$0xff] }
 0x5ad   :  { %8080 = vmatpush1.bf16.msra.mxu0 %v9686_v27  ;;  %v9871_v27 = vcombine.high %v4720_v25, %v4724_v21  ;;  %v9870_v28 = vcombine.low %v4720_v25, %v4724_v21  ;;  %v4696_v25 = vld [vmem:[#allocation15 + $0x798] sm:$0xff] }
 0x5ae   :  { %8103 = vmatpush1.bf16.msra.mxu1 %v9742_v29  ;;  %8081 = vmatprep.subr.bf16.mxu0 %v9695_v32  ;;  %v9799_v29 = vcombine.high %v4648_v17, %v4652_v12  ;;  %v4728_v32 = vld [vmem:[#allocation15 + $0x898] sm:$0xff] }
 0x5af   :  { %8104 = vmatprep.subr.bf16.mxu1 %v9751_v41  ;;  %v4732_v41 = vld [vmem:[#allocation15 + $0x8b8] sm:$0xff] }
 0x5b0   :  { %v9878_v4 = vcombine.low %v4728_v32, %v4732_v41  ;;  %v4700_v21 = vld [vmem:[#allocation15 + $0x7b8] sm:$0xff] }
 0x5b1   :  { %8082 = vmatpush1.bf16.msra.mxu0 %v9694_v34  ;;  %v9879_v34 = vcombine.high %v4728_v32, %v4732_v41  ;;  %v4776_v32 = vld [vmem:[#allocation15 + $0xa18] sm:$0xff] }
 0x5b2   :  { %8105 = vmatpush1.bf16.msra.mxu1 %v9750_v38  ;;  %8083 = vmatprep.subr.bf16.mxu0 %v9703_v7  ;;  %v9807_v38 = vcombine.high %v4656_v58, %v4660_v6  ;;  %v4736_v7 = vld [vmem:[#allocation15 + $0x8d8] sm:$0xff] }
 0x5b3   :  { %8106 = vmatprep.subr.bf16.mxu1 %v9759_v43  ;;  %v4740_v43 = vld [vmem:[#allocation15 + $0x8f8] sm:$0xff] }
 0x5b4   :  { %v9887_v46 = vcombine.high %v4736_v7, %v4740_v43  ;;  %v9886_v63 = vcombine.low %v4736_v7, %v4740_v43  ;;  %v4780_v41 = vld [vmem:[#allocation15 + $0xa38] sm:$0xff] }
 0x5b5   :  { %8084 = vmatpush1.bf16.msra.mxu0 %v9702_v47  ;;  %v9815_v47 = vcombine.high %v4664_v60, %v4668_v45  ;;  %v4784_v7 = vld [vmem:[#allocation15 + $0xa58] sm:$0xff] }
 0x5b6   :  { %8107 = vmatpush1.bf16.msra.mxu1 %v9758_v15  ;;  %8085 = vmatprep.subr.bf16.mxu0 %v9711_v48  ;;  %v4748_v15 = vld [vmem:[#allocation15 + $0x938] sm:$0xff] }
 0x5b7   :  { %8108 = vmatprep.subr.bf16.mxu1 %v9767_v31  ;;  %v4672_v48 = vld [vmem:[#allocation15 + $0x6d8] sm:$0xff] }
 0x5b8   :  { %v4676_v31 = vld [vmem:[#allocation15 + $0x6f8] sm:$0xff] }
 0x5b9   :  { %8086 = vmatpush1.bf16.msra.mxu0 %v9710_v35  ;;  %v9823_v36 = vcombine.high %v4672_v48, %v4676_v31  ;;  %v4752_v35 = vld [vmem:[#allocation15 + $0x958] sm:$0xff]  ;;  %v9822_v18 = vcombine.low %v4672_v48, %v4676_v31 }
 0x5ba   :  { %8109 = vmatpush1.bf16.msra.mxu1 %v9766_v42  ;;  %8087 = vmatprep.subr.bf16.mxu0 %v9719_v9  ;;  %v4756_v42 = vld [vmem:[#allocation15 + $0x978] sm:$0xff] }
 0x5bb   :  { %8110 = vmatprep.subr.bf16.mxu1 %v9775_v53  ;;  %v4680_v9 = vld [vmem:[#allocation15 + $0x718] sm:$0xff]  ;;  %v9903_v57 = vcombine.high %v4752_v35, %v4756_v42  ;;  %v9902_v11 = vcombine.low %v4752_v35, %v4756_v42 }
 0x5bc   :  { %v4684_v53 = vld [vmem:[#allocation15 + $0x738] sm:$0xff] }
 0x5bd   :  { %8088 = vmatpush1.bf16.msra.mxu0 %v9718_v0  ;;  %v9831_v61 = vcombine.high %v4680_v9, %v4684_v53  ;;  %v4760_v0 = vld [vmem:[#allocation15 + $0x998] sm:$0xff]  ;;  %v9830_v14 = vcombine.low %v4680_v9, %v4684_v53 }
 0x5be   :  { %8111 = vmatpush1.bf16.msra.mxu1 %v9774_v16  ;;  %8089 = vmatprep.subr.bf16.mxu0 %v9727_v10  ;;  %v4764_v16 = vld [vmem:[#allocation15 + $0x9b8] sm:$0xff] }
 0x5bf   :  { %8112 = vmatprep.subr.bf16.mxu1 %v9783_v5  ;;  %v4688_v10 = vld [vmem:[#allocation15 + $0x758] sm:$0xff]  ;;  %v9911_v19 = vcombine.high %v4760_v0, %v4764_v16  ;;  %v9910_v12 = vcombine.low %v4760_v0, %v4764_v16 }
 0x5c0   :  { %v4692_v5 = vld [vmem:[#allocation15 + $0x778] sm:$0xff] }
 0x5c1   :  { %8090 = vmatpush1.bf16.msra.mxu0 %v9726_v40  ;;  %v9839_v40 = vcombine.high %v4688_v10, %v4692_v5  ;;  %v4788_v43 = vld [vmem:[#allocation15 + $0xa78] sm:$0xff] }
 0x5c2   :  { %8113 = vmatpush1.bf16.msra.mxu1 %v9782_v3  ;;  %8141 = vmatprep.subr.bf16.mxu0 %v9863_v20  ;;  %v4768_v3 = vld [vmem:[#allocation15 + $0x9d8] sm:$0xff] }
 0x5c3   :  { %8114 = vmatprep.subr.bf16.mxu1 %v9791_v23  ;;  %v4772_v20 = vld [vmem:[#allocation15 + $0x9f8] sm:$0xff] }
 0x5c4   :  { %8092 = vmatmul.mubr.bf16.vlgmr.msra.gmra.mrb[44].mxu0 %v11346_v54  ;;  %v9806_v54 = vcombine.low %v4656_v58, %v4660_v6  ;;  %v4704_v58 = vld [vmem:[#allocation15 + $0x7d8] sm:$0xff] }
 0x5c5   :  { %8142 = vmatpush1.bf16.msra.mxu0 %v9862_v59  ;;  %8173 = vmatprep.mubr.bf16.mxu0 %v11443_v49  ;;  %v4744_v49 = vld [vmem:[#allocation15 + $0x918] sm:$0xff] }
 0x5c6   :  { %8115 = vmatpush1.bf16.msra.mxu1 %v9790_v2  ;;  %8143 = vmatprep.subr.bf16.mxu0 %v9871_v27  ;;  %v9895_v44 = vcombine.high %v4744_v49, %v4748_v15  ;;  %v9894_v37 = vcombine.low %v4744_v49, %v4748_v15  ;;  %v9838_v2 = vcombine.low %v4688_v10, %v4692_v5  ;;  %v4708_v6 = vld [vmem:[#allocation15 + $0x7f8] sm:$0xff] }
 0x5c7   :  { %8116 = vmatprep.subr.bf16.mxu1 %v9799_v29  ;;  %v9919_v27 = vcombine.high %v4768_v3, %v4772_v20  ;;  %v9847_v29 = vcombine.high %v4696_v25, %v4700_v21  ;;  %v4840_v60 = vld [vmem:[#allocation15 + $0xc18] sm:$0xff] }
 0x5c8   :  { %v4844_v45 = vld [vmem:[#allocation15 + $0xc38] sm:$0xff] }
 0x5c9   :  { %8144 = vmatpush1.bf16.msra.mxu0 %v9870_v28  ;;  %v9918_v28 = vcombine.low %v4768_v3, %v4772_v20  ;;  %v4792_v49 = vld [vmem:[#allocation15 + $0xa98] sm:$0xff] }
 0x5ca   :  { %8117 = vmatpush1.bf16.msra.mxu1 %v9798_v13  ;;  %8145 = vmatprep.subr.bf16.mxu0 %v9879_v34  ;;  %v9846_v13 = vcombine.low %v4696_v25, %v4700_v21  ;;  %v9927_v34 = vcombine.high %v4776_v32, %v4780_v41  ;;  %v4796_v15 = vld [vmem:[#allocation15 + $0xab8] sm:$0xff] }
 0x5cb   :  { %8118 = vmatprep.subr.bf16.mxu1 %v9807_v38  ;;  %v9855_v38 = vcombine.high %v4704_v58, %v4708_v6  ;;  %v4848_v48 = vld [vmem:[#allocation15 + $0xc58] sm:$0xff] }
 0x5cc   :  { %v4852_v31 = vld [vmem:[#allocation15 + $0xc78] sm:$0xff] }
 0x5cd   :  { %8146 = vmatpush1.bf16.msra.mxu0 %v9878_v4  ;;  %v9926_v4 = vcombine.low %v4776_v32, %v4780_v41  ;;  %v4800_v35 = vld [vmem:[#allocation15 + $0xad8] sm:$0xff] }
 0x5ce   :  { %8119 = vmatpush1.bf16.msra.mxu1 %v9806_v54  ;;  %8147 = vmatprep.subr.bf16.mxu0 %v9887_v46  ;;  %v9854_v54 = vcombine.low %v4704_v58, %v4708_v6  ;;  %v9935_v46 = vcombine.high %v4784_v7, %v4788_v43  ;;  %v4804_v42 = vld [vmem:[#allocation15 + $0xaf8] sm:$0xff]  ;;  %v11509_v6 = vld [vmem:[#allocation17] sm:$0xff] }
 0x5cf   :  { %8120 = vmatprep.subr.bf16.mxu1 %v9815_v47  ;;  %v9991_v47 = vcombine.high %v4840_v60, %v4844_v45  ;;  %v4856_v9 = vld [vmem:[#allocation15 + $0xc98] sm:$0xff] }
 0x5d0   :  { %v4860_v53 = vld [vmem:[#allocation15 + $0xcb8] sm:$0xff] }
 0x5d1   :  { %8148 = vmatpush1.bf16.msra.mxu0 %v9886_v63  ;;  %v9934_v63 = vcombine.low %v4784_v7, %v4788_v43  ;;  %v4808_v0 = vld [vmem:[#allocation15 + $0xb18] sm:$0xff] }
 0x5d2   :  { %8121 = vmatpush1.bf16.msra.mxu1 %v9814_v51  ;;  %8149 = vmatprep.subr.bf16.mxu0 %v9895_v44  ;;  %v9990_v51 = vcombine.low %v4840_v60, %v4844_v45  ;;  %v9943_v44 = vcombine.high %v4792_v49, %v4796_v15  ;;  %v4812_v16 = vld [vmem:[#allocation15 + $0xb38] sm:$0xff]  ;;  %v4982_v45 = vrot.slane %v11509_v6, %v11232_v33 }
 0x5d3   :  { %8122 = vmatprep.subr.bf16.mxu1 %v9823_v36  ;;  %v9999_v36 = vcombine.high %v4848_v48, %v4852_v31  ;;  %v4864_v10 = vld [vmem:[#allocation15 + $0xcd8] sm:$0xff]  ;;  %v9958_v25 = vcombine.low %v4808_v0, %v4812_v16 }
 0x5d4   :  { %v4868_v5 = vld [vmem:[#allocation15 + $0xcf8] sm:$0xff] }
 0x5d5   :  { %8150 = vmatpush1.bf16.msra.mxu0 %v9894_v37  ;;  %v9942_v37 = vcombine.low %v4792_v49, %v4796_v15  ;;  %v4820_v3 = vld [vmem:[#allocation15 + $0xb78] sm:$0xff]  ;;  %v10014_v21 = vcombine.low %v4864_v10, %v4868_v5 }
 0x5d6   :  { %8123 = vmatpush1.bf16.msra.mxu1 %v9822_v18  ;;  %8151 = vmatprep.subr.bf16.mxu0 %v9903_v57  ;;  %v9998_v18 = vcombine.low %v4848_v48, %v4852_v31  ;;  %v9951_v57 = vcombine.high %v4800_v35, %v4804_v42  ;;  %v4876_v20 = vld [vmem:[#allocation15 + $0xd38] sm:$0xff] }
 0x5d7   :  { %v11503_v52 = vpop.f32.mrb[32].mxu0  ;;  %8124 = vmatprep.subr.bf16.mxu1 %v9831_v61  ;;  %v10007_v61 = vcombine.high %v4856_v9, %v4860_v53  ;;  %v4888_v7 = vld [vmem:[#allocation15 + $0xd98] sm:$0xff] }
 0x5d8   :  { %v11505_v23 = vpop.f32.mrb[33].mxu0  ;;  %v4892_v43 = vld [vmem:[#allocation15 + $0xdb8] sm:$0xff] }
 0x5d9   :  { %8152 = vmatpush1.bf16.msra.mxu0 %v9902_v11  ;;  %v7728_v17 = vpop.f32.mrb[34].mxu0  ;;  %v9950_v11 = vcombine.low %v4800_v35, %v4804_v42  ;;  %v4896_v48 = vld [vmem:[#allocation15 + $0xdd8] sm:$0xff]  ;;  %v10038_v42 = vcombine.low %v4888_v7, %v4892_v43 }
 0x5da   :  { %8125 = vmatpush1.bf16.msra.mxu1 %v9830_v14  ;;  %v7729_v59 = vpop.f32.mrb[35].mxu0  ;;  %8153 = vmatprep.subr.bf16.mxu0 %v9911_v19  ;;  %v10006_v14 = vcombine.low %v4856_v9, %v4860_v53  ;;  %v10015_v19 = vcombine.high %v4864_v10, %v4868_v5  ;;  %v4900_v31 = vld [vmem:[#allocation15 + $0xdf8] sm:$0xff] }
 0x5db   :  { %8126 = vmatprep.subr.bf16.mxu1 %v9839_v40  ;;  %v4816_v40 = vld [vmem:[#allocation15 + $0xb58] sm:$0xff] }
 0x5dc   :  { %v9967_v17 = vcombine.high %v4816_v40, %v4820_v3  ;;  %v4824_v59 = vld [vmem:[#allocation15 + $0xb98] sm:$0xff]  ;;  %v9966_v32 = vcombine.low %v4816_v40, %v4820_v3 }
 0x5dd   :  { %8154 = vmatpush1.bf16.msra.mxu0 %v9910_v12  ;;  %v10323_v9 = vld [vmem:[#allocation21 + $0x4] ss:$8 sps:$4 sm:$0xff]  }
 0x5de   :  { %8127 = vmatpush1.bf16.msra.mxu1 %v9838_v2  ;;  %8155 = vmatprep.subr.bf16.mxu0 %v9919_v27  ;;  %v4828_v2 = vld [vmem:[#allocation15 + $0xbb8] sm:$0xff] }
 0x5df   :  { %8128 = vmatprep.subr.bf16.mxu1 %v9847_v29  ;;  %v4880_v27 = vld [vmem:[#allocation15 + $0xd58] sm:$0xff]  ;;  %v9975_v58 = vcombine.high %v4824_v59, %v4828_v2  ;;  %v9974_v60 = vcombine.low %v4824_v59, %v4828_v2 }
 0x5e0   :  { %v4884_v29 = vld [vmem:[#allocation15 + $0xd78] sm:$0xff] }
 0x5e1   :  { %8156 = vmatpush1.bf16.msra.mxu0 %v9918_v28  ;;  %v10031_v28 = vcombine.high %v4880_v27, %v4884_v29  ;;  %v4920_v2 = vld [vmem:[#allocation15 + $0xe98] sm:$0xff] }
 0x5e2   :  { %8129 = vmatpush1.bf16.msra.mxu1 %v9846_v13  ;;  %8157 = vmatprep.subr.bf16.mxu0 %v9927_v34  ;;  %v4832_v13 = vld [vmem:[#allocation15 + $0xbd8] sm:$0xff] }
 0x5e3   :  { %8130 = vmatprep.subr.bf16.mxu1 %v9855_v38  ;;  %v4836_v34 = vld [vmem:[#allocation15 + $0xbf8] sm:$0xff]  ;;  %v4978_v38 = vrot.slane %v11509_v6, %v11229_v30 }
 0x5e5   :  { %8158 = vmatpush1.bf16.msra.mxu0 %v9926_v4  ;;  %v10030_v4 = vcombine.low %v4880_v27, %v4884_v29  ;;  %v4924_v27 = vld [vmem:[#allocation15 + $0xeb8] sm:$0xff] }
 0x5e6   :  { %8131 = vmatpush1.bf16.msra.mxu1 %v9854_v54  ;;  %8159 = vmatprep.subr.bf16.mxu0 %v9935_v46  ;;  %v9983_v54 = vcombine.high %v4832_v13, %v4836_v34  ;;  %v10327_v29 = vld [vmem:[#allocation21 + $0x20] ss:$8 sps:$4 sm:$0xff]  }
 0x5e7   :  { %8182 = vmatprep.subr.bf16.mxu1 %v9991_v47  ;;  %v10039_v47 = vcombine.high %v4888_v7, %v4892_v43 }
 0x5e9   :  { %8133 = vmatmul.mubr.bf16.vlgmr.msra.gmra.mrb[40].mxu1 %v11395_v50  ;;  %8160 = vmatpush1.bf16.msra.mxu0 %v9934_v63  ;;  %v9959_v50 = vcombine.high %v4808_v0, %v4812_v16  ;;  %v10321_v16 = vld [vmem:[#allocation21] ss:$8 sps:$4 sm:$0xff]  }
 0x5ea   :  { %8183 = vmatpush1.bf16.msra.mxu1 %v9990_v51  ;;  %8214 = vmatprep.mubr.bf16.mxu1 %v11483_v62  ;;  %v4872_v62 = vld [vmem:[#allocation15 + $0xd18] sm:$0xff] }
 0x5eb   :  { %8161 = vmatprep.subr.bf16.mxu0 %v9943_v44  ;;  %8184 = vmatprep.subr.bf16.mxu1 %v9999_v36  ;;  %v10023_v12 = vcombine.high %v4872_v62, %v4876_v20  ;;  %v10022_v41 = vcombine.low %v4872_v62, %v4876_v20  ;;  %v9982_v44 = vcombine.low %v4832_v13, %v4836_v34  ;;  %v4912_v62 = vld [vmem:[#allocation15 + $0xe58] sm:$0xff]  ;;  %v10330_v13 = vld [vmem:[#allocation21 + $0x30] ss:$8 sps:$4 sm:$0xff]  }
 0x5ec   :  { %v4916_v20 = vld [vmem:[#allocation15 + $0xe78] sm:$0xff]  ;;  %v10070_v34 = vcombine.low %v4920_v2, %v4924_v27 }
 0x5ed   :  { %8162 = vmatpush1.bf16.msra.mxu0 %v9942_v37  ;;  %v10047_v37 = vcombine.high %v4896_v48, %v4900_v31  ;;  %v10063_v59 = vcombine.high %v4912_v62, %v4916_v20 }
 0x5ee   :  { %8185 = vmatpush1.bf16.msra.mxu1 %v9998_v18  ;;  %8163 = vmatprep.subr.bf16.mxu0 %v9951_v57  ;;  %v4904_v57 = vld [vmem:[#allocation15 + $0xe18] sm:$0xff] }
 0x5ef   :  { %8186 = vmatprep.subr.bf16.mxu1 %v10007_v61  ;;  %v4908_v61 = vld [vmem:[#allocation15 + $0xe38] sm:$0xff] }
 0x5f0   :  { %v10055_v40 = vcombine.high %v4904_v57, %v4908_v61 }
 0x5f1   :  { %8164 = vmatpush1.bf16.msra.mxu0 %v9950_v11  ;;  %v10046_v11 = vcombine.low %v4896_v48, %v4900_v31 }
 0x5f2   :  { %8187 = vmatpush1.bf16.msra.mxu1 %v10006_v14  ;;  %8165 = vmatprep.subr.bf16.mxu0 %v9959_v50  ;;  %v10326_v14 = vld [vmem:[#allocation21 + $0x14] ss:$8 sps:$4 sm:$0xff]  }
 0x5f3   :  { %8188 = vmatprep.subr.bf16.mxu1 %v10015_v19 }
 0x5f5   :  { %8166 = vmatpush1.bf16.msra.mxu0 %v9958_v25 }
 0x5f6   :  { %8189 = vmatpush1.bf16.msra.mxu1 %v10014_v21  ;;  %8167 = vmatprep.subr.bf16.mxu0 %v9967_v17  ;;  %v10324_v21 = vld [vmem:[#allocation21 + $0x10] ss:$8 sps:$4 sm:$0xff]   ;;  %v10054_v17 = vcombine.low %v4904_v57, %v4908_v61 }
 0x5f7   :  { %8190 = vmatprep.subr.bf16.mxu1 %v10023_v12  ;;  %v10329_v12 = vld [vmem:[#allocation21 + $0x24] ss:$8 sps:$4 sm:$0xff]   ;;  %v10336_v61 = vld [vmem:[#allocation21 + $0x50] ss:$8 sps:$4 sm:$0xff]  }
 0x5f9   :  { %8168 = vmatpush1.bf16.msra.mxu0 %v9966_v32  ;;  %v10062_v32 = vcombine.low %v4912_v62, %v4916_v20  ;;  %v10339_v62 = vld [vmem:[#allocation21 + $0x60] ss:$8 sps:$4 sm:$0xff]  }
 0x5fa   :  { %8191 = vmatpush1.bf16.msra.mxu1 %v10022_v41  ;;  %8169 = vmatprep.subr.bf16.mxu0 %v9975_v58  ;;  %v10071_v41 = vcombine.high %v4920_v2, %v4924_v27  ;;  %v4928_v58 = vld [vmem:[#allocation15 + $0xed8] sm:$0xff]  ;;  %v10342_v2 = vld [vmem:[#allocation21 + $0x70] ss:$8 sps:$4 sm:$0xff]  }
 0x5fb   :  { %v7888_v46 = vpop.f32.mrb[28].mxu1  ;;  %8192 = vmatprep.subr.bf16.mxu1 %v10031_v28  ;;  %v4932_v28 = vld [vmem:[#allocation15 + $0xef8] sm:$0xff] }
 0x5fc   :  { %v11515_v49 = vadd.f32 %v7888_v46, %v4978_v38  ;;  %v7890_v15 = vpop.f32.mrb[29].mxu1  ;;  %v10335_v38 = vld [vmem:[#allocation21 + $0x44] ss:$8 sps:$4 sm:$0xff]   ;;  %v10079_v7 = vcombine.high %v4928_v58, %v4932_v28 }
 0x5fd   :  { %v11517_v63 = vadd.f32 %v7890_v15, %v4982_v45  ;;  %8170 = vmatpush1.bf16.msra.mxu0 %v9974_v60  ;;  %v7892_v51 = vpop.f32.mrb[30].mxu1  ;;  %v4936_v60 = vld [vmem:[#allocation15 + $0xf18] sm:$0xff] }
 0x5fe   :  { %v8229_v36 = vmul.f32 0.044715, %v11515_v49  ;;  %8193 = vmatpush1.bf16.msra.mxu1 %v10030_v4  ;;  %v7893_v35 = vpop.f32.mrb[31].mxu1  ;;  %8171 = vmatprep.subr.bf16.mxu0 %v9983_v54  ;;  %v8225_v10 = vmul.f32 0.7978846, %v11515_v49  ;;  %v4940_v45 = vld [vmem:[#allocation15 + $0xf38] sm:$0xff]  ;;  %v10078_v51 = vcombine.low %v4928_v58, %v4932_v28 }
 0x5ff   :  { %v8230_v53 = vmul.f32 0.044715, %v11517_v63  ;;  %8194 = vmatprep.subr.bf16.mxu1 %v10039_v47  ;;  %v8226_v50 = vmul.f32 0.7978846, %v11517_v63  ;;  %v11526_v4 = vld [vmem:[#allocation18] sm:$0xf] }
 0x600   :  { %v8233_v18 = vmul.f32 %v11515_v49, %v8229_v36  ;;  %v8245_v46 = vmul.f32 0.5, %v11515_v49  ;;  %v10333_v47 = vld [vmem:[#allocation21 + $0x40] ss:$8 sps:$4 sm:$0xff]   ;;  %v8272_v48 = vrot.slane %v11526_v4, %v11229_v30  ;;  %v8246_v31 = vmul.f32 0.5, %v11517_v63  ;;  %v11532_v36 = vld [vmem:[#allocation20] sm:$0xf] }
 0x601   :  { %v8234_v0 = vmul.f32 %v11517_v63, %v8230_v53  ;;  %8172 = vmatpush1.bf16.msra.mxu0 %v9982_v44  ;;  %v10338_v44 = vld [vmem:[#allocation21 + $0x54] ss:$8 sps:$4 sm:$0xff]   ;;  %v10087_v49 = vcombine.high %v4936_v60, %v4940_v45  ;;  %v8298_v53 = vrot.slane %v11532_v36, %v11229_v30  ;;  %v8302_v63 = vrot.slane %v11532_v36, %v11232_v33  ;;  %v10348_v28 = vld [vmem:[#allocation21 + $0x90] ss:$8 sps:$4 sm:$0xff]  }
 0x602   :  { %v8237_v5 = vadd.f32 1.0, %v8233_v18  ;;  %8195 = vmatpush1.bf16.msra.mxu1 %v10038_v42  ;;  %8715 = vmatprep.subr.bf16.mxu0 %v10323_v9  ;;  %v8276_v42 = vrot.slane %v11526_v4, %v11232_v33  ;;  %v4948_v18 = vld [vmem:[#allocation15 + $0xf78] sm:$0xff]  ;;  %v10350_v58 = vld [vmem:[#allocation21 + $0x94] ss:$8 sps:$4 sm:$0xff]  }
 0x603   :  { %v8238_v19 = vadd.f32 1.0, %v8234_v0  ;;  %8196 = vmatprep.subr.bf16.mxu1 %v10047_v37  ;;  %v4944_v37 = vld [vmem:[#allocation15 + $0xf58] sm:$0xff] }
 0x604   :  { %v8241_v3 = vmul.f32 %v8237_v5, %v8225_v10  ;;  %8174 = vmatmul.mubr.bf16.vlgmr.msra.gmra.mrb[48].mxu0 %v11445_v8  ;;  %v10332_v8 = vld [vmem:[#allocation21 + $0x34] ss:$8 sps:$4 sm:$0xff]   ;;  %v10341_v10 = vld [vmem:[#allocation21 + $0x64] ss:$8 sps:$4 sm:$0xff]  }
 0x605   :  { %v8242_v25 = vmul.f32 %v8238_v19, %v8226_v50  ;;  %8716 = vmatpush1.bf16.msra.mxu0 %v10321_v16  ;;  %v10086_v16 = vcombine.low %v4936_v60, %v4940_v45  ;;  %v4952_v19 = vld [vmem:[#allocation15 + $0xf98] sm:$0xff]  ;;  %v10362_v45 = vld [vmem:[#allocation21 + $0xd4] ss:$8 sps:$4 sm:$0xff]  }
 0x606   :  { %10457 = vtanh.f32 %v8241_v3  ;;  %8197 = vmatpush1.bf16.msra.mxu1 %v10046_v11  ;;  %8717 = vmatprep.subr.bf16.mxu0 %v10326_v14  ;;  %v10095_v14 = vcombine.high %v4944_v37, %v4948_v18  ;;  %v10357_v60 = vld [vmem:[#allocation21 + $0xc0] ss:$8 sps:$4 sm:$0xff]  }
 0x607   :  { %10459 = vtanh.f32 %v8242_v25  ;;  %8198 = vmatprep.subr.bf16.mxu1 %v10055_v40  ;;  %v4956_v40 = vld [vmem:[#allocation15 + $0xfb8] sm:$0xff]  ;;  %v10094_v25 = vcombine.low %v4944_v37, %v4948_v18  ;;  %v4974_v18 = vrot.slane %v11509_v6, %v11224_v24 }
 0x608   :  { %v10102_v27 = vcombine.low %v4952_v19, %v4956_v40 }
 0x609   :  { %8718 = vmatpush1.bf16.msra.mxu0 %v10324_v21  ;;  %v10344_v21 = vld [vmem:[#allocation21 + $0x74] ss:$8 sps:$4 sm:$0xff]  }
 0x60a   :  { %8199 = vmatpush1.bf16.msra.mxu1 %v10054_v17  ;;  %8719 = vmatprep.subr.bf16.mxu0 %v10329_v12  ;;  %v10103_v17 = vcombine.high %v4952_v19, %v4956_v40  ;;  %v4960_v12 = vld [vmem:[#allocation15 + $0xfd8] sm:$0xff] }
 0x60b   :  { %8200 = vmatprep.subr.bf16.mxu1 %v10063_v59  ;;  %v4964_v59 = vld [vmem:[#allocation15 + $0xff8] sm:$0xff] }
 0x60d   :  { %8720 = vmatpush1.bf16.msra.mxu0 %v10327_v29  ;;  %v10347_v29 = vld [vmem:[#allocation21 + $0x84] ss:$8 sps:$4 sm:$0xff]  }
 0x60e   :  { %8201 = vmatpush1.bf16.msra.mxu1 %v10062_v32  ;;  %8721 = vmatprep.subr.bf16.mxu0 %v10332_v8  ;;  %v10111_v32 = vcombine.high %v4960_v12, %v4964_v59  ;;  %v10345_v8 = vld [vmem:[#allocation21 + $0x80] ss:$8 sps:$4 sm:$0xff]  }
 0x60f   :  { %8202 = vmatprep.subr.bf16.mxu1 %v10071_v41  ;;  %v10110_v41 = vcombine.low %v4960_v12, %v4964_v59 }
 0x610   :  { %v10458_v43 = vpop.eup %10457 }
 0x611   :  { %v10460_v54 = vpop.eup %10459  ;;  %8722 = vmatpush1.bf16.msra.mxu0 %v10330_v13  ;;  %v8253_v15 = vadd.f32 1.0, %v10458_v43  ;;  %v10353_v13 = vld [vmem:[#allocation21 + $0xa4] ss:$8 sps:$4 sm:$0xff]  }
 0x612   :  { %8203 = vmatpush1.bf16.msra.mxu1 %v10070_v34  ;;  %8723 = vmatprep.subr.bf16.mxu0 %v10335_v38  ;;  %v8254_v35 = vadd.f32 1.0, %v10460_v54  ;;  %v10351_v34 = vld [vmem:[#allocation21 + $0xa0] ss:$8 sps:$4 sm:$0xff]   ;;  %v10356_v38 = vld [vmem:[#allocation21 + $0xb4] ss:$8 sps:$4 sm:$0xff]  }
 0x613   :  { %8204 = vmatprep.subr.bf16.mxu1 %v10079_v7  ;;  %v8257_v9 = vmul.f32 %v8253_v15, %v8245_v46  ;;  %v10354_v7 = vld [vmem:[#allocation21 + $0xb0] ss:$8 sps:$4 sm:$0xff]   ;;  %v10359_v43 = vld [vmem:[#allocation21 + $0xc4] ss:$8 sps:$4 sm:$0xff]   ;;  %v10363_v15 = vld [vmem:[#allocation21 + $0xe0] ss:$8 sps:$4 sm:$0xff]  }
 0x614   :  { %v8258_v57 = vmul.f32 %v8254_v35, %v8246_v31  ;;  %v10360_v54 = vld [vmem:[#allocation21 + $0xd0] ss:$8 sps:$4 sm:$0xff]   ;;  %v10365_v46 = vld [vmem:[#allocation21 + $0xe4] ss:$8 sps:$4 sm:$0xff]  }
 0x615   :  { %8724 = vmatpush1.bf16.msra.mxu0 %v10333_v47  ;;  %v8283_v0 = vmul.f32 %v8272_v48, %v8257_v9  ;;  %v4986_v47 = vrot.slane %v11509_v6, %v11405_v56  ;;  %v10368_v48 = vld [vmem:[#allocation21 + $0xf4] ss:$8 sps:$4 sm:$0xff]   ;;  %v10371_v56 = vld [vmem:[#allocation21 + $0x104] ss:$8 sps:$4 sm:$0xff]  }
 0x616   :  { %8205 = vmatpush1.bf16.msra.mxu1 %v10078_v51  ;;  %8725 = vmatprep.subr.bf16.mxu0 %v10338_v44  ;;  %v8284_v5 = vmul.f32 %v8276_v42, %v8258_v57 }
 0x617   :  { %v11540_v11 = vpop.f32.mrb[36].mxu0  ;;  %8206 = vmatprep.subr.bf16.mxu1 %v10087_v49  ;;  %v11542_v50 = vadd.f32 %v8298_v53, %v8283_v0  ;;  %v10366_v49 = vld [vmem:[#allocation21 + $0xf0] ss:$8 sps:$4 sm:$0xff]  }
 0x618   :  { %v7931_v30 = vpop.f32.mrb[37].mxu0  ;;  %v11544_v3 = vadd.f32 %v8302_v63, %v8284_v5  ;;  %v7930_v31 = vadd.f32 %v11540_v11, %v4986_v47  ;;  %v10234_v63 = vadd.f32 %v11505_v23, %v4974_v18  ;;  %v10384_v18 = vld [vmem:[#allocation21 + $0x150] ss:$8 sps:$4 sm:$0xff]  }
 0x619   :  { %v7933_v33 = vpop.f32.mrb[38].mxu0  ;;  %8726 = vmatpush1.bf16.msra.mxu0 %v10336_v61 }
 0x61a   :  { %v7934_v20 = vpop.f32.mrb[39].mxu0  ;;  %8207 = vmatpush1.bf16.msra.mxu1 %v10086_v16  ;;  %8727 = vmatprep.subr.bf16.mxu0 %v10341_v10  ;;  %v8228_v0 = vmul.f32 0.044715, %v10234_v63 }
 0x61b   :  { %8208 = vmatprep.subr.bf16.mxu1 %v10095_v14 }
 0x61c   :  { %v8232_v14 = vmul.f32 %v10234_v63, %v8228_v0 }
 0x61d   :  { %8728 = vmatpush1.bf16.msra.mxu0 %v10339_v62 }
 0x61e   :  { %8209 = vmatpush1.bf16.msra.mxu1 %v10094_v25  ;;  %8729 = vmatprep.subr.bf16.mxu0 %v10344_v21  ;;  %v8236_v62 = vadd.f32 1.0, %v8232_v14  ;;  %v8224_v25 = vmul.f32 0.7978846, %v10234_v63  ;;  %v10395_v14 = vld [vmem:[#allocation21 + $0x184] ss:$8 sps:$4 sm:$0xff]  }
 0x61f   :  { %8210 = vmatprep.subr.bf16.mxu1 %v10103_v17 }
 0x620   :  { %v8240_v17 = vmul.f32 %v8236_v62, %v8224_v25  ;;  %v10399_v62 = vld [vmem:[#allocation21 + $0x1a0] ss:$8 sps:$4 sm:$0xff]   ;;  %v10402_v25 = vld [vmem:[#allocation21 + $0x1b0] ss:$8 sps:$4 sm:$0xff]  }
 0x621   :  { %8730 = vmatpush1.bf16.msra.mxu0 %v10342_v2 }
 0x622   :  { %8211 = vmatpush1.bf16.msra.mxu1 %v10102_v27  ;;  %8731 = vmatprep.subr.bf16.mxu0 %v10347_v29  ;;  %v8244_v27 = vmul.f32 0.5, %v10234_v63  ;;  %v10389_v63 = vld [vmem:[#allocation21 + $0x164] ss:$8 sps:$4 sm:$0xff]  }
 0x623   :  { %8212 = vmatprep.subr.bf16.mxu1 %v10111_v32  ;;  %v8264_v32 = vrot.slane %v11526_v4, %v11221_v22 }
 0x625   :  { %8732 = vmatpush1.bf16.msra.mxu0 %v10345_v8 }
 0x626   :  { %8213 = vmatpush1.bf16.msra.mxu1 %v10110_v41  ;;  %8733 = vmatprep.subr.bf16.mxu0 %v10350_v58  ;;  %v8268_v41 = vrot.slane %v11526_v4, %v11224_v24  ;;  %v10369_v4 = vld [vmem:[#allocation21 + $0x100] ss:$8 sps:$4 sm:$0xff]  }
 0x629   :  { %8215 = vmatmul.mubr.bf16.vlgmr.msra.gmra.mrb[44].mxu1 %v11485_v26  ;;  %8734 = vmatpush1.bf16.msra.mxu0 %v10348_v28  ;;  %v4990_v26 = vrot.slane %v11509_v6, %v11408_v1  ;;  %v4970_v1 = vrot.slane %v11509_v6, %v11221_v22  ;;  %v8290_v28 = vrot.slane %v11532_v36, %v11221_v22 }
 0x62a   :  { %8735 = vmatprep.subr.bf16.mxu0 %v10353_v13 }
 0x62b   :  { %v7932_v51 = vadd.f32 %v7931_v30, %v4990_v26  ;;  %v10233_v57 = vadd.f32 %v11503_v52, %v4970_v1  ;;  %v10386_v1 = vld [vmem:[#allocation21 + $0x154] ss:$8 sps:$4 sm:$0xff]  }
 0x62d   :  { %8736 = vmatpush1.bf16.msra.mxu0 %v10351_v34  ;;  %v8227_v61 = vmul.f32 0.044715, %v10233_v57  ;;  %v8223_v20 = vmul.f32 0.7978846, %v10233_v57  ;;  %v8243_v2 = vmul.f32 0.5, %v10233_v57  ;;  %v8294_v34 = vrot.slane %v11532_v36, %v11224_v24 }
 0x62e   :  { %8737 = vmatprep.subr.bf16.mxu0 %v10356_v38  ;;  %v10372_v36 = vld [vmem:[#allocation21 + $0x110] ss:$8 sps:$4 sm:$0xff]  }
 0x62f   :  { %v8231_v10 = vmul.f32 %v10233_v57, %v8227_v61 }
 0x631   :  { %8738 = vmatpush1.bf16.msra.mxu0 %v10354_v7  ;;  %v8235_v33 = vadd.f32 1.0, %v8231_v10  ;;  %v10387_v10 = vld [vmem:[#allocation21 + $0x160] ss:$8 sps:$4 sm:$0xff]  }
 0x632   :  { %8739 = vmatprep.subr.bf16.mxu0 %v10359_v43 }
 0x633   :  { %v8239_v21 = vmul.f32 %v8235_v33, %v8223_v20  ;;  %v10401_v33 = vld [vmem:[#allocation21 + $0x1a4] ss:$8 sps:$4 sm:$0xff]   ;;  %v10404_v20 = vld [vmem:[#allocation21 + $0x1b4] ss:$8 sps:$4 sm:$0xff]  }
 0x635   :  { %8740 = vmatpush1.bf16.msra.mxu0 %v10357_v60  ;;  %10461 = vtanh.f32 %v8239_v21  ;;  %v10407_v21 = vld [vmem:[#allocation21 + $0x1c4] ss:$8 sps:$4 sm:$0xff]  }
 0x636   :  { %8741 = vmatprep.subr.bf16.mxu0 %v10362_v45  ;;  %10463 = vtanh.f32 %v8240_v17  ;;  %v10405_v17 = vld [vmem:[#allocation21 + $0x1c0] ss:$8 sps:$4 sm:$0xff]  }
 0x639   :  { %8742 = vmatpush1.bf16.msra.mxu0 %v10360_v54 }
 0x63a   :  { %8743 = vmatprep.subr.bf16.mxu0 %v10365_v46 }
 0x63c   :  { %v7970_v44 = vpop.f32.mrb[32].mxu1 }
 0x63d   :  { %v7971_v35 = vadd.f32 %v7970_v44, %v7930_v31  ;;  %v7972_v42 = vpop.f32.mrb[33].mxu1  ;;  %8744 = vmatpush1.bf16.msra.mxu0 %v10363_v15  ;;  %v10417_v44 = vld [vmem:[#allocation24 + $0x40] sm:$0xff]  }
 0x63e   :  { %v7973_v9 = vadd.f32 %v7972_v42, %v7932_v51  ;;  %v7974_v53 = vpop.f32.mrb[34].mxu1  ;;  %8745 = vmatprep.subr.bf16.mxu0 %v10368_v48  ;;  %v10374_v51 = vld [vmem:[#allocation21 + $0x114] ss:$8 sps:$4 sm:$0xff]   ;;  %v10377_v42 = vld [vmem:[#allocation21 + $0x124] ss:$8 sps:$4 sm:$0xff]   ;;  %10193 = vmatprep.subr.bf16.mxu1 %v10417_v44 }
 0x63f   :  { %v7975_v37 = vpop.f32.mrb[35].mxu1  ;;  %v10462_v52 = vpop.eup %10461  ;;  %v10378_v53 = vld [vmem:[#allocation21 + $0x130] ss:$8 sps:$4 sm:$0xff]  }
 0x640   :  { %v10464_v23 = vpop.eup %10463  ;;  %v8251_v12 = vadd.f32 1.0, %v10462_v52  ;;  %v10383_v37 = vld [vmem:[#allocation21 + $0x144] ss:$8 sps:$4 sm:$0xff]   ;;  %v10410_v52 = vld [vmem:[#allocation21 + $0x1d4] ss:$8 sps:$4 sm:$0xff]  }
 0x641   :  { %8746 = vmatpush1.bf16.msra.mxu0 %v10366_v49  ;;  %v8252_v59 = vadd.f32 1.0, %v10464_v23  ;;  %v10375_v49 = vld [vmem:[#allocation21 + $0x120] ss:$8 sps:$4 sm:$0xff]   ;;  %v10408_v23 = vld [vmem:[#allocation21 + $0x1d0] ss:$8 sps:$4 sm:$0xff]  }
 0x642   :  { %8756 = vmatprep.subr.bf16.mxu0 %v10371_v56  ;;  %v8255_v29 = vmul.f32 %v8251_v12, %v8243_v2  ;;  %v10381_v56 = vld [vmem:[#allocation21 + $0x140] ss:$8 sps:$4 sm:$0xff]   ;;  %v4994_v12 = vrot.slane %v11509_v6, %v11451_v55  ;;  %v4998_v2 = vrot.slane %v11509_v6, %v11454_v39 }
 0x643   :  { %v8256_v8 = vmul.f32 %v8252_v59, %v8244_v27  ;;  %v10413_v59 = vld [vmem:[#allocation21 + $0x1e4] ss:$8 sps:$4 sm:$0xff]   ;;  %v10411_v27 = vld [vmem:[#allocation21 + $0x1e0] ss:$8 sps:$4 sm:$0xff]  }
 0x644   :  { %v8281_v58 = vmul.f32 %v8264_v32, %v8255_v29  ;;  %v10416_v32 = vld [vmem:[#allocation21 + $0x1f4] ss:$8 sps:$4 sm:$0xff]  }
 0x645   :  { %v8282_v13 = vmul.f32 %v8268_v41, %v8256_v8 }
 0x646   :  { %v8307_v43 = vadd.f32 %v8290_v28, %v8281_v58 }
 0x647   :  { %v8308_v54 = vadd.f32 %v8294_v34, %v8282_v13 }
 0x657   :  { %v8011_v16 = vpop.f32.mrb[40].mxu0 }
 0x658   :  { %v8012_v5 = vadd.f32 %v8011_v16, %v7971_v35  ;;  %v8013_v11 = vpop.f32.mrb[41].mxu0  ;;  %v10418_v35 = vld [vmem:[#allocation24] sm:$0xff]  }
 0x659   :  { %v8014_v30 = vadd.f32 %v8013_v11, %v7973_v9  ;;  %v8015_v19 = vpop.f32.mrb[42].mxu0  ;;  %10194 = vmatpush3.bf16.msra.mxu1 %v10418_v35  ;;  %v10380_v9 = vld [vmem:[#allocation21 + $0x134] ss:$8 sps:$4 sm:$0xff]   ;;  %v10390_v11 = vld [vmem:[#allocation21 + $0x170] ss:$8 sps:$4 sm:$0xff]  }
 0x65a   :  { %v8016_v40 = vpop.f32.mrb[43].mxu0  ;;  %v10398_v19 = vld [vmem:[#allocation21 + $0x194] ss:$8 sps:$4 sm:$0xff]   ;;  %v10419_v35 = vld [vmem:[#allocation24 + $0x48] sm:$0xff]  }
 0x65b   :  { %v10396_v40 = vld [vmem:[#allocation21 + $0x190] ss:$8 sps:$4 sm:$0xff]   ;;  %10195 = vmatprep.subr.bf16.mxu1 %v10419_v35 }
 0x67c   :  { %v8052_v38 = vpop.f32.mrb[36].mxu1 }
 0x67d   :  { %v8053_v7 = vadd.f32 %v8052_v38, %v8012_v5  ;;  %v8054_v60 = vpop.f32.mrb[37].mxu1  ;;  %v10392_v5 = vld [vmem:[#allocation21 + $0x174] ss:$8 sps:$4 sm:$0xff]   ;;  %v10414_v38 = vld [vmem:[#allocation21 + $0x1f0] ss:$8 sps:$4 sm:$0xff]  }
 0x67e   :  { %v8055_v45 = vadd.f32 %v8054_v60, %v8014_v30  ;;  %v8056_v46 = vpop.f32.mrb[38].mxu1  ;;  %v10393_v30 = vld [vmem:[#allocation21 + $0x180] ss:$8 sps:$4 sm:$0xff]  }
 0x67f   :  { %v8311_v47 = vadd.f32 %v8307_v43, %v8053_v7  ;;  %v8057_v26 = vpop.f32.mrb[39].mxu1 }
 0x680   :  { %v8312_v15 = vadd.f32 %v8308_v54, %v8055_v45 }
 0x681   :  { %v8315_v31 = vpack.c.bf16 %v8311_v47, %v8311_v47 }
 0x682   :  { %v8316_v48 = vpack.c.bf16 %v8312_v15, %v8312_v15 }
 0x684   :  { %8747 = vmatprep.mubr.bf16.mxu0 %v8316_v48 }
 0x685   :  { %8748 = vmatmul.mubr.bf16.vlgmr.msra.gmra.mrb[52].mxu0 %v8315_v31 }
 0x686   :  { %8757 = vmatpush1.bf16.msra.mxu0 %v10369_v4 }
 0x687   :  { %8758 = vmatprep.subr.bf16.mxu0 %v10374_v51 }
 0x68a   :  { %8759 = vmatpush1.bf16.msra.mxu0 %v10372_v36  ;;  %v10420_v36 = vld [vmem:[#allocation24 + $0x8] sm:$0xff]  }
 0x68b   :  { %8760 = vmatprep.subr.bf16.mxu0 %v10377_v42  ;;  %10196 = vmatpush3.bf16.msra.mxu1 %v10420_v36  ;;  %v10421_v42 = vld [vmem:[#allocation24 + $0x50] sm:$0xff]  }
 0x68c   :  { %10197 = vmatprep.subr.bf16.mxu1 %v10421_v42 }
 0x68e   :  { %8761 = vmatpush1.bf16.msra.mxu0 %v10375_v49  ;;  %v10422_v49 = vld [vmem:[#allocation24 + $0x10] sm:$0xff]  }
 0x68f   :  { %8762 = vmatprep.subr.bf16.mxu0 %v10380_v9  ;;  %10198 = vmatpush3.bf16.msra.mxu1 %v10422_v49  ;;  %v10423_v9 = vld [vmem:[#allocation24 + $0x58] sm:$0xff]  }
 0x690   :  { %10199 = vmatprep.subr.bf16.mxu1 %v10423_v9 }
 0x692   :  { %8763 = vmatpush1.bf16.msra.mxu0 %v10378_v53  ;;  %v10424_v53 = vld [vmem:[#allocation24 + $0x18] sm:$0xff]  }
 0x693   :  { %8764 = vmatprep.subr.bf16.mxu0 %v10383_v37  ;;  %10200 = vmatpush3.bf16.msra.mxu1 %v10424_v53  ;;  %v10426_v37 = vld [vmem:[#allocation24 + $0x20] sm:$0xff]  }
 0x696   :  { %8765 = vmatpush1.bf16.msra.mxu0 %v10381_v56  ;;  %v10427_v56 = vld [vmem:[#allocation24 + $0x68] sm:$0xff]  }
 0x697   :  { %v8093_v57 = vpop.f32.mrb[44].mxu0  ;;  %8766 = vmatprep.subr.bf16.mxu0 %v10386_v1  ;;  %v10429_v1 = vld [vmem:[#allocation24 + $0x70] sm:$0xff]  }
 0x698   :  { %v8095_v61 = vpop.f32.mrb[45].mxu0  ;;  %v8094_v29 = vadd.f32 %v8093_v57, %v4994_v12  ;;  %v10431_v57 = vld [vmem:[#allocation24 + $0x78] sm:$0xff]  }
 0x699   :  { %v8097_v0 = vpop.f32.mrb[46].mxu0  ;;  %v8096_v8 = vadd.f32 %v8095_v61, %v4998_v2  ;;  %v8383_v61 = vld [vmem:[#allocation23] sm:$0x3] }
 0x69a   :  { %v8098_v16 = vpop.f32.mrb[47].mxu0  ;;  %8767 = vmatpush1.bf16.msra.mxu0 %v10384_v18  ;;  %v10430_v18 = vld [vmem:[#allocation24 + $0x30] sm:$0xff]   ;;  %v8388_v0 = vrot.slane %v8383_v61, %v11221_v22 }
 0x69b   :  { %8768 = vmatprep.subr.bf16.mxu0 %v10389_v63  ;;  %v10432_v63 = vld [vmem:[#allocation24 + $0x38] sm:$0xff]   ;;  %v8392_v16 = vrot.slane %v8383_v61, %v11224_v24 }
 0x69e   :  { %8769 = vmatpush1.bf16.msra.mxu0 %v10387_v10 }
 0x69f   :  { %8770 = vmatprep.subr.bf16.mxu0 %v10392_v5 }
 0x6a2   :  { %8771 = vmatpush1.bf16.msra.mxu0 %v10390_v11 }
 0x6a3   :  { %8772 = vmatprep.subr.bf16.mxu0 %v10395_v14 }
 0x6a6   :  { %8773 = vmatpush1.bf16.msra.mxu0 %v10393_v30 }
 0x6a7   :  { %8774 = vmatprep.subr.bf16.mxu0 %v10398_v19 }
 0x6aa   :  { %8775 = vmatpush1.bf16.msra.mxu0 %v10396_v40 }
 0x6ab   :  { %8776 = vmatprep.subr.bf16.mxu0 %v10401_v33 }
 0x6ae   :  { %8777 = vmatpush1.bf16.msra.mxu0 %v10399_v62 }
 0x6af   :  { %8778 = vmatprep.subr.bf16.mxu0 %v10404_v20 }
 0x6b2   :  { %8779 = vmatpush1.bf16.msra.mxu0 %v10402_v25 }
 0x6b3   :  { %8780 = vmatprep.subr.bf16.mxu0 %v10407_v21 }
 0x6b6   :  { %8781 = vmatpush1.bf16.msra.mxu0 %v10405_v17 }
 0x6b7   :  { %8782 = vmatprep.subr.bf16.mxu0 %v10410_v52 }
 0x6ba   :  { %8783 = vmatpush1.bf16.msra.mxu0 %v10408_v23 }
 0x6bb   :  { %8784 = vmatprep.subr.bf16.mxu0 %v10413_v59 }
 0x6bc   :  { %v8134_v41 = vpop.f32.mrb[40].mxu1 }
 0x6bd   :  { %v8135_v58 = vadd.f32 %v8134_v41, %v8094_v29  ;;  %v8136_v28 = vpop.f32.mrb[41].mxu1 }
 0x6be   :  { %v8137_v13 = vadd.f32 %v8136_v28, %v8096_v8  ;;  %v8138_v34 = vpop.f32.mrb[42].mxu1  ;;  %8785 = vmatpush1.bf16.msra.mxu0 %v10411_v27 }
 0x6bf   :  { %v8139_v7 = vpop.f32.mrb[43].mxu1  ;;  %8786 = vmatprep.subr.bf16.mxu0 %v10416_v32  ;;  %v9003_v34 = vld [vmem:[#allocation2] sm:$0x1] }
 0x6c0   :  { %9006 = vperm.xlu0 %10308, %v9003_v34   ;;  %v10176_v7 = vld [vmem:[#allocation26] ss:$0 sm:$0xff] }
 0x6c2   :  { %8787 = vmatpush1.bf16.msra.mxu0 %v10414_v38 }
 0x6d7   :  { %v8175_v55 = vpop.f32.mrb[48].mxu0 }
 0x6d8   :  { %v8176_v43 = vadd.f32 %v8175_v55, %v8135_v58  ;;  %v8177_v60 = vpop.f32.mrb[49].mxu0 }
 0x6d9   :  { %v8178_v39 = vadd.f32 %v8177_v60, %v8137_v13  ;;  %v8179_v6 = vpop.f32.mrb[50].mxu0  ;;  %v10895_v13 = vmov 0.0  }
 0x6da   :  { %v8180_v45 = vpop.f32.mrb[51].mxu0  ;;  %10217 = vmatprep.subr.bf16.mxu0 %v10895_v13 }
 0x6fc   :  { %v8216_v54 = vpop.f32.mrb[44].mxu1 }
 0x6fd   :  { %v8217_v46 = vadd.f32 %v8216_v54, %v8176_v43  ;;  %v8218_v47 = vpop.f32.mrb[45].mxu1 }
 0x6fe   :  { %v8219_v26 = vadd.f32 %v8218_v47, %v8178_v39  ;;  %v8220_v15 = vpop.f32.mrb[46].mxu1 }
 0x6ff   :  { %v8313_v48 = vadd.f32 %v11542_v50, %v8217_v46  ;;  %v8221_v4 = vpop.f32.mrb[47].mxu1  ;;  %v10425_v50 = vld [vmem:[#allocation24 + $0x60] sm:$0xff]  }
 0x700   :  { %v8314_v31 = vadd.f32 %v11544_v3, %v8219_v26  ;;  %10201 = vmatprep.subr.bf16.mxu1 %v10425_v50  ;;  %v10428_v3 = vld [vmem:[#allocation24 + $0x28] sm:$0xff]  }
 0x701   :  { %v8317_v44 = vpack.c.bf16 %v8313_v48, %v8313_v48  ;;  %10202 = vmatpush3.bf16.msra.mxu1 %v10426_v37 }
 0x702   :  { %v8318_v51 = vpack.c.bf16 %v8314_v31, %v8314_v31  ;;  %10203 = vmatprep.subr.bf16.mxu1 %v10427_v56 }
 0x704   :  { %8788 = vmatprep.mubr.bf16.mxu0 %v8318_v51 }
 0x705   :  { %8789 = vmatmul.mubr.bf16.vlgmr.msra.gmra.mrb[52].mxu0 %v8317_v44  ;;  %10204 = vmatpush3.bf16.msra.mxu1 %v10428_v3  ;;  %v9002_v44 = vld [vmem:[#allocation27] sm:$0x1] }
 0x706   :  { %10205 = vmatprep.subr.bf16.mxu1 %v10429_v1  ;;  %10219 = vmatprep.mubr.msk.bf16.mxu0 %vm10896_vm1, %v10895_v13 }
 0x709   :  { %10206 = vmatpush3.bf16.msra.mxu1 %v10430_v18 }
 0x70a   :  { %10207 = vmatprep.subr.bf16.mxu1 %v10431_v57 }
 0x70d   :  { %10208 = vmatpush3.bf16.msra.mxu1 %v10432_v63 }
 0x73f   :  { %v9007_v35 = vpop.permute.xlu0 %9006 }
 0x740   :  { %v9012_v36 = vrot.slane %v9007_v35, %v11221_v22 }
 0x7d8   :  { %v8790_v10 = vpop.f32.mrb[52].mxu0 }
 0x7d9   :  { %v10237_v5 = vadd.f32 %v8790_v10, %v8388_v0  ;;  %v8792_v11 = vpop.f32.mrb[53].mxu0 }
 0x7da   :  { %v10238_v14 = vadd.f32 %v8792_v11, %v8392_v16  ;;  %v8794_v30 = vpop.f32.mrb[54].mxu0 }
 0x7db   :  { %v8799_v19 = vmul.f32 0.044715, %v10237_v5  ;;  %v8795_v40 = vpop.f32.mrb[55].mxu0  ;;  %v8797_v25 = vmul.f32 0.7978846, %v10237_v5  ;;  %v8807_v2 = vmul.f32 0.5, %v10237_v5 }
 0x7dc   :  { %v8800_v33 = vmul.f32 0.044715, %v10238_v14  ;;  %v8798_v17 = vmul.f32 0.7978846, %v10238_v14  ;;  %v8808_v29 = vmul.f32 0.5, %v10238_v14 }
 0x7dd   :  { %v8801_v62 = vmul.f32 %v10237_v5, %v8799_v19 }
 0x7de   :  { %v8802_v20 = vmul.f32 %v10238_v14, %v8800_v33 }
 0x7df   :  { %v8803_v21 = vadd.f32 1.0, %v8801_v62 }
 0x7e0   :  { %v8804_v52 = vadd.f32 1.0, %v8802_v20 }
 0x7e1   :  { %v8805_v23 = vmul.f32 %v8803_v21, %v8797_v25 }
 0x7e2   :  { %v8806_v12 = vmul.f32 %v8804_v52, %v8798_v17 }
 0x7e3   :  { %10465 = vtanh.f32 %v8805_v23 }
 0x7e4   :  { %10467 = vtanh.f32 %v8806_v12 }
 0x7ed   :  { %v10466_v59 = vpop.eup %10465 }
 0x7ee   :  { %v10468_v24 = vpop.eup %10467  ;;  %v8811_v27 = vadd.f32 1.0, %v10466_v59 }
 0x7ef   :  { %v8812_v32 = vadd.f32 1.0, %v10468_v24 }
 0x7f0   :  { %v8813_v8 = vmul.f32 %v8811_v27, %v8807_v2 }
 0x7f1   :  { %v8814_v41 = vmul.f32 %v8812_v32, %v8808_v29 }
 0x7f2   :  { %v8815_v28 = vpack.c.bf16 %v8813_v8, %v8813_v8 }
 0x7f3   :  { %v8816_v58 = vpack.c.bf16 %v8814_v41, %v8814_v41 }
 0x7f5   :  { %8984 = vmatprep.mubr.bf16.mxu1 %v8816_v58 }
 0x7f6   :  { %8985 = vmatmul.mubr.bf16.vlgmr.msra.gmra.mrb[48].mxu1 %v8815_v28 }
 0x8c9   :  { %v10209_v38 = vpop.f32.mrb[48].mxu1 }
 0x8ca   :  { %v10210_v55 = vpop.f32.mrb[49].mxu1 }
 0x8cb   :  { %v10211_v43 = vadd.f32 %v10210_v55, %v10209_v38  ;;  %v10212_v60 = vpop.f32.mrb[50].mxu1 }
 0x8cc   :  { %v10213_v39 = vpop.f32.mrb[51].mxu1 }
 0x8cd   :  { %v8987_v6 = vadd.f32 %v10211_v43, %v10176_v7 }
 0x8cf   :  { %v8993_v45 = vmul.f32 0.044715, %v8987_v6  ;;  %v8992_v46 = vmul.f32 0.7978846, %v8987_v6  ;;  %v8997_v48 = vmul.f32 0.5, %v8987_v6 }
 0x8d1   :  { %v8994_v54 = vmul.f32 %v8993_v45, %v8987_v6 }
 0x8d3   :  { %v8995_v47 = vadd.f32 1.0, %v8994_v54 }
 0x8d5   :  { %v8996_v26 = vmul.f32 %v8995_v47, %v8992_v46 }
 0x8d7   :  { %10469 = vtanh.f32 %v8996_v26 }
 0x8e1   :  { %v10470_v15 = vpop.eup %10469 }
 0x8e2   :  { %v8999_v4 = vadd.f32 1.0, %v10470_v15 }
 0x8e4   :  { %v9000_v31 = vmul.f32 %v8999_v4, %v8997_v48 }
 0x8e6   :  { %v9001_v51 = vpack.c.bf16 %v9000_v31, %v9000_v31 }
 0x8e8   :  { %10218 = vmatpush3.bf16.xpose.msra.mxu0 %v9001_v51 }
 0x8ef   :  { %10220 = vmatmul.mubr.bf16.vlgmr.msra.gmra.mrb[56].mxu0 %v9002_v44 }
 0x9c2   :  { %v9047_v42 = vpop.f32.mrb[56].mxu0 }
 0x9c3   :  { %v9048_v49 = vadd.f32 %v9047_v42, %v9012_v36  ;;  %v10221_v9 = vpop.f32.mrb[57].mxu0 }
 0x9c4   :  { %v9050_v53 = vpop.f32.mrb[58].mxu0 }
 0x9c5   :  { %v10222_v50 = vpop.f32.mrb[59].mxu0  ;;  %9054 = vst.msk [vmem:[#allocation29] sm:$0x1] %vm9053_vm2, %v9048_v49 }
 0x9c6   :  { %10838 = shalt.err (!%p10835_p6)
}
 0x9c7   :  { %s10839_s2 = scalar_lea.hbm %s11604_s17, 16 }
 0x9c8   :  { %p10840_p7 = scmp.ne.s32.totalorder %s11604_s17, %s10839_s2  ;;  %p10843_p8 = scmp.lt.u32.totalorder %s10839_s2, %s11604_s17 }
 0x9ca   :  { %p10845_p9 = pnand %p10843_p8, %p10840_p7 }
 0x9cc   :  { %10848 = shalt.err (!%p10845_p9)
}
 0x9cd   :  { %9064 = dma.vmem_to_hbm [thread:$0]  %s9062_s16, 16, %s11604_s17, [#allocation5]  }
 0x9ce   :  { %10867 = dma.done.wait [#allocation5], 16  }
 0x9cf   :  { %10868 = vsyncadd [#allocation5], 4294967280 }
 0x9d0   :  { %9068 = vsyncpa [#allocation4], 1 }
 0x9d1   :  { %9069 = vsyncpa [#allocation7], 1 }
 0x9d2   :  { %9070 = vsyncpa [#allocation10], 1 }
 0x9d3   :  { %9071 = vsyncpa [#allocation13], 1 }
 0x9d4   :  { %9072 = vsyncpa [#allocation16], 1 }
 0x9d5   :  { %9073 = vsyncpa [#allocation19], 1 }
 0x9d6   :  { %9074 = vsyncpa [#allocation22], 1 }
 0x9d7   :  { %9075 = vsyncpa [#allocation25], 1 }
 0x9d8   :  { %9076 = vsyncpa [#allocation28], 1 }
 0x9d9   :  { %9077 = vsyncpa [#allocation5], 1 }

</bundles_post_ra>
